<compile_context>
chip_gen: v6e
topology: v6e:2x2x1
jax: 0.10.0
libtpu: 0.0.40
codegen_flags: <defaults>
</compile_context>

<pallas_src>
import jax
import jax.numpy as jnp
from jax.experimental import pallas as pl
from jax.experimental.pallas import tpu as pltpu


# ----------------------------- Pallas kernels ------------------------------ #

def _conv_pool_kernel(p_ref, w_ref, b_ref, o_ref):
    # p_ref: (4, TM, K) im2col patches, leading axis = the four 2x2 pool taps.
    # w_ref: (K, N), b_ref: (1, N), o_ref: (TM, N) = pooled conv output rows.
    w = w_ref[...]
    d0 = jnp.dot(p_ref[0], w, preferred_element_type=jnp.float32)
    d1 = jnp.dot(p_ref[1], w, preferred_element_type=jnp.float32)
    d2 = jnp.dot(p_ref[2], w, preferred_element_type=jnp.float32)
    d3 = jnp.dot(p_ref[3], w, preferred_element_type=jnp.float32)
    pooled = jnp.maximum(jnp.maximum(d0, d1), jnp.maximum(d2, d3))
    # bias is pool-invariant, so adding it after the max is exact.
    o_ref[...] = (pooled + b_ref[...]).astype(o_ref.dtype)


def _fc_fused_kernel(x_ref, y_ref, w1_ref, b1_ref, w2a_ref, w2b_ref, b2_ref,
                     o_ref):
    # out = relu(x @ W1 + b1) @ W2a + y @ W2b + b2, all intermediates in VMEM.
    xb = x_ref[...].astype(jnp.bfloat16)          # bf16 MXU input, f32 accum
    h = jnp.dot(xb, w1_ref[...], preferred_element_type=jnp.float32)
    h = jnp.maximum(h + b1_ref[...], 0.0)         # (B, 512) relu(fc1); pad cols = 0
    out = jnp.dot(h, w2a_ref[...], preferred_element_type=jnp.float32)
    yv = y_ref[...]                               # (B, 2) f32
    w2b = w2b_ref[...]                            # (2, 2) f32
    out = out + yv[:, 0:1] * w2b[0:1, :] + yv[:, 1:2] * w2b[1:2, :]
    o_ref[...] = (out + b2_ref[...]).astype(o_ref.dtype)


# ------------------------------ layer wrappers ------------------------------ #

def conv_pool(x, w_mat, b_row, kh, kw, cin):
    """Fused valid-conv (stride 1) + 2x2/stride-2 maxpool.

    x: (B, H, W, C>=cin) NHWC; w_mat: (kh*kw*cin, N); b_row: (1, N).
    Returns pooled output (B, Ho//2, Wo//2, N), f32.
    """
    B, H, W, _ = x.shape
    K, N = w_mat.shape
    ho, wo = H - kh + 1, W - kw + 1
    ph, pw = ho // 2, wo // 2
    M = B * ph * pw

    # im2col (glue): K index order = (i*kw + j)*cin + c, matching w_mat rows.
    # The channel slice [:cin] also drops any lane padding of the previous layer.
    cols = [x[:, i:i + ho, j:j + wo, :cin] for i in range(kh) for j in range(kw)]
    imc = jnp.concatenate(cols, axis=-1)                    # (B, ho, wo, K)
    # Rearrange rows to (pool_tap, b, ph, pw) so the pool is a max over the
    # 4 leading row groups inside the kernel (no separate pool pass).
    pat = imc.reshape(B, ph, 2, pw, 2, K)
    pat = jnp.transpose(pat, (2, 4, 0, 1, 3, 5)).reshape(4, M, K)

    nblk = 2 if (M % 16 == 0) else 1                        # split rows across TCs
    tm = M // nblk
    out = pl.pallas_call(
        _conv_pool_kernel,
        out_shape=jax.ShapeDtypeStruct((M, N), jnp.float32),
        grid=(nblk,),
        in_specs=[
            pl.BlockSpec((4, tm, K), lambda i: (0, i, 0)),
            pl.BlockSpec((K, N), lambda i: (0, 0)),
            pl.BlockSpec((1, N), lambda i: (0, 0)),
        ],
        out_specs=pl.BlockSpec((tm, N), lambda i: (i, 0)),
        compiler_params=pltpu.CompilerParams(
            dimension_semantics=("parallel",),
            vmem_limit_bytes=32 << 20),
    )(pat, w_mat, b_row)
    return out.reshape(B, ph, pw, N)


def fc_fused(x_flat, y, w1, b1, w2a, w2b, b2):
    """Fused fc1 + ReLU + concat(y) + fc2 in a single pallas_call."""
    B, K1 = x_flat.shape
    _, N1 = w1.shape
    return pl.pallas_call(
        _fc_fused_kernel,
        out_shape=jax.ShapeDtypeStruct((B, 2), jnp.float32),
        in_specs=[
            pl.BlockSpec((B, K1), lambda: (0, 0)),
            pl.BlockSpec((B, 2), lambda: (0, 0)),
            pl.BlockSpec((K1, N1), lambda: (0, 0)),
            pl.BlockSpec((1, N1), lambda: (0, 0)),
            pl.BlockSpec((N1, 2), lambda: (0, 0)),
            pl.BlockSpec((2, 2), lambda: (0, 0)),
            pl.BlockSpec((1, 2), lambda: (0, 0)),
        ],
        out_specs=pl.BlockSpec((B, 2), lambda: (0, 0)),
        compiler_params=pltpu.CompilerParams(vmem_limit_bytes=32 << 20),
    )(x_flat, y, w1, b1, w2a, w2b, b2)


# ------------------------------ params & forward --------------------------- #

def init_params(key):
    k1, k2, k3, k4 = jax.random.split(key, 4)

    def xavier_uniform(k, fan_in, fan_out):
        bound = (6.0 / (fan_in + fan_out)) ** 0.5
        return jax.random.uniform(k, (fan_in, fan_out), jnp.float32,
                                  -bound, bound)

    return {
        # conv weights stored (KH, KW, Cin, Cout); biases 0 (matches the module)
        "conv1_w": 0.1 * jax.random.normal(k1, (5, 5, 1, 20), jnp.float32),
        "conv1_b": jnp.zeros((20,), jnp.float32),
        "conv2_w": 0.01 * jax.random.normal(k2, (5, 5, 20, 50), jnp.float32),
        "conv2_b": jnp.zeros((50,), jnp.float32),
        # fc weights stored (in, out); fc1 rows follow PyTorch's (c, h, w) flatten
        "fc1_w": xavier_uniform(k3, 3600, 500),
        "fc1_b": jnp.zeros((500,), jnp.float32),
        "fc2_w": xavier_uniform(k4, 502, 2),
        "fc2_b": jnp.zeros((2,), jnp.float32),
    }


def prepare_params(p):
    """One-time weight repacking (done outside the forward pass)."""
    # conv1: (5,5,1,20) -> (25, 20), pad Cout to 128 for lane-dense stores.
    c1w = jnp.pad(p["conv1_w"].reshape(25, 20), ((0, 0), (0, 108)))
    c1b = jnp.pad(p["conv1_b"], (0, 108)).reshape(1, 128)
    # conv2: (5,5,20,50) -> (500, 50).
    c2w = p["conv2_w"].reshape(500, 50)
    c2b = p["conv2_b"].reshape(1, 50)
    # fc1: permute rows from PyTorch's (c,h,w) flatten to the kernel's (h,w,c)
    # flatten (50 ch, 8x9 spatial), pad out-features 500 -> 512, store bf16.
    w1 = p["fc1_w"].reshape(50, 8, 9, 500).transpose(1, 2, 0, 3).reshape(3600, 500)
    w1 = jnp.pad(w1, ((0, 0), (0, 12)))
    b1 = jnp.pad(p["fc1_b"], (0, 12)).reshape(1, 512)
    # fc2 split for the fused kernel: rows 0..499 act on relu(fc1), 500..501 on y.
    w2a = jnp.pad(p["fc2_w"][:500], ((0, 12), (0, 0)))       # (512, 2), pad rows = 0
    w2b = p["fc2_w"][500:502]                                # (2, 2)
    b2 = p["fc2_b"].reshape(1, 2)
    return {
        "conv1_w": c1w, "conv1_b": c1b,
        "conv2_w": c2w, "conv2_b": c2b,
        "fc1_w": w1.astype(jnp.bfloat16), "fc1_b": b1,
        "fc2_wa": w2a, "fc2_wb": w2b, "fc2_b": b2,
    }


def forward(p, x_nchw, y):
    x = jnp.transpose(x_nchw, (0, 2, 3, 1))                   # NCHW -> NHWC
    x = conv_pool(x, p["conv1_w"], p["conv1_b"], 5, 5, 1)     # (B, 20, 22, 128)
    x = conv_pool(x, p["conv2_w"], p["conv2_b"], 5, 5, 20)    # (B, 8, 9, 50)
    B = x.shape[0]
    x = x.reshape(B, -1)                                      # (B, 3600), (h,w,c) order
    return fc_fused(x, y, p["fc1_w"], p["fc1_b"],
                    p["fc2_wa"], p["fc2_wb"], p["fc2_b"])     # (B, 2)


# ----------------------------------- main ----------------------------------- #

if __name__ == "__main__":
    key = jax.random.PRNGKey(0)
    kp, kx, ky = jax.random.split(key, 3)
    params = prepare_params(init_params(kp))

    # Spatial 44x48 makes the flatten size exactly 3600 (fc1 in_features):
    # 44x48 -conv5-> 40x44 -pool-> 20x22 -conv5-> 16x18 -pool-> 8x9, 50*8*9=3600.
    x = jax.random.normal(kx, (2, 1, 44, 48), jnp.float32)    # NCHW like PyTorch
    y = jax.random.normal(ky, (2, 2), jnp.float32)

    out = jax.jit(forward)(params, x, y)
    jax.block_until_ready(out)
    assert out.shape == (2, 2) and out.dtype == jnp.float32
    print("KERNEL_OK")
</pallas_src>

<mosaic_0001>
module attributes {stable_mosaic.version = 11 : i64} {
  func.func @_conv_pool_kernel(%arg0: i32, %arg1: memref<4x440x25xf32, #tpu.memory_space<vmem>>, %arg2: memref<25x128xf32, #tpu.memory_space<vmem>>, %arg3: memref<1x128xf32, #tpu.memory_space<vmem>>, %arg4: memref<440x128xf32, #tpu.memory_space<vmem>>) attributes {dimension_semantics = [#tpu.dimension_semantics<parallel>], iteration_bounds = array<i64: 2>, scalar_prefetch = 0 : i64, scratch_operands = 0 : i64, tpu.core_type = #tpu.core_type<tc>, window_params = [{transform_indices = @transform_0, window_bounds = array<i64: 4, 440, 25>}, {pipeline_mode = #tpu.pipeline_mode<synchronous>, transform_indices = @transform_1, window_bounds = array<i64: 25, 128>}, {pipeline_mode = #tpu.pipeline_mode<synchronous>, transform_indices = @transform_2, window_bounds = array<i64: 1, 128>}, {transform_indices = @transform_3, window_bounds = array<i64: 440, 128>}]} {
    %c0 = arith.constant 0 : index
    %c0_0 = arith.constant 0 : index
    %0 = vector.load %arg2[%c0, %c0_0] : memref<25x128xf32, #tpu.memory_space<vmem>>, vector<25x128xf32>
    %c0_1 = arith.constant 0 : index
    %c0_2 = arith.constant 0 : index
    %c0_3 = arith.constant 0 : index
    %1 = vector.load %arg1[%c0_1, %c0_2, %c0_3] : memref<4x440x25xf32, #tpu.memory_space<vmem>>, vector<1x440x25xf32>
    %2 = vector.shape_cast %1 : vector<1x440x25xf32> to vector<440x25xf32>
    %cst = arith.constant dense<0.000000e+00> : vector<440x128xf32>
    %3 = tpu.matmul %2, %0, %cst {dimension_numbers = #tpu.dot_dimension_numbers<[1], [0], [0], [1], [0, 0, 1, 1], [], []>} : vector<440x25xf32>, vector<25x128xf32>, vector<440x128xf32> -> vector<440x128xf32>
    %c1 = arith.constant 1 : index
    %c0_4 = arith.constant 0 : index
    %c0_5 = arith.constant 0 : index
    %4 = vector.load %arg1[%c1, %c0_4, %c0_5] : memref<4x440x25xf32, #tpu.memory_space<vmem>>, vector<1x440x25xf32>
    %5 = vector.shape_cast %4 : vector<1x440x25xf32> to vector<440x25xf32>
    %cst_6 = arith.constant dense<0.000000e+00> : vector<440x128xf32>
    %6 = tpu.matmul %5, %0, %cst_6 {dimension_numbers = #tpu.dot_dimension_numbers<[1], [0], [0], [1], [0, 0, 1, 1], [], []>} : vector<440x25xf32>, vector<25x128xf32>, vector<440x128xf32> -> vector<440x128xf32>
    %c2 = arith.constant 2 : index
    %c0_7 = arith.constant 0 : index
    %c0_8 = arith.constant 0 : index
    %7 = vector.load %arg1[%c2, %c0_7, %c0_8] : memref<4x440x25xf32, #tpu.memory_space<vmem>>, vector<1x440x25xf32>
    %8 = vector.shape_cast %7 : vector<1x440x25xf32> to vector<440x25xf32>
    %cst_9 = arith.constant dense<0.000000e+00> : vector<440x128xf32>
    %9 = tpu.matmul %8, %0, %cst_9 {dimension_numbers = #tpu.dot_dimension_numbers<[1], [0], [0], [1], [0, 0, 1, 1], [], []>} : vector<440x25xf32>, vector<25x128xf32>, vector<440x128xf32> -> vector<440x128xf32>
    %c3 = arith.constant 3 : index
    %c0_10 = arith.constant 0 : index
    %c0_11 = arith.constant 0 : index
    %10 = vector.load %arg1[%c3, %c0_10, %c0_11] : memref<4x440x25xf32, #tpu.memory_space<vmem>>, vector<1x440x25xf32>
    %11 = vector.shape_cast %10 : vector<1x440x25xf32> to vector<440x25xf32>
    %cst_12 = arith.constant dense<0.000000e+00> : vector<440x128xf32>
    %12 = tpu.matmul %11, %0, %cst_12 {dimension_numbers = #tpu.dot_dimension_numbers<[1], [0], [0], [1], [0, 0, 1, 1], [], []>} : vector<440x25xf32>, vector<25x128xf32>, vector<440x128xf32> -> vector<440x128xf32>
    %13 = arith.maximumf %3, %6 : vector<440x128xf32>
    %14 = arith.maximumf %9, %12 : vector<440x128xf32>
    %15 = arith.maximumf %13, %14 : vector<440x128xf32>
    %c0_13 = arith.constant 0 : index
    %c0_14 = arith.constant 0 : index
    %16 = vector.load %arg3[%c0_13, %c0_14] : memref<1x128xf32, #tpu.memory_space<vmem>>, vector<1x128xf32>
    %17 = vector.broadcast %16 : vector<1x128xf32> to vector<440x128xf32>
    %18 = arith.addf %15, %17 : vector<440x128xf32>
    %c0_15 = arith.constant 0 : index
    %c0_16 = arith.constant 0 : index
    %19 = vector.load %arg4[%c0_15, %c0_16] : memref<440x128xf32, #tpu.memory_space<vmem>>, vector<440x128xf32>
    tpu.vector_store %arg4[%c0_15, %c0_16], %18 {strides = array<i32>} : memref<440x128xf32, #tpu.memory_space<vmem>>, vector<440x128xf32>,
    return
  }
  func.func @transform_0(%arg0: i32) -> (i32, i32, i32) {
    %c0_i32 = arith.constant 0 : i32
    %c0_i32_0 = arith.constant 0 : i32
    %c0_i32_1 = arith.constant 0 : i32
    return %c0_i32, %arg0, %c0_i32_0 : i32, i32, i32
  }
  func.func @transform_1(%arg0: i32) -> (i32, i32) {
    %c0_i32 = arith.constant 0 : i32
    %c0_i32_0 = arith.constant 0 : i32
    %c0_i32_1 = arith.constant 0 : i32
    return %c0_i32, %c0_i32_0 : i32, i32
  }
  func.func @transform_2(%arg0: i32) -> (i32, i32) {
    %c0_i32 = arith.constant 0 : i32
    %c0_i32_0 = arith.constant 0 : i32
    %c0_i32_1 = arith.constant 0 : i32
    return %c0_i32, %c0_i32_0 : i32, i32
  }
  func.func @transform_3(%arg0: i32) -> (i32, i32) {
    %c0_i32 = arith.constant 0 : i32
    %c0_i32_0 = arith.constant 0 : i32
    return %arg0, %c0_i32 : i32, i32
  }
}

module attributes {stable_mosaic.version = 11 : i64} {
  func.func @_conv_pool_kernel(%arg0: i32, %arg1: memref<4x72x500xf32, #tpu.memory_space<vmem>>, %arg2: memref<500x50xf32, #tpu.memory_space<vmem>>, %arg3: memref<1x50xf32, #tpu.memory_space<vmem>>, %arg4: memref<72x50xf32, #tpu.memory_space<vmem>>) attributes {dimension_semantics = [#tpu.dimension_semantics<parallel>], iteration_bounds = array<i64: 2>, scalar_prefetch = 0 : i64, scratch_operands = 0 : i64, tpu.core_type = #tpu.core_type<tc>, window_params = [{transform_indices = @transform_0, window_bounds = array<i64: 4, 72, 500>}, {pipeline_mode = #tpu.pipeline_mode<synchronous>, transform_indices = @transform_1, window_bounds = array<i64: 500, 50>}, {pipeline_mode = #tpu.pipeline_mode<synchronous>, transform_indices = @transform_2, window_bounds = array<i64: 1, 50>}, {transform_indices = @transform_3, window_bounds = array<i64: 72, 50>}]} {
    %c0 = arith.constant 0 : index
    %c0_0 = arith.constant 0 : index
    %0 = vector.load %arg2[%c0, %c0_0] : memref<500x50xf32, #tpu.memory_space<vmem>>, vector<500x50xf32>
    %c0_1 = arith.constant 0 : index
    %c0_2 = arith.constant 0 : index
    %c0_3 = arith.constant 0 : index
    %1 = vector.load %arg1[%c0_1, %c0_2, %c0_3] : memref<4x72x500xf32, #tpu.memory_space<vmem>>, vector<1x72x500xf32>
    %2 = vector.shape_cast %1 : vector<1x72x500xf32> to vector<72x500xf32>
    %cst = arith.constant dense<0.000000e+00> : vector<72x50xf32>
    %3 = tpu.matmul %2, %0, %cst {dimension_numbers = #tpu.dot_dimension_numbers<[1], [0], [0], [1], [0, 0, 1, 1], [], []>} : vector<72x500xf32>, vector<500x50xf32>, vector<72x50xf32> -> vector<72x50xf32>
    %c1 = arith.constant 1 : index
    %c0_4 = arith.constant 0 : index
    %c0_5 = arith.constant 0 : index
    %4 = vector.load %arg1[%c1, %c0_4, %c0_5] : memref<4x72x500xf32, #tpu.memory_space<vmem>>, vector<1x72x500xf32>
    %5 = vector.shape_cast %4 : vector<1x72x500xf32> to vector<72x500xf32>
    %cst_6 = arith.constant dense<0.000000e+00> : vector<72x50xf32>
    %6 = tpu.matmul %5, %0, %cst_6 {dimension_numbers = #tpu.dot_dimension_numbers<[1], [0], [0], [1], [0, 0, 1, 1], [], []>} : vector<72x500xf32>, vector<500x50xf32>, vector<72x50xf32> -> vector<72x50xf32>
    %c2 = arith.constant 2 : index
    %c0_7 = arith.constant 0 : index
    %c0_8 = arith.constant 0 : index
    %7 = vector.load %arg1[%c2, %c0_7, %c0_8] : memref<4x72x500xf32, #tpu.memory_space<vmem>>, vector<1x72x500xf32>
    %8 = vector.shape_cast %7 : vector<1x72x500xf32> to vector<72x500xf32>
    %cst_9 = arith.constant dense<0.000000e+00> : vector<72x50xf32>
    %9 = tpu.matmul %8, %0, %cst_9 {dimension_numbers = #tpu.dot_dimension_numbers<[1], [0], [0], [1], [0, 0, 1, 1], [], []>} : vector<72x500xf32>, vector<500x50xf32>, vector<72x50xf32> -> vector<72x50xf32>
    %c3 = arith.constant 3 : index
    %c0_10 = arith.constant 0 : index
    %c0_11 = arith.constant 0 : index
    %10 = vector.load %arg1[%c3, %c0_10, %c0_11] : memref<4x72x500xf32, #tpu.memory_space<vmem>>, vector<1x72x500xf32>
    %11 = vector.shape_cast %10 : vector<1x72x500xf32> to vector<72x500xf32>
    %cst_12 = arith.constant dense<0.000000e+00> : vector<72x50xf32>
    %12 = tpu.matmul %11, %0, %cst_12 {dimension_numbers = #tpu.dot_dimension_numbers<[1], [0], [0], [1], [0, 0, 1, 1], [], []>} : vector<72x500xf32>, vector<500x50xf32>, vector<72x50xf32> -> vector<72x50xf32>
    %13 = arith.maximumf %3, %6 : vector<72x50xf32>
    %14 = arith.maximumf %9, %12 : vector<72x50xf32>
    %15 = arith.maximumf %13, %14 : vector<72x50xf32>
    %c0_13 = arith.constant 0 : index
    %c0_14 = arith.constant 0 : index
    %16 = vector.load %arg3[%c0_13, %c0_14] : memref<1x50xf32, #tpu.memory_space<vmem>>, vector<1x50xf32>
    %17 = vector.broadcast %16 : vector<1x50xf32> to vector<72x50xf32>
    %18 = arith.addf %15, %17 : vector<72x50xf32>
    %c0_15 = arith.constant 0 : index
    %c0_16 = arith.constant 0 : index
    %19 = vector.load %arg4[%c0_15, %c0_16] : memref<72x50xf32, #tpu.memory_space<vmem>>, vector<72x50xf32>
    tpu.vector_store %arg4[%c0_15, %c0_16], %18 {strides = array<i32>} : memref<72x50xf32, #tpu.memory_space<vmem>>, vector<72x50xf32>,
    return
  }
  func.func @transform_0(%arg0: i32) -> (i32, i32, i32) {
    %c0_i32 = arith.constant 0 : i32
    %c0_i32_0 = arith.constant 0 : i32
    %c0_i32_1 = arith.constant 0 : i32
    return %c0_i32, %arg0, %c0_i32_0 : i32, i32, i32
  }
  func.func @transform_1(%arg0: i32) -> (i32, i32) {
    %c0_i32 = arith.constant 0 : i32
    %c0_i32_0 = arith.constant 0 : i32
    %c0_i32_1 = arith.constant 0 : i32
    return %c0_i32, %c0_i32_0 : i32, i32
  }
  func.func @transform_2(%arg0: i32) -> (i32, i32) {
    %c0_i32 = arith.constant 0 : i32
    %c0_i32_0 = arith.constant 0 : i32
    %c0_i32_1 = arith.constant 0 : i32
    return %c0_i32, %c0_i32_0 : i32, i32
  }
  func.func @transform_3(%arg0: i32) -> (i32, i32) {
    %c0_i32 = arith.constant 0 : i32
    %c0_i32_0 = arith.constant 0 : i32
    return %arg0, %c0_i32 : i32, i32
  }
}

module attributes {stable_mosaic.version = 11 : i64} {
  func.func @_fc_fused_kernel(%arg0: memref<2x3600xf32, #tpu.memory_space<vmem>>, %arg1: memref<2x2xf32, #tpu.memory_space<vmem>>, %arg2: memref<3600x512xbf16, #tpu.memory_space<vmem>>, %arg3: memref<1x512xf32, #tpu.memory_space<vmem>>, %arg4: memref<512x2xf32, #tpu.memory_space<vmem>>, %arg5: memref<2x2xf32, #tpu.memory_space<vmem>>, %arg6: memref<1x2xf32, #tpu.memory_space<vmem>>, %arg7: memref<2x2xf32, #tpu.memory_space<vmem>>) attributes {dimension_semantics = [], scalar_prefetch = 0 : i64, scratch_operands = 0 : i64, tpu.core_type = #tpu.core_type<tc>} {
    %c0 = arith.constant 0 : index
    %c0_0 = arith.constant 0 : index
    %0 = vector.load %arg0[%c0, %c0_0] : memref<2x3600xf32, #tpu.memory_space<vmem>>, vector<2x3600xf32>
    %1 = arith.truncf %0 : vector<2x3600xf32> to vector<2x3600xbf16>
    %c0_1 = arith.constant 0 : index
    %c0_2 = arith.constant 0 : index
    %2 = vector.load %arg2[%c0_1, %c0_2] : memref<3600x512xbf16, #tpu.memory_space<vmem>>, vector<3600x512xbf16>
    %cst = arith.constant dense<0.000000e+00> : vector<2x512xf32>
    %3 = tpu.matmul %1, %2, %cst {dimension_numbers = #tpu.dot_dimension_numbers<[1], [0], [0], [1], [0, 0, 1, 1], [], []>} : vector<2x3600xbf16>, vector<3600x512xbf16>, vector<2x512xf32> -> vector<2x512xf32>
    %c0_3 = arith.constant 0 : index
    %c0_4 = arith.constant 0 : index
    %4 = vector.load %arg3[%c0_3, %c0_4] : memref<1x512xf32, #tpu.memory_space<vmem>>, vector<1x512xf32>
    %5 = vector.broadcast %4 : vector<1x512xf32> to vector<2x512xf32>
    %6 = arith.addf %3, %5 : vector<2x512xf32>
    %cst_5 = arith.constant 0.000000e+00 : f32
    %7 = vector.broadcast %cst_5 : f32 to vector<2x512xf32>
    %8 = arith.maximumf %6, %7 : vector<2x512xf32>
    %c0_6 = arith.constant 0 : index
    %c0_7 = arith.constant 0 : index
    %9 = vector.load %arg4[%c0_6, %c0_7] : memref<512x2xf32, #tpu.memory_space<vmem>>, vector<512x2xf32>
    %cst_8 = arith.constant dense<0.000000e+00> : vector<2x2xf32>
    %10 = tpu.matmul %8, %9, %cst_8 {dimension_numbers = #tpu.dot_dimension_numbers<[1], [0], [0], [1], [0, 0, 1, 1], [], []>} : vector<2x512xf32>, vector<512x2xf32>, vector<2x2xf32> -> vector<2x2xf32>
    %c0_9 = arith.constant 0 : index
    %c0_10 = arith.constant 0 : index
    %11 = vector.load %arg1[%c0_9, %c0_10] : memref<2x2xf32, #tpu.memory_space<vmem>>, vector<2x2xf32>
    %c0_11 = arith.constant 0 : index
    %c0_12 = arith.constant 0 : index
    %12 = vector.load %arg5[%c0_11, %c0_12] : memref<2x2xf32, #tpu.memory_space<vmem>>, vector<2x2xf32>
    %13 = vector.extract_strided_slice %11 {offsets = [0, 0], sizes = [2, 1], strides = [1, 1]} : vector<2x2xf32> to vector<2x1xf32>
    %14 = vector.extract_strided_slice %12 {offsets = [0, 0], sizes = [1, 2], strides = [1, 1]} : vector<2x2xf32> to vector<1x2xf32>
    %15 = vector.broadcast %13 : vector<2x1xf32> to vector<2x2xf32>
    %16 = vector.broadcast %14 : vector<1x2xf32> to vector<2x2xf32>
    %17 = arith.mulf %15, %16 : vector<2x2xf32>
    %18 = arith.addf %10, %17 : vector<2x2xf32>
    %19 = vector.extract_strided_slice %11 {offsets = [0, 1], sizes = [2, 1], strides = [1, 1]} : vector<2x2xf32> to vector<2x1xf32>
    %20 = vector.extract_strided_slice %12 {offsets = [1, 0], sizes = [1, 2], strides = [1, 1]} : vector<2x2xf32> to vector<1x2xf32>
    %21 = vector.broadcast %19 : vector<2x1xf32> to vector<2x2xf32>
    %22 = vector.broadcast %20 : vector<1x2xf32> to vector<2x2xf32>
    %23 = arith.mulf %21, %22 : vector<2x2xf32>
    %24 = arith.addf %18, %23 : vector<2x2xf32>
    %c0_13 = arith.constant 0 : index
    %c0_14 = arith.constant 0 : index
    %25 = vector.load %arg6[%c0_13, %c0_14] : memref<1x2xf32, #tpu.memory_space<vmem>>, vector<1x2xf32>
    %26 = vector.broadcast %25 : vector<1x2xf32> to vector<2x2xf32>
    %27 = arith.addf %24, %26 : vector<2x2xf32>
    %c0_15 = arith.constant 0 : index
    %c0_16 = arith.constant 0 : index
    %28 = vector.load %arg7[%c0_15, %c0_16] : memref<2x2xf32, #tpu.memory_space<vmem>>, vector<2x2xf32>
    tpu.vector_store %arg7[%c0_15, %c0_16], %27 {strides = array<i32>} : memref<2x2xf32, #tpu.memory_space<vmem>>, vector<2x2xf32>,
    return
  }
}

</mosaic_0001>

<bundles_post_ra>
// kernel: forward.3
= control target key start
LH: loop header
LB: loop body
LE: loop exit
PB: predicated region body
PF: predicated region fallthrough
CT: control target
= control target key end

     0   :  { %s5083_s12 = smov 0   ;;  %s5085_s13 = smov 0   ;;  %s7105_s0 = inlined_call_operand.vmem [shape: f32[4,880,25], index: 0, kind: input, shape index: {}]   ;;  %s7106_s1 = inlined_call_operand.vmem [shape: f32[25,128], index: 1, kind: input, shape index: {}]   ;;  %s7107_s2 = inlined_call_operand.vmem [shape: f32[1,128], index: 2, kind: input, shape index: {}]   ;;  %s7108_s3 = inlined_call_operand.vmem [shape: f32[880,128], index: 3, kind: output, shape index: {}]  }
   0x1   :  { %s5087_s14 = smov 0  }
   0x2 LB: > { %s3681_s15 = sadd.s32 4294967295, %s5059_s14   ;;  %s5100_s16 = sadd.s32 1, %s5059_s14   ;;  %s5059_s14 = sphi %s5087_s14, %s7343_s14   ;;  %s5055_s13 = sphi %s5085_s13, %s7342_s13   ;;  %s5051_s12 = sphi %s5083_s12, %s7341_s12  }
   0x3   : > { %s17_s17 = ssub.s32 %s5059_s14, %s5100_s16  ;;  %s20_s18 = sadd.s32 1, %s5055_s13 }
   0x4   : > { %p18_p0 = scmp.eq.s32.totalorder %s17_s17, 0  ;;  %p27_p1 = scmp.ne.s32.totalorder %s5055_s13, %s5051_s12 }
   0x5   : > { %p28_p2 = scmp.eq.s32.totalorder %s5059_s14, 0  ;;  %p3684_p4 = scmp.ge.s32.totalorder %s5059_s14, 2 }
   0x6   : > { %s5109_s19 = scalar_select %p18_p0, %s5055_s13, %s20_s18  }
   0x7   : > { %p29_p3 = por %p28_p2, %p27_p1  ;;  %127 = sbr.rel (%p3684_p4) target bundleno = 127 (0x7f), region = 24 }
   0xc   : > { %130 = sbr.rel (!%p29_p3) target bundleno = 127 (0x7f), region = 28  ;;  %s132_s20 = sand.u32 (%p29_p3), 1, %s5055_s13  }
   0xd   : > { %s4080_s21 = smul.u32 (%p29_p3), 440, %s5059_s14 }
   0xe   : > { %s5009_s22 = smul.u32 (%p29_p3), 1760, %s132_s20 }
   0xf   : > { %s5117_s25 = scalar_lea.vmem (%p29_p3), %s7105_s0, %s4080_s21 }
  0x10   : > { %v604_v0 = vld [vmem:[%s5117_s25] sm:$0xff] (%p29_p3)  ;;  %v606_v1 = vld [vmem:[%s5117_s25 + $0x8] sm:$0xff] (%p29_p3)  ;;  %v608_v2 = vld [vmem:[%s5117_s25 + $0x10] sm:$0xff] (%p29_p3)  ;;  %s5122_s26 = scalar_lea.vmem (%p29_p3), [#allocation2], %s5009_s22 }
  0x11   : > { %605 = vst [vmem:[%s5122_s26] sm:$0xff] %v604_v0  ;;  %607 = vst [vmem:[%s5122_s26 + $0x8] sm:$0xff] %v606_v1  ;;  %v610_v3 = vld [vmem:[%s5117_s25 + $0x18] sm:$0xff]  ;;  %v612_v4 = vld [vmem:[%s5117_s25 + $0x20] sm:$0xff] }
  0x12   : > { %609 = vst [vmem:[%s5122_s26 + $0x10] sm:$0xff] %v608_v2  ;;  %v614_v5 = vld [vmem:[%s5117_s25 + $0x28] sm:$0xff]  ;;  %611 = vst [vmem:[%s5122_s26 + $0x18] sm:$0xff] %v610_v3  ;;  %v616_v6 = vld [vmem:[%s5117_s25 + $0x30] sm:$0xff] }
  0x13   : > { %613 = vst [vmem:[%s5122_s26 + $0x20] sm:$0xff] %v612_v4  ;;  %615 = vst [vmem:[%s5122_s26 + $0x28] sm:$0xff] %v614_v5  ;;  %v618_v7 = vld [vmem:[%s5117_s25 + $0x38] sm:$0xff]  ;;  %v620_v8 = vld [vmem:[%s5117_s25 + $0x40] sm:$0xff] }
  0x14   : > { %617 = vst [vmem:[%s5122_s26 + $0x30] sm:$0xff] %v616_v6  ;;  %619 = vst [vmem:[%s5122_s26 + $0x38] sm:$0xff] %v618_v7  ;;  %v622_v9 = vld [vmem:[%s5117_s25 + $0x48] sm:$0xff]  ;;  %v624_v10 = vld [vmem:[%s5117_s25 + $0x50] sm:$0xff] }
  0x15   : > { %621 = vst [vmem:[%s5122_s26 + $0x40] sm:$0xff] %v620_v8  ;;  %v626_v11 = vld [vmem:[%s5117_s25 + $0x58] sm:$0xff]  ;;  %623 = vst [vmem:[%s5122_s26 + $0x48] sm:$0xff] %v622_v9  ;;  %v628_v12 = vld [vmem:[%s5117_s25 + $0x60] sm:$0xff] }
  0x16   : > { %625 = vst [vmem:[%s5122_s26 + $0x50] sm:$0xff] %v624_v10  ;;  %627 = vst [vmem:[%s5122_s26 + $0x58] sm:$0xff] %v626_v11  ;;  %v630_v13 = vld [vmem:[%s5117_s25 + $0x68] sm:$0xff]  ;;  %v632_v14 = vld [vmem:[%s5117_s25 + $0x70] sm:$0xff] }
  0x17   : > { %629 = vst [vmem:[%s5122_s26 + $0x60] sm:$0xff] %v628_v12  ;;  %631 = vst [vmem:[%s5122_s26 + $0x68] sm:$0xff] %v630_v13  ;;  %v634_v15 = vld [vmem:[%s5117_s25 + $0x78] sm:$0xff]  ;;  %v636_v16 = vld [vmem:[%s5117_s25 + $0x80] sm:$0xff] }
  0x18   : > { %633 = vst [vmem:[%s5122_s26 + $0x70] sm:$0xff] %v632_v14  ;;  %v638_v17 = vld [vmem:[%s5117_s25 + $0x88] sm:$0xff]  ;;  %635 = vst [vmem:[%s5122_s26 + $0x78] sm:$0xff] %v634_v15  ;;  %v640_v18 = vld [vmem:[%s5117_s25 + $0x90] sm:$0xff] }
  0x19   : > { %637 = vst [vmem:[%s5122_s26 + $0x80] sm:$0xff] %v636_v16  ;;  %639 = vst [vmem:[%s5122_s26 + $0x88] sm:$0xff] %v638_v17  ;;  %v642_v19 = vld [vmem:[%s5117_s25 + $0x98] sm:$0xff]  ;;  %v644_v20 = vld [vmem:[%s5117_s25 + $0xa0] sm:$0xff] }
  0x1a   : > { %641 = vst [vmem:[%s5122_s26 + $0x90] sm:$0xff] %v640_v18  ;;  %643 = vst [vmem:[%s5122_s26 + $0x98] sm:$0xff] %v642_v19  ;;  %v646_v21 = vld [vmem:[%s5117_s25 + $0xa8] sm:$0xff]  ;;  %v648_v22 = vld [vmem:[%s5117_s25 + $0xb0] sm:$0xff] }
  0x1b   : > { %645 = vst [vmem:[%s5122_s26 + $0xa0] sm:$0xff] %v644_v20  ;;  %v650_v23 = vld [vmem:[%s5117_s25 + $0xb8] sm:$0xff]  ;;  %647 = vst [vmem:[%s5122_s26 + $0xa8] sm:$0xff] %v646_v21  ;;  %v652_v24 = vld [vmem:[%s5117_s25 + $0xc0] sm:$0xff] }
  0x1c   : > { %649 = vst [vmem:[%s5122_s26 + $0xb0] sm:$0xff] %v648_v22  ;;  %651 = vst [vmem:[%s5122_s26 + $0xb8] sm:$0xff] %v650_v23  ;;  %v654_v25 = vld [vmem:[%s5117_s25 + $0xc8] sm:$0xff]  ;;  %v656_v26 = vld [vmem:[%s5117_s25 + $0xd0] sm:$0xff] }
  0x1d   : > { %653 = vst [vmem:[%s5122_s26 + $0xc0] sm:$0xff] %v652_v24  ;;  %655 = vst [vmem:[%s5122_s26 + $0xc8] sm:$0xff] %v654_v25  ;;  %v658_v27 = vld [vmem:[%s5117_s25 + $0xd8] sm:$0xff]  ;;  %v660_v28 = vld [vmem:[%s5117_s25 + $0xe0] sm:$0xff] }
  0x1e   : > { %657 = vst [vmem:[%s5122_s26 + $0xd0] sm:$0xff] %v656_v26  ;;  %v662_v29 = vld [vmem:[%s5117_s25 + $0xe8] sm:$0xff]  ;;  %659 = vst [vmem:[%s5122_s26 + $0xd8] sm:$0xff] %v658_v27  ;;  %v664_v30 = vld [vmem:[%s5117_s25 + $0xf0] sm:$0xff] }
  0x1f   : > { %661 = vst [vmem:[%s5122_s26 + $0xe0] sm:$0xff] %v660_v28  ;;  %663 = vst [vmem:[%s5122_s26 + $0xe8] sm:$0xff] %v662_v29  ;;  %v666_v31 = vld [vmem:[%s5117_s25 + $0xf8] sm:$0xff]  ;;  %v668_v32 = vld [vmem:[%s5117_s25 + $0x100] sm:$0xff] }
  0x20   : > { %665 = vst [vmem:[%s5122_s26 + $0xf0] sm:$0xff] %v664_v30  ;;  %667 = vst [vmem:[%s5122_s26 + $0xf8] sm:$0xff] %v666_v31  ;;  %v670_v33 = vld [vmem:[%s5117_s25 + $0x108] sm:$0xff]  ;;  %v672_v34 = vld [vmem:[%s5117_s25 + $0x110] sm:$0xff] }
  0x21   : > { %669 = vst [vmem:[%s5122_s26 + $0x100] sm:$0xff] %v668_v32  ;;  %v674_v35 = vld [vmem:[%s5117_s25 + $0x118] sm:$0xff]  ;;  %671 = vst [vmem:[%s5122_s26 + $0x108] sm:$0xff] %v670_v33  ;;  %v676_v36 = vld [vmem:[%s5117_s25 + $0x120] sm:$0xff] }
  0x22   : > { %673 = vst [vmem:[%s5122_s26 + $0x110] sm:$0xff] %v672_v34  ;;  %675 = vst [vmem:[%s5122_s26 + $0x118] sm:$0xff] %v674_v35  ;;  %v678_v37 = vld [vmem:[%s5117_s25 + $0x128] sm:$0xff]  ;;  %v680_v38 = vld [vmem:[%s5117_s25 + $0x130] sm:$0xff] }
  0x23   : > { %677 = vst [vmem:[%s5122_s26 + $0x120] sm:$0xff] %v676_v36  ;;  %679 = vst [vmem:[%s5122_s26 + $0x128] sm:$0xff] %v678_v37  ;;  %v682_v39 = vld [vmem:[%s5117_s25 + $0x138] sm:$0xff]  ;;  %v684_v40 = vld [vmem:[%s5117_s25 + $0x140] sm:$0xff] }
  0x24   : > { %681 = vst [vmem:[%s5122_s26 + $0x130] sm:$0xff] %v680_v38  ;;  %v686_v41 = vld [vmem:[%s5117_s25 + $0x148] sm:$0xff]  ;;  %683 = vst [vmem:[%s5122_s26 + $0x138] sm:$0xff] %v682_v39  ;;  %v688_v42 = vld [vmem:[%s5117_s25 + $0x150] sm:$0xff] }
  0x25   : > { %685 = vst [vmem:[%s5122_s26 + $0x140] sm:$0xff] %v684_v40  ;;  %687 = vst [vmem:[%s5122_s26 + $0x148] sm:$0xff] %v686_v41  ;;  %v690_v43 = vld [vmem:[%s5117_s25 + $0x158] sm:$0xff]  ;;  %v692_v44 = vld [vmem:[%s5117_s25 + $0x160] sm:$0xff] }
  0x26   : > { %689 = vst [vmem:[%s5122_s26 + $0x150] sm:$0xff] %v688_v42  ;;  %691 = vst [vmem:[%s5122_s26 + $0x158] sm:$0xff] %v690_v43  ;;  %v694_v45 = vld [vmem:[%s5117_s25 + $0x168] sm:$0xff]  ;;  %v696_v46 = vld [vmem:[%s5117_s25 + $0x170] sm:$0xff] }
  0x27   : > { %693 = vst [vmem:[%s5122_s26 + $0x160] sm:$0xff] %v692_v44  ;;  %v698_v47 = vld [vmem:[%s5117_s25 + $0x178] sm:$0xff]  ;;  %695 = vst [vmem:[%s5122_s26 + $0x168] sm:$0xff] %v694_v45  ;;  %v700_v48 = vld [vmem:[%s5117_s25 + $0x180] sm:$0xff] }
  0x28   : > { %697 = vst [vmem:[%s5122_s26 + $0x170] sm:$0xff] %v696_v46  ;;  %699 = vst [vmem:[%s5122_s26 + $0x178] sm:$0xff] %v698_v47  ;;  %v702_v49 = vld [vmem:[%s5117_s25 + $0x188] sm:$0xff]  ;;  %v704_v50 = vld [vmem:[%s5117_s25 + $0x190] sm:$0xff] }
  0x29   : > { %701 = vst [vmem:[%s5122_s26 + $0x180] sm:$0xff] %v700_v48  ;;  %703 = vst [vmem:[%s5122_s26 + $0x188] sm:$0xff] %v702_v49  ;;  %v706_v51 = vld [vmem:[%s5117_s25 + $0x198] sm:$0xff]  ;;  %v708_v52 = vld [vmem:[%s5117_s25 + $0x1a0] sm:$0xff] }
  0x2a   : > { %705 = vst [vmem:[%s5122_s26 + $0x190] sm:$0xff] %v704_v50  ;;  %v710_v53 = vld [vmem:[%s5117_s25 + $0x1a8] sm:$0xff]  ;;  %707 = vst [vmem:[%s5122_s26 + $0x198] sm:$0xff] %v706_v51  ;;  %v712_v54 = vld [vmem:[%s5117_s25 + $0x1b0] sm:$0xff] }
  0x2b   : > { %709 = vst [vmem:[%s5122_s26 + $0x1a0] sm:$0xff] %v708_v52  ;;  %711 = vst [vmem:[%s5122_s26 + $0x1a8] sm:$0xff] %v710_v53  ;;  %v714_v55 = vld [vmem:[%s5117_s25 + $0x370] sm:$0xff]  ;;  %v716_v56 = vld [vmem:[%s5117_s25 + $0x378] sm:$0xff] }
  0x2c   : > { %713 = vst [vmem:[%s5122_s26 + $0x1b0] sm:$0xff] %v712_v54  ;;  %715 = vst [vmem:[%s5122_s26 + $0x1b8] sm:$0xff] %v714_v55  ;;  %v718_v57 = vld [vmem:[%s5117_s25 + $0x380] sm:$0xff]  ;;  %v720_v58 = vld [vmem:[%s5117_s25 + $0x388] sm:$0xff] }
  0x2d   : > { %717 = vst [vmem:[%s5122_s26 + $0x1c0] sm:$0xff] %v716_v56  ;;  %v722_v59 = vld [vmem:[%s5117_s25 + $0x390] sm:$0xff]  ;;  %719 = vst [vmem:[%s5122_s26 + $0x1c8] sm:$0xff] %v718_v57  ;;  %v724_v60 = vld [vmem:[%s5117_s25 + $0x398] sm:$0xff] }
  0x2e   : > { %721 = vst [vmem:[%s5122_s26 + $0x1d0] sm:$0xff] %v720_v58  ;;  %723 = vst [vmem:[%s5122_s26 + $0x1d8] sm:$0xff] %v722_v59  ;;  %v726_v61 = vld [vmem:[%s5117_s25 + $0x3a0] sm:$0xff]  ;;  %v728_v62 = vld [vmem:[%s5117_s25 + $0x3a8] sm:$0xff] }
  0x2f   : > { %725 = vst [vmem:[%s5122_s26 + $0x1e0] sm:$0xff] %v724_v60  ;;  %727 = vst [vmem:[%s5122_s26 + $0x1e8] sm:$0xff] %v726_v61  ;;  %v730_v63 = vld [vmem:[%s5117_s25 + $0x3b0] sm:$0xff]  ;;  %v732_v0 = vld [vmem:[%s5117_s25 + $0x3b8] sm:$0xff] }
  0x30   : > { %729 = vst [vmem:[%s5122_s26 + $0x1f0] sm:$0xff] %v728_v62  ;;  %v734_v1 = vld [vmem:[%s5117_s25 + $0x3c0] sm:$0xff]  ;;  %731 = vst [vmem:[%s5122_s26 + $0x1f8] sm:$0xff] %v730_v63  ;;  %v736_v2 = vld [vmem:[%s5117_s25 + $0x3c8] sm:$0xff] }
  0x31   : > { %733 = vst [vmem:[%s5122_s26 + $0x200] sm:$0xff] %v732_v0  ;;  %735 = vst [vmem:[%s5122_s26 + $0x208] sm:$0xff] %v734_v1  ;;  %v738_v3 = vld [vmem:[%s5117_s25 + $0x3d0] sm:$0xff]  ;;  %v740_v4 = vld [vmem:[%s5117_s25 + $0x3d8] sm:$0xff] }
  0x32   : > { %737 = vst [vmem:[%s5122_s26 + $0x210] sm:$0xff] %v736_v2  ;;  %739 = vst [vmem:[%s5122_s26 + $0x218] sm:$0xff] %v738_v3  ;;  %v742_v5 = vld [vmem:[%s5117_s25 + $0x3e0] sm:$0xff]  ;;  %v744_v6 = vld [vmem:[%s5117_s25 + $0x3e8] sm:$0xff] }
  0x33   : > { %741 = vst [vmem:[%s5122_s26 + $0x220] sm:$0xff] %v740_v4  ;;  %v746_v7 = vld [vmem:[%s5117_s25 + $0x3f0] sm:$0xff]  ;;  %743 = vst [vmem:[%s5122_s26 + $0x228] sm:$0xff] %v742_v5  ;;  %v748_v8 = vld [vmem:[%s5117_s25 + $0x3f8] sm:$0xff] }
  0x34   : > { %745 = vst [vmem:[%s5122_s26 + $0x230] sm:$0xff] %v744_v6  ;;  %747 = vst [vmem:[%s5122_s26 + $0x238] sm:$0xff] %v746_v7  ;;  %v750_v9 = vld [vmem:[%s5117_s25 + $0x400] sm:$0xff]  ;;  %v752_v10 = vld [vmem:[%s5117_s25 + $0x408] sm:$0xff] }
  0x35   : > { %749 = vst [vmem:[%s5122_s26 + $0x240] sm:$0xff] %v748_v8  ;;  %751 = vst [vmem:[%s5122_s26 + $0x248] sm:$0xff] %v750_v9  ;;  %v754_v11 = vld [vmem:[%s5117_s25 + $0x410] sm:$0xff]  ;;  %v756_v12 = vld [vmem:[%s5117_s25 + $0x418] sm:$0xff] }
  0x36   : > { %753 = vst [vmem:[%s5122_s26 + $0x250] sm:$0xff] %v752_v10  ;;  %v758_v13 = vld [vmem:[%s5117_s25 + $0x420] sm:$0xff]  ;;  %755 = vst [vmem:[%s5122_s26 + $0x258] sm:$0xff] %v754_v11  ;;  %v760_v14 = vld [vmem:[%s5117_s25 + $0x428] sm:$0xff] }
  0x37   : > { %757 = vst [vmem:[%s5122_s26 + $0x260] sm:$0xff] %v756_v12  ;;  %759 = vst [vmem:[%s5122_s26 + $0x268] sm:$0xff] %v758_v13  ;;  %v762_v15 = vld [vmem:[%s5117_s25 + $0x430] sm:$0xff]  ;;  %v764_v16 = vld [vmem:[%s5117_s25 + $0x438] sm:$0xff] }
  0x38   : > { %761 = vst [vmem:[%s5122_s26 + $0x270] sm:$0xff] %v760_v14  ;;  %763 = vst [vmem:[%s5122_s26 + $0x278] sm:$0xff] %v762_v15  ;;  %v766_v17 = vld [vmem:[%s5117_s25 + $0x440] sm:$0xff]  ;;  %v768_v18 = vld [vmem:[%s5117_s25 + $0x448] sm:$0xff] }
  0x39   : > { %765 = vst [vmem:[%s5122_s26 + $0x280] sm:$0xff] %v764_v16  ;;  %v770_v19 = vld [vmem:[%s5117_s25 + $0x450] sm:$0xff]  ;;  %767 = vst [vmem:[%s5122_s26 + $0x288] sm:$0xff] %v766_v17  ;;  %v772_v20 = vld [vmem:[%s5117_s25 + $0x458] sm:$0xff] }
  0x3a   : > { %769 = vst [vmem:[%s5122_s26 + $0x290] sm:$0xff] %v768_v18  ;;  %771 = vst [vmem:[%s5122_s26 + $0x298] sm:$0xff] %v770_v19  ;;  %v774_v21 = vld [vmem:[%s5117_s25 + $0x460] sm:$0xff]  ;;  %v776_v22 = vld [vmem:[%s5117_s25 + $0x468] sm:$0xff] }
  0x3b   : > { %773 = vst [vmem:[%s5122_s26 + $0x2a0] sm:$0xff] %v772_v20  ;;  %775 = vst [vmem:[%s5122_s26 + $0x2a8] sm:$0xff] %v774_v21  ;;  %v778_v23 = vld [vmem:[%s5117_s25 + $0x470] sm:$0xff]  ;;  %v780_v24 = vld [vmem:[%s5117_s25 + $0x478] sm:$0xff] }
  0x3c   : > { %777 = vst [vmem:[%s5122_s26 + $0x2b0] sm:$0xff] %v776_v22  ;;  %v782_v25 = vld [vmem:[%s5117_s25 + $0x480] sm:$0xff]  ;;  %779 = vst [vmem:[%s5122_s26 + $0x2b8] sm:$0xff] %v778_v23  ;;  %v784_v26 = vld [vmem:[%s5117_s25 + $0x488] sm:$0xff] }
  0x3d   : > { %781 = vst [vmem:[%s5122_s26 + $0x2c0] sm:$0xff] %v780_v24  ;;  %783 = vst [vmem:[%s5122_s26 + $0x2c8] sm:$0xff] %v782_v25  ;;  %v786_v27 = vld [vmem:[%s5117_s25 + $0x490] sm:$0xff]  ;;  %v788_v28 = vld [vmem:[%s5117_s25 + $0x498] sm:$0xff] }
  0x3e   : > { %785 = vst [vmem:[%s5122_s26 + $0x2d0] sm:$0xff] %v784_v26  ;;  %787 = vst [vmem:[%s5122_s26 + $0x2d8] sm:$0xff] %v786_v27  ;;  %v790_v29 = vld [vmem:[%s5117_s25 + $0x4a0] sm:$0xff]  ;;  %v792_v30 = vld [vmem:[%s5117_s25 + $0x4a8] sm:$0xff] }
  0x3f   : > { %789 = vst [vmem:[%s5122_s26 + $0x2e0] sm:$0xff] %v788_v28  ;;  %v794_v31 = vld [vmem:[%s5117_s25 + $0x4b0] sm:$0xff]  ;;  %791 = vst [vmem:[%s5122_s26 + $0x2e8] sm:$0xff] %v790_v29  ;;  %v796_v32 = vld [vmem:[%s5117_s25 + $0x4b8] sm:$0xff] }
  0x40   : > { %793 = vst [vmem:[%s5122_s26 + $0x2f0] sm:$0xff] %v792_v30  ;;  %795 = vst [vmem:[%s5122_s26 + $0x2f8] sm:$0xff] %v794_v31  ;;  %v798_v33 = vld [vmem:[%s5117_s25 + $0x4c0] sm:$0xff]  ;;  %v800_v34 = vld [vmem:[%s5117_s25 + $0x4c8] sm:$0xff] }
  0x41   : > { %797 = vst [vmem:[%s5122_s26 + $0x300] sm:$0xff] %v796_v32  ;;  %799 = vst [vmem:[%s5122_s26 + $0x308] sm:$0xff] %v798_v33  ;;  %v802_v35 = vld [vmem:[%s5117_s25 + $0x4d0] sm:$0xff]  ;;  %v804_v36 = vld [vmem:[%s5117_s25 + $0x4d8] sm:$0xff] }
  0x42   : > { %801 = vst [vmem:[%s5122_s26 + $0x310] sm:$0xff] %v800_v34  ;;  %v806_v37 = vld [vmem:[%s5117_s25 + $0x4e0] sm:$0xff]  ;;  %803 = vst [vmem:[%s5122_s26 + $0x318] sm:$0xff] %v802_v35  ;;  %v808_v38 = vld [vmem:[%s5117_s25 + $0x4e8] sm:$0xff] }
  0x43   : > { %805 = vst [vmem:[%s5122_s26 + $0x320] sm:$0xff] %v804_v36  ;;  %807 = vst [vmem:[%s5122_s26 + $0x328] sm:$0xff] %v806_v37  ;;  %v810_v39 = vld [vmem:[%s5117_s25 + $0x4f0] sm:$0xff]  ;;  %v812_v40 = vld [vmem:[%s5117_s25 + $0x4f8] sm:$0xff] }
  0x44   : > { %809 = vst [vmem:[%s5122_s26 + $0x330] sm:$0xff] %v808_v38  ;;  %811 = vst [vmem:[%s5122_s26 + $0x338] sm:$0xff] %v810_v39  ;;  %v814_v41 = vld [vmem:[%s5117_s25 + $0x500] sm:$0xff]  ;;  %v816_v42 = vld [vmem:[%s5117_s25 + $0x508] sm:$0xff] }
  0x45   : > { %813 = vst [vmem:[%s5122_s26 + $0x340] sm:$0xff] %v812_v40  ;;  %v818_v43 = vld [vmem:[%s5117_s25 + $0x510] sm:$0xff]  ;;  %815 = vst [vmem:[%s5122_s26 + $0x348] sm:$0xff] %v814_v41  ;;  %v820_v44 = vld [vmem:[%s5117_s25 + $0x518] sm:$0xff] }
  0x46   : > { %817 = vst [vmem:[%s5122_s26 + $0x350] sm:$0xff] %v816_v42  ;;  %819 = vst [vmem:[%s5122_s26 + $0x358] sm:$0xff] %v818_v43  ;;  %v822_v45 = vld [vmem:[%s5117_s25 + $0x520] sm:$0xff]  ;;  %v826_v47 = vld [vmem:[%s5117_s25 + $0x6e8] sm:$0xff] }
  0x47   : > { %v824_v46 = vld [vmem:[%s5117_s25 + $0x6e0] sm:$0xff]  ;;  %821 = vst [vmem:[%s5122_s26 + $0x360] sm:$0xff] %v820_v44  ;;  %823 = vst [vmem:[%s5122_s26 + $0x368] sm:$0xff] %v822_v45  ;;  %v828_v48 = vld [vmem:[%s5117_s25 + $0x6f0] sm:$0xff] }
  0x48   : > { %825 = vst [vmem:[%s5122_s26 + $0x370] sm:$0xff] %v824_v46  ;;  %v830_v49 = vld [vmem:[%s5117_s25 + $0x6f8] sm:$0xff]  ;;  %827 = vst [vmem:[%s5122_s26 + $0x378] sm:$0xff] %v826_v47  ;;  %v832_v50 = vld [vmem:[%s5117_s25 + $0x700] sm:$0xff] }
  0x49   : > { %829 = vst [vmem:[%s5122_s26 + $0x380] sm:$0xff] %v828_v48  ;;  %831 = vst [vmem:[%s5122_s26 + $0x388] sm:$0xff] %v830_v49  ;;  %v834_v51 = vld [vmem:[%s5117_s25 + $0x708] sm:$0xff]  ;;  %v836_v52 = vld [vmem:[%s5117_s25 + $0x710] sm:$0xff] }
  0x4a   : > { %833 = vst [vmem:[%s5122_s26 + $0x390] sm:$0xff] %v832_v50  ;;  %835 = vst [vmem:[%s5122_s26 + $0x398] sm:$0xff] %v834_v51  ;;  %v838_v53 = vld [vmem:[%s5117_s25 + $0x718] sm:$0xff]  ;;  %v840_v54 = vld [vmem:[%s5117_s25 + $0x720] sm:$0xff] }
  0x4b   : > { %837 = vst [vmem:[%s5122_s26 + $0x3a0] sm:$0xff] %v836_v52  ;;  %v842_v55 = vld [vmem:[%s5117_s25 + $0x728] sm:$0xff]  ;;  %839 = vst [vmem:[%s5122_s26 + $0x3a8] sm:$0xff] %v838_v53  ;;  %v844_v56 = vld [vmem:[%s5117_s25 + $0x730] sm:$0xff] }
  0x4c   : > { %841 = vst [vmem:[%s5122_s26 + $0x3b0] sm:$0xff] %v840_v54  ;;  %843 = vst [vmem:[%s5122_s26 + $0x3b8] sm:$0xff] %v842_v55  ;;  %v846_v57 = vld [vmem:[%s5117_s25 + $0x738] sm:$0xff]  ;;  %v848_v58 = vld [vmem:[%s5117_s25 + $0x740] sm:$0xff] }
  0x4d   : > { %845 = vst [vmem:[%s5122_s26 + $0x3c0] sm:$0xff] %v844_v56  ;;  %847 = vst [vmem:[%s5122_s26 + $0x3c8] sm:$0xff] %v846_v57  ;;  %v850_v59 = vld [vmem:[%s5117_s25 + $0x748] sm:$0xff]  ;;  %v852_v60 = vld [vmem:[%s5117_s25 + $0x750] sm:$0xff] }
  0x4e   : > { %849 = vst [vmem:[%s5122_s26 + $0x3d0] sm:$0xff] %v848_v58  ;;  %v854_v61 = vld [vmem:[%s5117_s25 + $0x758] sm:$0xff]  ;;  %851 = vst [vmem:[%s5122_s26 + $0x3d8] sm:$0xff] %v850_v59  ;;  %v856_v62 = vld [vmem:[%s5117_s25 + $0x760] sm:$0xff] }
  0x4f   : > { %853 = vst [vmem:[%s5122_s26 + $0x3e0] sm:$0xff] %v852_v60  ;;  %855 = vst [vmem:[%s5122_s26 + $0x3e8] sm:$0xff] %v854_v61  ;;  %v858_v63 = vld [vmem:[%s5117_s25 + $0x768] sm:$0xff]  ;;  %v860_v0 = vld [vmem:[%s5117_s25 + $0x770] sm:$0xff] }
  0x50   : > { %857 = vst [vmem:[%s5122_s26 + $0x3f0] sm:$0xff] %v856_v62  ;;  %859 = vst [vmem:[%s5122_s26 + $0x3f8] sm:$0xff] %v858_v63  ;;  %v862_v1 = vld [vmem:[%s5117_s25 + $0x778] sm:$0xff]  ;;  %v864_v2 = vld [vmem:[%s5117_s25 + $0x780] sm:$0xff] }
  0x51   : > { %861 = vst [vmem:[%s5122_s26 + $0x400] sm:$0xff] %v860_v0  ;;  %v866_v3 = vld [vmem:[%s5117_s25 + $0x788] sm:$0xff]  ;;  %863 = vst [vmem:[%s5122_s26 + $0x408] sm:$0xff] %v862_v1  ;;  %v868_v4 = vld [vmem:[%s5117_s25 + $0x790] sm:$0xff] }
  0x52   : > { %865 = vst [vmem:[%s5122_s26 + $0x410] sm:$0xff] %v864_v2  ;;  %867 = vst [vmem:[%s5122_s26 + $0x418] sm:$0xff] %v866_v3  ;;  %v870_v5 = vld [vmem:[%s5117_s25 + $0x798] sm:$0xff]  ;;  %v872_v6 = vld [vmem:[%s5117_s25 + $0x7a0] sm:$0xff] }
  0x53   : > { %869 = vst [vmem:[%s5122_s26 + $0x420] sm:$0xff] %v868_v4  ;;  %871 = vst [vmem:[%s5122_s26 + $0x428] sm:$0xff] %v870_v5  ;;  %v874_v7 = vld [vmem:[%s5117_s25 + $0x7a8] sm:$0xff]  ;;  %v876_v8 = vld [vmem:[%s5117_s25 + $0x7b0] sm:$0xff] }
  0x54   : > { %873 = vst [vmem:[%s5122_s26 + $0x430] sm:$0xff] %v872_v6  ;;  %v878_v9 = vld [vmem:[%s5117_s25 + $0x7b8] sm:$0xff]  ;;  %875 = vst [vmem:[%s5122_s26 + $0x438] sm:$0xff] %v874_v7  ;;  %v880_v10 = vld [vmem:[%s5117_s25 + $0x7c0] sm:$0xff] }
  0x55   : > { %877 = vst [vmem:[%s5122_s26 + $0x440] sm:$0xff] %v876_v8  ;;  %879 = vst [vmem:[%s5122_s26 + $0x448] sm:$0xff] %v878_v9  ;;  %v882_v11 = vld [vmem:[%s5117_s25 + $0x7c8] sm:$0xff]  ;;  %v884_v12 = vld [vmem:[%s5117_s25 + $0x7d0] sm:$0xff] }
  0x56   : > { %881 = vst [vmem:[%s5122_s26 + $0x450] sm:$0xff] %v880_v10  ;;  %883 = vst [vmem:[%s5122_s26 + $0x458] sm:$0xff] %v882_v11  ;;  %v886_v13 = vld [vmem:[%s5117_s25 + $0x7d8] sm:$0xff]  ;;  %v888_v14 = vld [vmem:[%s5117_s25 + $0x7e0] sm:$0xff] }
  0x57   : > { %885 = vst [vmem:[%s5122_s26 + $0x460] sm:$0xff] %v884_v12  ;;  %v890_v15 = vld [vmem:[%s5117_s25 + $0x7e8] sm:$0xff]  ;;  %887 = vst [vmem:[%s5122_s26 + $0x468] sm:$0xff] %v886_v13  ;;  %v892_v16 = vld [vmem:[%s5117_s25 + $0x7f0] sm:$0xff] }
  0x58   : > { %889 = vst [vmem:[%s5122_s26 + $0x470] sm:$0xff] %v888_v14  ;;  %891 = vst [vmem:[%s5122_s26 + $0x478] sm:$0xff] %v890_v15  ;;  %v894_v17 = vld [vmem:[%s5117_s25 + $0x7f8] sm:$0xff]  ;;  %v896_v18 = vld [vmem:[%s5117_s25 + $0x800] sm:$0xff] }
  0x59   : > { %893 = vst [vmem:[%s5122_s26 + $0x480] sm:$0xff] %v892_v16  ;;  %895 = vst [vmem:[%s5122_s26 + $0x488] sm:$0xff] %v894_v17  ;;  %v898_v19 = vld [vmem:[%s5117_s25 + $0x808] sm:$0xff]  ;;  %v900_v20 = vld [vmem:[%s5117_s25 + $0x810] sm:$0xff] }
  0x5a   : > { %897 = vst [vmem:[%s5122_s26 + $0x490] sm:$0xff] %v896_v18  ;;  %v902_v21 = vld [vmem:[%s5117_s25 + $0x818] sm:$0xff]  ;;  %899 = vst [vmem:[%s5122_s26 + $0x498] sm:$0xff] %v898_v19  ;;  %v904_v22 = vld [vmem:[%s5117_s25 + $0x820] sm:$0xff] }
  0x5b   : > { %901 = vst [vmem:[%s5122_s26 + $0x4a0] sm:$0xff] %v900_v20  ;;  %903 = vst [vmem:[%s5122_s26 + $0x4a8] sm:$0xff] %v902_v21  ;;  %v906_v23 = vld [vmem:[%s5117_s25 + $0x828] sm:$0xff]  ;;  %v908_v24 = vld [vmem:[%s5117_s25 + $0x830] sm:$0xff] }
  0x5c   : > { %905 = vst [vmem:[%s5122_s26 + $0x4b0] sm:$0xff] %v904_v22  ;;  %907 = vst [vmem:[%s5122_s26 + $0x4b8] sm:$0xff] %v906_v23  ;;  %v910_v25 = vld [vmem:[%s5117_s25 + $0x838] sm:$0xff]  ;;  %v912_v26 = vld [vmem:[%s5117_s25 + $0x840] sm:$0xff] }
  0x5d   : > { %909 = vst [vmem:[%s5122_s26 + $0x4c0] sm:$0xff] %v908_v24  ;;  %v914_v27 = vld [vmem:[%s5117_s25 + $0x848] sm:$0xff]  ;;  %911 = vst [vmem:[%s5122_s26 + $0x4c8] sm:$0xff] %v910_v25  ;;  %v916_v28 = vld [vmem:[%s5117_s25 + $0x850] sm:$0xff] }
  0x5e   : > { %913 = vst [vmem:[%s5122_s26 + $0x4d0] sm:$0xff] %v912_v26  ;;  %915 = vst [vmem:[%s5122_s26 + $0x4d8] sm:$0xff] %v914_v27  ;;  %v918_v29 = vld [vmem:[%s5117_s25 + $0x858] sm:$0xff]  ;;  %v920_v30 = vld [vmem:[%s5117_s25 + $0x860] sm:$0xff] }
  0x5f   : > { %917 = vst [vmem:[%s5122_s26 + $0x4e0] sm:$0xff] %v916_v28  ;;  %919 = vst [vmem:[%s5122_s26 + $0x4e8] sm:$0xff] %v918_v29  ;;  %v922_v31 = vld [vmem:[%s5117_s25 + $0x868] sm:$0xff]  ;;  %v924_v32 = vld [vmem:[%s5117_s25 + $0x870] sm:$0xff] }
  0x60   : > { %921 = vst [vmem:[%s5122_s26 + $0x4f0] sm:$0xff] %v920_v30  ;;  %v926_v33 = vld [vmem:[%s5117_s25 + $0x878] sm:$0xff]  ;;  %923 = vst [vmem:[%s5122_s26 + $0x4f8] sm:$0xff] %v922_v31  ;;  %v928_v34 = vld [vmem:[%s5117_s25 + $0x880] sm:$0xff] }
  0x61   : > { %925 = vst [vmem:[%s5122_s26 + $0x500] sm:$0xff] %v924_v32  ;;  %927 = vst [vmem:[%s5122_s26 + $0x508] sm:$0xff] %v926_v33  ;;  %v930_v35 = vld [vmem:[%s5117_s25 + $0x888] sm:$0xff]  ;;  %v932_v36 = vld [vmem:[%s5117_s25 + $0x890] sm:$0xff] }
  0x62   : > { %929 = vst [vmem:[%s5122_s26 + $0x510] sm:$0xff] %v928_v34  ;;  %931 = vst [vmem:[%s5122_s26 + $0x518] sm:$0xff] %v930_v35  ;;  %v934_v37 = vld [vmem:[%s5117_s25 + $0xa50] sm:$0xff]  ;;  %v936_v38 = vld [vmem:[%s5117_s25 + $0xa58] sm:$0xff] }
  0x63   : > { %933 = vst [vmem:[%s5122_s26 + $0x520] sm:$0xff] %v932_v36  ;;  %v938_v39 = vld [vmem:[%s5117_s25 + $0xa60] sm:$0xff]  ;;  %935 = vst [vmem:[%s5122_s26 + $0x528] sm:$0xff] %v934_v37  ;;  %v940_v40 = vld [vmem:[%s5117_s25 + $0xa68] sm:$0xff] }
  0x64   : > { %937 = vst [vmem:[%s5122_s26 + $0x530] sm:$0xff] %v936_v38  ;;  %939 = vst [vmem:[%s5122_s26 + $0x538] sm:$0xff] %v938_v39  ;;  %v942_v41 = vld [vmem:[%s5117_s25 + $0xa70] sm:$0xff]  ;;  %v944_v42 = vld [vmem:[%s5117_s25 + $0xa78] sm:$0xff] }
  0x65   : > { %941 = vst [vmem:[%s5122_s26 + $0x540] sm:$0xff] %v940_v40  ;;  %943 = vst [vmem:[%s5122_s26 + $0x548] sm:$0xff] %v942_v41  ;;  %v946_v43 = vld [vmem:[%s5117_s25 + $0xa80] sm:$0xff]  ;;  %v948_v44 = vld [vmem:[%s5117_s25 + $0xa88] sm:$0xff] }
  0x66   : > { %945 = vst [vmem:[%s5122_s26 + $0x550] sm:$0xff] %v944_v42  ;;  %v950_v45 = vld [vmem:[%s5117_s25 + $0xa90] sm:$0xff]  ;;  %947 = vst [vmem:[%s5122_s26 + $0x558] sm:$0xff] %v946_v43  ;;  %v952_v46 = vld [vmem:[%s5117_s25 + $0xa98] sm:$0xff] }
  0x67   : > { %949 = vst [vmem:[%s5122_s26 + $0x560] sm:$0xff] %v948_v44  ;;  %951 = vst [vmem:[%s5122_s26 + $0x568] sm:$0xff] %v950_v45  ;;  %v954_v47 = vld [vmem:[%s5117_s25 + $0xaa0] sm:$0xff]  ;;  %v956_v48 = vld [vmem:[%s5117_s25 + $0xaa8] sm:$0xff] }
  0x68   : > { %953 = vst [vmem:[%s5122_s26 + $0x570] sm:$0xff] %v952_v46  ;;  %955 = vst [vmem:[%s5122_s26 + $0x578] sm:$0xff] %v954_v47  ;;  %v958_v49 = vld [vmem:[%s5117_s25 + $0xab0] sm:$0xff]  ;;  %v960_v50 = vld [vmem:[%s5117_s25 + $0xab8] sm:$0xff] }
  0x69   : > { %957 = vst [vmem:[%s5122_s26 + $0x580] sm:$0xff] %v956_v48  ;;  %v962_v51 = vld [vmem:[%s5117_s25 + $0xac0] sm:$0xff]  ;;  %959 = vst [vmem:[%s5122_s26 + $0x588] sm:$0xff] %v958_v49  ;;  %v964_v52 = vld [vmem:[%s5117_s25 + $0xac8] sm:$0xff] }
  0x6a   : > { %961 = vst [vmem:[%s5122_s26 + $0x590] sm:$0xff] %v960_v50  ;;  %963 = vst [vmem:[%s5122_s26 + $0x598] sm:$0xff] %v962_v51  ;;  %v966_v53 = vld [vmem:[%s5117_s25 + $0xad0] sm:$0xff]  ;;  %v968_v54 = vld [vmem:[%s5117_s25 + $0xad8] sm:$0xff] }
  0x6b   : > { %965 = vst [vmem:[%s5122_s26 + $0x5a0] sm:$0xff] %v964_v52  ;;  %967 = vst [vmem:[%s5122_s26 + $0x5a8] sm:$0xff] %v966_v53  ;;  %v970_v55 = vld [vmem:[%s5117_s25 + $0xae0] sm:$0xff]  ;;  %v972_v56 = vld [vmem:[%s5117_s25 + $0xae8] sm:$0xff] }
  0x6c   : > { %969 = vst [vmem:[%s5122_s26 + $0x5b0] sm:$0xff] %v968_v54  ;;  %v974_v57 = vld [vmem:[%s5117_s25 + $0xaf0] sm:$0xff]  ;;  %971 = vst [vmem:[%s5122_s26 + $0x5b8] sm:$0xff] %v970_v55  ;;  %v976_v58 = vld [vmem:[%s5117_s25 + $0xaf8] sm:$0xff] }
  0x6d   : > { %973 = vst [vmem:[%s5122_s26 + $0x5c0] sm:$0xff] %v972_v56  ;;  %975 = vst [vmem:[%s5122_s26 + $0x5c8] sm:$0xff] %v974_v57  ;;  %v978_v59 = vld [vmem:[%s5117_s25 + $0xb00] sm:$0xff]  ;;  %v980_v60 = vld [vmem:[%s5117_s25 + $0xb08] sm:$0xff] }
  0x6e   : > { %977 = vst [vmem:[%s5122_s26 + $0x5d0] sm:$0xff] %v976_v58  ;;  %979 = vst [vmem:[%s5122_s26 + $0x5d8] sm:$0xff] %v978_v59  ;;  %v982_v61 = vld [vmem:[%s5117_s25 + $0xb10] sm:$0xff]  ;;  %v984_v62 = vld [vmem:[%s5117_s25 + $0xb18] sm:$0xff] }
  0x6f   : > { %981 = vst [vmem:[%s5122_s26 + $0x5e0] sm:$0xff] %v980_v60  ;;  %v986_v63 = vld [vmem:[%s5117_s25 + $0xb20] sm:$0xff]  ;;  %983 = vst [vmem:[%s5122_s26 + $0x5e8] sm:$0xff] %v982_v61  ;;  %v988_v0 = vld [vmem:[%s5117_s25 + $0xb28] sm:$0xff] }
  0x70   : > { %985 = vst [vmem:[%s5122_s26 + $0x5f0] sm:$0xff] %v984_v62  ;;  %987 = vst [vmem:[%s5122_s26 + $0x5f8] sm:$0xff] %v986_v63  ;;  %v990_v1 = vld [vmem:[%s5117_s25 + $0xb30] sm:$0xff]  ;;  %v992_v2 = vld [vmem:[%s5117_s25 + $0xb38] sm:$0xff] }
  0x71   : > { %989 = vst [vmem:[%s5122_s26 + $0x600] sm:$0xff] %v988_v0  ;;  %991 = vst [vmem:[%s5122_s26 + $0x608] sm:$0xff] %v990_v1  ;;  %v994_v3 = vld [vmem:[%s5117_s25 + $0xb40] sm:$0xff]  ;;  %v996_v4 = vld [vmem:[%s5117_s25 + $0xb48] sm:$0xff] }
  0x72   : > { %993 = vst [vmem:[%s5122_s26 + $0x610] sm:$0xff] %v992_v2  ;;  %v998_v5 = vld [vmem:[%s5117_s25 + $0xb50] sm:$0xff]  ;;  %995 = vst [vmem:[%s5122_s26 + $0x618] sm:$0xff] %v994_v3  ;;  %v1000_v6 = vld [vmem:[%s5117_s25 + $0xb58] sm:$0xff] }
  0x73   : > { %997 = vst [vmem:[%s5122_s26 + $0x620] sm:$0xff] %v996_v4  ;;  %999 = vst [vmem:[%s5122_s26 + $0x628] sm:$0xff] %v998_v5  ;;  %v1002_v7 = vld [vmem:[%s5117_s25 + $0xb60] sm:$0xff]  ;;  %v1004_v8 = vld [vmem:[%s5117_s25 + $0xb68] sm:$0xff] }
  0x74   : > { %1001 = vst [vmem:[%s5122_s26 + $0x630] sm:$0xff] %v1000_v6  ;;  %1003 = vst [vmem:[%s5122_s26 + $0x638] sm:$0xff] %v1002_v7  ;;  %v1006_v9 = vld [vmem:[%s5117_s25 + $0xb70] sm:$0xff]  ;;  %v1008_v10 = vld [vmem:[%s5117_s25 + $0xb78] sm:$0xff] }
  0x75   : > { %1005 = vst [vmem:[%s5122_s26 + $0x640] sm:$0xff] %v1004_v8  ;;  %v1010_v11 = vld [vmem:[%s5117_s25 + $0xb80] sm:$0xff]  ;;  %1007 = vst [vmem:[%s5122_s26 + $0x648] sm:$0xff] %v1006_v9  ;;  %v1012_v12 = vld [vmem:[%s5117_s25 + $0xb88] sm:$0xff] }
  0x76   : > { %1009 = vst [vmem:[%s5122_s26 + $0x650] sm:$0xff] %v1008_v10  ;;  %1011 = vst [vmem:[%s5122_s26 + $0x658] sm:$0xff] %v1010_v11  ;;  %v1014_v13 = vld [vmem:[%s5117_s25 + $0xb90] sm:$0xff]  ;;  %v1016_v14 = vld [vmem:[%s5117_s25 + $0xb98] sm:$0xff] }
  0x77   : > { %1013 = vst [vmem:[%s5122_s26 + $0x660] sm:$0xff] %v1012_v12  ;;  %1015 = vst [vmem:[%s5122_s26 + $0x668] sm:$0xff] %v1014_v13  ;;  %v1018_v15 = vld [vmem:[%s5117_s25 + $0xba0] sm:$0xff]  ;;  %v1020_v16 = vld [vmem:[%s5117_s25 + $0xba8] sm:$0xff] }
  0x78   : > { %1017 = vst [vmem:[%s5122_s26 + $0x670] sm:$0xff] %v1016_v14  ;;  %v1022_v17 = vld [vmem:[%s5117_s25 + $0xbb0] sm:$0xff]  ;;  %1019 = vst [vmem:[%s5122_s26 + $0x678] sm:$0xff] %v1018_v15  ;;  %v1024_v18 = vld [vmem:[%s5117_s25 + $0xbb8] sm:$0xff] }
  0x79   : > { %1021 = vst [vmem:[%s5122_s26 + $0x680] sm:$0xff] %v1020_v16  ;;  %1023 = vst [vmem:[%s5122_s26 + $0x688] sm:$0xff] %v1022_v17  ;;  %v1026_v19 = vld [vmem:[%s5117_s25 + $0xbc0] sm:$0xff]  ;;  %v1028_v20 = vld [vmem:[%s5117_s25 + $0xbc8] sm:$0xff] }
  0x7a   : > { %1025 = vst [vmem:[%s5122_s26 + $0x690] sm:$0xff] %v1024_v18  ;;  %1027 = vst [vmem:[%s5122_s26 + $0x698] sm:$0xff] %v1026_v19  ;;  %v1030_v21 = vld [vmem:[%s5117_s25 + $0xbd0] sm:$0xff]  ;;  %v1032_v22 = vld [vmem:[%s5117_s25 + $0xbd8] sm:$0xff] }
  0x7b   : > { %1029 = vst [vmem:[%s5122_s26 + $0x6a0] sm:$0xff] %v1028_v20  ;;  %v1034_v23 = vld [vmem:[%s5117_s25 + $0xbe0] sm:$0xff]  ;;  %1031 = vst [vmem:[%s5122_s26 + $0x6a8] sm:$0xff] %v1030_v21  ;;  %v1036_v24 = vld [vmem:[%s5117_s25 + $0xbe8] sm:$0xff] }
  0x7c   : > { %1033 = vst [vmem:[%s5122_s26 + $0x6b0] sm:$0xff] %v1032_v22  ;;  %1035 = vst [vmem:[%s5122_s26 + $0x6b8] sm:$0xff] %v1034_v23  ;;  %v1038_v25 = vld [vmem:[%s5117_s25 + $0xbf0] sm:$0xff]  ;;  %v1040_v26 = vld [vmem:[%s5117_s25 + $0xbf8] sm:$0xff] }
  0x7d   : > { %1037 = vst [vmem:[%s5122_s26 + $0x6c0] sm:$0xff] %v1036_v24  ;;  %1039 = vst [vmem:[%s5122_s26 + $0x6c8] sm:$0xff] %v1038_v25  ;;  %v1042_v27 = vld [vmem:[%s5117_s25 + $0xc00] sm:$0xff] }
  0x7e   : > { %1041 = vst [vmem:[%s5122_s26 + $0x6d0] sm:$0xff] %v1040_v26  ;;  %1043 = vst [vmem:[%s5122_s26 + $0x6d8] sm:$0xff] %v1042_v27 }
  0x7f PF: > { %p3686_p5 = scmp.ge.s32.totalorder %s5059_s14, 1  ;;  %p1048_p6 = scmp.lt.s32.totalorder %s5059_s14, 3 }
  0x81   : > { %p1049_p7 = pnand %p3686_p5, %p1048_p6 }
  0x83   : > { %1052 = sbr.rel (%p1049_p7) target bundleno = 782 (0x30e), region = 66 }
  0x88   : > { %v1088_v28 = vld [vmem:[%s7106_s1 + $0x18] sm:$0x1]  ;;  %vm1310_vm0 = vcmask 1040384   ;;  %v7165_v29 = vmov 0.0   ;;  %v1087_v30 = vld [vmem:[%s7106_s1 + $0x10] sm:$0xff]  ;;  %s1055_s4 = sand.u32 1, %s5051_s12  }
  0x89   : > { %4317 = vmatprep.subr.mxu0 %v7165_v29  ;;  %4490 = vmatprep.subr.mxu1 %v7165_v29  ;;  %s5010_s5 = smul.u32 1760, %s1055_s4  ;;  %v1086_v31 = vld [vmem:[%s7106_s1 + $0x8] sm:$0xff]  ;;  %v1085_v32 = vld [vmem:[%s7106_s1] sm:$0xff]  ;;  %vm1144_vm1 = vcmask 203776   ;;  %vm5062_vm2 = vmmov 0  }
  0x8a   : > { %4318 = vmatpush3.msk.msra.mxu0 %vm1310_vm0, %v1088_v28  ;;  %4491 = vmatpush3.msk.msra.mxu1 %vm1310_vm0, %v1088_v28  ;;  %s1079_s11 = smul.u32 55, %s3681_s15 }
  0x8b   : > { %4319 = vmatprep.subr.mxu0 %v7165_v29  ;;  %4492 = vmatprep.subr.mxu1 %v7165_v29  ;;  %s5586_s10 = scalar_lea.vmem [#allocation2], %s5010_s5 }
  0x8c   : > { %4320 = vmatpush3.msra.mxu0 %v1087_v30  ;;  %4493 = vmatpush3.msra.mxu1 %v1087_v30  ;;  %v1089_v33 = vld [vmem:[%s5586_s10] sm:$0xff]  ;;  %v3744_v34 = vld [vmem:[%s5586_s10 + $0x1b8] sm:$0xff]  ;;  %v1090_v35 = vld [vmem:[%s5586_s10 + $0x8] sm:$0xff]  ;;  %p1080_p8 = scmp.lt.s32.totalorder %s1079_s11, 109 }
  0x8d   : > { %4321 = vmatprep.subr.mxu0 %v7165_v29  ;;  %4494 = vmatprep.subr.mxu1 %v7165_v29  ;;  %v3745_v36 = vld [vmem:[%s5586_s10 + $0x1c0] sm:$0xff]  ;;  %v1091_v37 = vld [vmem:[%s5586_s10 + $0x10] sm:$0xff]  ;;  %v3746_v38 = vld [vmem:[%s5586_s10 + $0x1c8] sm:$0xff] }
  0x8e   : > { %4322 = vmatpush3.msra.mxu0 %v1086_v31  ;;  %4495 = vmatpush3.msra.mxu1 %v1086_v31  ;;  %v1092_v39 = vld [vmem:[%s5586_s10 + $0x18] sm:$0xff]  ;;  %v3747_v40 = vld [vmem:[%s5586_s10 + $0x1d0] sm:$0xff]  ;;  %v1093_v41 = vld [vmem:[%s5586_s10 + $0x20] sm:$0xff]  ;;  %s7345_s11 = smov (!%p1080_p8, %s1079_s11), 109 }
  0x8f   : > { %4323 = vmatprep.subr.mxu0 %v7165_v29  ;;  %4496 = vmatprep.subr.mxu1 %v7165_v29  ;;  %v3748_v42 = vld [vmem:[%s5586_s10 + $0x1d8] sm:$0xff]  ;;  %v1094_v43 = vld [vmem:[%s5586_s10 + $0x28] sm:$0xff]  ;;  %v3749_v44 = vld [vmem:[%s5586_s10 + $0x1e0] sm:$0xff]  ;;  %s3687_s12 = sshll.u32 %s7345_s11, 3 }
  0x90   : > { %4324 = vmatpush3.msra.mxu0 %v1085_v32  ;;  %4325 = vmatprep.mubr.msk.f32.mxu0 %vm5062_vm2, %v7165_v29  ;;  %v1095_v45 = vld [vmem:[%s5586_s10 + $0x30] sm:$0xff]  ;;  %v3750_v46 = vld [vmem:[%s5586_s10 + $0x1e8] sm:$0xff]  ;;  %v1096_v47 = vld [vmem:[%s5586_s10 + $0x38] sm:$0xff]  ;;  %s6779_s20 = scalar_lea.vmem %s7108_s3, %s3687_s12 }
  0x91   : > { %4497 = vmatpush3.msra.mxu1 %v1085_v32  ;;  %4498 = vmatprep.mubr.msk.f32.mxu1 %vm5062_vm2, %v7165_v29  ;;  %v3751_v48 = vld [vmem:[%s5586_s10 + $0x1f0] sm:$0xff]  ;;  %v1097_v49 = vld [vmem:[%s5586_s10 + $0x40] sm:$0xff]  ;;  %v3752_v50 = vld [vmem:[%s5586_s10 + $0x1f8] sm:$0xff] }
  0x92   : > { %4326 = vmatmul.mubr.msk.f32.vlgmr.msra.gmra.mxu0 %vm1144_vm1, %v1089_v33  ;;  %4499 = vmatmul.mubr.msk.f32.vlgmr.msra.gmra.mxu1 %vm1144_vm1, %v3744_v34  ;;  %v1098_v51 = vld [vmem:[%s5586_s10 + $0x48] sm:$0xff]  ;;  %v3753_v52 = vld [vmem:[%s5586_s10 + $0x200] sm:$0xff]  ;;  %v1099_v53 = vld [vmem:[%s5586_s10 + $0x50] sm:$0xff] }
  0x93   : > { %4663 = vmatprep.subr.mxu0 %v7165_v29  ;;  %4836 = vmatprep.subr.mxu1 %v7165_v29  ;;  %v3754_v54 = vld [vmem:[%s5586_s10 + $0x208] sm:$0xff]  ;;  %v1100_v55 = vld [vmem:[%s5586_s10 + $0x58] sm:$0xff]  ;;  %v3755_v56 = vld [vmem:[%s5586_s10 + $0x210] sm:$0xff] }
  0x94   : > { %4664 = vmatpush3.msk.msra.mxu0 %vm1310_vm0, %v1088_v28  ;;  %4837 = vmatpush3.msk.msra.mxu1 %vm1310_vm0, %v1088_v28  ;;  %v1101_v57 = vld [vmem:[%s5586_s10 + $0x60] sm:$0xff]  ;;  %v3756_v58 = vld [vmem:[%s5586_s10 + $0x218] sm:$0xff]  ;;  %v1102_v59 = vld [vmem:[%s5586_s10 + $0x68] sm:$0xff] }
  0x95   : > { %4328 = vmatprep.mubr.msk.f32.mxu0 %vm5062_vm2, %v7165_v29  ;;  %4501 = vmatprep.mubr.msk.f32.mxu1 %vm5062_vm2, %v7165_v29  ;;  %v3757_v60 = vld [vmem:[%s5586_s10 + $0x220] sm:$0xff]  ;;  %v1103_v61 = vld [vmem:[%s5586_s10 + $0x70] sm:$0xff]  ;;  %v3758_v62 = vld [vmem:[%s5586_s10 + $0x228] sm:$0xff] }
  0x96   : > { %4329 = vmatmul.mubr.msk.f32.gmra.mxu0 %vm1144_vm1, %v1090_v35  ;;  %4502 = vmatmul.mubr.msk.f32.gmra.mxu1 %vm1144_vm1, %v3745_v36  ;;  %v1104_v63 = vld [vmem:[%s5586_s10 + $0x78] sm:$0xff]  ;;  %v3759_v0 = vld [vmem:[%s5586_s10 + $0x230] sm:$0xff]  ;;  %v1105_v1 = vld [vmem:[%s5586_s10 + $0x80] sm:$0xff] }
  0x97   : > { %4331 = vmatprep.mubr.msk.f32.mxu0 %vm5062_vm2, %v7165_v29  ;;  %4504 = vmatprep.mubr.msk.f32.mxu1 %vm5062_vm2, %v7165_v29  ;;  %v3760_v2 = vld [vmem:[%s5586_s10 + $0x238] sm:$0xff]  ;;  %v1106_v3 = vld [vmem:[%s5586_s10 + $0x88] sm:$0xff]  ;;  %v3761_v4 = vld [vmem:[%s5586_s10 + $0x240] sm:$0xff] }
  0x98   : > { %4665 = vmatprep.subr.mxu0 %v7165_v29  ;;  %4838 = vmatprep.subr.mxu1 %v7165_v29  ;;  %v1107_v5 = vld [vmem:[%s5586_s10 + $0x90] sm:$0xff]  ;;  %v3762_v6 = vld [vmem:[%s5586_s10 + $0x248] sm:$0xff]  ;;  %v1108_v7 = vld [vmem:[%s5586_s10 + $0x98] sm:$0xff] }
  0x99   : > { %4666 = vmatpush3.msra.mxu0 %v1087_v30  ;;  %4839 = vmatpush3.msra.mxu1 %v1087_v30  ;;  %v3763_v8 = vld [vmem:[%s5586_s10 + $0x250] sm:$0xff]  ;;  %v1109_v9 = vld [vmem:[%s5586_s10 + $0xa0] sm:$0xff]  ;;  %v3764_v10 = vld [vmem:[%s5586_s10 + $0x258] sm:$0xff] }
  0x9a   : > { %4332 = vmatmul.mubr.msk.f32.gmra.mxu0 %vm1144_vm1, %v1091_v37  ;;  %4505 = vmatmul.mubr.msk.f32.gmra.mxu1 %vm1144_vm1, %v3746_v38  ;;  %v1110_v11 = vld [vmem:[%s5586_s10 + $0xa8] sm:$0xff]  ;;  %v3765_v12 = vld [vmem:[%s5586_s10 + $0x260] sm:$0xff]  ;;  %v1111_v13 = vld [vmem:[%s5586_s10 + $0xb0] sm:$0xff] }
  0x9b   : > { %4334 = vmatprep.mubr.msk.f32.mxu0 %vm5062_vm2, %v7165_v29  ;;  %4507 = vmatprep.mubr.msk.f32.mxu1 %vm5062_vm2, %v7165_v29  ;;  %v3766_v14 = vld [vmem:[%s5586_s10 + $0x268] sm:$0xff]  ;;  %v1112_v15 = vld [vmem:[%s5586_s10 + $0xb8] sm:$0xff]  ;;  %v3767_v16 = vld [vmem:[%s5586_s10 + $0x270] sm:$0xff] }
  0x9c   : > { %4667 = vmatprep.subr.mxu0 %v7165_v29  ;;  %4840 = vmatprep.subr.mxu1 %v7165_v29  ;;  %v1113_v17 = vld [vmem:[%s5586_s10 + $0xc0] sm:$0xff]  ;;  %v3768_v18 = vld [vmem:[%s5586_s10 + $0x278] sm:$0xff]  ;;  %v1114_v19 = vld [vmem:[%s5586_s10 + $0xc8] sm:$0xff] }
  0x9d   : > { %4668 = vmatpush3.msra.mxu0 %v1086_v31  ;;  %4841 = vmatpush3.msra.mxu1 %v1086_v31  ;;  %v3769_v20 = vld [vmem:[%s5586_s10 + $0x280] sm:$0xff]  ;;  %v1115_v21 = vld [vmem:[%s5586_s10 + $0xd0] sm:$0xff]  ;;  %v3770_v22 = vld [vmem:[%s5586_s10 + $0x288] sm:$0xff] }
  0x9e   : > { %4335 = vmatmul.mubr.msk.f32.gmra.mxu0 %vm1144_vm1, %v1092_v39  ;;  %4508 = vmatmul.mubr.msk.f32.gmra.mxu1 %vm1144_vm1, %v3747_v40  ;;  %v1116_v23 = vld [vmem:[%s5586_s10 + $0xd8] sm:$0xff]  ;;  %v3771_v24 = vld [vmem:[%s5586_s10 + $0x290] sm:$0xff]  ;;  %v1117_v25 = vld [vmem:[%s5586_s10 + $0xe0] sm:$0xff] }
  0x9f   : > { %4337 = vmatprep.mubr.msk.f32.mxu0 %vm5062_vm2, %v7165_v29  ;;  %4510 = vmatprep.mubr.msk.f32.mxu1 %vm5062_vm2, %v7165_v29  ;;  %v3772_v26 = vld [vmem:[%s5586_s10 + $0x298] sm:$0xff]  ;;  %v1118_v27 = vld [vmem:[%s5586_s10 + $0xe8] sm:$0xff]  ;;  %v3773_v28 = vld [vmem:[%s5586_s10 + $0x2a0] sm:$0xff] }
  0xa0   : > { %4669 = vmatprep.subr.mxu0 %v7165_v29  ;;  %4842 = vmatprep.subr.mxu1 %v7165_v29  ;;  %v1119_v30 = vld [vmem:[%s5586_s10 + $0xf0] sm:$0xff]  ;;  %v3774_v31 = vld [vmem:[%s5586_s10 + $0x2a8] sm:$0xff]  ;;  %v1121_v34 = vld [vmem:[%s5586_s10 + $0x100] sm:$0xff] }
  0xa1   : > { %4670 = vmatpush3.msra.mxu0 %v1085_v32  ;;  %4843 = vmatpush3.msra.mxu1 %v1085_v32  ;;  %v1120_v32 = vld [vmem:[%s5586_s10 + $0xf8] sm:$0xff]  ;;  %v3775_v33 = vld [vmem:[%s5586_s10 + $0x2b0] sm:$0xff]  ;;  %v1122_v36 = vld [vmem:[%s5586_s10 + $0x108] sm:$0xff] }
  0xa2   : > { %4338 = vmatmul.mubr.msk.f32.gmra.mxu0 %vm1144_vm1, %v1093_v41  ;;  %4511 = vmatmul.mubr.msk.f32.gmra.mxu1 %vm1144_vm1, %v3748_v42  ;;  %v3776_v35 = vld [vmem:[%s5586_s10 + $0x2b8] sm:$0xff]  ;;  %v3777_v37 = vld [vmem:[%s5586_s10 + $0x2c0] sm:$0xff]  ;;  %v1123_v38 = vld [vmem:[%s5586_s10 + $0x110] sm:$0xff] }
  0xa3   : > { %4340 = vmatprep.mubr.msk.f32.mxu0 %vm5062_vm2, %v7165_v29  ;;  %4513 = vmatprep.mubr.msk.f32.mxu1 %vm5062_vm2, %v7165_v29  ;;  %v3778_v39 = vld [vmem:[%s5586_s10 + $0x2c8] sm:$0xff]  ;;  %v1124_v40 = vld [vmem:[%s5586_s10 + $0x118] sm:$0xff]  ;;  %v3779_v41 = vld [vmem:[%s5586_s10 + $0x2d0] sm:$0xff] }
  0xa4   : > { %v1125_v42 = vld [vmem:[%s5586_s10 + $0x120] sm:$0xff] }
  0xa6   : > { %4341 = vmatmul.mubr.msk.f32.gmra.mxu0 %vm1144_vm1, %v1094_v43  ;;  %4514 = vmatmul.mubr.msk.f32.gmra.mxu1 %vm1144_vm1, %v3749_v44  ;;  %v3780_v43 = vld [vmem:[%s5586_s10 + $0x2d8] sm:$0xff]  ;;  %v1126_v44 = vld [vmem:[%s5586_s10 + $0x128] sm:$0xff] }
  0xa7   : > { %4343 = vmatprep.mubr.msk.f32.mxu0 %vm5062_vm2, %v7165_v29  ;;  %4516 = vmatprep.mubr.msk.f32.mxu1 %vm5062_vm2, %v7165_v29 }
  0xaa   : > { %4344 = vmatmul.mubr.msk.f32.gmra.mxu0 %vm1144_vm1, %v1095_v45  ;;  %4517 = vmatmul.mubr.msk.f32.gmra.mxu1 %vm1144_vm1, %v3750_v46  ;;  %v3781_v45 = vld [vmem:[%s5586_s10 + $0x2e0] sm:$0xff]  ;;  %v1127_v46 = vld [vmem:[%s5586_s10 + $0x130] sm:$0xff] }
  0xab   : > { %4346 = vmatprep.mubr.msk.f32.mxu0 %vm5062_vm2, %v7165_v29  ;;  %4519 = vmatprep.mubr.msk.f32.mxu1 %vm5062_vm2, %v7165_v29 }
  0xae   : > { %4347 = vmatmul.mubr.msk.f32.gmra.mxu0 %vm1144_vm1, %v1096_v47  ;;  %4520 = vmatmul.mubr.msk.f32.gmra.mxu1 %vm1144_vm1, %v3751_v48  ;;  %v3782_v47 = vld [vmem:[%s5586_s10 + $0x2e8] sm:$0xff]  ;;  %v1128_v48 = vld [vmem:[%s5586_s10 + $0x138] sm:$0xff] }
  0xaf   : > { %4349 = vmatprep.mubr.msk.f32.mxu0 %vm5062_vm2, %v7165_v29  ;;  %4522 = vmatprep.mubr.msk.f32.mxu1 %vm5062_vm2, %v7165_v29 }
  0xb2   : > { %4350 = vmatmul.mubr.msk.f32.gmra.mxu0 %vm1144_vm1, %v1097_v49  ;;  %4523 = vmatmul.mubr.msk.f32.gmra.mxu1 %vm1144_vm1, %v3752_v50  ;;  %v3783_v49 = vld [vmem:[%s5586_s10 + $0x2f0] sm:$0xff]  ;;  %v1129_v50 = vld [vmem:[%s5586_s10 + $0x140] sm:$0xff] }
  0xb3   : > { %4352 = vmatprep.mubr.msk.f32.mxu0 %vm5062_vm2, %v7165_v29  ;;  %4525 = vmatprep.mubr.msk.f32.mxu1 %vm5062_vm2, %v7165_v29 }
  0xb6   : > { %4353 = vmatmul.mubr.msk.f32.gmra.mxu0 %vm1144_vm1, %v1098_v51  ;;  %4526 = vmatmul.mubr.msk.f32.gmra.mxu1 %vm1144_vm1, %v3753_v52  ;;  %v3784_v51 = vld [vmem:[%s5586_s10 + $0x2f8] sm:$0xff]  ;;  %v1130_v52 = vld [vmem:[%s5586_s10 + $0x148] sm:$0xff] }
  0xb7   : > { %4355 = vmatprep.mubr.msk.f32.mxu0 %vm5062_vm2, %v7165_v29  ;;  %4528 = vmatprep.mubr.msk.f32.mxu1 %vm5062_vm2, %v7165_v29 }
  0xba   : > { %4356 = vmatmul.mubr.msk.f32.gmra.mxu0 %vm1144_vm1, %v1099_v53  ;;  %4529 = vmatmul.mubr.msk.f32.gmra.mxu1 %vm1144_vm1, %v3754_v54  ;;  %v3785_v53 = vld [vmem:[%s5586_s10 + $0x300] sm:$0xff]  ;;  %v1131_v54 = vld [vmem:[%s5586_s10 + $0x150] sm:$0xff] }
  0xbb   : > { %4358 = vmatprep.mubr.msk.f32.mxu0 %vm5062_vm2, %v7165_v29  ;;  %4531 = vmatprep.mubr.msk.f32.mxu1 %vm5062_vm2, %v7165_v29 }
  0xbe   : > { %4359 = vmatmul.mubr.msk.f32.gmra.mxu0 %vm1144_vm1, %v1100_v55  ;;  %4532 = vmatmul.mubr.msk.f32.gmra.mxu1 %vm1144_vm1, %v3755_v56  ;;  %v3786_v55 = vld [vmem:[%s5586_s10 + $0x308] sm:$0xff]  ;;  %v1132_v56 = vld [vmem:[%s5586_s10 + $0x158] sm:$0xff] }
  0xbf   : > { %4361 = vmatprep.mubr.msk.f32.mxu0 %vm5062_vm2, %v7165_v29  ;;  %4534 = vmatprep.mubr.msk.f32.mxu1 %vm5062_vm2, %v7165_v29 }
  0xc2   : > { %4362 = vmatmul.mubr.msk.f32.gmra.mxu0 %vm1144_vm1, %v1101_v57  ;;  %4535 = vmatmul.mubr.msk.f32.gmra.mxu1 %vm1144_vm1, %v3756_v58  ;;  %v3787_v57 = vld [vmem:[%s5586_s10 + $0x310] sm:$0xff]  ;;  %v1133_v58 = vld [vmem:[%s5586_s10 + $0x160] sm:$0xff] }
  0xc3   : > { %4364 = vmatprep.mubr.msk.f32.mxu0 %vm5062_vm2, %v7165_v29  ;;  %4537 = vmatprep.mubr.msk.f32.mxu1 %vm5062_vm2, %v7165_v29 }
  0xc6   : > { %4365 = vmatmul.mubr.msk.f32.gmra.mxu0 %vm1144_vm1, %v1102_v59  ;;  %4538 = vmatmul.mubr.msk.f32.gmra.mxu1 %vm1144_vm1, %v3757_v60  ;;  %v3788_v59 = vld [vmem:[%s5586_s10 + $0x318] sm:$0xff]  ;;  %v1134_v60 = vld [vmem:[%s5586_s10 + $0x168] sm:$0xff] }
  0xc7   : > { %4367 = vmatprep.mubr.msk.f32.mxu0 %vm5062_vm2, %v7165_v29  ;;  %4540 = vmatprep.mubr.msk.f32.mxu1 %vm5062_vm2, %v7165_v29 }
  0xca   : > { %4368 = vmatmul.mubr.msk.f32.gmra.mxu0 %vm1144_vm1, %v1103_v61  ;;  %4541 = vmatmul.mubr.msk.f32.gmra.mxu1 %vm1144_vm1, %v3758_v62  ;;  %v3789_v61 = vld [vmem:[%s5586_s10 + $0x320] sm:$0xff]  ;;  %v1135_v62 = vld [vmem:[%s5586_s10 + $0x170] sm:$0xff] }
  0xcb   : > { %4370 = vmatprep.mubr.msk.f32.mxu0 %vm5062_vm2, %v7165_v29  ;;  %4543 = vmatprep.mubr.msk.f32.mxu1 %vm5062_vm2, %v7165_v29 }
  0xce   : > { %4371 = vmatmul.mubr.msk.f32.gmra.mxu0 %vm1144_vm1, %v1104_v63  ;;  %4544 = vmatmul.mubr.msk.f32.gmra.mxu1 %vm1144_vm1, %v3759_v0  ;;  %v3790_v63 = vld [vmem:[%s5586_s10 + $0x328] sm:$0xff]  ;;  %v1136_v0 = vld [vmem:[%s5586_s10 + $0x178] sm:$0xff] }
  0xcf   : > { %4373 = vmatprep.mubr.msk.f32.mxu0 %vm5062_vm2, %v7165_v29  ;;  %4546 = vmatprep.mubr.msk.f32.mxu1 %vm5062_vm2, %v7165_v29 }
  0xd2   : > { %4374 = vmatmul.mubr.msk.f32.gmra.mxu0 %vm1144_vm1, %v1105_v1  ;;  %4547 = vmatmul.mubr.msk.f32.gmra.mxu1 %vm1144_vm1, %v3760_v2  ;;  %v3791_v1 = vld [vmem:[%s5586_s10 + $0x330] sm:$0xff]  ;;  %v1137_v2 = vld [vmem:[%s5586_s10 + $0x180] sm:$0xff] }
  0xd3   : > { %4376 = vmatprep.mubr.msk.f32.mxu0 %vm5062_vm2, %v7165_v29  ;;  %4549 = vmatprep.mubr.msk.f32.mxu1 %vm5062_vm2, %v7165_v29 }
  0xd6   : > { %4377 = vmatmul.mubr.msk.f32.gmra.mxu0 %vm1144_vm1, %v1106_v3  ;;  %4550 = vmatmul.mubr.msk.f32.gmra.mxu1 %vm1144_vm1, %v3761_v4  ;;  %v3792_v3 = vld [vmem:[%s5586_s10 + $0x338] sm:$0xff] }
  0xd7   : > { %4379 = vmatprep.mubr.msk.f32.mxu0 %vm5062_vm2, %v7165_v29  ;;  %4552 = vmatprep.mubr.msk.f32.mxu1 %vm5062_vm2, %v7165_v29 }
  0xda   : > { %4380 = vmatmul.mubr.msk.f32.gmra.mxu0 %vm1144_vm1, %v1107_v5  ;;  %4553 = vmatmul.mubr.msk.f32.gmra.mxu1 %vm1144_vm1, %v3762_v6 }
  0xdb   : > { %4382 = vmatprep.mubr.msk.f32.mxu0 %vm5062_vm2, %v7165_v29  ;;  %4555 = vmatprep.mubr.msk.f32.mxu1 %vm5062_vm2, %v7165_v29 }
  0xde   : > { %4383 = vmatmul.mubr.msk.f32.gmra.mxu0 %vm1144_vm1, %v1108_v7  ;;  %4556 = vmatmul.mubr.msk.f32.gmra.mxu1 %vm1144_vm1, %v3763_v8  ;;  %v1138_v7 = vld [vmem:[%s5586_s10 + $0x188] sm:$0xff]  ;;  %v3793_v8 = vld [vmem:[%s5586_s10 + $0x340] sm:$0xff] }
  0xdf   : > { %4385 = vmatprep.mubr.msk.f32.mxu0 %vm5062_vm2, %v7165_v29  ;;  %4558 = vmatprep.mubr.msk.f32.mxu1 %vm5062_vm2, %v7165_v29 }
  0xe2   : > { %4386 = vmatmul.mubr.msk.f32.gmra.mxu0 %vm1144_vm1, %v1109_v9  ;;  %4559 = vmatmul.mubr.msk.f32.gmra.mxu1 %vm1144_vm1, %v3764_v10 }
  0xe3   : > { %4388 = vmatprep.mubr.msk.f32.mxu0 %vm5062_vm2, %v7165_v29  ;;  %4561 = vmatprep.mubr.msk.f32.mxu1 %vm5062_vm2, %v7165_v29 }
  0xe6   : > { %4389 = vmatmul.mubr.msk.f32.gmra.mxu0 %vm1144_vm1, %v1110_v11  ;;  %4562 = vmatmul.mubr.msk.f32.gmra.mxu1 %vm1144_vm1, %v3765_v12 }
  0xe7   : > { %4391 = vmatprep.mubr.msk.f32.mxu0 %vm5062_vm2, %v7165_v29  ;;  %4564 = vmatprep.mubr.msk.f32.mxu1 %vm5062_vm2, %v7165_v29 }
  0xea   : > { %4392 = vmatmul.mubr.msk.f32.gmra.mxu0 %vm1144_vm1, %v1111_v13  ;;  %4565 = vmatmul.mubr.msk.f32.gmra.mxu1 %vm1144_vm1, %v3766_v14  ;;  %v1139_v14 = vld [vmem:[%s5586_s10 + $0x190] sm:$0xff] }
  0xeb   : > { %4394 = vmatprep.mubr.msk.f32.mxu0 %vm5062_vm2, %v7165_v29  ;;  %4567 = vmatprep.mubr.msk.f32.mxu1 %vm5062_vm2, %v7165_v29 }
  0xee   : > { %4395 = vmatmul.mubr.msk.f32.gmra.mxu0 %vm1144_vm1, %v1112_v15  ;;  %4568 = vmatmul.mubr.msk.f32.gmra.mxu1 %vm1144_vm1, %v3767_v16  ;;  %v3794_v15 = vld [vmem:[%s5586_s10 + $0x348] sm:$0xff] }
  0xef   : > { %4397 = vmatprep.mubr.msk.f32.mxu0 %vm5062_vm2, %v7165_v29  ;;  %4570 = vmatprep.mubr.msk.f32.mxu1 %vm5062_vm2, %v7165_v29 }
  0xf2   : > { %4398 = vmatmul.mubr.msk.f32.gmra.mxu0 %vm1144_vm1, %v1113_v17  ;;  %4571 = vmatmul.mubr.msk.f32.gmra.mxu1 %vm1144_vm1, %v3768_v18 }
  0xf3   : > { %4400 = vmatprep.mubr.msk.f32.mxu0 %vm5062_vm2, %v7165_v29  ;;  %4573 = vmatprep.mubr.msk.f32.mxu1 %vm5062_vm2, %v7165_v29 }
  0xf6   : > { %4401 = vmatmul.mubr.msk.f32.gmra.mxu0 %vm1144_vm1, %v1114_v19  ;;  %4574 = vmatmul.mubr.msk.f32.gmra.mxu1 %vm1144_vm1, %v3769_v20 }
  0xf7   : > { %4403 = vmatprep.mubr.msk.f32.mxu0 %vm5062_vm2, %v7165_v29  ;;  %4576 = vmatprep.mubr.msk.f32.mxu1 %vm5062_vm2, %v7165_v29 }
  0xfa   : > { %4404 = vmatmul.mubr.msk.f32.gmra.mxu0 %vm1144_vm1, %v1115_v21  ;;  %4577 = vmatmul.mubr.msk.f32.gmra.mxu1 %vm1144_vm1, %v3770_v22  ;;  %v1140_v21 = vld [vmem:[%s5586_s10 + $0x198] sm:$0xff]  ;;  %v3795_v22 = vld [vmem:[%s5586_s10 + $0x350] sm:$0xff] }
  0xfb   : > { %4406 = vmatprep.mubr.msk.f32.mxu0 %vm5062_vm2, %v7165_v29  ;;  %4579 = vmatprep.mubr.msk.f32.mxu1 %vm5062_vm2, %v7165_v29 }
  0xfe   : > { %4407 = vmatmul.mubr.msk.f32.gmra.mxu0 %vm1144_vm1, %v1116_v23  ;;  %4580 = vmatmul.mubr.msk.f32.gmra.mxu1 %vm1144_vm1, %v3771_v24 }
  0xff   : > { %4409 = vmatprep.mubr.msk.f32.mxu0 %vm5062_vm2, %v7165_v29  ;;  %4582 = vmatprep.mubr.msk.f32.mxu1 %vm5062_vm2, %v7165_v29 }
 0x102   : > { %4410 = vmatmul.mubr.msk.f32.gmra.mxu0 %vm1144_vm1, %v1117_v25  ;;  %4583 = vmatmul.mubr.msk.f32.gmra.mxu1 %vm1144_vm1, %v3772_v26 }
 0x103   : > { %4412 = vmatprep.mubr.msk.f32.mxu0 %vm5062_vm2, %v7165_v29  ;;  %4585 = vmatprep.mubr.msk.f32.mxu1 %vm5062_vm2, %v7165_v29 }
 0x106   : > { %4413 = vmatmul.mubr.msk.f32.gmra.mxu0 %vm1144_vm1, %v1118_v27  ;;  %4586 = vmatmul.mubr.msk.f32.gmra.mxu1 %vm1144_vm1, %v3773_v28  ;;  %v1141_v28 = vld [vmem:[%s5586_s10 + $0x1a0] sm:$0xff] }
 0x107   : > { %4415 = vmatprep.mubr.msk.f32.mxu0 %vm5062_vm2, %v7165_v29  ;;  %4588 = vmatprep.mubr.msk.f32.mxu1 %vm5062_vm2, %v7165_v29 }
 0x10a   : > { %4416 = vmatmul.mubr.msk.f32.gmra.mxu0 %vm1144_vm1, %v1119_v30  ;;  %4589 = vmatmul.mubr.msk.f32.gmra.mxu1 %vm1144_vm1, %v3774_v31  ;;  %v3796_v30 = vld [vmem:[%s5586_s10 + $0x358] sm:$0xff] }
 0x10b   : > { %4418 = vmatprep.mubr.msk.f32.mxu0 %vm5062_vm2, %v7165_v29  ;;  %4591 = vmatprep.mubr.msk.f32.mxu1 %vm5062_vm2, %v7165_v29 }
 0x10e   : > { %4419 = vmatmul.mubr.msk.f32.gmra.mxu0 %vm1144_vm1, %v1120_v32  ;;  %4592 = vmatmul.mubr.msk.f32.gmra.mxu1 %vm1144_vm1, %v3775_v33 }
 0x10f   : > { %4421 = vmatprep.mubr.msk.f32.mxu0 %vm5062_vm2, %v7165_v29  ;;  %4594 = vmatprep.mubr.msk.f32.mxu1 %vm5062_vm2, %v7165_v29 }
 0x112   : > { %4422 = vmatmul.mubr.msk.f32.gmra.mxu0 %vm1144_vm1, %v1121_v34  ;;  %4595 = vmatmul.mubr.msk.f32.gmra.mxu1 %vm1144_vm1, %v3776_v35 }
 0x113   : > { %4424 = vmatprep.mubr.msk.f32.mxu0 %vm5062_vm2, %v7165_v29  ;;  %4597 = vmatprep.mubr.msk.f32.mxu1 %vm5062_vm2, %v7165_v29 }
 0x116   : > { %4425 = vmatmul.mubr.msk.f32.gmra.mxu0 %vm1144_vm1, %v1122_v36  ;;  %4598 = vmatmul.mubr.msk.f32.gmra.mxu1 %vm1144_vm1, %v3777_v37  ;;  %v1142_v36 = vld [vmem:[%s5586_s10 + $0x1a8] sm:$0xff]  ;;  %v3797_v37 = vld [vmem:[%s5586_s10 + $0x360] sm:$0xff] }
 0x117   : > { %4427 = vmatprep.mubr.msk.f32.mxu0 %vm5062_vm2, %v7165_v29  ;;  %4600 = vmatprep.mubr.msk.f32.mxu1 %vm5062_vm2, %v7165_v29 }
 0x11a   : > { %4428 = vmatmul.mubr.msk.f32.gmra.mxu0 %vm1144_vm1, %v1123_v38  ;;  %4601 = vmatmul.mubr.msk.f32.gmra.mxu1 %vm1144_vm1, %v3778_v39 }
 0x11b   : > { %4430 = vmatprep.mubr.msk.f32.mxu0 %vm5062_vm2, %v7165_v29  ;;  %4603 = vmatprep.mubr.msk.f32.mxu1 %vm5062_vm2, %v7165_v29 }
 0x11e   : > { %4431 = vmatmul.mubr.msk.f32.gmra.mxu0 %vm1144_vm1, %v1124_v40  ;;  %4604 = vmatmul.mubr.msk.f32.gmra.mxu1 %vm1144_vm1, %v3779_v41 }
 0x11f   : > { %4433 = vmatprep.mubr.msk.f32.mxu0 %vm5062_vm2, %v7165_v29  ;;  %4606 = vmatprep.mubr.msk.f32.mxu1 %vm5062_vm2, %v7165_v29 }
 0x122   : > { %4434 = vmatmul.mubr.msk.f32.gmra.mxu0 %vm1144_vm1, %v1125_v42  ;;  %4607 = vmatmul.mubr.msk.f32.gmra.mxu1 %vm1144_vm1, %v3780_v43  ;;  %v1143_v43 = vld [vmem:[%s5586_s10 + $0x1b0] sm:$0xff] }
 0x123   : > { %4436 = vmatprep.mubr.msk.f32.mxu0 %vm5062_vm2, %v7165_v29  ;;  %4609 = vmatprep.mubr.msk.f32.mxu1 %vm5062_vm2, %v7165_v29 }
 0x126   : > { %4437 = vmatmul.mubr.msk.f32.gmra.mxu0 %vm1144_vm1, %v1126_v44  ;;  %4610 = vmatmul.mubr.msk.f32.gmra.mxu1 %vm1144_vm1, %v3781_v45  ;;  %v3798_v44 = vld [vmem:[%s5586_s10 + $0x368] sm:$0xff] }
 0x127   : > { %4439 = vmatprep.mubr.msk.f32.mxu0 %vm5062_vm2, %v7165_v29  ;;  %4612 = vmatprep.mubr.msk.f32.mxu1 %vm5062_vm2, %v7165_v29 }
 0x12a   : > { %4440 = vmatmul.mubr.msk.f32.gmra.mxu0 %vm1144_vm1, %v1127_v46  ;;  %4613 = vmatmul.mubr.msk.f32.gmra.mxu1 %vm1144_vm1, %v3782_v47 }
 0x12b   : > { %4442 = vmatprep.mubr.msk.f32.mxu0 %vm5062_vm2, %v7165_v29  ;;  %4615 = vmatprep.mubr.msk.f32.mxu1 %vm5062_vm2, %v7165_v29 }
 0x12e   : > { %4443 = vmatmul.mubr.msk.f32.gmra.mxu0 %vm1144_vm1, %v1128_v48  ;;  %4616 = vmatmul.mubr.msk.f32.gmra.mxu1 %vm1144_vm1, %v3783_v49 }
 0x12f   : > { %4445 = vmatprep.mubr.msk.f32.mxu0 %vm5062_vm2, %v7165_v29  ;;  %4618 = vmatprep.mubr.msk.f32.mxu1 %vm5062_vm2, %v7165_v29 }
 0x132   : > { %4446 = vmatmul.mubr.msk.f32.gmra.mxu0 %vm1144_vm1, %v1129_v50  ;;  %4619 = vmatmul.mubr.msk.f32.gmra.mxu1 %vm1144_vm1, %v3784_v51  ;;  %v3855_v50 = vld [vmem:[%s5586_s10 + $0x370] sm:$0xff]  ;;  %v3966_v51 = vld [vmem:[%s5586_s10 + $0x528] sm:$0xff] }
 0x133   : > { %4448 = vmatprep.mubr.msk.f32.mxu0 %vm5062_vm2, %v7165_v29  ;;  %4621 = vmatprep.mubr.msk.f32.mxu1 %vm5062_vm2, %v7165_v29 }
 0x136   : > { %4449 = vmatmul.mubr.msk.f32.gmra.mxu0 %vm1144_vm1, %v1130_v52  ;;  %4622 = vmatmul.mubr.msk.f32.gmra.mxu1 %vm1144_vm1, %v3785_v53 }
 0x137   : > { %4451 = vmatprep.mubr.msk.f32.mxu0 %vm5062_vm2, %v7165_v29  ;;  %4624 = vmatprep.mubr.msk.f32.mxu1 %vm5062_vm2, %v7165_v29 }
 0x13a   : > { %4452 = vmatmul.mubr.msk.f32.gmra.mxu0 %vm1144_vm1, %v1131_v54  ;;  %4625 = vmatmul.mubr.msk.f32.gmra.mxu1 %vm1144_vm1, %v3786_v55 }
 0x13b   : > { %4454 = vmatprep.mubr.msk.f32.mxu0 %vm5062_vm2, %v7165_v29  ;;  %4627 = vmatprep.mubr.msk.f32.mxu1 %vm5062_vm2, %v7165_v29 }
 0x13e   : > { %4455 = vmatmul.mubr.msk.f32.gmra.mxu0 %vm1144_vm1, %v1132_v56  ;;  %4628 = vmatmul.mubr.msk.f32.gmra.mxu1 %vm1144_vm1, %v3787_v57  ;;  %v3856_v57 = vld [vmem:[%s5586_s10 + $0x378] sm:$0xff] }
 0x13f   : > { %4457 = vmatprep.mubr.msk.f32.mxu0 %vm5062_vm2, %v7165_v29  ;;  %4630 = vmatprep.mubr.msk.f32.mxu1 %vm5062_vm2, %v7165_v29 }
 0x142   : > { %4458 = vmatmul.mubr.msk.f32.gmra.mxu0 %vm1144_vm1, %v1133_v58  ;;  %4631 = vmatmul.mubr.msk.f32.gmra.mxu1 %vm1144_vm1, %v3788_v59  ;;  %v3967_v58 = vld [vmem:[%s5586_s10 + $0x530] sm:$0xff] }
 0x143   : > { %4460 = vmatprep.mubr.msk.f32.mxu0 %vm5062_vm2, %v7165_v29  ;;  %4633 = vmatprep.mubr.msk.f32.mxu1 %vm5062_vm2, %v7165_v29 }
 0x146   : > { %4461 = vmatmul.mubr.msk.f32.gmra.mxu0 %vm1144_vm1, %v1134_v60  ;;  %4634 = vmatmul.mubr.msk.f32.gmra.mxu1 %vm1144_vm1, %v3789_v61 }
 0x147   : > { %4463 = vmatprep.mubr.msk.f32.mxu0 %vm5062_vm2, %v7165_v29  ;;  %4636 = vmatprep.mubr.msk.f32.mxu1 %vm5062_vm2, %v7165_v29 }
 0x14a   : > { %4464 = vmatmul.mubr.msk.f32.gmra.mxu0 %vm1144_vm1, %v1135_v62  ;;  %4637 = vmatmul.mubr.msk.f32.gmra.mxu1 %vm1144_vm1, %v3790_v63 }
 0x14b   : > { %4466 = vmatprep.mubr.msk.f32.mxu0 %vm5062_vm2, %v7165_v29  ;;  %4639 = vmatprep.mubr.msk.f32.mxu1 %vm5062_vm2, %v7165_v29 }
 0x14e   : > { %4467 = vmatmul.mubr.msk.f32.gmra.mxu0 %vm1144_vm1, %v1136_v0  ;;  %4640 = vmatmul.mubr.msk.f32.gmra.mxu1 %vm1144_vm1, %v3791_v1  ;;  %v3857_v0 = vld [vmem:[%s5586_s10 + $0x380] sm:$0xff]  ;;  %v3968_v1 = vld [vmem:[%s5586_s10 + $0x538] sm:$0xff] }
 0x14f   : > { %4469 = vmatprep.mubr.msk.f32.mxu0 %vm5062_vm2, %v7165_v29  ;;  %4642 = vmatprep.mubr.msk.f32.mxu1 %vm5062_vm2, %v7165_v29 }
 0x152   : > { %v5988_v4 = vpop.f32.mrf.mxu0  ;;  %4470 = vmatmul.mubr.msk.f32.gmra.mxu0 %vm1144_vm1, %v1137_v2  ;;  %v5991_v5 = vpop.f32.mrf.mxu1  ;;  %4643 = vmatmul.mubr.msk.f32.gmra.mxu1 %vm1144_vm1, %v3792_v3 }
 0x153   : > { %4472 = vmatprep.mubr.msk.f32.mxu0 %vm5062_vm2, %v7165_v29  ;;  %4645 = vmatprep.mubr.msk.f32.mxu1 %vm5062_vm2, %v7165_v29 }
 0x154   : > { %v4327_v9 = vpop.f32.mrf.mxu0  ;;  %v4500_v10 = vpop.f32.mrf.mxu1 }
 0x155   : > { %v3858_v10 = vld [vmem:[%s5586_s10 + $0x388] sm:$0xff] }
 0x156   : > { %v6002_v11 = vpop.f32.mrf.mxu0  ;;  %4473 = vmatmul.mubr.msk.f32.gmra.mxu0 %vm1144_vm1, %v1138_v7  ;;  %v6005_v12 = vpop.f32.mrf.mxu1  ;;  %4646 = vmatmul.mubr.msk.f32.gmra.mxu1 %vm1144_vm1, %v3793_v8 }
 0x157   : > { %4475 = vmatprep.mubr.msk.f32.mxu0 %vm5062_vm2, %v7165_v29  ;;  %4648 = vmatprep.mubr.msk.f32.mxu1 %vm5062_vm2, %v7165_v29 }
 0x158   : > { %v4330_v16 = vpop.f32.mrf.mxu0  ;;  %v4503_v17 = vpop.f32.mrf.mxu1 }
 0x15a   : > { %v6016_v18 = vpop.f32.mrf.mxu0  ;;  %4476 = vmatmul.mubr.msk.f32.gmra.mxu0 %vm1144_vm1, %v1139_v14  ;;  %v6019_v19 = vpop.f32.mrf.mxu1  ;;  %4649 = vmatmul.mubr.msk.f32.gmra.mxu1 %vm1144_vm1, %v3794_v15  ;;  %v3969_v14 = vld [vmem:[%s5586_s10 + $0x540] sm:$0xff] }
 0x15b   : > { %4478 = vmatprep.mubr.msk.f32.mxu0 %vm5062_vm2, %v7165_v29  ;;  %4651 = vmatprep.mubr.msk.f32.mxu1 %vm5062_vm2, %v7165_v29 }
 0x15c   : > { %v4333_v23 = vpop.f32.mrf.mxu0  ;;  %v4506_v24 = vpop.f32.mrf.mxu1 }
 0x15d   : > { %v3859_v23 = vld [vmem:[%s5586_s10 + $0x390] sm:$0xff]  ;;  %v3970_v24 = vld [vmem:[%s5586_s10 + $0x548] sm:$0xff] }
 0x15e   : > { %v6030_v25 = vpop.f32.mrf.mxu0  ;;  %4479 = vmatmul.mubr.msk.f32.gmra.mxu0 %vm1144_vm1, %v1140_v21  ;;  %v6033_v26 = vpop.f32.mrf.mxu1  ;;  %4652 = vmatmul.mubr.msk.f32.gmra.mxu1 %vm1144_vm1, %v3795_v22 }
 0x15f   : > { %4481 = vmatprep.mubr.msk.f32.mxu0 %vm5062_vm2, %v7165_v29  ;;  %4654 = vmatprep.mubr.msk.f32.mxu1 %vm5062_vm2, %v7165_v29 }
 0x160   : > { %v4336_v31 = vpop.f32.mrf.mxu0  ;;  %v4509_v32 = vpop.f32.mrf.mxu1 }
 0x162   : > { %v6044_v33 = vpop.f32.mrf.mxu0  ;;  %4482 = vmatmul.mubr.msk.f32.gmra.mxu0 %vm1144_vm1, %v1141_v28  ;;  %v6047_v34 = vpop.f32.mrf.mxu1  ;;  %4655 = vmatmul.mubr.msk.f32.gmra.mxu1 %vm1144_vm1, %v3796_v30 }
 0x163   : > { %4484 = vmatprep.mubr.msk.f32.mxu0 %vm5062_vm2, %v7165_v29  ;;  %4657 = vmatprep.mubr.msk.f32.mxu1 %vm5062_vm2, %v7165_v29 }
 0x164   : > { %v4339_v38 = vpop.f32.mrf.mxu0  ;;  %v4512_v39 = vpop.f32.mrf.mxu1 }
 0x165   : > { %v3971_v38 = vld [vmem:[%s5586_s10 + $0x550] sm:$0xff] }
 0x166   : > { %v6058_v40 = vpop.f32.mrf.mxu0  ;;  %4485 = vmatmul.mubr.msk.f32.gmra.mxu0 %vm1144_vm1, %v1142_v36  ;;  %v6061_v41 = vpop.f32.mrf.mxu1  ;;  %4658 = vmatmul.mubr.msk.f32.gmra.mxu1 %vm1144_vm1, %v3797_v37  ;;  %v3860_v37 = vld [vmem:[%s5586_s10 + $0x398] sm:$0xff] }
 0x167   : > { %4487 = vmatprep.mubr.msk.f32.mxu0 %vm5062_vm2, %v7165_v29  ;;  %4660 = vmatprep.mubr.msk.f32.mxu1 %vm5062_vm2, %v7165_v29 }
 0x168   : > { %v4342_v45 = vpop.f32.mrf.mxu0  ;;  %v4515_v46 = vpop.f32.mrf.mxu1 }
 0x16a   : > { %v6072_v47 = vpop.f32.mrf.mxu0  ;;  %4488 = vmatmul.mubr.msk.f32.gmra.mxu0 %vm1144_vm1, %v1143_v43  ;;  %v6075_v48 = vpop.f32.mrf.mxu1  ;;  %4661 = vmatmul.mubr.msk.f32.gmra.mxu1 %vm1144_vm1, %v3798_v44 }
 0x16b   : > { %4671 = vmatprep.mubr.msk.f32.mxu0 %vm5062_vm2, %v7165_v29  ;;  %4844 = vmatprep.mubr.msk.f32.mxu1 %vm5062_vm2, %v7165_v29 }
 0x16c   : > { %v4345_v52 = vpop.f32.mrf.mxu0  ;;  %v4518_v53 = vpop.f32.mrf.mxu1 }
 0x16e   : > { %v6086_v54 = vpop.f32.mrf.mxu0  ;;  %v6088_v55 = vpop.f32.mrf.mxu1  ;;  %4672 = vmatmul.mubr.msk.f32.vlgmr.msra.gmra.mxu0 %vm1144_vm1, %v3855_v50  ;;  %4845 = vmatmul.mubr.msk.f32.vlgmr.msra.gmra.mxu1 %vm1144_vm1, %v3966_v51  ;;  %v3861_v50 = vld [vmem:[%s5586_s10 + $0x3a0] sm:$0xff]  ;;  %v3972_v51 = vld [vmem:[%s5586_s10 + $0x558] sm:$0xff] }
 0x16f   : > { %4674 = vmatprep.mubr.msk.f32.mxu0 %vm5062_vm2, %v7165_v29  ;;  %4847 = vmatprep.mubr.msk.f32.mxu1 %vm5062_vm2, %v7165_v29 }
 0x170   : > { %v4348_v59 = vpop.f32.mrf.mxu0  ;;  %v4521_v60 = vpop.f32.mrf.mxu1 }
 0x171   : > { %v3862_v60 = vld [vmem:[%s5586_s10 + $0x3a8] sm:$0xff] }
 0x172   : > { %v6100_v61 = vpop.f32.mrf.mxu0  ;;  %v6102_v62 = vpop.f32.mrf.mxu1  ;;  %4675 = vmatmul.mubr.msk.f32.gmra.mxu0 %vm1144_vm1, %v3856_v57  ;;  %4848 = vmatmul.mubr.msk.f32.gmra.mxu1 %vm1144_vm1, %v3967_v58 }
 0x173   : > { %4677 = vmatprep.mubr.msk.f32.mxu0 %vm5062_vm2, %v7165_v29  ;;  %4850 = vmatprep.mubr.msk.f32.mxu1 %vm5062_vm2, %v7165_v29 }
 0x174   : > { %v4351_v2 = vpop.f32.mrf.mxu0  ;;  %v4524_v3 = vpop.f32.mrf.mxu1 }
 0x176   : > { %v6114_v7 = vpop.f32.mrf.mxu0  ;;  %v6116_v8 = vpop.f32.mrf.mxu1  ;;  %4678 = vmatmul.mubr.msk.f32.gmra.mxu0 %vm1144_vm1, %v3857_v0  ;;  %4851 = vmatmul.mubr.msk.f32.gmra.mxu1 %vm1144_vm1, %v3968_v1  ;;  %v3973_v0 = vld [vmem:[%s5586_s10 + $0x560] sm:$0xff] }
 0x177   : > { %4680 = vmatprep.mubr.msk.f32.mxu0 %vm5062_vm2, %v7165_v29  ;;  %4853 = vmatprep.mubr.msk.f32.mxu1 %vm5062_vm2, %v7165_v29 }
 0x178   : > { %v4354_v15 = vpop.f32.mrf.mxu0  ;;  %v4527_v16 = vpop.f32.mrf.mxu1 }
 0x179   : > { %v3863_v15 = vld [vmem:[%s5586_s10 + $0x3b0] sm:$0xff]  ;;  %v3974_v16 = vld [vmem:[%s5586_s10 + $0x568] sm:$0xff] }
 0x17a   : > { %v6128_v17 = vpop.f32.mrf.mxu0  ;;  %v6130_v21 = vpop.f32.mrf.mxu1  ;;  %4681 = vmatmul.mubr.msk.f32.gmra.mxu0 %vm1144_vm1, %v3858_v10  ;;  %4854 = vmatmul.mubr.msk.f32.gmra.mxu1 %vm1144_vm1, %v3969_v14 }
 0x17b   : > { %4683 = vmatprep.mubr.msk.f32.mxu0 %vm5062_vm2, %v7165_v29  ;;  %4856 = vmatprep.mubr.msk.f32.mxu1 %vm5062_vm2, %v7165_v29 }
 0x17c   : > { %v4357_v28 = vpop.f32.mrf.mxu0  ;;  %v4530_v30 = vpop.f32.mrf.mxu1 }
 0x17e   : > { %v6142_v31 = vpop.f32.mrf.mxu0  ;;  %v6144_v32 = vpop.f32.mrf.mxu1  ;;  %4684 = vmatmul.mubr.msk.f32.gmra.mxu0 %vm1144_vm1, %v3859_v23  ;;  %4857 = vmatmul.mubr.msk.f32.gmra.mxu1 %vm1144_vm1, %v3970_v24 }
 0x17f   : > { %4686 = vmatprep.mubr.msk.f32.mxu0 %vm5062_vm2, %v7165_v29  ;;  %4859 = vmatprep.mubr.msk.f32.mxu1 %vm5062_vm2, %v7165_v29 }
 0x180   : > { %v4360_v39 = vpop.f32.mrf.mxu0  ;;  %v4533_v43 = vpop.f32.mrf.mxu1 }
 0x181   : > { %v3975_v39 = vld [vmem:[%s5586_s10 + $0x570] sm:$0xff] }
 0x182   : > { %v6156_v44 = vpop.f32.mrf.mxu0  ;;  %v6158_v45 = vpop.f32.mrf.mxu1  ;;  %4687 = vmatmul.mubr.msk.f32.gmra.mxu0 %vm1144_vm1, %v3860_v37  ;;  %4860 = vmatmul.mubr.msk.f32.gmra.mxu1 %vm1144_vm1, %v3971_v38  ;;  %v3864_v38 = vld [vmem:[%s5586_s10 + $0x3b8] sm:$0xff] }
 0x183   : > { %4689 = vmatprep.mubr.msk.f32.mxu0 %vm5062_vm2, %v7165_v29  ;;  %4862 = vmatprep.mubr.msk.f32.mxu1 %vm5062_vm2, %v7165_v29 }
 0x184   : > { %v4363_v52 = vpop.f32.mrf.mxu0  ;;  %v4536_v53 = vpop.f32.mrf.mxu1 }
 0x186   : > { %v6170_v57 = vpop.f32.mrf.mxu0  ;;  %v6172_v58 = vpop.f32.mrf.mxu1  ;;  %4690 = vmatmul.mubr.msk.f32.gmra.mxu0 %vm1144_vm1, %v3861_v50  ;;  %4863 = vmatmul.mubr.msk.f32.gmra.mxu1 %vm1144_vm1, %v3972_v51 }
 0x187   : > { %4692 = vmatprep.mubr.msk.f32.mxu0 %vm5062_vm2, %v7165_v29  ;;  %4865 = vmatprep.mubr.msk.f32.mxu1 %vm5062_vm2, %v7165_v29 }
 0x188   : > { %v4366_v1 = vpop.f32.mrf.mxu0  ;;  %v4539_v2 = vpop.f32.mrf.mxu1 }
 0x18a   : > { %v6184_v3 = vpop.f32.mrf.mxu0  ;;  %v6186_v10 = vpop.f32.mrf.mxu1  ;;  %4693 = vmatmul.mubr.msk.f32.gmra.mxu0 %vm1144_vm1, %v3862_v60  ;;  %4866 = vmatmul.mubr.msk.f32.gmra.mxu1 %vm1144_vm1, %v3973_v0  ;;  %v3865_v60 = vld [vmem:[%s5586_s10 + $0x3c0] sm:$0xff]  ;;  %v3976_v0 = vld [vmem:[%s5586_s10 + $0x578] sm:$0xff] }
 0x18b   : > { %4695 = vmatprep.mubr.msk.f32.mxu0 %vm5062_vm2, %v7165_v29  ;;  %4868 = vmatprep.mubr.msk.f32.mxu1 %vm5062_vm2, %v7165_v29 }
 0x18c   : > { %v4369_v23 = vpop.f32.mrf.mxu0  ;;  %v4542_v24 = vpop.f32.mrf.mxu1 }
 0x18d   : > { %v3866_v24 = vld [vmem:[%s5586_s10 + $0x3c8] sm:$0xff] }
 0x18e   : > { %v6198_v28 = vpop.f32.mrf.mxu0  ;;  %v6200_v30 = vpop.f32.mrf.mxu1  ;;  %4696 = vmatmul.mubr.msk.f32.gmra.mxu0 %vm1144_vm1, %v3863_v15  ;;  %4869 = vmatmul.mubr.msk.f32.gmra.mxu1 %vm1144_vm1, %v3974_v16 }
 0x18f   : > { %4698 = vmatprep.mubr.msk.f32.mxu0 %vm5062_vm2, %v7165_v29  ;;  %4871 = vmatprep.mubr.msk.f32.mxu1 %vm5062_vm2, %v7165_v29 }
 0x190   : > { %v4372_v43 = vpop.f32.mrf.mxu0  ;;  %v4545_v50 = vpop.f32.mrf.mxu1 }
 0x192   : > { %v6212_v51 = vpop.f32.mrf.mxu0  ;;  %v6214_v52 = vpop.f32.mrf.mxu1  ;;  %4699 = vmatmul.mubr.msk.f32.gmra.mxu0 %vm1144_vm1, %v3864_v38  ;;  %4872 = vmatmul.mubr.msk.f32.gmra.mxu1 %vm1144_vm1, %v3975_v39  ;;  %v3977_v38 = vld [vmem:[%s5586_s10 + $0x580] sm:$0xff] }
 0x193   : > { %4701 = vmatprep.mubr.msk.f32.mxu0 %vm5062_vm2, %v7165_v29  ;;  %4874 = vmatprep.mubr.msk.f32.mxu1 %vm5062_vm2, %v7165_v29 }
 0x194   : > { %v4375_v1 = vpop.f32.mrf.mxu0  ;;  %v4548_v2 = vpop.f32.mrf.mxu1 }
 0x195   : > { %v3867_v1 = vld [vmem:[%s5586_s10 + $0x3d0] sm:$0xff]  ;;  %v3978_v2 = vld [vmem:[%s5586_s10 + $0x588] sm:$0xff] }
 0x196   : > { %v6226_v15 = vpop.f32.mrf.mxu0  ;;  %v6228_v16 = vpop.f32.mrf.mxu1  ;;  %4702 = vmatmul.mubr.msk.f32.gmra.mxu0 %vm1144_vm1, %v3865_v60  ;;  %4875 = vmatmul.mubr.msk.f32.gmra.mxu1 %vm1144_vm1, %v3976_v0 }
 0x197   : > { %4704 = vmatprep.mubr.msk.f32.mxu0 %vm5062_vm2, %v7165_v29  ;;  %4877 = vmatprep.mubr.msk.f32.mxu1 %vm5062_vm2, %v7165_v29 }
 0x198   : > { %v4378_v39 = vpop.f32.mrf.mxu0  ;;  %v4551_v43 = vpop.f32.mrf.mxu1 }
 0x19a   : > { %v6240_v50 = vpop.f32.mrf.mxu0  ;;  %v6242_v60 = vpop.f32.mrf.mxu1  ;;  %4705 = vmatmul.mubr.msk.f32.gmra.mxu0 %vm1144_vm1, %v3866_v24  ;;  %4878 = vmatmul.mubr.msk.f32.gmra.mxu1 %vm1144_vm1, %v3977_v38 }
 0x19b   : > { %4707 = vmatprep.mubr.msk.f32.mxu0 %vm5062_vm2, %v7165_v29  ;;  %4880 = vmatprep.mubr.msk.f32.mxu1 %vm5062_vm2, %v7165_v29 }
 0x19c   : > { %v4381_v39 = vpop.f32.mrf.mxu0  ;;  %v4554_v43 = vpop.f32.mrf.mxu1 }
 0x19d   : > { %v3868_v39 = vld [vmem:[%s5586_s10 + $0x3d8] sm:$0xff]  ;;  %v3979_v43 = vld [vmem:[%s5586_s10 + $0x590] sm:$0xff] }
 0x19e   : > { %v6254_v23 = vpop.f32.mrf.mxu0  ;;  %v6256_v24 = vpop.f32.mrf.mxu1  ;;  %4708 = vmatmul.mubr.msk.f32.gmra.mxu0 %vm1144_vm1, %v3867_v1  ;;  %4881 = vmatmul.mubr.msk.f32.gmra.mxu1 %vm1144_vm1, %v3978_v2 }
 0x19f   : > { %4710 = vmatprep.mubr.msk.f32.mxu0 %vm5062_vm2, %v7165_v29  ;;  %4883 = vmatprep.mubr.msk.f32.mxu1 %vm5062_vm2, %v7165_v29 }
 0x1a0   : > { %v4384_v0 = vpop.f32.mrf.mxu0  ;;  %v4557_v53 = vpop.f32.mrf.mxu1 }
 0x1a1   : > { %v3869_v53 = vld [vmem:[%s5586_s10 + $0x3e0] sm:$0xff]  ;;  %v3980_v0 = vld [vmem:[%s5586_s10 + $0x598] sm:$0xff] }
 0x1a2   : > { %v6268_v37 = vpop.f32.mrf.mxu0  ;;  %v6270_v1 = vpop.f32.mrf.mxu1  ;;  %4711 = vmatmul.mubr.msk.f32.gmra.mxu0 %vm1144_vm1, %v3868_v39  ;;  %4884 = vmatmul.mubr.msk.f32.gmra.mxu1 %vm1144_vm1, %v3979_v43 }
 0x1a3   : > { %4713 = vmatprep.mubr.msk.f32.mxu0 %vm5062_vm2, %v7165_v29  ;;  %4886 = vmatprep.mubr.msk.f32.mxu1 %vm5062_vm2, %v7165_v29 }
 0x1a4   : > { %v4387_v38 = vpop.f32.mrf.mxu0  ;;  %v4560_v14 = vpop.f32.mrf.mxu1 }
 0x1a5   : > { %v3870_v14 = vld [vmem:[%s5586_s10 + $0x3e8] sm:$0xff]  ;;  %v3981_v38 = vld [vmem:[%s5586_s10 + $0x5a0] sm:$0xff] }
 0x1a6   : > { %v6282_v59 = vpop.f32.mrf.mxu0  ;;  %v6284_v39 = vpop.f32.mrf.mxu1  ;;  %4714 = vmatmul.mubr.msk.f32.gmra.mxu0 %vm1144_vm1, %v3869_v53  ;;  %4887 = vmatmul.mubr.msk.f32.gmra.mxu1 %vm1144_vm1, %v3980_v0 }
 0x1a7   : > { %4716 = vmatprep.mubr.msk.f32.mxu0 %vm5062_vm2, %v7165_v29  ;;  %4889 = vmatprep.mubr.msk.f32.mxu1 %vm5062_vm2, %v7165_v29 }
 0x1a8   : > { %v4390_v2 = vpop.f32.mrf.mxu0  ;;  %v4563_v46 = vpop.f32.mrf.mxu1 }
 0x1a9   : > { %v3871_v46 = vld [vmem:[%s5586_s10 + $0x3f0] sm:$0xff]  ;;  %v3982_v2 = vld [vmem:[%s5586_s10 + $0x5a8] sm:$0xff] }
 0x1aa   : > { %v6296_v36 = vpop.f32.mrf.mxu0  ;;  %v6298_v53 = vpop.f32.mrf.mxu1  ;;  %4717 = vmatmul.mubr.msk.f32.gmra.mxu0 %vm1144_vm1, %v3870_v14  ;;  %4890 = vmatmul.mubr.msk.f32.gmra.mxu1 %vm1144_vm1, %v3981_v38 }
 0x1ab   : > { %4719 = vmatprep.mubr.msk.f32.mxu0 %vm5062_vm2, %v7165_v29  ;;  %4892 = vmatprep.mubr.msk.f32.mxu1 %vm5062_vm2, %v7165_v29 }
 0x1ac   : > { %v4393_v43 = vpop.f32.mrf.mxu0  ;;  %v4566_v22 = vpop.f32.mrf.mxu1 }
 0x1ad   : > { %v3872_v22 = vld [vmem:[%s5586_s10 + $0x3f8] sm:$0xff]  ;;  %v3983_v43 = vld [vmem:[%s5586_s10 + $0x5b0] sm:$0xff] }
 0x1ae   : > { %v6310_v9 = vpop.f32.mrf.mxu0  ;;  %v6312_v14 = vpop.f32.mrf.mxu1  ;;  %4720 = vmatmul.mubr.msk.f32.gmra.mxu0 %vm1144_vm1, %v3871_v46  ;;  %4893 = vmatmul.mubr.msk.f32.gmra.mxu1 %vm1144_vm1, %v3982_v2 }
 0x1af   : > { %4722 = vmatprep.mubr.msk.f32.mxu0 %vm5062_vm2, %v7165_v29  ;;  %4895 = vmatprep.mubr.msk.f32.mxu1 %vm5062_vm2, %v7165_v29 }
 0x1b0   : > { %v4396_v0 = vpop.f32.mrf.mxu0  ;;  %v4569_v63 = vpop.f32.mrf.mxu1 }
 0x1b1   : > { %v3873_v63 = vld [vmem:[%s5586_s10 + $0x400] sm:$0xff]  ;;  %v3984_v0 = vld [vmem:[%s5586_s10 + $0x5b8] sm:$0xff] }
 0x1b2   : > { %v6324_v56 = vpop.f32.mrf.mxu0  ;;  %v6326_v46 = vpop.f32.mrf.mxu1  ;;  %4723 = vmatmul.mubr.msk.f32.gmra.mxu0 %vm1144_vm1, %v3872_v22  ;;  %4896 = vmatmul.mubr.msk.f32.gmra.mxu1 %vm1144_vm1, %v3983_v43 }
 0x1b3   : > { %4725 = vmatprep.mubr.msk.f32.mxu0 %vm5062_vm2, %v7165_v29  ;;  %4898 = vmatprep.mubr.msk.f32.mxu1 %vm5062_vm2, %v7165_v29 }
 0x1b4   : > { %v4399_v38 = vpop.f32.mrf.mxu0  ;;  %v4572_v49 = vpop.f32.mrf.mxu1 }
 0x1b5   : > { %v3874_v49 = vld [vmem:[%s5586_s10 + $0x408] sm:$0xff]  ;;  %v3985_v38 = vld [vmem:[%s5586_s10 + $0x5c0] sm:$0xff] }
 0x1b6   : > { %v6338_v42 = vpop.f32.mrf.mxu0  ;;  %v6340_v22 = vpop.f32.mrf.mxu1  ;;  %4726 = vmatmul.mubr.msk.f32.gmra.mxu0 %vm1144_vm1, %v3873_v63  ;;  %4899 = vmatmul.mubr.msk.f32.gmra.mxu1 %vm1144_vm1, %v3984_v0 }
 0x1b7   : > { %4728 = vmatprep.mubr.msk.f32.mxu0 %vm5062_vm2, %v7165_v29  ;;  %4901 = vmatprep.mubr.msk.f32.mxu1 %vm5062_vm2, %v7165_v29 }
 0x1b8   : > { %v4402_v2 = vpop.f32.mrf.mxu0  ;;  %v4575_v35 = vpop.f32.mrf.mxu1 }
 0x1b9   : > { %v3875_v35 = vld [vmem:[%s5586_s10 + $0x410] sm:$0xff]  ;;  %v3986_v2 = vld [vmem:[%s5586_s10 + $0x5c8] sm:$0xff] }
 0x1ba   : > { %v6352_v27 = vpop.f32.mrf.mxu0  ;;  %v6354_v63 = vpop.f32.mrf.mxu1  ;;  %4729 = vmatmul.mubr.msk.f32.gmra.mxu0 %vm1144_vm1, %v3874_v49  ;;  %4902 = vmatmul.mubr.msk.f32.gmra.mxu1 %vm1144_vm1, %v3985_v38 }
 0x1bb   : > { %7169 = vst [vmem:[#allocation3_spill] sm:$0xff] %v6352_v27  ;;  %7170 = vst [vmem:[#allocation4_spill] sm:$0xff] %v6354_v63  ;;  %4731 = vmatprep.mubr.msk.f32.mxu0 %vm5062_vm2, %v7165_v29  ;;  %4904 = vmatprep.mubr.msk.f32.mxu1 %vm5062_vm2, %v7165_v29 }
 0x1bc   : > { %v4405_v43 = vpop.f32.mrf.mxu0  ;;  %v4578_v20 = vpop.f32.mrf.mxu1 }
 0x1bd   : > { %v3876_v20 = vld [vmem:[%s5586_s10 + $0x418] sm:$0xff]  ;;  %v3987_v43 = vld [vmem:[%s5586_s10 + $0x5d0] sm:$0xff] }
 0x1be   : > { %v6366_v13 = vpop.f32.mrf.mxu0  ;;  %v6368_v49 = vpop.f32.mrf.mxu1  ;;  %4732 = vmatmul.mubr.msk.f32.gmra.mxu0 %vm1144_vm1, %v3875_v35  ;;  %4905 = vmatmul.mubr.msk.f32.gmra.mxu1 %vm1144_vm1, %v3986_v2 }
 0x1bf   : > { %7171 = vst [vmem:[#allocation5_spill] sm:$0xff] %v6366_v13  ;;  %7172 = vst [vmem:[#allocation6_spill] sm:$0xff] %v6368_v49  ;;  %4734 = vmatprep.mubr.msk.f32.mxu0 %vm5062_vm2, %v7165_v29  ;;  %4907 = vmatprep.mubr.msk.f32.mxu1 %vm5062_vm2, %v7165_v29 }
 0x1c0   : > { %v4408_v0 = vpop.f32.mrf.mxu0  ;;  %v4581_v6 = vpop.f32.mrf.mxu1 }
 0x1c1   : > { %v3877_v6 = vld [vmem:[%s5586_s10 + $0x420] sm:$0xff]  ;;  %v3988_v0 = vld [vmem:[%s5586_s10 + $0x5d8] sm:$0xff] }
 0x1c2   : > { %v6380_v63 = vpop.f32.mrf.mxu0  ;;  %v6382_v35 = vpop.f32.mrf.mxu1  ;;  %4735 = vmatmul.mubr.msk.f32.gmra.mxu0 %vm1144_vm1, %v3876_v20  ;;  %4908 = vmatmul.mubr.msk.f32.gmra.mxu1 %vm1144_vm1, %v3987_v43 }
 0x1c3   : > { %7173 = vst [vmem:[#allocation7_spill] sm:$0xff] %v6380_v63  ;;  %7174 = vst [vmem:[#allocation8_spill] sm:$0xff] %v6382_v35  ;;  %4737 = vmatprep.mubr.msk.f32.mxu0 %vm5062_vm2, %v7165_v29  ;;  %4910 = vmatprep.mubr.msk.f32.mxu1 %vm5062_vm2, %v7165_v29 }
 0x1c4   : > { %v4411_v38 = vpop.f32.mrf.mxu0  ;;  %v4584_v49 = vpop.f32.mrf.mxu1 }
 0x1c5   : > { %v3878_v49 = vld [vmem:[%s5586_s10 + $0x428] sm:$0xff]  ;;  %v3989_v38 = vld [vmem:[%s5586_s10 + $0x5e0] sm:$0xff] }
 0x1c6   : > { %v6394_v13 = vpop.f32.mrf.mxu0  ;;  %v6396_v20 = vpop.f32.mrf.mxu1  ;;  %4738 = vmatmul.mubr.msk.f32.gmra.mxu0 %vm1144_vm1, %v3877_v6  ;;  %4911 = vmatmul.mubr.msk.f32.gmra.mxu1 %vm1144_vm1, %v3988_v0 }
 0x1c7   : > { %7175 = vst [vmem:[#allocation9_spill] sm:$0xff] %v6394_v13  ;;  %7176 = vst [vmem:[#allocation10_spill] sm:$0xff] %v6396_v20  ;;  %4740 = vmatprep.mubr.msk.f32.mxu0 %vm5062_vm2, %v7165_v29  ;;  %4913 = vmatprep.mubr.msk.f32.mxu1 %vm5062_vm2, %v7165_v29 }
 0x1c8   : > { %v4414_v2 = vpop.f32.mrf.mxu0  ;;  %v4587_v35 = vpop.f32.mrf.mxu1 }
 0x1c9   : > { %v3879_v35 = vld [vmem:[%s5586_s10 + $0x430] sm:$0xff]  ;;  %v3990_v2 = vld [vmem:[%s5586_s10 + $0x5e8] sm:$0xff] }
 0x1ca   : > { %v6408_v63 = vpop.f32.mrf.mxu0  ;;  %v6410_v6 = vpop.f32.mrf.mxu1  ;;  %4741 = vmatmul.mubr.msk.f32.gmra.mxu0 %vm1144_vm1, %v3878_v49  ;;  %4914 = vmatmul.mubr.msk.f32.gmra.mxu1 %vm1144_vm1, %v3989_v38 }
 0x1cb   : > { %7177 = vst [vmem:[#allocation11_spill] sm:$0xff] %v6408_v63  ;;  %7178 = vst [vmem:[#allocation12_spill] sm:$0xff] %v6410_v6  ;;  %4743 = vmatprep.mubr.msk.f32.mxu0 %vm5062_vm2, %v7165_v29  ;;  %4916 = vmatprep.mubr.msk.f32.mxu1 %vm5062_vm2, %v7165_v29 }
 0x1cc   : > { %v4417_v43 = vpop.f32.mrf.mxu0  ;;  %v4590_v20 = vpop.f32.mrf.mxu1 }
 0x1cd   : > { %v3880_v20 = vld [vmem:[%s5586_s10 + $0x438] sm:$0xff]  ;;  %v3991_v43 = vld [vmem:[%s5586_s10 + $0x5f0] sm:$0xff] }
 0x1ce   : > { %v6422_v13 = vpop.f32.mrf.mxu0  ;;  %v6424_v49 = vpop.f32.mrf.mxu1  ;;  %4744 = vmatmul.mubr.msk.f32.gmra.mxu0 %vm1144_vm1, %v3879_v35  ;;  %4917 = vmatmul.mubr.msk.f32.gmra.mxu1 %vm1144_vm1, %v3990_v2 }
 0x1cf   : > { %7179 = vst [vmem:[#allocation13_spill] sm:$0xff] %v6422_v13  ;;  %7180 = vst [vmem:[#allocation14_spill] sm:$0xff] %v6424_v49  ;;  %4746 = vmatprep.mubr.msk.f32.mxu0 %vm5062_vm2, %v7165_v29  ;;  %4919 = vmatprep.mubr.msk.f32.mxu1 %vm5062_vm2, %v7165_v29 }
 0x1d0   : > { %v4420_v0 = vpop.f32.mrf.mxu0  ;;  %v4593_v6 = vpop.f32.mrf.mxu1 }
 0x1d1   : > { %v3881_v6 = vld [vmem:[%s5586_s10 + $0x440] sm:$0xff]  ;;  %v3992_v0 = vld [vmem:[%s5586_s10 + $0x5f8] sm:$0xff] }
 0x1d2   : > { %v6436_v63 = vpop.f32.mrf.mxu0  ;;  %v6438_v35 = vpop.f32.mrf.mxu1  ;;  %4747 = vmatmul.mubr.msk.f32.gmra.mxu0 %vm1144_vm1, %v3880_v20  ;;  %4920 = vmatmul.mubr.msk.f32.gmra.mxu1 %vm1144_vm1, %v3991_v43 }
 0x1d3   : > { %7181 = vst [vmem:[#allocation15_spill] sm:$0xff] %v6436_v63  ;;  %7182 = vst [vmem:[#allocation16_spill] sm:$0xff] %v6438_v35  ;;  %4749 = vmatprep.mubr.msk.f32.mxu0 %vm5062_vm2, %v7165_v29  ;;  %4922 = vmatprep.mubr.msk.f32.mxu1 %vm5062_vm2, %v7165_v29 }
 0x1d4   : > { %v4423_v38 = vpop.f32.mrf.mxu0  ;;  %v4596_v49 = vpop.f32.mrf.mxu1 }
 0x1d5   : > { %v3882_v49 = vld [vmem:[%s5586_s10 + $0x448] sm:$0xff]  ;;  %v3993_v38 = vld [vmem:[%s5586_s10 + $0x600] sm:$0xff] }
 0x1d6   : > { %v6450_v13 = vpop.f32.mrf.mxu0  ;;  %v6452_v20 = vpop.f32.mrf.mxu1  ;;  %4750 = vmatmul.mubr.msk.f32.gmra.mxu0 %vm1144_vm1, %v3881_v6  ;;  %4923 = vmatmul.mubr.msk.f32.gmra.mxu1 %vm1144_vm1, %v3992_v0 }
 0x1d7   : > { %7183 = vst [vmem:[#allocation17_spill] sm:$0xff] %v6450_v13  ;;  %7184 = vst [vmem:[#allocation18_spill] sm:$0xff] %v6452_v20  ;;  %4752 = vmatprep.mubr.msk.f32.mxu0 %vm5062_vm2, %v7165_v29  ;;  %4925 = vmatprep.mubr.msk.f32.mxu1 %vm5062_vm2, %v7165_v29 }
 0x1d8   : > { %v4426_v2 = vpop.f32.mrf.mxu0  ;;  %v4599_v35 = vpop.f32.mrf.mxu1 }
 0x1d9   : > { %v3883_v35 = vld [vmem:[%s5586_s10 + $0x450] sm:$0xff]  ;;  %v3994_v2 = vld [vmem:[%s5586_s10 + $0x608] sm:$0xff] }
 0x1da   : > { %v6464_v63 = vpop.f32.mrf.mxu0  ;;  %v6466_v6 = vpop.f32.mrf.mxu1  ;;  %4753 = vmatmul.mubr.msk.f32.gmra.mxu0 %vm1144_vm1, %v3882_v49  ;;  %4926 = vmatmul.mubr.msk.f32.gmra.mxu1 %vm1144_vm1, %v3993_v38 }
 0x1db   : > { %7185 = vst [vmem:[#allocation19_spill] sm:$0xff] %v6464_v63  ;;  %7186 = vst [vmem:[#allocation20_spill] sm:$0xff] %v6466_v6  ;;  %4755 = vmatprep.mubr.msk.f32.mxu0 %vm5062_vm2, %v7165_v29  ;;  %4928 = vmatprep.mubr.msk.f32.mxu1 %vm5062_vm2, %v7165_v29 }
 0x1dc   : > { %v4429_v43 = vpop.f32.mrf.mxu0  ;;  %v4602_v20 = vpop.f32.mrf.mxu1 }
 0x1dd   : > { %v3884_v20 = vld [vmem:[%s5586_s10 + $0x458] sm:$0xff]  ;;  %v3995_v43 = vld [vmem:[%s5586_s10 + $0x610] sm:$0xff] }
 0x1de   : > { %v6478_v13 = vpop.f32.mrf.mxu0  ;;  %v6480_v49 = vpop.f32.mrf.mxu1  ;;  %4756 = vmatmul.mubr.msk.f32.gmra.mxu0 %vm1144_vm1, %v3883_v35  ;;  %4929 = vmatmul.mubr.msk.f32.gmra.mxu1 %vm1144_vm1, %v3994_v2 }
 0x1df   : > { %7187 = vst [vmem:[#allocation21_spill] sm:$0xff] %v6478_v13  ;;  %7188 = vst [vmem:[#allocation22_spill] sm:$0xff] %v6480_v49  ;;  %4758 = vmatprep.mubr.msk.f32.mxu0 %vm5062_vm2, %v7165_v29  ;;  %4931 = vmatprep.mubr.msk.f32.mxu1 %vm5062_vm2, %v7165_v29 }
 0x1e0   : > { %v4432_v0 = vpop.f32.mrf.mxu0  ;;  %v4605_v6 = vpop.f32.mrf.mxu1 }
 0x1e1   : > { %v3885_v6 = vld [vmem:[%s5586_s10 + $0x460] sm:$0xff]  ;;  %v3996_v0 = vld [vmem:[%s5586_s10 + $0x618] sm:$0xff] }
 0x1e2   : > { %v6492_v63 = vpop.f32.mrf.mxu0  ;;  %v6494_v35 = vpop.f32.mrf.mxu1  ;;  %4759 = vmatmul.mubr.msk.f32.gmra.mxu0 %vm1144_vm1, %v3884_v20  ;;  %4932 = vmatmul.mubr.msk.f32.gmra.mxu1 %vm1144_vm1, %v3995_v43 }
 0x1e3   : > { %7189 = vst [vmem:[#allocation23_spill] sm:$0xff] %v6492_v63  ;;  %7190 = vst [vmem:[#allocation24_spill] sm:$0xff] %v6494_v35  ;;  %4761 = vmatprep.mubr.msk.f32.mxu0 %vm5062_vm2, %v7165_v29  ;;  %4934 = vmatprep.mubr.msk.f32.mxu1 %vm5062_vm2, %v7165_v29 }
 0x1e4   : > { %v4435_v38 = vpop.f32.mrf.mxu0  ;;  %v4608_v49 = vpop.f32.mrf.mxu1 }
 0x1e5   : > { %v3886_v49 = vld [vmem:[%s5586_s10 + $0x468] sm:$0xff]  ;;  %v3997_v38 = vld [vmem:[%s5586_s10 + $0x620] sm:$0xff] }
 0x1e6   : > { %v6506_v13 = vpop.f32.mrf.mxu0  ;;  %v6508_v20 = vpop.f32.mrf.mxu1  ;;  %4762 = vmatmul.mubr.msk.f32.gmra.mxu0 %vm1144_vm1, %v3885_v6  ;;  %4935 = vmatmul.mubr.msk.f32.gmra.mxu1 %vm1144_vm1, %v3996_v0 }
 0x1e7   : > { %7191 = vst [vmem:[#allocation25_spill] sm:$0xff] %v6506_v13  ;;  %7192 = vst [vmem:[#allocation26_spill] sm:$0xff] %v6508_v20  ;;  %4764 = vmatprep.mubr.msk.f32.mxu0 %vm5062_vm2, %v7165_v29  ;;  %4937 = vmatprep.mubr.msk.f32.mxu1 %vm5062_vm2, %v7165_v29 }
 0x1e8   : > { %v4438_v2 = vpop.f32.mrf.mxu0  ;;  %v4611_v35 = vpop.f32.mrf.mxu1 }
 0x1e9   : > { %v3887_v35 = vld [vmem:[%s5586_s10 + $0x470] sm:$0xff]  ;;  %v3998_v2 = vld [vmem:[%s5586_s10 + $0x628] sm:$0xff] }
 0x1ea   : > { %v6520_v63 = vpop.f32.mrf.mxu0  ;;  %v6522_v6 = vpop.f32.mrf.mxu1  ;;  %4765 = vmatmul.mubr.msk.f32.gmra.mxu0 %vm1144_vm1, %v3886_v49  ;;  %4938 = vmatmul.mubr.msk.f32.gmra.mxu1 %vm1144_vm1, %v3997_v38 }
 0x1eb   : > { %7193 = vst [vmem:[#allocation27_spill] sm:$0xff] %v6520_v63  ;;  %7194 = vst [vmem:[#allocation28_spill] sm:$0xff] %v6522_v6  ;;  %4767 = vmatprep.mubr.msk.f32.mxu0 %vm5062_vm2, %v7165_v29  ;;  %4940 = vmatprep.mubr.msk.f32.mxu1 %vm5062_vm2, %v7165_v29 }
 0x1ec   : > { %v4441_v43 = vpop.f32.mrf.mxu0  ;;  %v4614_v20 = vpop.f32.mrf.mxu1 }
 0x1ed   : > { %v3888_v20 = vld [vmem:[%s5586_s10 + $0x478] sm:$0xff]  ;;  %v3999_v43 = vld [vmem:[%s5586_s10 + $0x630] sm:$0xff] }
 0x1ee   : > { %v6534_v13 = vpop.f32.mrf.mxu0  ;;  %v6536_v49 = vpop.f32.mrf.mxu1  ;;  %4768 = vmatmul.mubr.msk.f32.gmra.mxu0 %vm1144_vm1, %v3887_v35  ;;  %4941 = vmatmul.mubr.msk.f32.gmra.mxu1 %vm1144_vm1, %v3998_v2 }
 0x1ef   : > { %7195 = vst [vmem:[#allocation29_spill] sm:$0xff] %v6534_v13  ;;  %7196 = vst [vmem:[#allocation30_spill] sm:$0xff] %v6536_v49  ;;  %4770 = vmatprep.mubr.msk.f32.mxu0 %vm5062_vm2, %v7165_v29  ;;  %4943 = vmatprep.mubr.msk.f32.mxu1 %vm5062_vm2, %v7165_v29 }
 0x1f0   : > { %v4444_v0 = vpop.f32.mrf.mxu0  ;;  %v4617_v6 = vpop.f32.mrf.mxu1 }
 0x1f1   : > { %v3889_v6 = vld [vmem:[%s5586_s10 + $0x480] sm:$0xff]  ;;  %v4000_v0 = vld [vmem:[%s5586_s10 + $0x638] sm:$0xff] }
 0x1f2   : > { %v6548_v63 = vpop.f32.mrf.mxu0  ;;  %v6550_v35 = vpop.f32.mrf.mxu1  ;;  %4771 = vmatmul.mubr.msk.f32.gmra.mxu0 %vm1144_vm1, %v3888_v20  ;;  %4944 = vmatmul.mubr.msk.f32.gmra.mxu1 %vm1144_vm1, %v3999_v43 }
 0x1f3   : > { %7197 = vst [vmem:[#allocation31_spill] sm:$0xff] %v6548_v63  ;;  %7198 = vst [vmem:[#allocation32_spill] sm:$0xff] %v6550_v35  ;;  %4773 = vmatprep.mubr.msk.f32.mxu0 %vm5062_vm2, %v7165_v29  ;;  %4946 = vmatprep.mubr.msk.f32.mxu1 %vm5062_vm2, %v7165_v29 }
 0x1f4   : > { %v4447_v38 = vpop.f32.mrf.mxu0  ;;  %v4620_v49 = vpop.f32.mrf.mxu1 }
 0x1f5   : > { %v3890_v49 = vld [vmem:[%s5586_s10 + $0x488] sm:$0xff]  ;;  %v4001_v38 = vld [vmem:[%s5586_s10 + $0x640] sm:$0xff] }
 0x1f6   : > { %v6562_v13 = vpop.f32.mrf.mxu0  ;;  %v6564_v20 = vpop.f32.mrf.mxu1  ;;  %4774 = vmatmul.mubr.msk.f32.gmra.mxu0 %vm1144_vm1, %v3889_v6  ;;  %4947 = vmatmul.mubr.msk.f32.gmra.mxu1 %vm1144_vm1, %v4000_v0 }
 0x1f7   : > { %7199 = vst [vmem:[#allocation33_spill] sm:$0xff] %v6562_v13  ;;  %7200 = vst [vmem:[#allocation34_spill] sm:$0xff] %v6564_v20  ;;  %4776 = vmatprep.mubr.msk.f32.mxu0 %vm5062_vm2, %v7165_v29  ;;  %4949 = vmatprep.mubr.msk.f32.mxu1 %vm5062_vm2, %v7165_v29 }
 0x1f8   : > { %v4450_v2 = vpop.f32.mrf.mxu0  ;;  %v4623_v35 = vpop.f32.mrf.mxu1 }
 0x1f9   : > { %v3891_v35 = vld [vmem:[%s5586_s10 + $0x490] sm:$0xff]  ;;  %v4002_v2 = vld [vmem:[%s5586_s10 + $0x648] sm:$0xff] }
 0x1fa   : > { %v6576_v63 = vpop.f32.mrf.mxu0  ;;  %v6578_v6 = vpop.f32.mrf.mxu1  ;;  %4777 = vmatmul.mubr.msk.f32.gmra.mxu0 %vm1144_vm1, %v3890_v49  ;;  %4950 = vmatmul.mubr.msk.f32.gmra.mxu1 %vm1144_vm1, %v4001_v38 }
 0x1fb   : > { %7201 = vst [vmem:[#allocation35_spill] sm:$0xff] %v6576_v63  ;;  %7202 = vst [vmem:[#allocation36_spill] sm:$0xff] %v6578_v6  ;;  %4779 = vmatprep.mubr.msk.f32.mxu0 %vm5062_vm2, %v7165_v29  ;;  %4952 = vmatprep.mubr.msk.f32.mxu1 %vm5062_vm2, %v7165_v29 }
 0x1fc   : > { %v4453_v43 = vpop.f32.mrf.mxu0  ;;  %v4626_v20 = vpop.f32.mrf.mxu1 }
 0x1fd   : > { %v3892_v20 = vld [vmem:[%s5586_s10 + $0x498] sm:$0xff]  ;;  %v4003_v43 = vld [vmem:[%s5586_s10 + $0x650] sm:$0xff] }
 0x1fe   : > { %v6590_v13 = vpop.f32.mrf.mxu0  ;;  %v6592_v49 = vpop.f32.mrf.mxu1  ;;  %4780 = vmatmul.mubr.msk.f32.gmra.mxu0 %vm1144_vm1, %v3891_v35  ;;  %4953 = vmatmul.mubr.msk.f32.gmra.mxu1 %vm1144_vm1, %v4002_v2 }
 0x1ff   : > { %7203 = vst [vmem:[#allocation37_spill] sm:$0xff] %v6590_v13  ;;  %7204 = vst [vmem:[#allocation38_spill] sm:$0xff] %v6592_v49  ;;  %4782 = vmatprep.mubr.msk.f32.mxu0 %vm5062_vm2, %v7165_v29  ;;  %4955 = vmatprep.mubr.msk.f32.mxu1 %vm5062_vm2, %v7165_v29 }
 0x200   : > { %v4456_v0 = vpop.f32.mrf.mxu0  ;;  %v4629_v6 = vpop.f32.mrf.mxu1 }
 0x201   : > { %v3893_v6 = vld [vmem:[%s5586_s10 + $0x4a0] sm:$0xff]  ;;  %v4004_v0 = vld [vmem:[%s5586_s10 + $0x658] sm:$0xff] }
 0x202   : > { %v6604_v63 = vpop.f32.mrf.mxu0  ;;  %v6606_v35 = vpop.f32.mrf.mxu1  ;;  %4783 = vmatmul.mubr.msk.f32.gmra.mxu0 %vm1144_vm1, %v3892_v20  ;;  %4956 = vmatmul.mubr.msk.f32.gmra.mxu1 %vm1144_vm1, %v4003_v43 }
 0x203   : > { %7205 = vst [vmem:[#allocation39_spill] sm:$0xff] %v6604_v63  ;;  %7206 = vst [vmem:[#allocation40_spill] sm:$0xff] %v6606_v35  ;;  %4785 = vmatprep.mubr.msk.f32.mxu0 %vm5062_vm2, %v7165_v29  ;;  %4958 = vmatprep.mubr.msk.f32.mxu1 %vm5062_vm2, %v7165_v29 }
 0x204   : > { %v4459_v38 = vpop.f32.mrf.mxu0  ;;  %v4632_v49 = vpop.f32.mrf.mxu1 }
 0x205   : > { %v3894_v49 = vld [vmem:[%s5586_s10 + $0x4a8] sm:$0xff]  ;;  %v4005_v38 = vld [vmem:[%s5586_s10 + $0x660] sm:$0xff] }
 0x206   : > { %v6618_v13 = vpop.f32.mrf.mxu0  ;;  %v6620_v20 = vpop.f32.mrf.mxu1  ;;  %4786 = vmatmul.mubr.msk.f32.gmra.mxu0 %vm1144_vm1, %v3893_v6  ;;  %4959 = vmatmul.mubr.msk.f32.gmra.mxu1 %vm1144_vm1, %v4004_v0 }
 0x207   : > { %7207 = vst [vmem:[#allocation41_spill] sm:$0xff] %v6618_v13  ;;  %7208 = vst [vmem:[#allocation42_spill] sm:$0xff] %v6620_v20  ;;  %4788 = vmatprep.mubr.msk.f32.mxu0 %vm5062_vm2, %v7165_v29  ;;  %4961 = vmatprep.mubr.msk.f32.mxu1 %vm5062_vm2, %v7165_v29 }
 0x208   : > { %v4462_v2 = vpop.f32.mrf.mxu0  ;;  %v4635_v35 = vpop.f32.mrf.mxu1 }
 0x209   : > { %v3895_v35 = vld [vmem:[%s5586_s10 + $0x4b0] sm:$0xff]  ;;  %v4006_v2 = vld [vmem:[%s5586_s10 + $0x668] sm:$0xff] }
 0x20a   : > { %v6632_v63 = vpop.f32.mrf.mxu0  ;;  %v6634_v6 = vpop.f32.mrf.mxu1  ;;  %4789 = vmatmul.mubr.msk.f32.gmra.mxu0 %vm1144_vm1, %v3894_v49  ;;  %4962 = vmatmul.mubr.msk.f32.gmra.mxu1 %vm1144_vm1, %v4005_v38 }
 0x20b   : > { %7209 = vst [vmem:[#allocation43_spill] sm:$0xff] %v6632_v63  ;;  %7210 = vst [vmem:[#allocation44_spill] sm:$0xff] %v6634_v6  ;;  %4791 = vmatprep.mubr.msk.f32.mxu0 %vm5062_vm2, %v7165_v29  ;;  %4964 = vmatprep.mubr.msk.f32.mxu1 %vm5062_vm2, %v7165_v29 }
 0x20c   : > { %v4465_v43 = vpop.f32.mrf.mxu0  ;;  %v4638_v20 = vpop.f32.mrf.mxu1 }
 0x20d   : > { %v3896_v20 = vld [vmem:[%s5586_s10 + $0x4b8] sm:$0xff]  ;;  %v4007_v43 = vld [vmem:[%s5586_s10 + $0x670] sm:$0xff] }
 0x20e   : > { %v6646_v13 = vpop.f32.mrf.mxu0  ;;  %v6648_v49 = vpop.f32.mrf.mxu1  ;;  %4792 = vmatmul.mubr.msk.f32.gmra.mxu0 %vm1144_vm1, %v3895_v35  ;;  %4965 = vmatmul.mubr.msk.f32.gmra.mxu1 %vm1144_vm1, %v4006_v2 }
 0x20f   : > { %7211 = vst [vmem:[#allocation45_spill] sm:$0xff] %v6646_v13  ;;  %7212 = vst [vmem:[#allocation46_spill] sm:$0xff] %v6648_v49  ;;  %4794 = vmatprep.mubr.msk.f32.mxu0 %vm5062_vm2, %v7165_v29  ;;  %4967 = vmatprep.mubr.msk.f32.mxu1 %vm5062_vm2, %v7165_v29 }
 0x210   : > { %v4468_v0 = vpop.f32.mrf.mxu0  ;;  %v4641_v6 = vpop.f32.mrf.mxu1 }
 0x211   : > { %v3897_v6 = vld [vmem:[%s5586_s10 + $0x4c0] sm:$0xff]  ;;  %v4008_v0 = vld [vmem:[%s5586_s10 + $0x678] sm:$0xff] }
 0x212   : > { %v6660_v63 = vpop.f32.mrf.mxu0  ;;  %v6662_v35 = vpop.f32.mrf.mxu1  ;;  %4795 = vmatmul.mubr.msk.f32.gmra.mxu0 %vm1144_vm1, %v3896_v20  ;;  %4968 = vmatmul.mubr.msk.f32.gmra.mxu1 %vm1144_vm1, %v4007_v43 }
 0x213   : > { %7213 = vst [vmem:[#allocation47_spill] sm:$0xff] %v6660_v63  ;;  %7214 = vst [vmem:[#allocation48_spill] sm:$0xff] %v6662_v35  ;;  %4797 = vmatprep.mubr.msk.f32.mxu0 %vm5062_vm2, %v7165_v29  ;;  %4970 = vmatprep.mubr.msk.f32.mxu1 %vm5062_vm2, %v7165_v29 }
 0x214   : > { %v4471_v38 = vpop.f32.mrf.mxu0  ;;  %v4644_v49 = vpop.f32.mrf.mxu1 }
 0x215   : > { %v3898_v49 = vld [vmem:[%s5586_s10 + $0x4c8] sm:$0xff]  ;;  %v4009_v38 = vld [vmem:[%s5586_s10 + $0x680] sm:$0xff] }
 0x216   : > { %v6674_v13 = vpop.f32.mrf.mxu0  ;;  %v6676_v20 = vpop.f32.mrf.mxu1  ;;  %4798 = vmatmul.mubr.msk.f32.gmra.mxu0 %vm1144_vm1, %v3897_v6  ;;  %4971 = vmatmul.mubr.msk.f32.gmra.mxu1 %vm1144_vm1, %v4008_v0 }
 0x217   : > { %7215 = vst [vmem:[#allocation49_spill] sm:$0xff] %v6674_v13  ;;  %7216 = vst [vmem:[#allocation50_spill] sm:$0xff] %v6676_v20  ;;  %4800 = vmatprep.mubr.msk.f32.mxu0 %vm5062_vm2, %v7165_v29  ;;  %4973 = vmatprep.mubr.msk.f32.mxu1 %vm5062_vm2, %v7165_v29 }
 0x218   : > { %v4474_v2 = vpop.f32.mrf.mxu0  ;;  %v4647_v35 = vpop.f32.mrf.mxu1 }
 0x219   : > { %v3899_v35 = vld [vmem:[%s5586_s10 + $0x4d0] sm:$0xff]  ;;  %v4010_v2 = vld [vmem:[%s5586_s10 + $0x688] sm:$0xff] }
 0x21a   : > { %v6688_v63 = vpop.f32.mrf.mxu0  ;;  %v6690_v6 = vpop.f32.mrf.mxu1  ;;  %4801 = vmatmul.mubr.msk.f32.gmra.mxu0 %vm1144_vm1, %v3898_v49  ;;  %4974 = vmatmul.mubr.msk.f32.gmra.mxu1 %vm1144_vm1, %v4009_v38 }
 0x21b   : > { %7217 = vst [vmem:[#allocation51_spill] sm:$0xff] %v6688_v63  ;;  %7218 = vst [vmem:[#allocation52_spill] sm:$0xff] %v6690_v6  ;;  %4803 = vmatprep.mubr.msk.f32.mxu0 %vm5062_vm2, %v7165_v29  ;;  %4976 = vmatprep.mubr.msk.f32.mxu1 %vm5062_vm2, %v7165_v29 }
 0x21c   : > { %v4477_v43 = vpop.f32.mrf.mxu0  ;;  %v4650_v20 = vpop.f32.mrf.mxu1 }
 0x21d   : > { %v3900_v20 = vld [vmem:[%s5586_s10 + $0x4d8] sm:$0xff]  ;;  %v4011_v43 = vld [vmem:[%s5586_s10 + $0x690] sm:$0xff] }
 0x21e   : > { %v6702_v13 = vpop.f32.mrf.mxu0  ;;  %v6704_v49 = vpop.f32.mrf.mxu1  ;;  %4804 = vmatmul.mubr.msk.f32.gmra.mxu0 %vm1144_vm1, %v3899_v35  ;;  %4977 = vmatmul.mubr.msk.f32.gmra.mxu1 %vm1144_vm1, %v4010_v2 }
 0x21f   : > { %7219 = vst [vmem:[#allocation53_spill] sm:$0xff] %v6702_v13  ;;  %7220 = vst [vmem:[#allocation54_spill] sm:$0xff] %v6704_v49  ;;  %4806 = vmatprep.mubr.msk.f32.mxu0 %vm5062_vm2, %v7165_v29  ;;  %4979 = vmatprep.mubr.msk.f32.mxu1 %vm5062_vm2, %v7165_v29 }
 0x220   : > { %v4480_v0 = vpop.f32.mrf.mxu0  ;;  %v4653_v6 = vpop.f32.mrf.mxu1 }
 0x221   : > { %v3901_v6 = vld [vmem:[%s5586_s10 + $0x4e0] sm:$0xff]  ;;  %v4012_v0 = vld [vmem:[%s5586_s10 + $0x698] sm:$0xff] }
 0x222   : > { %v6716_v63 = vpop.f32.mrf.mxu0  ;;  %v6718_v35 = vpop.f32.mrf.mxu1  ;;  %4807 = vmatmul.mubr.msk.f32.gmra.mxu0 %vm1144_vm1, %v3900_v20  ;;  %4980 = vmatmul.mubr.msk.f32.gmra.mxu1 %vm1144_vm1, %v4011_v43 }
 0x223   : > { %7221 = vst [vmem:[#allocation55_spill] sm:$0xff] %v6716_v63  ;;  %7222 = vst [vmem:[#allocation56_spill] sm:$0xff] %v6718_v35  ;;  %4809 = vmatprep.mubr.msk.f32.mxu0 %vm5062_vm2, %v7165_v29  ;;  %4982 = vmatprep.mubr.msk.f32.mxu1 %vm5062_vm2, %v7165_v29 }
 0x224   : > { %v4483_v38 = vpop.f32.mrf.mxu0  ;;  %v4656_v49 = vpop.f32.mrf.mxu1 }
 0x225   : > { %v3902_v49 = vld [vmem:[%s5586_s10 + $0x4e8] sm:$0xff]  ;;  %v4013_v38 = vld [vmem:[%s5586_s10 + $0x6a0] sm:$0xff] }
 0x226   : > { %v6732_v20 = vpop.f32.mrf.mxu0  ;;  %v6734_v43 = vpop.f32.mrf.mxu1  ;;  %4810 = vmatmul.mubr.msk.f32.gmra.mxu0 %vm1144_vm1, %v3901_v6  ;;  %4983 = vmatmul.mubr.msk.f32.gmra.mxu1 %vm1144_vm1, %v4012_v0  ;;  %v3904_v0 = vld [vmem:[%s5586_s10 + $0x4f8] sm:$0xff] }
 0x227   : > { %7223 = vst [vmem:[#allocation57_spill] sm:$0xff] %v6732_v20  ;;  %7224 = vst [vmem:[#allocation58_spill] sm:$0xff] %v6734_v43  ;;  %4812 = vmatprep.mubr.msk.f32.mxu0 %vm5062_vm2, %v7165_v29  ;;  %4985 = vmatprep.mubr.msk.f32.mxu1 %vm5062_vm2, %v7165_v29 }
 0x228   : > { %v4486_v35 = vpop.f32.mrf.mxu0  ;;  %v4659_v63 = vpop.f32.mrf.mxu1 }
 0x229   : > { %v3903_v63 = vld [vmem:[%s5586_s10 + $0x4f0] sm:$0xff]  ;;  %v4014_v35 = vld [vmem:[%s5586_s10 + $0x6a8] sm:$0xff] }
 0x22a   : > { %v6746_v13 = vpop.f32.mrf.mxu0  ;;  %v6748_v6 = vpop.f32.mrf.mxu1  ;;  %4813 = vmatmul.mubr.msk.f32.gmra.mxu0 %vm1144_vm1, %v3902_v49  ;;  %4986 = vmatmul.mubr.msk.f32.gmra.mxu1 %vm1144_vm1, %v4013_v38 }
 0x22b   : > { %7225 = vst [vmem:[#allocation59_spill] sm:$0xff] %v6746_v13  ;;  %7226 = vst [vmem:[#allocation60_spill] sm:$0xff] %v6748_v6  ;;  %4815 = vmatprep.mubr.msk.f32.mxu0 %vm5062_vm2, %v7165_v29  ;;  %4988 = vmatprep.mubr.msk.f32.mxu1 %vm5062_vm2, %v7165_v29  ;;  %v4015_v6 = vld [vmem:[%s5586_s10 + $0x6b0] sm:$0xff] }
 0x22c   : > { %v4489_v2 = vpop.f32.mrf.mxu0  ;;  %v4662_v43 = vpop.f32.mrf.mxu1 }
 0x22d   : > { %v6771_v2 = vld [vmem:[%s7107_s2] ss:$0 sm:$0xff] }
 0x22e   : > { %v2502_v20 = vpop.f32.mrf.mxu0  ;;  %4816 = vmatmul.mubr.msk.f32.gmra.mxu0 %vm1144_vm1, %v3903_v63  ;;  %v3063_v49 = vpop.f32.mrf.mxu1  ;;  %4989 = vmatmul.mubr.msk.f32.gmra.mxu1 %vm1144_vm1, %v4014_v35 }
 0x22f   : > { %v3392_v38 = vmax.f32 %v2502_v20, %v3063_v49  ;;  %4818 = vmatprep.mubr.msk.f32.mxu0 %vm5062_vm2, %v7165_v29  ;;  %4991 = vmatprep.mubr.msk.f32.mxu1 %vm5062_vm2, %v7165_v29  ;;  %v7227_v20 = vmax.f32 %v5988_v4, %v5991_v5  ;;  %v3905_v4 = vld [vmem:[%s5586_s10 + $0x500] sm:$0xff]  ;;  %v4016_v5 = vld [vmem:[%s5586_s10 + $0x6b8] sm:$0xff] }
 0x230   : > { %v4673_v43 = vpop.f32.mrf.mxu0  ;;  %v4846_v63 = vpop.f32.mrf.mxu1 }
 0x231   : > { %v3447_v35 = vmax.f32 %v7227_v20, %v3392_v38  ;;  %v7228_v63 = vmov 0.0  }
 0x232   : > { %v2507_v49 = vpop.f32.mrf.mxu0  ;;  %4819 = vmatmul.mubr.msk.f32.gmra.mxu0 %vm1144_vm1, %v3904_v0  ;;  %v3068_v29 = vpop.f32.mrf.mxu1  ;;  %4992 = vmatmul.mubr.msk.f32.gmra.mxu1 %vm1144_vm1, %v4015_v6  ;;  %v7229_v6 = vmax.f32 %v6002_v11, %v6005_v12  ;;  %v4017_v11 = vld [vmem:[%s5586_s10 + $0x6c0] sm:$0xff] }
 0x233   : > { %v3509_v13 = vadd.f32 %v6771_v2, %v3447_v35  ;;  %v3393_v43 = vmax.f32 %v2507_v49, %v3068_v29  ;;  %4821 = vmatprep.mubr.msk.f32.mxu0 %vm5062_vm2, %v7228_v63  ;;  %4994 = vmatprep.mubr.msk.f32.mxu1 %vm5062_vm2, %v7228_v63 }
 0x234   : > { %v4676_v38 = vpop.f32.mrf.mxu0  ;;  %v4849_v20 = vpop.f32.mrf.mxu1 }
 0x235   : > { %3564 = vst [vmem:[%s6779_s20] sm:$0xff] %v3509_v13  ;;  %v3448_v0 = vmax.f32 %v7229_v6, %v3393_v43  ;;  %v3906_v13 = vld [vmem:[%s5586_s10 + $0x508] sm:$0xff] }
 0x236   : > { %v2512_v35 = vpop.f32.mrf.mxu0  ;;  %4822 = vmatmul.mubr.msk.f32.gmra.mxu0 %vm1144_vm1, %v3905_v4  ;;  %v3073_v29 = vpop.f32.mrf.mxu1  ;;  %4995 = vmatmul.mubr.msk.f32.gmra.mxu1 %vm1144_vm1, %v4016_v5  ;;  %v7230_v4 = vmax.f32 %v6016_v18, %v6019_v19  ;;  %v4018_v18 = vld [vmem:[%s5586_s10 + $0x6c8] sm:$0xff] }
 0x237   : > { %v3510_v49 = vadd.f32 %v6771_v2, %v3448_v0  ;;  %v3394_v27 = vmax.f32 %v2512_v35, %v3073_v29  ;;  %4824 = vmatprep.mubr.msk.f32.mxu0 %vm5062_vm2, %v7228_v63  ;;  %4997 = vmatprep.mubr.msk.f32.mxu1 %vm5062_vm2, %v7228_v63  ;;  %v3907_v35 = vld [vmem:[%s5586_s10 + $0x510] sm:$0xff]  ;;  %v7231_v29 = vmax.f32 %v6030_v25, %v6033_v26 }
 0x238   : > { %v4679_v12 = vpop.f32.mrf.mxu0  ;;  %v4852_v43 = vpop.f32.mrf.mxu1  ;;  %v4019_v25 = vld [vmem:[%s5586_s10 + $0x6d0] sm:$0xff] }
 0x239   : > { %3565 = vst [vmem:[%s6779_s20 + $0x8] sm:$0xff] %v3510_v49  ;;  %v3449_v5 = vmax.f32 %v7230_v4, %v3394_v27  ;;  %v3908_v4 = vld [vmem:[%s5586_s10 + $0x518] sm:$0xff] }
 0x23a   : > { %v2517_v38 = vpop.f32.mrf.mxu0  ;;  %4825 = vmatmul.mubr.msk.f32.gmra.mxu0 %vm1144_vm1, %v3906_v13  ;;  %v3078_v20 = vpop.f32.mrf.mxu1  ;;  %4998 = vmatmul.mubr.msk.f32.gmra.mxu1 %vm1144_vm1, %v4017_v11 }
 0x23b   : > { %v3511_v6 = vadd.f32 %v6771_v2, %v3449_v5  ;;  %v3395_v0 = vmax.f32 %v2517_v38, %v3078_v20  ;;  %4827 = vmatprep.mubr.msk.f32.mxu0 %vm5062_vm2, %v7228_v63  ;;  %5000 = vmatprep.mubr.msk.f32.mxu1 %vm5062_vm2, %v7228_v63  ;;  %v7232_v38 = vmax.f32 %v6044_v33, %v6047_v34 }
 0x23c   : > { %v4682_v19 = vpop.f32.mrf.mxu0  ;;  %v4855_v27 = vpop.f32.mrf.mxu1 }
 0x23d   : > { %3566 = vst [vmem:[%s6779_s20 + $0x10] sm:$0xff] %v3511_v6  ;;  %v3450_v49 = vmax.f32 %v7231_v29, %v3395_v0  ;;  %v3909_v19 = vld [vmem:[%s5586_s10 + $0x520] sm:$0xff]  ;;  %v4020_v27 = vld [vmem:[%s5586_s10 + $0x6d8] sm:$0xff]  ;;  %v7233_v29 = vmax.f32 %v6058_v40, %v6061_v41 }
 0x23e   : > { %v2522_v13 = vpop.f32.mrf.mxu0  ;;  %4828 = vmatmul.mubr.msk.f32.gmra.mxu0 %vm1144_vm1, %v3907_v35  ;;  %v3083_v11 = vpop.f32.mrf.mxu1  ;;  %5001 = vmatmul.mubr.msk.f32.gmra.mxu1 %vm1144_vm1, %v4018_v18 }
 0x23f   : > { %v3512_v12 = vadd.f32 %v6771_v2, %v3450_v49  ;;  %v3396_v43 = vmax.f32 %v2522_v13, %v3083_v11  ;;  %4830 = vmatprep.mubr.msk.f32.mxu0 %vm5062_vm2, %v7228_v63  ;;  %5003 = vmatprep.mubr.msk.f32.mxu1 %vm5062_vm2, %v7228_v63 }
 0x240   : > { %v4685_v26 = vpop.f32.mrf.mxu0  ;;  %v4858_v5 = vpop.f32.mrf.mxu1 }
 0x241   : > { %3567 = vst [vmem:[%s6779_s20 + $0x18] sm:$0xff] %v3512_v12  ;;  %v3451_v20 = vmax.f32 %v7232_v38, %v3396_v43 }
 0x242   : > { %v2527_v6 = vpop.f32.mrf.mxu0  ;;  %4831 = vmatmul.mubr.msk.f32.gmra.mxu0 %vm1144_vm1, %v3908_v4  ;;  %v3088_v0 = vpop.f32.mrf.mxu1  ;;  %5004 = vmatmul.mubr.msk.f32.gmra.mxu1 %vm1144_vm1, %v4019_v25  ;;  %v7234_v25 = vmax.f32 %v6072_v47, %v6075_v48 }
 0x243   : > { %v3513_v35 = vadd.f32 %v6771_v2, %v3451_v20  ;;  %v3397_v18 = vmax.f32 %v2527_v6, %v3088_v0  ;;  %4833 = vmatprep.mubr.msk.f32.mxu0 %vm5062_vm2, %v7228_v63  ;;  %5006 = vmatprep.mubr.msk.f32.mxu1 %vm5062_vm2, %v7228_v63  ;;  %v7235_v0 = vmax.f32 %v6086_v54, %v6088_v55 }
 0x244   : > { %v4688_v33 = vpop.f32.mrf.mxu0  ;;  %v4861_v34 = vpop.f32.mrf.mxu1 }
 0x245   : > { %3568 = vst [vmem:[%s6779_s20 + $0x20] sm:$0xff] %v3513_v35  ;;  %v3452_v49 = vmax.f32 %v7233_v29, %v3397_v18  ;;  %v7236_v34 = vmax.f32 %v6100_v61, %v6102_v62 }
 0x246   : > { %v2532_v13 = vpop.f32.mrf.mxu0  ;;  %4834 = vmatmul.mubr.msk.f32.gmra.mxu0 %vm1144_vm1, %v3909_v19  ;;  %v3093_v11 = vpop.f32.mrf.mxu1  ;;  %5007 = vmatmul.mubr.msk.f32.gmra.mxu1 %vm1144_vm1, %v4020_v27 }
 0x247   : > { %v3514_v12 = vadd.f32 %v6771_v2, %v3452_v49  ;;  %v3398_v43 = vmax.f32 %v2532_v13, %v3093_v11 }
 0x248   : > { %v4691_v63 = vpop.f32.mrf.mxu0  ;;  %v4864_v4 = vpop.f32.mrf.mxu1 }
 0x249   : > { %3569 = vst [vmem:[%s6779_s20 + $0x28] sm:$0xff] %v3514_v12  ;;  %v3453_v26 = vmax.f32 %v7234_v25, %v3398_v43  ;;  %v7237_v43 = vmax.f32 %v6114_v7, %v6116_v8 }
 0x24a   : > { %v2537_v40 = vpop.f32.mrf.mxu0  ;;  %v3098_v41 = vpop.f32.mrf.mxu1 }
 0x24b   : > { %v3515_v5 = vadd.f32 %v6771_v2, %v3453_v26  ;;  %v3399_v38 = vmax.f32 %v2537_v40, %v3098_v41  ;;  %v7238_v41 = vmax.f32 %v6128_v17, %v6130_v21 }
 0x24c   : > { %v4694_v20 = vpop.f32.mrf.mxu0  ;;  %v4867_v6 = vpop.f32.mrf.mxu1 }
 0x24d   : > { %3570 = vst [vmem:[%s6779_s20 + $0x30] sm:$0xff] %v3515_v5  ;;  %v3454_v35 = vmax.f32 %v7235_v0, %v3399_v38 }
 0x24e   : > { %v2542_v18 = vpop.f32.mrf.mxu0  ;;  %v3103_v19 = vpop.f32.mrf.mxu1 }
 0x24f   : > { %v3516_v27 = vadd.f32 %v6771_v2, %v3454_v35  ;;  %v3400_v47 = vmax.f32 %v2542_v18, %v3103_v19  ;;  %v7239_v35 = vmax.f32 %v6142_v31, %v6144_v32 }
 0x250   : > { %v4697_v48 = vpop.f32.mrf.mxu0  ;;  %v4870_v33 = vpop.f32.mrf.mxu1 }
 0x251   : > { %3571 = vst [vmem:[%s6779_s20 + $0x38] sm:$0xff] %v3516_v27  ;;  %v3455_v29 = vmax.f32 %v7236_v34, %v3400_v47  ;;  %v7240_v33 = vmax.f32 %v6156_v44, %v6158_v45 }
 0x252   : > { %v2547_v49 = vpop.f32.mrf.mxu0  ;;  %v3108_v13 = vpop.f32.mrf.mxu1 }
 0x253   : > { %v3517_v11 = vadd.f32 %v6771_v2, %v3455_v29  ;;  %v3401_v54 = vmax.f32 %v2547_v49, %v3108_v13 }
 0x254   : > { %v4700_v55 = vpop.f32.mrf.mxu0  ;;  %v4873_v12 = vpop.f32.mrf.mxu1 }
 0x255   : > { %3572 = vst [vmem:[%s6779_s20 + $0x40] sm:$0xff] %v3517_v11  ;;  %v3456_v63 = vmax.f32 %v7237_v43, %v3401_v54  ;;  %v7241_v54 = vmax.f32 %v6170_v57, %v6172_v58 }
 0x256   : > { %v2552_v4 = vpop.f32.mrf.mxu0  ;;  %v3113_v25 = vpop.f32.mrf.mxu1 }
 0x257   : > { %v3518_v26 = vadd.f32 %v6771_v2, %v3456_v63  ;;  %v3402_v61 = vmax.f32 %v2552_v4, %v3113_v25  ;;  %v7242_v25 = vmax.f32 %v6184_v3, %v6186_v10 }
 0x258   : > { %v4703_v62 = vpop.f32.mrf.mxu0  ;;  %v4876_v40 = vpop.f32.mrf.mxu1 }
 0x259   : > { %3573 = vst [vmem:[%s6779_s20 + $0x48] sm:$0xff] %v3518_v26  ;;  %v3457_v5 = vmax.f32 %v7238_v41, %v3402_v61 }
 0x25a   : > { %v2557_v38 = vpop.f32.mrf.mxu0  ;;  %v3118_v20 = vpop.f32.mrf.mxu1 }
 0x25b   : > { %v3519_v6 = vadd.f32 %v6771_v2, %v3457_v5  ;;  %v3403_v7 = vmax.f32 %v2557_v38, %v3118_v20  ;;  %v7243_v5 = vmax.f32 %v6198_v28, %v6200_v30 }
 0x25c   : > { %v4706_v8 = vpop.f32.mrf.mxu0  ;;  %v4879_v0 = vpop.f32.mrf.mxu1 }
 0x25d   : > { %3574 = vst [vmem:[%s6779_s20 + $0x50] sm:$0xff] %v3519_v6  ;;  %v3458_v18 = vmax.f32 %v7239_v35, %v3403_v7  ;;  %v7244_v0 = vmax.f32 %v6212_v51, %v6214_v52 }
 0x25e   : > { %v2562_v19 = vpop.f32.mrf.mxu0  ;;  %v3123_v27 = vpop.f32.mrf.mxu1 }
 0x25f   : > { %v3520_v47 = vadd.f32 %v6771_v2, %v3458_v18  ;;  %v3404_v17 = vmax.f32 %v2562_v19, %v3123_v27 }
 0x260   : > { %v4709_v21 = vpop.f32.mrf.mxu0  ;;  %v4882_v48 = vpop.f32.mrf.mxu1 }
 0x261   : > { %3575 = vst [vmem:[%s6779_s20 + $0x58] sm:$0xff] %v3520_v47  ;;  %v3459_v34 = vmax.f32 %v7240_v33, %v3404_v17  ;;  %v7245_v17 = vmax.f32 %v6226_v15, %v6228_v16 }
 0x262   : > { %v2567_v29 = vpop.f32.mrf.mxu0  ;;  %v3128_v49 = vpop.f32.mrf.mxu1 }
 0x263   : > { %v3521_v13 = vadd.f32 %v6771_v2, %v3459_v34  ;;  %v3405_v31 = vmax.f32 %v2567_v29, %v3128_v49  ;;  %v7246_v49 = vmax.f32 %v6240_v50, %v6242_v60 }
 0x264   : > { %v4712_v32 = vpop.f32.mrf.mxu0  ;;  %v4885_v11 = vpop.f32.mrf.mxu1 }
 0x265   : > { %3576 = vst [vmem:[%s6779_s20 + $0x60] sm:$0xff] %v3521_v13  ;;  %v3460_v55 = vmax.f32 %v7241_v54, %v3405_v31 }
 0x266   : > { %v2572_v12 = vpop.f32.mrf.mxu0  ;;  %v3133_v43 = vpop.f32.mrf.mxu1 }
 0x267   : > { %v3522_v63 = vadd.f32 %v6771_v2, %v3460_v55  ;;  %v3406_v44 = vmax.f32 %v2572_v12, %v3133_v43  ;;  %v7247_v55 = vmax.f32 %v6254_v23, %v6256_v24 }
 0x268   : > { %v4715_v45 = vpop.f32.mrf.mxu0  ;;  %v4888_v4 = vpop.f32.mrf.mxu1 }
 0x269   : > { %3577 = vst [vmem:[%s6779_s20 + $0x68] sm:$0xff] %v3522_v63  ;;  %v3461_v26 = vmax.f32 %v7242_v25, %v3406_v44  ;;  %v7248_v4 = vmax.f32 %v6268_v37, %v6270_v1 }
 0x26a   : > { %v2577_v61 = vpop.f32.mrf.mxu0  ;;  %v3138_v62 = vpop.f32.mrf.mxu1 }
 0x26b   : > { %v3523_v40 = vadd.f32 %v6771_v2, %v3461_v26  ;;  %v3407_v57 = vmax.f32 %v2577_v61, %v3138_v62 }
 0x26c   : > { %v4718_v58 = vpop.f32.mrf.mxu0  ;;  %v4891_v41 = vpop.f32.mrf.mxu1 }
 0x26d   : > { %3578 = vst [vmem:[%s6779_s20 + $0x70] sm:$0xff] %v3523_v40  ;;  %v3462_v38 = vmax.f32 %v7243_v5, %v3407_v57  ;;  %v7249_v57 = vmax.f32 %v6282_v59, %v6284_v39 }
 0x26e   : > { %v2582_v20 = vpop.f32.mrf.mxu0  ;;  %v3143_v6 = vpop.f32.mrf.mxu1 }
 0x26f   : > { %v3524_v7 = vadd.f32 %v6771_v2, %v3462_v38  ;;  %v3408_v3 = vmax.f32 %v2582_v20, %v3143_v6  ;;  %v7250_v6 = vmax.f32 %v6296_v36, %v6298_v53 }
 0x270   : > { %v4721_v10 = vpop.f32.mrf.mxu0  ;;  %v4894_v8 = vpop.f32.mrf.mxu1 }
 0x271   : > { %3579 = vst [vmem:[%s6779_s20 + $0x78] sm:$0xff] %v3524_v7  ;;  %v3463_v35 = vmax.f32 %v7244_v0, %v3408_v3 }
 0x272   : > { %v2587_v18 = vpop.f32.mrf.mxu0  ;;  %v3148_v19 = vpop.f32.mrf.mxu1 }
 0x273   : > { %v3525_v27 = vadd.f32 %v6771_v2, %v3463_v35  ;;  %v3409_v28 = vmax.f32 %v2587_v18, %v3148_v19  ;;  %v7251_v35 = vmax.f32 %v6310_v9, %v6312_v14 }
 0x274   : > { %v4724_v30 = vpop.f32.mrf.mxu0  ;;  %v4897_v47 = vpop.f32.mrf.mxu1 }
 0x275   : > { %3580 = vst [vmem:[%s6779_s20 + $0x80] sm:$0xff] %v3525_v27  ;;  %v3464_v21 = vmax.f32 %v7245_v17, %v3409_v28  ;;  %v7252_v47 = vmax.f32 %v6324_v56, %v6326_v46 }
 0x276   : > { %v2592_v48 = vpop.f32.mrf.mxu0  ;;  %v3153_v33 = vpop.f32.mrf.mxu1 }
 0x277   : > { %v3526_v34 = vadd.f32 %v6771_v2, %v3464_v21  ;;  %v3410_v51 = vmax.f32 %v2592_v48, %v3153_v33 }
 0x278   : > { %v4727_v52 = vpop.f32.mrf.mxu0  ;;  %v4900_v29 = vpop.f32.mrf.mxu1 }
 0x279   : > { %3581 = vst [vmem:[%s6779_s20 + $0x88] sm:$0xff] %v3526_v34  ;;  %v3465_v13 = vmax.f32 %v7246_v49, %v3410_v51  ;;  %v7253_v51 = vmax.f32 %v6338_v42, %v6340_v22 }
 0x27a   : > { %v2597_v31 = vpop.f32.mrf.mxu0  ;;  %v3158_v32 = vpop.f32.mrf.mxu1 }
 0x27b   : > { %v3527_v11 = vadd.f32 %v6771_v2, %v3465_v13  ;;  %v3411_v15 = vmax.f32 %v2597_v31, %v3158_v32  ;;  %v7254_v32 = vld [vmem:[#allocation3_spill] sm:$0xff] }
 0x27c   : > { %v4730_v16 = vpop.f32.mrf.mxu0  ;;  %v4903_v54 = vpop.f32.mrf.mxu1 }
 0x27d   : > { %3582 = vst [vmem:[%s6779_s20 + $0x90] sm:$0xff] %v3527_v11  ;;  %v3466_v12 = vmax.f32 %v7247_v55, %v3411_v15  ;;  %v7255_v11 = vld [vmem:[#allocation4_spill] sm:$0xff] }
 0x27e   : > { %v2602_v43 = vpop.f32.mrf.mxu0  ;;  %v3163_v63 = vpop.f32.mrf.mxu1  ;;  %v7256_v15 = vmax.f32 %v7254_v32, %v7255_v11 }
 0x27f   : > { %v3528_v44 = vadd.f32 %v6771_v2, %v3466_v12  ;;  %v3412_v50 = vmax.f32 %v2602_v43, %v3163_v63  ;;  %v7257_v63 = vld [vmem:[#allocation5_spill] sm:$0xff] }
 0x280   : > { %v4733_v60 = vpop.f32.mrf.mxu0  ;;  %v4906_v45 = vpop.f32.mrf.mxu1 }
 0x281   : > { %3583 = vst [vmem:[%s6779_s20 + $0x98] sm:$0xff] %v3528_v44  ;;  %v3467_v25 = vmax.f32 %v7248_v4, %v3412_v50  ;;  %v7258_v44 = vld [vmem:[#allocation6_spill] sm:$0xff] }
 0x282   : > { %v2607_v26 = vpop.f32.mrf.mxu0  ;;  %v3168_v61 = vpop.f32.mrf.mxu1  ;;  %v7259_v50 = vmax.f32 %v7257_v63, %v7258_v44 }
 0x283   : > { %v3529_v62 = vadd.f32 %v6771_v2, %v3467_v25  ;;  %v3413_v23 = vmax.f32 %v2607_v26, %v3168_v61 }
 0x284   : > { %v4736_v24 = vpop.f32.mrf.mxu0  ;;  %v4909_v40 = vpop.f32.mrf.mxu1 }
 0x285   : > { %3584 = vst [vmem:[%s6779_s20 + $0xa0] sm:$0xff] %v3529_v62  ;;  %v3468_v58 = vmax.f32 %v7249_v57, %v3413_v23  ;;  %v7260_v23 = vld [vmem:[#allocation7_spill] sm:$0xff]  ;;  %v7261_v24 = vld [vmem:[#allocation8_spill] sm:$0xff] }
 0x286   : > { %v2612_v41 = vpop.f32.mrf.mxu0  ;;  %v3173_v5 = vpop.f32.mrf.mxu1  ;;  %v7262_v40 = vmax.f32 %v7260_v23, %v7261_v24 }
 0x287   : > { %v3530_v38 = vadd.f32 %v6771_v2, %v3468_v58  ;;  %v3414_v37 = vmax.f32 %v2612_v41, %v3173_v5 }
 0x288   : > { %v4739_v1 = vpop.f32.mrf.mxu0  ;;  %v4912_v20 = vpop.f32.mrf.mxu1 }
 0x289   : > { %3585 = vst [vmem:[%s6779_s20 + $0xa8] sm:$0xff] %v3530_v38  ;;  %v3469_v7 = vmax.f32 %v7250_v6, %v3414_v37  ;;  %v7263_v20 = vld [vmem:[#allocation9_spill] sm:$0xff]  ;;  %v7264_v6 = vld [vmem:[#allocation10_spill] sm:$0xff] }
 0x28a   : > { %v2617_v3 = vpop.f32.mrf.mxu0  ;;  %v3178_v10 = vpop.f32.mrf.mxu1 }
 0x28b   : > { %v3531_v8 = vadd.f32 %v6771_v2, %v3469_v7  ;;  %v3415_v59 = vmax.f32 %v2617_v3, %v3178_v10  ;;  %v7265_v7 = vmax.f32 %v7263_v20, %v7264_v6 }
 0x28c   : > { %v4742_v39 = vpop.f32.mrf.mxu0  ;;  %v4915_v0 = vpop.f32.mrf.mxu1 }
 0x28d   : > { %3586 = vst [vmem:[%s6779_s20 + $0xb0] sm:$0xff] %v3531_v8  ;;  %v3470_v18 = vmax.f32 %v7251_v35, %v3415_v59 }
 0x28e   : > { %v2622_v19 = vpop.f32.mrf.mxu0  ;;  %v3183_v27 = vpop.f32.mrf.mxu1 }
 0x28f   : > { %v3532_v28 = vadd.f32 %v6771_v2, %v3470_v18  ;;  %v3416_v36 = vmax.f32 %v2622_v19, %v3183_v27  ;;  %v7266_v18 = vld [vmem:[#allocation11_spill] sm:$0xff]  ;;  %v7267_v19 = vld [vmem:[#allocation12_spill] sm:$0xff] }
 0x290   : > { %v4745_v53 = vpop.f32.mrf.mxu0  ;;  %v4918_v30 = vpop.f32.mrf.mxu1  ;;  %v7268_v27 = vmax.f32 %v7266_v18, %v7267_v19 }
 0x291   : > { %3587 = vst [vmem:[%s6779_s20 + $0xb8] sm:$0xff] %v3532_v28  ;;  %v3471_v17 = vmax.f32 %v7252_v47, %v3416_v36 }
 0x292   : > { %v2627_v21 = vpop.f32.mrf.mxu0  ;;  %v3188_v48 = vpop.f32.mrf.mxu1 }
 0x293   : > { %v3533_v33 = vadd.f32 %v6771_v2, %v3471_v17  ;;  %v3417_v9 = vmax.f32 %v2627_v21, %v3188_v48  ;;  %v7269_v48 = vld [vmem:[#allocation13_spill] sm:$0xff] }
 0x294   : > { %v4748_v14 = vpop.f32.mrf.mxu0  ;;  %v4921_v34 = vpop.f32.mrf.mxu1 }
 0x295   : > { %3588 = vst [vmem:[%s6779_s20 + $0xc0] sm:$0xff] %v3533_v33  ;;  %v3472_v52 = vmax.f32 %v7253_v51, %v3417_v9  ;;  %v7270_v33 = vld [vmem:[#allocation14_spill] sm:$0xff] }
 0x296   : > { %v2632_v29 = vpop.f32.mrf.mxu0  ;;  %v3193_v49 = vpop.f32.mrf.mxu1  ;;  %v7271_v9 = vmax.f32 %v7269_v48, %v7270_v33 }
 0x297   : > { %v3534_v13 = vadd.f32 %v6771_v2, %v3472_v52  ;;  %v3418_v56 = vmax.f32 %v2632_v29, %v3193_v49 }
 0x298   : > { %v4751_v46 = vpop.f32.mrf.mxu0  ;;  %v4924_v31 = vpop.f32.mrf.mxu1 }
 0x299   : > { %3589 = vst [vmem:[%s6779_s20 + $0xc8] sm:$0xff] %v3534_v13  ;;  %v3473_v16 = vmax.f32 %v7256_v15, %v3418_v56  ;;  %v7272_v56 = vld [vmem:[#allocation15_spill] sm:$0xff]  ;;  %v7273_v46 = vld [vmem:[#allocation16_spill] sm:$0xff] }
 0x29a   : > { %v2637_v54 = vpop.f32.mrf.mxu0  ;;  %v3198_v55 = vpop.f32.mrf.mxu1  ;;  %v7274_v31 = vmax.f32 %v7272_v56, %v7273_v46 }
 0x29b   : > { %v3535_v12 = vadd.f32 %v6771_v2, %v3473_v16  ;;  %v3419_v42 = vmax.f32 %v2637_v54, %v3198_v55 }
 0x29c   : > { %v4754_v22 = vpop.f32.mrf.mxu0  ;;  %v4927_v43 = vpop.f32.mrf.mxu1 }
 0x29d   : > { %3590 = vst [vmem:[%s6779_s20 + $0xd0] sm:$0xff] %v3535_v12  ;;  %v3474_v60 = vmax.f32 %v7259_v50, %v3419_v42  ;;  %v7275_v42 = vld [vmem:[#allocation17_spill] sm:$0xff]  ;;  %v7276_v22 = vld [vmem:[#allocation18_spill] sm:$0xff] }
 0x29e   : > { %v2642_v45 = vpop.f32.mrf.mxu0  ;;  %v3203_v4 = vpop.f32.mrf.mxu1  ;;  %v7277_v43 = vmax.f32 %v7275_v42, %v7276_v22 }
 0x29f   : > { %v3536_v25 = vadd.f32 %v6771_v2, %v3474_v60  ;;  %v3420_v26 = vmax.f32 %v2642_v45, %v3203_v4 }
 0x2a0   : > { %v4757_v61 = vpop.f32.mrf.mxu0  ;;  %v4930_v62 = vpop.f32.mrf.mxu1 }
 0x2a1   : > { %3591 = vst [vmem:[%s6779_s20 + $0xd8] sm:$0xff] %v3536_v25  ;;  %v3475_v57 = vmax.f32 %v7262_v40, %v3420_v26  ;;  %v7278_v26 = vld [vmem:[#allocation19_spill] sm:$0xff]  ;;  %v7279_v61 = vld [vmem:[#allocation20_spill] sm:$0xff] }
 0x2a2   : > { %v2647_v58 = vpop.f32.mrf.mxu0  ;;  %v3208_v41 = vpop.f32.mrf.mxu1  ;;  %v7280_v62 = vmax.f32 %v7278_v26, %v7279_v61 }
 0x2a3   : > { %v3537_v5 = vadd.f32 %v6771_v2, %v3475_v57  ;;  %v3421_v38 = vmax.f32 %v2647_v58, %v3208_v41 }
 0x2a4   : > { %v4760_v37 = vpop.f32.mrf.mxu0  ;;  %v4933_v1 = vpop.f32.mrf.mxu1 }
 0x2a5   : > { %3592 = vst [vmem:[%s6779_s20 + $0xe0] sm:$0xff] %v3537_v5  ;;  %v3476_v3 = vmax.f32 %v7265_v7, %v3421_v38  ;;  %v7281_v38 = vld [vmem:[#allocation21_spill] sm:$0xff]  ;;  %v7282_v37 = vld [vmem:[#allocation22_spill] sm:$0xff] }
 0x2a6   : > { %v2652_v10 = vpop.f32.mrf.mxu0  ;;  %v3213_v8 = vpop.f32.mrf.mxu1  ;;  %v7283_v1 = vmax.f32 %v7281_v38, %v7282_v37 }
 0x2a7   : > { %v3538_v59 = vadd.f32 %v6771_v2, %v3476_v3  ;;  %v3422_v39 = vmax.f32 %v2652_v10, %v3213_v8 }
 0x2a8   : > { %v4763_v0 = vpop.f32.mrf.mxu0  ;;  %v4936_v35 = vpop.f32.mrf.mxu1 }
 0x2a9   : > { %3593 = vst [vmem:[%s6779_s20 + $0xe8] sm:$0xff] %v3538_v59  ;;  %v3477_v28 = vmax.f32 %v7268_v27, %v3422_v39  ;;  %v7284_v39 = vld [vmem:[#allocation23_spill] sm:$0xff]  ;;  %v7285_v0 = vld [vmem:[#allocation24_spill] sm:$0xff] }
 0x2aa   : > { %v2657_v36 = vpop.f32.mrf.mxu0  ;;  %v3218_v53 = vpop.f32.mrf.mxu1  ;;  %v7286_v35 = vmax.f32 %v7284_v39, %v7285_v0 }
 0x2ab   : > { %v3539_v30 = vadd.f32 %v6771_v2, %v3477_v28  ;;  %v3423_v47 = vmax.f32 %v2657_v36, %v3218_v53 }
 0x2ac   : > { %v4766_v17 = vpop.f32.mrf.mxu0  ;;  %v4939_v21 = vpop.f32.mrf.mxu1 }
 0x2ad   : > { %3594 = vst [vmem:[%s6779_s20 + $0xf0] sm:$0xff] %v3539_v30  ;;  %v3478_v14 = vmax.f32 %v7271_v9, %v3423_v47  ;;  %v7287_v47 = vld [vmem:[#allocation25_spill] sm:$0xff]  ;;  %v7288_v17 = vld [vmem:[#allocation26_spill] sm:$0xff] }
 0x2ae   : > { %v2662_v34 = vpop.f32.mrf.mxu0  ;;  %v3223_v51 = vpop.f32.mrf.mxu1  ;;  %v7289_v21 = vmax.f32 %v7287_v47, %v7288_v17 }
 0x2af   : > { %v3540_v52 = vadd.f32 %v6771_v2, %v3478_v14  ;;  %v3424_v29 = vmax.f32 %v2662_v34, %v3223_v51 }
 0x2b0   : > { %v4769_v49 = vpop.f32.mrf.mxu0  ;;  %v4942_v13 = vpop.f32.mrf.mxu1 }
 0x2b1   : > { %3595 = vst [vmem:[%s6779_s20 + $0xf8] sm:$0xff] %v3540_v52  ;;  %v3479_v32 = vmax.f32 %v7274_v31, %v3424_v29  ;;  %v7290_v29 = vld [vmem:[#allocation27_spill] sm:$0xff]  ;;  %v7291_v49 = vld [vmem:[#allocation28_spill] sm:$0xff] }
 0x2b2   : > { %v2667_v11 = vpop.f32.mrf.mxu0  ;;  %v3228_v15 = vpop.f32.mrf.mxu1  ;;  %v7292_v13 = vmax.f32 %v7290_v29, %v7291_v49 }
 0x2b3   : > { %v3541_v16 = vadd.f32 %v6771_v2, %v3479_v32  ;;  %v3425_v54 = vmax.f32 %v2667_v11, %v3228_v15 }
 0x2b4   : > { %v4772_v55 = vpop.f32.mrf.mxu0  ;;  %v4945_v12 = vpop.f32.mrf.mxu1 }
 0x2b5   : > { %3596 = vst [vmem:[%s6779_s20 + $0x100] sm:$0xff] %v3541_v16  ;;  %v3480_v63 = vmax.f32 %v7277_v43, %v3425_v54  ;;  %v7293_v54 = vld [vmem:[#allocation29_spill] sm:$0xff]  ;;  %v7294_v55 = vld [vmem:[#allocation30_spill] sm:$0xff] }
 0x2b6   : > { %v2672_v44 = vpop.f32.mrf.mxu0  ;;  %v3233_v50 = vpop.f32.mrf.mxu1  ;;  %v7295_v12 = vmax.f32 %v7293_v54, %v7294_v55 }
 0x2b7   : > { %v3542_v60 = vadd.f32 %v6771_v2, %v3480_v63  ;;  %v3426_v45 = vmax.f32 %v2672_v44, %v3233_v50 }
 0x2b8   : > { %v4775_v4 = vpop.f32.mrf.mxu0  ;;  %v4948_v25 = vpop.f32.mrf.mxu1 }
 0x2b9   : > { %3597 = vst [vmem:[%s6779_s20 + $0x108] sm:$0xff] %v3542_v60  ;;  %v3481_v23 = vmax.f32 %v7280_v62, %v3426_v45  ;;  %v7296_v45 = vld [vmem:[#allocation31_spill] sm:$0xff]  ;;  %v7297_v4 = vld [vmem:[#allocation32_spill] sm:$0xff] }
 0x2ba   : > { %v2677_v24 = vpop.f32.mrf.mxu0  ;;  %v3238_v40 = vpop.f32.mrf.mxu1  ;;  %v7298_v25 = vmax.f32 %v7296_v45, %v7297_v4 }
 0x2bb   : > { %v3543_v57 = vadd.f32 %v6771_v2, %v3481_v23  ;;  %v3427_v58 = vmax.f32 %v2677_v24, %v3238_v40 }
 0x2bc   : > { %v4778_v41 = vpop.f32.mrf.mxu0  ;;  %v4951_v5 = vpop.f32.mrf.mxu1 }
 0x2bd   : > { %3598 = vst [vmem:[%s6779_s20 + $0x110] sm:$0xff] %v3543_v57  ;;  %v3482_v20 = vmax.f32 %v7283_v1, %v3427_v58  ;;  %v7299_v58 = vld [vmem:[#allocation33_spill] sm:$0xff]  ;;  %v7300_v41 = vld [vmem:[#allocation34_spill] sm:$0xff] }
 0x2be   : > { %v2682_v6 = vpop.f32.mrf.mxu0  ;;  %v3243_v7 = vpop.f32.mrf.mxu1  ;;  %v7301_v5 = vmax.f32 %v7299_v58, %v7300_v41 }
 0x2bf   : > { %v3544_v3 = vadd.f32 %v6771_v2, %v3482_v20  ;;  %v3428_v10 = vmax.f32 %v2682_v6, %v3243_v7 }
 0x2c0   : > { %v4781_v8 = vpop.f32.mrf.mxu0  ;;  %v4954_v59 = vpop.f32.mrf.mxu1 }
 0x2c1   : > { %3599 = vst [vmem:[%s6779_s20 + $0x118] sm:$0xff] %v3544_v3  ;;  %v3483_v18 = vmax.f32 %v7286_v35, %v3428_v10  ;;  %v7302_v10 = vld [vmem:[#allocation35_spill] sm:$0xff]  ;;  %v7303_v8 = vld [vmem:[#allocation36_spill] sm:$0xff] }
 0x2c2   : > { %v2687_v19 = vpop.f32.mrf.mxu0  ;;  %v3248_v27 = vpop.f32.mrf.mxu1  ;;  %v7304_v59 = vmax.f32 %v7302_v10, %v7303_v8 }
 0x2c3   : > { %v3545_v28 = vadd.f32 %v6771_v2, %v3483_v18  ;;  %v3429_v36 = vmax.f32 %v2687_v19, %v3248_v27 }
 0x2c4   : > { %v4784_v53 = vpop.f32.mrf.mxu0  ;;  %v4957_v30 = vpop.f32.mrf.mxu1 }
 0x2c5   : > { %3600 = vst [vmem:[%s6779_s20 + $0x120] sm:$0xff] %v3545_v28  ;;  %v3484_v48 = vmax.f32 %v7289_v21, %v3429_v36  ;;  %v7305_v36 = vld [vmem:[#allocation37_spill] sm:$0xff]  ;;  %v7306_v53 = vld [vmem:[#allocation38_spill] sm:$0xff] }
 0x2c6   : > { %v2692_v33 = vpop.f32.mrf.mxu0  ;;  %v3253_v9 = vpop.f32.mrf.mxu1  ;;  %v7307_v30 = vmax.f32 %v7305_v36, %v7306_v53 }
 0x2c7   : > { %v3546_v14 = vadd.f32 %v6771_v2, %v3484_v48  ;;  %v3430_v34 = vmax.f32 %v2692_v33, %v3253_v9 }
 0x2c8   : > { %v4787_v51 = vpop.f32.mrf.mxu0  ;;  %v4960_v52 = vpop.f32.mrf.mxu1 }
 0x2c9   : > { %3601 = vst [vmem:[%s6779_s20 + $0x128] sm:$0xff] %v3546_v14  ;;  %v3485_v56 = vmax.f32 %v7292_v13, %v3430_v34  ;;  %v7308_v34 = vld [vmem:[#allocation39_spill] sm:$0xff]  ;;  %v7309_v51 = vld [vmem:[#allocation40_spill] sm:$0xff] }
 0x2ca   : > { %v2697_v46 = vpop.f32.mrf.mxu0  ;;  %v3258_v31 = vpop.f32.mrf.mxu1  ;;  %v7310_v52 = vmax.f32 %v7308_v34, %v7309_v51 }
 0x2cb   : > { %v3547_v32 = vadd.f32 %v6771_v2, %v3485_v56  ;;  %v3431_v11 = vmax.f32 %v2697_v46, %v3258_v31 }
 0x2cc   : > { %v4790_v15 = vpop.f32.mrf.mxu0  ;;  %v4963_v16 = vpop.f32.mrf.mxu1 }
 0x2cd   : > { %3602 = vst [vmem:[%s6779_s20 + $0x130] sm:$0xff] %v3547_v32  ;;  %v3486_v42 = vmax.f32 %v7295_v12, %v3431_v11  ;;  %v7311_v11 = vld [vmem:[#allocation41_spill] sm:$0xff]  ;;  %v7312_v15 = vld [vmem:[#allocation42_spill] sm:$0xff] }
 0x2ce   : > { %v2702_v22 = vpop.f32.mrf.mxu0  ;;  %v3263_v43 = vpop.f32.mrf.mxu1  ;;  %v7313_v16 = vmax.f32 %v7311_v11, %v7312_v15 }
 0x2cf   : > { %v3548_v63 = vadd.f32 %v6771_v2, %v3486_v42  ;;  %v3432_v44 = vmax.f32 %v2702_v22, %v3263_v43 }
 0x2d0   : > { %v4793_v50 = vpop.f32.mrf.mxu0  ;;  %v4966_v60 = vpop.f32.mrf.mxu1 }
 0x2d1   : > { %3603 = vst [vmem:[%s6779_s20 + $0x138] sm:$0xff] %v3548_v63  ;;  %v3487_v26 = vmax.f32 %v7298_v25, %v3432_v44  ;;  %v7314_v44 = vld [vmem:[#allocation43_spill] sm:$0xff]  ;;  %v7315_v50 = vld [vmem:[#allocation44_spill] sm:$0xff] }
 0x2d2   : > { %v2707_v61 = vpop.f32.mrf.mxu0  ;;  %v3268_v62 = vpop.f32.mrf.mxu1  ;;  %v7316_v60 = vmax.f32 %v7314_v44, %v7315_v50 }
 0x2d3   : > { %v3549_v23 = vadd.f32 %v6771_v2, %v3487_v26  ;;  %v3433_v24 = vmax.f32 %v2707_v61, %v3268_v62 }
 0x2d4   : > { %v4796_v40 = vpop.f32.mrf.mxu0  ;;  %v4969_v57 = vpop.f32.mrf.mxu1 }
 0x2d5   : > { %3604 = vst [vmem:[%s6779_s20 + $0x140] sm:$0xff] %v3549_v23  ;;  %v3488_v38 = vmax.f32 %v7301_v5, %v3433_v24  ;;  %v7317_v24 = vld [vmem:[#allocation45_spill] sm:$0xff]  ;;  %v7318_v40 = vld [vmem:[#allocation46_spill] sm:$0xff] }
 0x2d6   : > { %v2712_v37 = vpop.f32.mrf.mxu0  ;;  %v3273_v1 = vpop.f32.mrf.mxu1  ;;  %v7319_v57 = vmax.f32 %v7317_v24, %v7318_v40 }
 0x2d7   : > { %v3550_v20 = vadd.f32 %v6771_v2, %v3488_v38  ;;  %v3434_v6 = vmax.f32 %v2712_v37, %v3273_v1 }
 0x2d8   : > { %v4799_v7 = vpop.f32.mrf.mxu0  ;;  %v4972_v3 = vpop.f32.mrf.mxu1 }
 0x2d9   : > { %3605 = vst [vmem:[%s6779_s20 + $0x148] sm:$0xff] %v3550_v20  ;;  %v3489_v39 = vmax.f32 %v7304_v59, %v3434_v6  ;;  %v7320_v6 = vld [vmem:[#allocation47_spill] sm:$0xff]  ;;  %v7321_v7 = vld [vmem:[#allocation48_spill] sm:$0xff] }
 0x2da   : > { %v2717_v0 = vpop.f32.mrf.mxu0  ;;  %v3278_v35 = vpop.f32.mrf.mxu1  ;;  %v7322_v3 = vmax.f32 %v7320_v6, %v7321_v7 }
 0x2db   : > { %v3551_v18 = vadd.f32 %v6771_v2, %v3489_v39  ;;  %v3435_v19 = vmax.f32 %v2717_v0, %v3278_v35 }
 0x2dc   : > { %v4802_v27 = vpop.f32.mrf.mxu0  ;;  %v4975_v28 = vpop.f32.mrf.mxu1 }
 0x2dd   : > { %3606 = vst [vmem:[%s6779_s20 + $0x150] sm:$0xff] %v3551_v18  ;;  %v3490_v47 = vmax.f32 %v7307_v30, %v3435_v19  ;;  %v7323_v19 = vld [vmem:[#allocation49_spill] sm:$0xff]  ;;  %v7324_v27 = vld [vmem:[#allocation50_spill] sm:$0xff] }
 0x2de   : > { %v2722_v17 = vpop.f32.mrf.mxu0  ;;  %v3283_v21 = vpop.f32.mrf.mxu1  ;;  %v7325_v28 = vmax.f32 %v7323_v19, %v7324_v27 }
 0x2df   : > { %v3552_v48 = vadd.f32 %v6771_v2, %v3490_v47  ;;  %v3436_v33 = vmax.f32 %v2722_v17, %v3283_v21 }
 0x2e0   : > { %v4805_v9 = vpop.f32.mrf.mxu0  ;;  %v4978_v14 = vpop.f32.mrf.mxu1 }
 0x2e1   : > { %3607 = vst [vmem:[%s6779_s20 + $0x158] sm:$0xff] %v3552_v48  ;;  %v3491_v29 = vmax.f32 %v7310_v52, %v3436_v33  ;;  %v7326_v33 = vld [vmem:[#allocation51_spill] sm:$0xff]  ;;  %v7327_v9 = vld [vmem:[#allocation52_spill] sm:$0xff] }
 0x2e2   : > { %v2727_v49 = vpop.f32.mrf.mxu0  ;;  %v3288_v13 = vpop.f32.mrf.mxu1  ;;  %v7328_v14 = vmax.f32 %v7326_v33, %v7327_v9 }
 0x2e3   : > { %v3553_v56 = vadd.f32 %v6771_v2, %v3491_v29  ;;  %v3437_v46 = vmax.f32 %v2727_v49, %v3288_v13 }
 0x2e4   : > { %v4808_v31 = vpop.f32.mrf.mxu0  ;;  %v4981_v32 = vpop.f32.mrf.mxu1 }
 0x2e5   : > { %3608 = vst [vmem:[%s6779_s20 + $0x160] sm:$0xff] %v3553_v56  ;;  %v3492_v54 = vmax.f32 %v7313_v16, %v3437_v46  ;;  %v7329_v46 = vld [vmem:[#allocation53_spill] sm:$0xff]  ;;  %v7330_v31 = vld [vmem:[#allocation54_spill] sm:$0xff] }
 0x2e6   : > { %v2732_v55 = vpop.f32.mrf.mxu0  ;;  %v3293_v12 = vpop.f32.mrf.mxu1  ;;  %v7331_v32 = vmax.f32 %v7329_v46, %v7330_v31 }
 0x2e7   : > { %v3554_v42 = vadd.f32 %v6771_v2, %v3492_v54  ;;  %v3438_v22 = vmax.f32 %v2732_v55, %v3293_v12 }
 0x2e8   : > { %v4811_v43 = vpop.f32.mrf.mxu0  ;;  %v4984_v63 = vpop.f32.mrf.mxu1 }
 0x2e9   : > { %3609 = vst [vmem:[%s6779_s20 + $0x168] sm:$0xff] %v3554_v42  ;;  %v3493_v45 = vmax.f32 %v7316_v60, %v3438_v22  ;;  %v7332_v22 = vld [vmem:[#allocation55_spill] sm:$0xff]  ;;  %v7333_v43 = vld [vmem:[#allocation56_spill] sm:$0xff] }
 0x2ea   : > { %v2737_v4 = vpop.f32.mrf.mxu0  ;;  %v3298_v25 = vpop.f32.mrf.mxu1  ;;  %v7334_v63 = vmax.f32 %v7332_v22, %v7333_v43 }
 0x2eb   : > { %v3555_v26 = vadd.f32 %v6771_v2, %v3493_v45  ;;  %v3439_v61 = vmax.f32 %v2737_v4, %v3298_v25 }
 0x2ec   : > { %v4814_v62 = vpop.f32.mrf.mxu0  ;;  %v4987_v23 = vpop.f32.mrf.mxu1 }
 0x2ed   : > { %3610 = vst [vmem:[%s6779_s20 + $0x170] sm:$0xff] %v3555_v26  ;;  %v3494_v58 = vmax.f32 %v7319_v57, %v3439_v61  ;;  %v7335_v61 = vld [vmem:[#allocation57_spill] sm:$0xff]  ;;  %v7336_v62 = vld [vmem:[#allocation58_spill] sm:$0xff] }
 0x2ee   : > { %v2742_v41 = vpop.f32.mrf.mxu0  ;;  %v3303_v5 = vpop.f32.mrf.mxu1  ;;  %v7337_v23 = vmax.f32 %v7335_v61, %v7336_v62 }
 0x2ef   : > { %v3556_v38 = vadd.f32 %v6771_v2, %v3494_v58  ;;  %v3440_v37 = vmax.f32 %v2742_v41, %v3303_v5 }
 0x2f0   : > { %v4817_v1 = vpop.f32.mrf.mxu0  ;;  %v4990_v20 = vpop.f32.mrf.mxu1 }
 0x2f1   : > { %3611 = vst [vmem:[%s6779_s20 + $0x178] sm:$0xff] %v3556_v38  ;;  %v3495_v10 = vmax.f32 %v7322_v3, %v3440_v37  ;;  %v7338_v37 = vld [vmem:[#allocation59_spill] sm:$0xff]  ;;  %v7339_v1 = vld [vmem:[#allocation60_spill] sm:$0xff] }
 0x2f2   : > { %v2747_v8 = vpop.f32.mrf.mxu0  ;;  %v3308_v59 = vpop.f32.mrf.mxu1  ;;  %v7340_v20 = vmax.f32 %v7338_v37, %v7339_v1 }
 0x2f3   : > { %v3557_v39 = vadd.f32 %v6771_v2, %v3495_v10  ;;  %v3441_v0 = vmax.f32 %v2747_v8, %v3308_v59 }
 0x2f4   : > { %v4820_v35 = vpop.f32.mrf.mxu0  ;;  %v4993_v18 = vpop.f32.mrf.mxu1 }
 0x2f5   : > { %3612 = vst [vmem:[%s6779_s20 + $0x180] sm:$0xff] %v3557_v39  ;;  %v3496_v36 = vmax.f32 %v7325_v28, %v3441_v0 }
 0x2f6   : > { %v2752_v53 = vpop.f32.mrf.mxu0  ;;  %v3313_v30 = vpop.f32.mrf.mxu1 }
 0x2f7   : > { %v3558_v47 = vadd.f32 %v6771_v2, %v3496_v36  ;;  %v3442_v17 = vmax.f32 %v2752_v53, %v3313_v30 }
 0x2f8   : > { %v4823_v21 = vpop.f32.mrf.mxu0  ;;  %v4996_v48 = vpop.f32.mrf.mxu1 }
 0x2f9   : > { %3613 = vst [vmem:[%s6779_s20 + $0x188] sm:$0xff] %v3558_v47  ;;  %v3497_v34 = vmax.f32 %v7328_v14, %v3442_v17 }
 0x2fa   : > { %v2757_v51 = vpop.f32.mrf.mxu0  ;;  %v3318_v52 = vpop.f32.mrf.mxu1 }
 0x2fb   : > { %v3559_v29 = vadd.f32 %v6771_v2, %v3497_v34  ;;  %v3443_v49 = vmax.f32 %v2757_v51, %v3318_v52 }
 0x2fc   : > { %v4826_v13 = vpop.f32.mrf.mxu0  ;;  %v4999_v56 = vpop.f32.mrf.mxu1 }
 0x2fd   : > { %3614 = vst [vmem:[%s6779_s20 + $0x190] sm:$0xff] %v3559_v29  ;;  %v3498_v11 = vmax.f32 %v7331_v32, %v3443_v49 }
 0x2fe   : > { %v2762_v15 = vpop.f32.mrf.mxu0  ;;  %v3323_v16 = vpop.f32.mrf.mxu1 }
 0x2ff   : > { %v3560_v54 = vadd.f32 %v6771_v2, %v3498_v11  ;;  %v3444_v55 = vmax.f32 %v2762_v15, %v3323_v16 }
 0x300   : > { %v4829_v12 = vpop.f32.mrf.mxu0  ;;  %v5002_v42 = vpop.f32.mrf.mxu1 }
 0x301   : > { %3615 = vst [vmem:[%s6779_s20 + $0x198] sm:$0xff] %v3560_v54  ;;  %v3499_v44 = vmax.f32 %v7334_v63, %v3444_v55 }
 0x302   : > { %v2767_v50 = vpop.f32.mrf.mxu0  ;;  %v3328_v60 = vpop.f32.mrf.mxu1 }
 0x303   : > { %v3561_v45 = vadd.f32 %v6771_v2, %v3499_v44  ;;  %v3445_v4 = vmax.f32 %v2767_v50, %v3328_v60 }
 0x304   : > { %v4832_v25 = vpop.f32.mrf.mxu0  ;;  %v5005_v26 = vpop.f32.mrf.mxu1 }
 0x305   : > { %3616 = vst [vmem:[%s6779_s20 + $0x1a0] sm:$0xff] %v3561_v45  ;;  %v3500_v24 = vmax.f32 %v7337_v23, %v3445_v4 }
 0x306   : > { %v2772_v40 = vpop.f32.mrf.mxu0  ;;  %v3333_v57 = vpop.f32.mrf.mxu1 }
 0x307   : > { %v3562_v58 = vadd.f32 %v6771_v2, %v3500_v24  ;;  %v3446_v41 = vmax.f32 %v2772_v40, %v3333_v57 }
 0x308   : > { %v4835_v5 = vpop.f32.mrf.mxu0  ;;  %v5008_v38 = vpop.f32.mrf.mxu1 }
 0x309   : > { %3617 = vst [vmem:[%s6779_s20 + $0x1a8] sm:$0xff] %v3562_v58  ;;  %v3501_v6 = vmax.f32 %v7340_v20, %v3446_v41 }
 0x30b   : > { %v3563_v7 = vadd.f32 %v6771_v2, %v3501_v6 }
 0x30d   : > { %3618 = vst [vmem:[%s6779_s20 + $0x1b0] sm:$0xff] %v3563_v7 }
 0x30e PF: > { %p10_p9 = scmp.ge.s32.totalorder %s5100_s16, 4   ;;  %s7341_s12 = smov %s5055_s13 }
 0x30f   : > { %s7342_s13 = smov %s5109_s19  ;;  %s7343_s14 = smov %s5100_s16 }
 0x310   :  { %12 = sbr.rel (!%p10_p9) target bundleno = 2 (0x2), region = 108 }

// kernel: forward.4
= control target key start
LH: loop header
LB: loop body
LE: loop exit
PB: predicated region body
PF: predicated region fallthrough
CT: control target
= control target key end

     0   :  { %s2300_s12 = smov 0   ;;  %s2302_s13 = smov 0   ;;  %s3763_s0 = inlined_call_operand.vmem [shape: f32[4,144,500], index: 0, kind: input, shape index: {}]   ;;  %s3764_s1 = inlined_call_operand.vmem [shape: f32[500,50], index: 1, kind: input, shape index: {}]   ;;  %s3765_s2 = inlined_call_operand.vmem [shape: f32[1,50], index: 2, kind: input, shape index: {}]   ;;  %s3766_s3 = inlined_call_operand.vmem [shape: f32[144,50], index: 3, kind: output, shape index: {}]  }
   0x1   :  { %s2304_s14 = smov 0  }
   0x2 LB: > { %s1798_s15 = sadd.s32 4294967295, %s2277_s14   ;;  %s2317_s16 = sadd.s32 1, %s2277_s14   ;;  %s2277_s14 = sphi %s2304_s14, %s3793_s14   ;;  %s2273_s13 = sphi %s2302_s13, %s3792_s13   ;;  %s2269_s12 = sphi %s2300_s12, %s3791_s12  }
   0x3   : > { %s17_s17 = ssub.s32 %s2277_s14, %s2317_s16  ;;  %s20_s18 = sadd.s32 1, %s2273_s13 }
   0x4   : > { %p18_p0 = scmp.eq.s32.totalorder %s17_s17, 0  ;;  %p27_p1 = scmp.ne.s32.totalorder %s2273_s13, %s2269_s12 }
   0x5   : > { %p28_p2 = scmp.eq.s32.totalorder %s2277_s14, 0  ;;  %p1801_p4 = scmp.ge.s32.totalorder %s2277_s14, 2 }
   0x6   : > { %s2326_s19 = scalar_select %p18_p0, %s2273_s13, %s20_s18  }
   0x7   : > { %p29_p3 = por %p28_p2, %p27_p1  ;;  %127 = sbr.rel (%p1801_p4) target bundleno = 89 (0x59), region = 24 }
   0xc   : > { %130 = sbr.rel (!%p29_p3) target bundleno = 89 (0x59), region = 28  ;;  %s132_s20 = sand.u32 (%p29_p3), 1, %s2273_s13  }
   0xd   : > { %s1959_s21 = smul.u32 (%p29_p3), 288, %s2277_s14 }
   0xe   : > { %s2196_s22 = smul.u32 (%p29_p3), 1152, %s132_s20 }
   0xf   : > { %s2334_s25 = scalar_lea.vmem (%p29_p3), %s3763_s0, %s1959_s21 }
  0x10   : > { %v151_v0 = vld [vmem:[%s2334_s25] sm:$0xff] (%p29_p3)  ;;  %v153_v1 = vld [vmem:[%s2334_s25 + $0x8] sm:$0xff] (%p29_p3)  ;;  %v155_v2 = vld [vmem:[%s2334_s25 + $0x10] sm:$0xff] (%p29_p3)  ;;  %s2339_s26 = scalar_lea.vmem (%p29_p3), [#allocation2], %s2196_s22 }
  0x11   : > { %152 = vst [vmem:[%s2339_s26] sm:$0xff] %v151_v0  ;;  %154 = vst [vmem:[%s2339_s26 + $0x8] sm:$0xff] %v153_v1  ;;  %v157_v3 = vld [vmem:[%s2334_s25 + $0x18] sm:$0xff]  ;;  %v159_v4 = vld [vmem:[%s2334_s25 + $0x20] sm:$0xff] }
  0x12   : > { %156 = vst [vmem:[%s2339_s26 + $0x10] sm:$0xff] %v155_v2  ;;  %v161_v5 = vld [vmem:[%s2334_s25 + $0x28] sm:$0xff]  ;;  %158 = vst [vmem:[%s2339_s26 + $0x18] sm:$0xff] %v157_v3  ;;  %v163_v6 = vld [vmem:[%s2334_s25 + $0x30] sm:$0xff] }
  0x13   : > { %160 = vst [vmem:[%s2339_s26 + $0x20] sm:$0xff] %v159_v4  ;;  %162 = vst [vmem:[%s2339_s26 + $0x28] sm:$0xff] %v161_v5  ;;  %v165_v7 = vld [vmem:[%s2334_s25 + $0x38] sm:$0xff]  ;;  %v167_v8 = vld [vmem:[%s2334_s25 + $0x40] sm:$0xff] }
  0x14   : > { %164 = vst [vmem:[%s2339_s26 + $0x30] sm:$0xff] %v163_v6  ;;  %166 = vst [vmem:[%s2339_s26 + $0x38] sm:$0xff] %v165_v7  ;;  %v169_v9 = vld [vmem:[%s2334_s25 + $0x48] sm:$0xff]  ;;  %v171_v10 = vld [vmem:[%s2334_s25 + $0x50] sm:$0xff] }
  0x15   : > { %168 = vst [vmem:[%s2339_s26 + $0x40] sm:$0xff] %v167_v8  ;;  %v173_v11 = vld [vmem:[%s2334_s25 + $0x58] sm:$0xff]  ;;  %170 = vst [vmem:[%s2339_s26 + $0x48] sm:$0xff] %v169_v9  ;;  %v175_v12 = vld [vmem:[%s2334_s25 + $0x60] sm:$0xff] }
  0x16   : > { %172 = vst [vmem:[%s2339_s26 + $0x50] sm:$0xff] %v171_v10  ;;  %174 = vst [vmem:[%s2339_s26 + $0x58] sm:$0xff] %v173_v11  ;;  %v177_v13 = vld [vmem:[%s2334_s25 + $0x68] sm:$0xff]  ;;  %v179_v14 = vld [vmem:[%s2334_s25 + $0x70] sm:$0xff] }
  0x17   : > { %176 = vst [vmem:[%s2339_s26 + $0x60] sm:$0xff] %v175_v12  ;;  %178 = vst [vmem:[%s2339_s26 + $0x68] sm:$0xff] %v177_v13  ;;  %v181_v15 = vld [vmem:[%s2334_s25 + $0x78] sm:$0xff]  ;;  %v183_v16 = vld [vmem:[%s2334_s25 + $0x80] sm:$0xff] }
  0x18   : > { %180 = vst [vmem:[%s2339_s26 + $0x70] sm:$0xff] %v179_v14  ;;  %v185_v17 = vld [vmem:[%s2334_s25 + $0x88] sm:$0xff]  ;;  %182 = vst [vmem:[%s2339_s26 + $0x78] sm:$0xff] %v181_v15  ;;  %v187_v18 = vld [vmem:[%s2334_s25 + $0x90] sm:$0xff] }
  0x19   : > { %184 = vst [vmem:[%s2339_s26 + $0x80] sm:$0xff] %v183_v16  ;;  %186 = vst [vmem:[%s2339_s26 + $0x88] sm:$0xff] %v185_v17  ;;  %v189_v19 = vld [vmem:[%s2334_s25 + $0x98] sm:$0xff]  ;;  %v191_v20 = vld [vmem:[%s2334_s25 + $0xa0] sm:$0xff] }
  0x1a   : > { %188 = vst [vmem:[%s2339_s26 + $0x90] sm:$0xff] %v187_v18  ;;  %190 = vst [vmem:[%s2339_s26 + $0x98] sm:$0xff] %v189_v19  ;;  %v193_v21 = vld [vmem:[%s2334_s25 + $0xa8] sm:$0xff]  ;;  %v195_v22 = vld [vmem:[%s2334_s25 + $0xb0] sm:$0xff] }
  0x1b   : > { %192 = vst [vmem:[%s2339_s26 + $0xa0] sm:$0xff] %v191_v20  ;;  %v197_v23 = vld [vmem:[%s2334_s25 + $0xb8] sm:$0xff]  ;;  %194 = vst [vmem:[%s2339_s26 + $0xa8] sm:$0xff] %v193_v21  ;;  %v199_v24 = vld [vmem:[%s2334_s25 + $0xc0] sm:$0xff] }
  0x1c   : > { %196 = vst [vmem:[%s2339_s26 + $0xb0] sm:$0xff] %v195_v22  ;;  %198 = vst [vmem:[%s2339_s26 + $0xb8] sm:$0xff] %v197_v23  ;;  %v201_v25 = vld [vmem:[%s2334_s25 + $0xc8] sm:$0xff]  ;;  %v203_v26 = vld [vmem:[%s2334_s25 + $0xd0] sm:$0xff] }
  0x1d   : > { %200 = vst [vmem:[%s2339_s26 + $0xc0] sm:$0xff] %v199_v24  ;;  %202 = vst [vmem:[%s2339_s26 + $0xc8] sm:$0xff] %v201_v25  ;;  %v205_v27 = vld [vmem:[%s2334_s25 + $0xd8] sm:$0xff]  ;;  %v207_v28 = vld [vmem:[%s2334_s25 + $0xe0] sm:$0xff] }
  0x1e   : > { %204 = vst [vmem:[%s2339_s26 + $0xd0] sm:$0xff] %v203_v26  ;;  %v209_v29 = vld [vmem:[%s2334_s25 + $0xe8] sm:$0xff]  ;;  %206 = vst [vmem:[%s2339_s26 + $0xd8] sm:$0xff] %v205_v27  ;;  %v211_v30 = vld [vmem:[%s2334_s25 + $0xf0] sm:$0xff] }
  0x1f   : > { %208 = vst [vmem:[%s2339_s26 + $0xe0] sm:$0xff] %v207_v28  ;;  %210 = vst [vmem:[%s2339_s26 + $0xe8] sm:$0xff] %v209_v29  ;;  %v213_v31 = vld [vmem:[%s2334_s25 + $0xf8] sm:$0xff]  ;;  %v215_v32 = vld [vmem:[%s2334_s25 + $0x100] sm:$0xff] }
  0x20   : > { %212 = vst [vmem:[%s2339_s26 + $0xf0] sm:$0xff] %v211_v30  ;;  %214 = vst [vmem:[%s2339_s26 + $0xf8] sm:$0xff] %v213_v31  ;;  %v217_v33 = vld [vmem:[%s2334_s25 + $0x108] sm:$0xff]  ;;  %v219_v34 = vld [vmem:[%s2334_s25 + $0x110] sm:$0xff] }
  0x21   : > { %216 = vst [vmem:[%s2339_s26 + $0x100] sm:$0xff] %v215_v32  ;;  %v221_v35 = vld [vmem:[%s2334_s25 + $0x118] sm:$0xff]  ;;  %218 = vst [vmem:[%s2339_s26 + $0x108] sm:$0xff] %v217_v33  ;;  %v223_v36 = vld [vmem:[%s2334_s25 + $0x240] sm:$0xff] }
  0x22   : > { %220 = vst [vmem:[%s2339_s26 + $0x110] sm:$0xff] %v219_v34  ;;  %222 = vst [vmem:[%s2339_s26 + $0x118] sm:$0xff] %v221_v35  ;;  %v225_v37 = vld [vmem:[%s2334_s25 + $0x248] sm:$0xff]  ;;  %v227_v38 = vld [vmem:[%s2334_s25 + $0x250] sm:$0xff] }
  0x23   : > { %224 = vst [vmem:[%s2339_s26 + $0x120] sm:$0xff] %v223_v36  ;;  %226 = vst [vmem:[%s2339_s26 + $0x128] sm:$0xff] %v225_v37  ;;  %v229_v39 = vld [vmem:[%s2334_s25 + $0x258] sm:$0xff]  ;;  %v231_v40 = vld [vmem:[%s2334_s25 + $0x260] sm:$0xff] }
  0x24   : > { %228 = vst [vmem:[%s2339_s26 + $0x130] sm:$0xff] %v227_v38  ;;  %v233_v41 = vld [vmem:[%s2334_s25 + $0x268] sm:$0xff]  ;;  %230 = vst [vmem:[%s2339_s26 + $0x138] sm:$0xff] %v229_v39  ;;  %v235_v42 = vld [vmem:[%s2334_s25 + $0x270] sm:$0xff] }
  0x25   : > { %232 = vst [vmem:[%s2339_s26 + $0x140] sm:$0xff] %v231_v40  ;;  %234 = vst [vmem:[%s2339_s26 + $0x148] sm:$0xff] %v233_v41  ;;  %v237_v43 = vld [vmem:[%s2334_s25 + $0x278] sm:$0xff]  ;;  %v239_v44 = vld [vmem:[%s2334_s25 + $0x280] sm:$0xff] }
  0x26   : > { %236 = vst [vmem:[%s2339_s26 + $0x150] sm:$0xff] %v235_v42  ;;  %238 = vst [vmem:[%s2339_s26 + $0x158] sm:$0xff] %v237_v43  ;;  %v241_v45 = vld [vmem:[%s2334_s25 + $0x288] sm:$0xff]  ;;  %v243_v46 = vld [vmem:[%s2334_s25 + $0x290] sm:$0xff] }
  0x27   : > { %240 = vst [vmem:[%s2339_s26 + $0x160] sm:$0xff] %v239_v44  ;;  %v245_v47 = vld [vmem:[%s2334_s25 + $0x298] sm:$0xff]  ;;  %242 = vst [vmem:[%s2339_s26 + $0x168] sm:$0xff] %v241_v45  ;;  %v247_v48 = vld [vmem:[%s2334_s25 + $0x2a0] sm:$0xff] }
  0x28   : > { %244 = vst [vmem:[%s2339_s26 + $0x170] sm:$0xff] %v243_v46  ;;  %246 = vst [vmem:[%s2339_s26 + $0x178] sm:$0xff] %v245_v47  ;;  %v249_v49 = vld [vmem:[%s2334_s25 + $0x2a8] sm:$0xff]  ;;  %v251_v50 = vld [vmem:[%s2334_s25 + $0x2b0] sm:$0xff] }
  0x29   : > { %248 = vst [vmem:[%s2339_s26 + $0x180] sm:$0xff] %v247_v48  ;;  %250 = vst [vmem:[%s2339_s26 + $0x188] sm:$0xff] %v249_v49  ;;  %v253_v51 = vld [vmem:[%s2334_s25 + $0x2b8] sm:$0xff]  ;;  %v255_v52 = vld [vmem:[%s2334_s25 + $0x2c0] sm:$0xff] }
  0x2a   : > { %252 = vst [vmem:[%s2339_s26 + $0x190] sm:$0xff] %v251_v50  ;;  %v257_v53 = vld [vmem:[%s2334_s25 + $0x2c8] sm:$0xff]  ;;  %254 = vst [vmem:[%s2339_s26 + $0x198] sm:$0xff] %v253_v51  ;;  %v259_v54 = vld [vmem:[%s2334_s25 + $0x2d0] sm:$0xff] }
  0x2b   : > { %256 = vst [vmem:[%s2339_s26 + $0x1a0] sm:$0xff] %v255_v52  ;;  %258 = vst [vmem:[%s2339_s26 + $0x1a8] sm:$0xff] %v257_v53  ;;  %v261_v55 = vld [vmem:[%s2334_s25 + $0x2d8] sm:$0xff]  ;;  %v263_v56 = vld [vmem:[%s2334_s25 + $0x2e0] sm:$0xff] }
  0x2c   : > { %260 = vst [vmem:[%s2339_s26 + $0x1b0] sm:$0xff] %v259_v54  ;;  %262 = vst [vmem:[%s2339_s26 + $0x1b8] sm:$0xff] %v261_v55  ;;  %v265_v57 = vld [vmem:[%s2334_s25 + $0x2e8] sm:$0xff]  ;;  %v267_v58 = vld [vmem:[%s2334_s25 + $0x2f0] sm:$0xff] }
  0x2d   : > { %264 = vst [vmem:[%s2339_s26 + $0x1c0] sm:$0xff] %v263_v56  ;;  %v269_v59 = vld [vmem:[%s2334_s25 + $0x2f8] sm:$0xff]  ;;  %266 = vst [vmem:[%s2339_s26 + $0x1c8] sm:$0xff] %v265_v57  ;;  %v271_v60 = vld [vmem:[%s2334_s25 + $0x300] sm:$0xff] }
  0x2e   : > { %268 = vst [vmem:[%s2339_s26 + $0x1d0] sm:$0xff] %v267_v58  ;;  %270 = vst [vmem:[%s2339_s26 + $0x1d8] sm:$0xff] %v269_v59  ;;  %v273_v61 = vld [vmem:[%s2334_s25 + $0x308] sm:$0xff]  ;;  %v275_v62 = vld [vmem:[%s2334_s25 + $0x310] sm:$0xff] }
  0x2f   : > { %272 = vst [vmem:[%s2339_s26 + $0x1e0] sm:$0xff] %v271_v60  ;;  %274 = vst [vmem:[%s2339_s26 + $0x1e8] sm:$0xff] %v273_v61  ;;  %v277_v63 = vld [vmem:[%s2334_s25 + $0x318] sm:$0xff]  ;;  %v279_v0 = vld [vmem:[%s2334_s25 + $0x320] sm:$0xff] }
  0x30   : > { %276 = vst [vmem:[%s2339_s26 + $0x1f0] sm:$0xff] %v275_v62  ;;  %v281_v1 = vld [vmem:[%s2334_s25 + $0x328] sm:$0xff]  ;;  %278 = vst [vmem:[%s2339_s26 + $0x1f8] sm:$0xff] %v277_v63  ;;  %v283_v2 = vld [vmem:[%s2334_s25 + $0x330] sm:$0xff] }
  0x31   : > { %280 = vst [vmem:[%s2339_s26 + $0x200] sm:$0xff] %v279_v0  ;;  %282 = vst [vmem:[%s2339_s26 + $0x208] sm:$0xff] %v281_v1  ;;  %v285_v3 = vld [vmem:[%s2334_s25 + $0x338] sm:$0xff]  ;;  %v287_v4 = vld [vmem:[%s2334_s25 + $0x340] sm:$0xff] }
  0x32   : > { %284 = vst [vmem:[%s2339_s26 + $0x210] sm:$0xff] %v283_v2  ;;  %286 = vst [vmem:[%s2339_s26 + $0x218] sm:$0xff] %v285_v3  ;;  %v289_v5 = vld [vmem:[%s2334_s25 + $0x348] sm:$0xff]  ;;  %v291_v6 = vld [vmem:[%s2334_s25 + $0x350] sm:$0xff] }
  0x33   : > { %288 = vst [vmem:[%s2339_s26 + $0x220] sm:$0xff] %v287_v4  ;;  %v293_v7 = vld [vmem:[%s2334_s25 + $0x358] sm:$0xff]  ;;  %290 = vst [vmem:[%s2339_s26 + $0x228] sm:$0xff] %v289_v5  ;;  %v295_v8 = vld [vmem:[%s2334_s25 + $0x480] sm:$0xff] }
  0x34   : > { %292 = vst [vmem:[%s2339_s26 + $0x230] sm:$0xff] %v291_v6  ;;  %294 = vst [vmem:[%s2339_s26 + $0x238] sm:$0xff] %v293_v7  ;;  %v297_v9 = vld [vmem:[%s2334_s25 + $0x488] sm:$0xff]  ;;  %v299_v10 = vld [vmem:[%s2334_s25 + $0x490] sm:$0xff] }
  0x35   : > { %296 = vst [vmem:[%s2339_s26 + $0x240] sm:$0xff] %v295_v8  ;;  %298 = vst [vmem:[%s2339_s26 + $0x248] sm:$0xff] %v297_v9  ;;  %v301_v11 = vld [vmem:[%s2334_s25 + $0x498] sm:$0xff]  ;;  %v303_v12 = vld [vmem:[%s2334_s25 + $0x4a0] sm:$0xff] }
  0x36   : > { %300 = vst [vmem:[%s2339_s26 + $0x250] sm:$0xff] %v299_v10  ;;  %v305_v13 = vld [vmem:[%s2334_s25 + $0x4a8] sm:$0xff]  ;;  %302 = vst [vmem:[%s2339_s26 + $0x258] sm:$0xff] %v301_v11  ;;  %v307_v14 = vld [vmem:[%s2334_s25 + $0x4b0] sm:$0xff] }
  0x37   : > { %304 = vst [vmem:[%s2339_s26 + $0x260] sm:$0xff] %v303_v12  ;;  %306 = vst [vmem:[%s2339_s26 + $0x268] sm:$0xff] %v305_v13  ;;  %v309_v15 = vld [vmem:[%s2334_s25 + $0x4b8] sm:$0xff]  ;;  %v311_v16 = vld [vmem:[%s2334_s25 + $0x4c0] sm:$0xff] }
  0x38   : > { %308 = vst [vmem:[%s2339_s26 + $0x270] sm:$0xff] %v307_v14  ;;  %310 = vst [vmem:[%s2339_s26 + $0x278] sm:$0xff] %v309_v15  ;;  %v313_v17 = vld [vmem:[%s2334_s25 + $0x4c8] sm:$0xff]  ;;  %v315_v18 = vld [vmem:[%s2334_s25 + $0x4d0] sm:$0xff] }
  0x39   : > { %312 = vst [vmem:[%s2339_s26 + $0x280] sm:$0xff] %v311_v16  ;;  %v317_v19 = vld [vmem:[%s2334_s25 + $0x4d8] sm:$0xff]  ;;  %314 = vst [vmem:[%s2339_s26 + $0x288] sm:$0xff] %v313_v17  ;;  %v319_v20 = vld [vmem:[%s2334_s25 + $0x4e0] sm:$0xff] }
  0x3a   : > { %316 = vst [vmem:[%s2339_s26 + $0x290] sm:$0xff] %v315_v18  ;;  %318 = vst [vmem:[%s2339_s26 + $0x298] sm:$0xff] %v317_v19  ;;  %v321_v21 = vld [vmem:[%s2334_s25 + $0x4e8] sm:$0xff]  ;;  %v323_v22 = vld [vmem:[%s2334_s25 + $0x4f0] sm:$0xff] }
  0x3b   : > { %320 = vst [vmem:[%s2339_s26 + $0x2a0] sm:$0xff] %v319_v20  ;;  %322 = vst [vmem:[%s2339_s26 + $0x2a8] sm:$0xff] %v321_v21  ;;  %v325_v23 = vld [vmem:[%s2334_s25 + $0x4f8] sm:$0xff]  ;;  %v327_v24 = vld [vmem:[%s2334_s25 + $0x500] sm:$0xff] }
  0x3c   : > { %324 = vst [vmem:[%s2339_s26 + $0x2b0] sm:$0xff] %v323_v22  ;;  %v329_v25 = vld [vmem:[%s2334_s25 + $0x508] sm:$0xff]  ;;  %326 = vst [vmem:[%s2339_s26 + $0x2b8] sm:$0xff] %v325_v23  ;;  %v331_v26 = vld [vmem:[%s2334_s25 + $0x510] sm:$0xff] }
  0x3d   : > { %328 = vst [vmem:[%s2339_s26 + $0x2c0] sm:$0xff] %v327_v24  ;;  %330 = vst [vmem:[%s2339_s26 + $0x2c8] sm:$0xff] %v329_v25  ;;  %v333_v27 = vld [vmem:[%s2334_s25 + $0x518] sm:$0xff]  ;;  %v335_v28 = vld [vmem:[%s2334_s25 + $0x520] sm:$0xff] }
  0x3e   : > { %332 = vst [vmem:[%s2339_s26 + $0x2d0] sm:$0xff] %v331_v26  ;;  %334 = vst [vmem:[%s2339_s26 + $0x2d8] sm:$0xff] %v333_v27  ;;  %v337_v29 = vld [vmem:[%s2334_s25 + $0x528] sm:$0xff]  ;;  %v339_v30 = vld [vmem:[%s2334_s25 + $0x530] sm:$0xff] }
  0x3f   : > { %336 = vst [vmem:[%s2339_s26 + $0x2e0] sm:$0xff] %v335_v28  ;;  %v341_v31 = vld [vmem:[%s2334_s25 + $0x538] sm:$0xff]  ;;  %338 = vst [vmem:[%s2339_s26 + $0x2e8] sm:$0xff] %v337_v29  ;;  %v343_v32 = vld [vmem:[%s2334_s25 + $0x540] sm:$0xff] }
  0x40   : > { %340 = vst [vmem:[%s2339_s26 + $0x2f0] sm:$0xff] %v339_v30  ;;  %342 = vst [vmem:[%s2339_s26 + $0x2f8] sm:$0xff] %v341_v31  ;;  %v345_v33 = vld [vmem:[%s2334_s25 + $0x548] sm:$0xff]  ;;  %v347_v34 = vld [vmem:[%s2334_s25 + $0x550] sm:$0xff] }
  0x41   : > { %344 = vst [vmem:[%s2339_s26 + $0x300] sm:$0xff] %v343_v32  ;;  %346 = vst [vmem:[%s2339_s26 + $0x308] sm:$0xff] %v345_v33  ;;  %v349_v35 = vld [vmem:[%s2334_s25 + $0x558] sm:$0xff]  ;;  %v351_v36 = vld [vmem:[%s2334_s25 + $0x560] sm:$0xff] }
  0x42   : > { %348 = vst [vmem:[%s2339_s26 + $0x310] sm:$0xff] %v347_v34  ;;  %v353_v37 = vld [vmem:[%s2334_s25 + $0x568] sm:$0xff]  ;;  %350 = vst [vmem:[%s2339_s26 + $0x318] sm:$0xff] %v349_v35  ;;  %v355_v38 = vld [vmem:[%s2334_s25 + $0x570] sm:$0xff] }
  0x43   : > { %352 = vst [vmem:[%s2339_s26 + $0x320] sm:$0xff] %v351_v36  ;;  %354 = vst [vmem:[%s2339_s26 + $0x328] sm:$0xff] %v353_v37  ;;  %v357_v39 = vld [vmem:[%s2334_s25 + $0x578] sm:$0xff]  ;;  %v359_v40 = vld [vmem:[%s2334_s25 + $0x580] sm:$0xff] }
  0x44   : > { %356 = vst [vmem:[%s2339_s26 + $0x330] sm:$0xff] %v355_v38  ;;  %358 = vst [vmem:[%s2339_s26 + $0x338] sm:$0xff] %v357_v39  ;;  %v361_v41 = vld [vmem:[%s2334_s25 + $0x588] sm:$0xff]  ;;  %v363_v42 = vld [vmem:[%s2334_s25 + $0x590] sm:$0xff] }
  0x45   : > { %360 = vst [vmem:[%s2339_s26 + $0x340] sm:$0xff] %v359_v40  ;;  %v365_v43 = vld [vmem:[%s2334_s25 + $0x598] sm:$0xff]  ;;  %362 = vst [vmem:[%s2339_s26 + $0x348] sm:$0xff] %v361_v41  ;;  %v367_v44 = vld [vmem:[%s2334_s25 + $0x6c0] sm:$0xff] }
  0x46   : > { %364 = vst [vmem:[%s2339_s26 + $0x350] sm:$0xff] %v363_v42  ;;  %366 = vst [vmem:[%s2339_s26 + $0x358] sm:$0xff] %v365_v43  ;;  %v369_v45 = vld [vmem:[%s2334_s25 + $0x6c8] sm:$0xff]  ;;  %v371_v46 = vld [vmem:[%s2334_s25 + $0x6d0] sm:$0xff] }
  0x47   : > { %368 = vst [vmem:[%s2339_s26 + $0x360] sm:$0xff] %v367_v44  ;;  %370 = vst [vmem:[%s2339_s26 + $0x368] sm:$0xff] %v369_v45  ;;  %v373_v47 = vld [vmem:[%s2334_s25 + $0x6d8] sm:$0xff]  ;;  %v375_v48 = vld [vmem:[%s2334_s25 + $0x6e0] sm:$0xff] }
  0x48   : > { %372 = vst [vmem:[%s2339_s26 + $0x370] sm:$0xff] %v371_v46  ;;  %v377_v49 = vld [vmem:[%s2334_s25 + $0x6e8] sm:$0xff]  ;;  %374 = vst [vmem:[%s2339_s26 + $0x378] sm:$0xff] %v373_v47  ;;  %v379_v50 = vld [vmem:[%s2334_s25 + $0x6f0] sm:$0xff] }
  0x49   : > { %376 = vst [vmem:[%s2339_s26 + $0x380] sm:$0xff] %v375_v48  ;;  %378 = vst [vmem:[%s2339_s26 + $0x388] sm:$0xff] %v377_v49  ;;  %v381_v51 = vld [vmem:[%s2334_s25 + $0x6f8] sm:$0xff]  ;;  %v383_v52 = vld [vmem:[%s2334_s25 + $0x700] sm:$0xff] }
  0x4a   : > { %380 = vst [vmem:[%s2339_s26 + $0x390] sm:$0xff] %v379_v50  ;;  %382 = vst [vmem:[%s2339_s26 + $0x398] sm:$0xff] %v381_v51  ;;  %v385_v53 = vld [vmem:[%s2334_s25 + $0x708] sm:$0xff]  ;;  %v387_v54 = vld [vmem:[%s2334_s25 + $0x710] sm:$0xff] }
  0x4b   : > { %384 = vst [vmem:[%s2339_s26 + $0x3a0] sm:$0xff] %v383_v52  ;;  %v389_v55 = vld [vmem:[%s2334_s25 + $0x718] sm:$0xff]  ;;  %386 = vst [vmem:[%s2339_s26 + $0x3a8] sm:$0xff] %v385_v53  ;;  %v391_v56 = vld [vmem:[%s2334_s25 + $0x720] sm:$0xff] }
  0x4c   : > { %388 = vst [vmem:[%s2339_s26 + $0x3b0] sm:$0xff] %v387_v54  ;;  %390 = vst [vmem:[%s2339_s26 + $0x3b8] sm:$0xff] %v389_v55  ;;  %v393_v57 = vld [vmem:[%s2334_s25 + $0x728] sm:$0xff]  ;;  %v395_v58 = vld [vmem:[%s2334_s25 + $0x730] sm:$0xff] }
  0x4d   : > { %392 = vst [vmem:[%s2339_s26 + $0x3c0] sm:$0xff] %v391_v56  ;;  %394 = vst [vmem:[%s2339_s26 + $0x3c8] sm:$0xff] %v393_v57  ;;  %v397_v59 = vld [vmem:[%s2334_s25 + $0x738] sm:$0xff]  ;;  %v399_v60 = vld [vmem:[%s2334_s25 + $0x740] sm:$0xff] }
  0x4e   : > { %396 = vst [vmem:[%s2339_s26 + $0x3d0] sm:$0xff] %v395_v58  ;;  %v401_v61 = vld [vmem:[%s2334_s25 + $0x748] sm:$0xff]  ;;  %398 = vst [vmem:[%s2339_s26 + $0x3d8] sm:$0xff] %v397_v59  ;;  %v403_v62 = vld [vmem:[%s2334_s25 + $0x750] sm:$0xff] }
  0x4f   : > { %400 = vst [vmem:[%s2339_s26 + $0x3e0] sm:$0xff] %v399_v60  ;;  %402 = vst [vmem:[%s2339_s26 + $0x3e8] sm:$0xff] %v401_v61  ;;  %v405_v63 = vld [vmem:[%s2334_s25 + $0x758] sm:$0xff]  ;;  %v407_v0 = vld [vmem:[%s2334_s25 + $0x760] sm:$0xff] }
  0x50   : > { %404 = vst [vmem:[%s2339_s26 + $0x3f0] sm:$0xff] %v403_v62  ;;  %406 = vst [vmem:[%s2339_s26 + $0x3f8] sm:$0xff] %v405_v63  ;;  %v409_v1 = vld [vmem:[%s2334_s25 + $0x768] sm:$0xff]  ;;  %v411_v2 = vld [vmem:[%s2334_s25 + $0x770] sm:$0xff] }
  0x51   : > { %408 = vst [vmem:[%s2339_s26 + $0x400] sm:$0xff] %v407_v0  ;;  %v413_v3 = vld [vmem:[%s2334_s25 + $0x778] sm:$0xff]  ;;  %410 = vst [vmem:[%s2339_s26 + $0x408] sm:$0xff] %v409_v1  ;;  %v415_v4 = vld [vmem:[%s2334_s25 + $0x780] sm:$0xff] }
  0x52   : > { %412 = vst [vmem:[%s2339_s26 + $0x410] sm:$0xff] %v411_v2  ;;  %414 = vst [vmem:[%s2339_s26 + $0x418] sm:$0xff] %v413_v3  ;;  %v417_v5 = vld [vmem:[%s2334_s25 + $0x788] sm:$0xff]  ;;  %v419_v6 = vld [vmem:[%s2334_s25 + $0x790] sm:$0xff] }
  0x53   : > { %416 = vst [vmem:[%s2339_s26 + $0x420] sm:$0xff] %v415_v4  ;;  %418 = vst [vmem:[%s2339_s26 + $0x428] sm:$0xff] %v417_v5  ;;  %v421_v7 = vld [vmem:[%s2334_s25 + $0x798] sm:$0xff]  ;;  %v423_v8 = vld [vmem:[%s2334_s25 + $0x7a0] sm:$0xff] }
  0x54   : > { %420 = vst [vmem:[%s2339_s26 + $0x430] sm:$0xff] %v419_v6  ;;  %v425_v9 = vld [vmem:[%s2334_s25 + $0x7a8] sm:$0xff]  ;;  %422 = vst [vmem:[%s2339_s26 + $0x438] sm:$0xff] %v421_v7  ;;  %v427_v10 = vld [vmem:[%s2334_s25 + $0x7b0] sm:$0xff] }
  0x55   : > { %424 = vst [vmem:[%s2339_s26 + $0x440] sm:$0xff] %v423_v8  ;;  %426 = vst [vmem:[%s2339_s26 + $0x448] sm:$0xff] %v425_v9  ;;  %v429_v11 = vld [vmem:[%s2334_s25 + $0x7b8] sm:$0xff]  ;;  %v431_v12 = vld [vmem:[%s2334_s25 + $0x7c0] sm:$0xff] }
  0x56   : > { %428 = vst [vmem:[%s2339_s26 + $0x450] sm:$0xff] %v427_v10  ;;  %430 = vst [vmem:[%s2339_s26 + $0x458] sm:$0xff] %v429_v11  ;;  %v433_v13 = vld [vmem:[%s2334_s25 + $0x7c8] sm:$0xff]  ;;  %v435_v14 = vld [vmem:[%s2334_s25 + $0x7d0] sm:$0xff] }
  0x57   : > { %432 = vst [vmem:[%s2339_s26 + $0x460] sm:$0xff] %v431_v12  ;;  %v437_v15 = vld [vmem:[%s2334_s25 + $0x7d8] sm:$0xff]  ;;  %434 = vst [vmem:[%s2339_s26 + $0x468] sm:$0xff] %v433_v13 }
  0x58   : > { %436 = vst [vmem:[%s2339_s26 + $0x470] sm:$0xff] %v435_v14  ;;  %438 = vst [vmem:[%s2339_s26 + $0x478] sm:$0xff] %v437_v15 }
  0x59 PF: > { %p1804_p5 = scmp.ge.s32.totalorder %s2277_s14, 1  ;;  %p443_p6 = scmp.lt.s32.totalorder %s2277_s14, 3 }
  0x5b   : > { %p444_p7 = pnand %p1804_p5, %p443_p6 }
  0x5d   : > { %447 = sbr.rel (%p444_p7) target bundleno = 578 (0x242), region = 51 }
  0x62   : > { %v2631_v16 = vld [vmem:[%s3764_s1 + $0xf8] sm:$0xff]  ;;  %v2279_v19 = vmov 0.0   ;;  %v2648_v20 = vld [vmem:[%s3764_s1 + $0xf0] sm:$0xff]  ;;  %v2665_v23 = vld [vmem:[%s3764_s1 + $0xe8] sm:$0xff]  ;;  %s450_s30 = sand.u32 1, %s2269_s12   ;;  %vm607_vm0 = vcmask 1043456  }
  0x63   : > { %v2636_v17 = vld [vmem:[%s3764_s1 + $0x78] sm:$0xff]  ;;  %1960 = vmatprep.subr.mxu0 %v2631_v16  ;;  %721 = vmatprep.subr.mxu1 %v2279_v19  ;;  %v2653_v21 = vld [vmem:[%s3764_s1 + $0x70] sm:$0xff]  ;;  %v2672_v24 = vld [vmem:[%s3764_s1 + $0x68] sm:$0xff]  ;;  %s2197_s11 = smul.u32 1152, %s450_s30  ;;  %vm579_vm1 = vcmask 949248   ;;  %vm1726_vm2 = vcmask 408576  }
  0x64   : > { %v2641_v18 = vld [vmem:[%s3764_s1 + $0x178] sm:$0xff]  ;;  %v2658_v22 = vld [vmem:[%s3764_s1 + $0x170] sm:$0xff]  ;;  %1961 = vmatpush3.msra.mxu0 %v2636_v17  ;;  %v2677_v25 = vld [vmem:[%s3764_s1 + $0x168] sm:$0xff] }
  0x65   : > { %722 = vmatpush1.msra.mxu1 %v2641_v18  ;;  %1962 = vmatprep.subr.mxu0 %v2648_v20  ;;  %v2684_v26 = vld [vmem:[%s3764_s1 + $0xe0] sm:$0xff]  ;;  %v2703_v29 = vld [vmem:[%s3764_s1 + $0xd8] sm:$0xff]  ;;  %v2722_v32 = vld [vmem:[%s3764_s1 + $0xd0] sm:$0xff]  ;;  %s2922_s10 = scalar_lea.vmem [#allocation2], %s2197_s11 }
  0x66   : > { %723 = vmatprep.subr.mxu1 %v2279_v19  ;;  %1963 = vmatpush3.msra.mxu0 %v2653_v21  ;;  %v2691_v27 = vld [vmem:[%s3764_s1 + $0x60] sm:$0xff]  ;;  %v2710_v30 = vld [vmem:[%s3764_s1 + $0x58] sm:$0xff]  ;;  %v2729_v33 = vld [vmem:[%s3764_s1 + $0x50] sm:$0xff] }
  0x67   : > { %724 = vmatpush1.msra.mxu1 %v2658_v22  ;;  %1964 = vmatprep.subr.mxu0 %v2665_v23  ;;  %v2696_v28 = vld [vmem:[%s3764_s1 + $0x160] sm:$0xff]  ;;  %v2715_v31 = vld [vmem:[%s3764_s1 + $0x158] sm:$0xff]  ;;  %v2734_v34 = vld [vmem:[%s3764_s1 + $0x150] sm:$0xff] }
  0x68   : > { %725 = vmatprep.subr.mxu1 %v2279_v19  ;;  %1965 = vmatpush3.msra.mxu0 %v2672_v24  ;;  %v2741_v35 = vld [vmem:[%s3764_s1 + $0xc8] sm:$0xff]  ;;  %v2760_v38 = vld [vmem:[%s3764_s1 + $0xc0] sm:$0xff]  ;;  %v2779_v41 = vld [vmem:[%s3764_s1 + $0xb8] sm:$0xff] }
  0x69   : > { %726 = vmatpush1.msra.mxu1 %v2677_v25  ;;  %1966 = vmatprep.subr.mxu0 %v2684_v26  ;;  %v2748_v36 = vld [vmem:[%s3764_s1 + $0x48] sm:$0xff]  ;;  %v2767_v39 = vld [vmem:[%s3764_s1 + $0x40] sm:$0xff]  ;;  %v2786_v42 = vld [vmem:[%s3764_s1 + $0x38] sm:$0xff] }
  0x6a   : > { %727 = vmatprep.subr.mxu1 %v2279_v19  ;;  %1967 = vmatpush3.msra.mxu0 %v2691_v27  ;;  %v2753_v37 = vld [vmem:[%s3764_s1 + $0x148] sm:$0xff]  ;;  %v2772_v40 = vld [vmem:[%s3764_s1 + $0x140] sm:$0xff]  ;;  %v2791_v43 = vld [vmem:[%s3764_s1 + $0x138] sm:$0xff] }
  0x6b   : > { %728 = vmatpush1.msra.mxu1 %v2696_v28  ;;  %1968 = vmatprep.subr.mxu0 %v2703_v29  ;;  %v2798_v44 = vld [vmem:[%s3764_s1 + $0xb0] sm:$0xff]  ;;  %v2817_v47 = vld [vmem:[%s3764_s1 + $0xa8] sm:$0xff]  ;;  %v2837_v50 = vld [vmem:[%s3764_s1 + $0xa0] sm:$0xff] }
  0x6c   : > { %729 = vmatprep.subr.mxu1 %v2279_v19  ;;  %1969 = vmatpush3.msra.mxu0 %v2710_v30  ;;  %v2805_v45 = vld [vmem:[%s3764_s1 + $0x30] sm:$0xff]  ;;  %v2824_v48 = vld [vmem:[%s3764_s1 + $0x28] sm:$0xff]  ;;  %v2844_v51 = vld [vmem:[%s3764_s1 + $0x20] sm:$0xff] }
  0x6d   : > { %730 = vmatpush1.msra.mxu1 %v2715_v31  ;;  %1970 = vmatprep.subr.mxu0 %v2722_v32  ;;  %v2810_v46 = vld [vmem:[%s3764_s1 + $0x130] sm:$0xff]  ;;  %v2829_v49 = vld [vmem:[%s3764_s1 + $0x128] sm:$0xff]  ;;  %v2849_v52 = vld [vmem:[%s3764_s1 + $0x120] sm:$0xff] }
  0x6e   : > { %731 = vmatprep.subr.mxu1 %v2279_v19  ;;  %1971 = vmatpush3.msra.mxu0 %v2729_v33  ;;  %v2856_v53 = vld [vmem:[%s3764_s1 + $0x98] sm:$0xff]  ;;  %v2875_v56 = vld [vmem:[%s3764_s1 + $0x90] sm:$0xff]  ;;  %v2894_v59 = vld [vmem:[%s3764_s1 + $0x88] sm:$0xff] }
  0x6f   : > { %732 = vmatpush1.msra.mxu1 %v2734_v34  ;;  %1972 = vmatprep.subr.mxu0 %v2741_v35  ;;  %v2863_v54 = vld [vmem:[%s3764_s1 + $0x18] sm:$0xff]  ;;  %v2882_v57 = vld [vmem:[%s3764_s1 + $0x10] sm:$0xff]  ;;  %v2901_v60 = vld [vmem:[%s3764_s1 + $0x8] sm:$0xff] }
  0x70   : > { %733 = vmatprep.subr.mxu1 %v2279_v19  ;;  %1973 = vmatpush3.msra.mxu0 %v2748_v36  ;;  %v2868_v55 = vld [vmem:[%s3764_s1 + $0x118] sm:$0xff]  ;;  %v2887_v58 = vld [vmem:[%s3764_s1 + $0x110] sm:$0xff]  ;;  %v2906_v61 = vld [vmem:[%s3764_s1 + $0x108] sm:$0xff] }
  0x71   : > { %734 = vmatpush1.msra.mxu1 %v2753_v37  ;;  %1974 = vmatprep.subr.mxu0 %v2760_v38  ;;  %v2913_v62 = vld [vmem:[%s3764_s1 + $0x80] sm:$0xff]  ;;  %v544_v0 = vld [vmem:[%s2922_s10 + $0x8] sm:$0xff]  ;;  %v2939_v3 = vld [vmem:[%s3764_s1 + $0x1f0] sm:$0xf] }
  0x72   : > { %735 = vmatprep.subr.mxu1 %v2279_v19  ;;  %1975 = vmatpush3.msra.mxu0 %v2767_v39  ;;  %v2920_v63 = vld [vmem:[%s3764_s1] sm:$0xff]  ;;  %v548_v4 = vld [vmem:[%s2922_s10 + $0x28] sm:$0xff]  ;;  %v2969_v9 = vld [vmem:[%s3764_s1 + $0x1d8] sm:$0xff] }
  0x73   : > { %736 = vmatpush1.msra.mxu1 %v2772_v40  ;;  %1976 = vmatprep.subr.mxu0 %v2779_v41  ;;  %v2930_v1 = vld [vmem:[%s3764_s1 + $0x100] sm:$0xff]  ;;  %v2948_v5 = vld [vmem:[%s3764_s1 + $0x1e8] sm:$0xff]  ;;  %v2978_v11 = vld [vmem:[%s3764_s1 + $0x1d0] sm:$0xff] }
  0x74   : > { %737 = vmatprep.subr.mxu1 %v2279_v19  ;;  %1977 = vmatpush3.msra.mxu0 %v2786_v42  ;;  %v543_v2 = vld [vmem:[%s2922_s10] sm:$0xff]  ;;  %v552_v8 = vld [vmem:[%s2922_s10 + $0x48] sm:$0xff] }
  0x75   : > { %738 = vmatpush1.msra.mxu1 %v2791_v43  ;;  %1978 = vmatprep.subr.mxu0 %v2798_v44  ;;  %v547_v6 = vld [vmem:[%s2922_s10 + $0x20] sm:$0xff]  ;;  %v556_v12 = vld [vmem:[%s2922_s10 + $0x68] sm:$0xff] }
  0x76   : > { %739 = vmatprep.subr.mxu1 %v2279_v19  ;;  %1979 = vmatpush3.msra.mxu0 %v2805_v45  ;;  %v2958_v7 = vld [vmem:[%s3764_s1 + $0x1e0] sm:$0xff]  ;;  %v2989_v13 = vld [vmem:[%s3764_s1 + $0x1c8] sm:$0xff] }
  0x77   : > { %740 = vmatpush1.msra.mxu1 %v2810_v46  ;;  %1980 = vmatprep.subr.mxu0 %v2817_v47  ;;  %v551_v10 = vld [vmem:[%s2922_s10 + $0x40] sm:$0xff] }
  0x78   : > { %741 = vmatprep.subr.mxu1 %v2279_v19  ;;  %1981 = vmatpush3.msra.mxu0 %v2824_v48  ;;  %v555_v14 = vld [vmem:[%s2922_s10 + $0x60] sm:$0xff] }
  0x79   : > { %742 = vmatpush1.msra.mxu1 %v2829_v49  ;;  %1982 = vmatprep.subr.mxu0 %v2837_v50  ;;  %v2998_v15 = vld [vmem:[%s3764_s1 + $0x1c0] sm:$0xff] }
  0x7a   : > { %743 = vmatprep.subr.mxu1 %v2279_v19  ;;  %1983 = vmatpush3.msra.mxu0 %v2844_v51 }
  0x7b   : > { %744 = vmatpush1.msra.mxu1 %v2849_v52  ;;  %1984 = vmatprep.subr.mxu0 %v2856_v53 }
  0x7c   : > { %745 = vmatprep.subr.mxu1 %v2279_v19  ;;  %1985 = vmatpush3.msra.mxu0 %v2863_v54 }
  0x7d   : > { %746 = vmatpush1.msra.mxu1 %v2868_v55  ;;  %1986 = vmatprep.subr.mxu0 %v2875_v56 }
  0x7e   : > { %747 = vmatprep.subr.mxu1 %v2279_v19  ;;  %1987 = vmatpush3.msra.mxu0 %v2882_v57 }
  0x7f   : > { %748 = vmatpush1.msra.mxu1 %v2887_v58  ;;  %1988 = vmatprep.subr.mxu0 %v2894_v59 }
  0x80   : > { %749 = vmatprep.subr.mxu1 %v2279_v19  ;;  %1989 = vmatpush3.msra.mxu0 %v2901_v60 }
  0x81   : > { %750 = vmatpush1.msra.mxu1 %v2906_v61  ;;  %1990 = vmatprep.subr.mxu0 %v2913_v62 }
  0x82   : > { %751 = vmatprep.subr.mxu1 %v2279_v19  ;;  %1991 = vmatpush3.msra.mxu0 %v2920_v63 }
  0x83   : > { %675 = vmatprep.mubr.f32.mxu0 %v544_v0  ;;  %752 = vmatpush1.msra.mxu1 %v2930_v1  ;;  %v560_v0 = vld [vmem:[%s2922_s10 + $0x88] sm:$0xff] }
  0x84   : > { %676 = vmatmul.mubr.f32.vlgmr.msra.gmra.mxu0 %v543_v2  ;;  %755 = vmatprep.subr.mxu1 %v2279_v19  ;;  %v3007_v2 = vld [vmem:[%s3764_s1 + $0x1b8] sm:$0xff] }
  0x85   : > { %2019 = vmatprep.subr.mxu0 %v2631_v16  ;;  %1806 = vmatpush2.msk.msra.mxu1 %vm607_vm0, %v2939_v3 }
  0x86   : > { %2020 = vmatpush3.msra.mxu0 %v2636_v17  ;;  %757 = vmatprep.subr.mxu1 %v2279_v19 }
  0x87   : > { %680 = vmatprep.mubr.f32.mxu0 %v548_v4  ;;  %758 = vmatpush2.msra.mxu1 %v2948_v5  ;;  %v559_v4 = vld [vmem:[%s2922_s10 + $0x80] sm:$0xff] }
  0x88   : > { %2021 = vmatprep.subr.mxu0 %v2648_v20  ;;  %681 = vmatmul.mubr.f32.gmra.mxu0 %v547_v6  ;;  %v3018_v6 = vld [vmem:[%s3764_s1 + $0x1b0] sm:$0xff] }
  0x89   : > { %759 = vmatprep.subr.mxu1 %v2279_v19  ;;  %2022 = vmatpush3.msra.mxu0 %v2653_v21 }
  0x8a   : > { %760 = vmatpush2.msra.mxu1 %v2958_v7  ;;  %2023 = vmatprep.subr.mxu0 %v2665_v23 }
  0x8b   : > { %761 = vmatprep.subr.mxu1 %v2279_v19  ;;  %2024 = vmatpush3.msra.mxu0 %v2672_v24 }
  0x8c   : > { %685 = vmatprep.mubr.f32.mxu0 %v552_v8  ;;  %762 = vmatpush2.msra.mxu1 %v2969_v9  ;;  %v564_v8 = vld [vmem:[%s2922_s10 + $0xa8] sm:$0xff] }
  0x8d   : > { %2025 = vmatprep.subr.mxu0 %v2684_v26  ;;  %686 = vmatmul.mubr.f32.gmra.mxu0 %v551_v10  ;;  %v3027_v10 = vld [vmem:[%s3764_s1 + $0x1a8] sm:$0xff] }
  0x8e   : > { %763 = vmatprep.subr.mxu1 %v2279_v19  ;;  %2026 = vmatpush3.msra.mxu0 %v2691_v27  ;;  %3779 = vst [vmem:[#allocation3_spill] sm:$0xff] %v3027_v10 }
  0x8f   : > { %764 = vmatpush2.msra.mxu1 %v2978_v11  ;;  %2027 = vmatprep.subr.mxu0 %v2703_v29 }
  0x90   : > { %765 = vmatprep.subr.mxu1 %v2279_v19  ;;  %2028 = vmatpush3.msra.mxu0 %v2710_v30 }
  0x91   : > { %690 = vmatprep.mubr.f32.mxu0 %v556_v12  ;;  %766 = vmatpush2.msra.mxu1 %v2989_v13  ;;  %v563_v12 = vld [vmem:[%s2922_s10 + $0xa0] sm:$0xff] }
  0x92   : > { %691 = vmatmul.mubr.f32.gmra.mxu0 %v555_v14  ;;  %767 = vmatprep.subr.mxu1 %v2279_v19  ;;  %v3037_v14 = vld [vmem:[%s3764_s1 + $0x1a0] sm:$0xff] }
  0x93   : > { %2029 = vmatprep.subr.mxu0 %v2722_v32  ;;  %768 = vmatpush2.msra.mxu1 %v2998_v15  ;;  %3780 = vst [vmem:[#allocation4_spill] sm:$0xff] %v3037_v14 }
  0x94   : > { %2030 = vmatpush3.msra.mxu0 %v2729_v33  ;;  %769 = vmatprep.subr.mxu1 %v2279_v19 }
  0x95   : > { %2031 = vmatprep.subr.mxu0 %v2741_v35  ;;  %695 = vmatprep.mubr.f32.mxu0 %v560_v0  ;;  %v568_v0 = vld [vmem:[%s2922_s10 + $0xc8] sm:$0xff] }
  0x96   : > { %770 = vmatpush2.msra.mxu1 %v3007_v2  ;;  %2032 = vmatpush3.msra.mxu0 %v2748_v36 }
  0x97   : > { %771 = vmatprep.subr.mxu1 %v2279_v19  ;;  %696 = vmatmul.mubr.f32.gmra.mxu0 %v559_v4  ;;  %v3047_v4 = vld [vmem:[%s3764_s1 + $0x198] sm:$0xff] }
  0x98   : > { %2033 = vmatprep.subr.mxu0 %v2760_v38  ;;  %772 = vmatpush2.msra.mxu1 %v3018_v6  ;;  %3781 = vst [vmem:[#allocation5_spill] sm:$0xff] %v3047_v4 }
  0x99   : > { %2034 = vmatpush3.msra.mxu0 %v2767_v39  ;;  %773 = vmatprep.subr.mxu1 %v2279_v19 }
  0x9a   : > { %2035 = vmatprep.subr.mxu0 %v2779_v41  ;;  %700 = vmatprep.mubr.f32.mxu0 %v564_v8  ;;  %v567_v8 = vld [vmem:[%s2922_s10 + $0xc0] sm:$0xff] }
  0x9b   : > { %774 = vmatpush2.msra.mxu1 %v3027_v10  ;;  %2036 = vmatpush3.msra.mxu0 %v2786_v42  ;;  %v545_v10 = vld [vmem:[%s2922_s10 + $0x10] sm:$0xff] }
  0x9c   : > { %775 = vmatprep.subr.mxu1 %v2279_v19  ;;  %701 = vmatmul.mubr.f32.gmra.mxu0 %v563_v12  ;;  %v3056_v12 = vld [vmem:[%s3764_s1 + $0x190] sm:$0xff] }
  0x9d   : > { %776 = vmatpush2.msra.mxu1 %v3037_v14  ;;  %2037 = vmatprep.subr.mxu0 %v2798_v44  ;;  %3782 = vst [vmem:[#allocation6_spill] sm:$0xff] %v3056_v12  ;;  %v572_v14 = vld [vmem:[%s2922_s10 + $0xe8] sm:$0xff] }
  0x9e   : > { %777 = vmatprep.subr.mxu1 %v2279_v19  ;;  %2038 = vmatpush3.msra.mxu0 %v2805_v45 }
  0x9f   : > { %705 = vmatprep.mubr.f32.mxu0 %v568_v0  ;;  %778 = vmatpush2.msra.mxu1 %v3047_v4  ;;  %v3067_v0 = vld [vmem:[%s3764_s1 + $0x188] sm:$0xff]  ;;  %v571_v4 = vld [vmem:[%s2922_s10 + $0xe0] sm:$0xff] }
  0xa0   : > { %2039 = vmatprep.subr.mxu0 %v2817_v47  ;;  %706 = vmatmul.mubr.f32.gmra.mxu0 %v567_v8  ;;  %3783 = vst [vmem:[#allocation7_spill] sm:$0xff] %v3067_v0  ;;  %v3076_v8 = vld [vmem:[%s3764_s1 + $0x180] sm:$0xff] }
  0xa1   : > { %779 = vmatprep.subr.mxu1 %v2279_v19  ;;  %2040 = vmatpush3.msra.mxu0 %v2824_v48  ;;  %3784 = vst [vmem:[#allocation8_spill] sm:$0xff] %v3076_v8 }
  0xa2   : > { %780 = vmatpush2.msra.mxu1 %v3056_v12  ;;  %2041 = vmatprep.subr.mxu0 %v2837_v50  ;;  %v546_v12 = vld [vmem:[%s2922_s10 + $0x18] sm:$0xff] }
  0xa3   : > { %781 = vmatprep.subr.mxu1 %v2279_v19  ;;  %2042 = vmatpush3.msra.mxu0 %v2844_v51 }
  0xa4   : > { %710 = vmatprep.mubr.f32.mxu0 %v572_v14  ;;  %782 = vmatpush2.msra.mxu1 %v3067_v0  ;;  %v576_v14 = vld [vmem:[%s2922_s10 + $0x108] sm:$0xff]  ;;  %v575_v0 = vld [vmem:[%s2922_s10 + $0x100] sm:$0xff] }
  0xa5   : > { %2043 = vmatprep.subr.mxu0 %v2856_v53  ;;  %711 = vmatmul.mubr.f32.gmra.mxu0 %v571_v4  ;;  %v550_v4 = vld [vmem:[%s2922_s10 + $0x38] sm:$0xff] }
  0xa6   : > { %783 = vmatprep.subr.mxu1 %v2279_v19  ;;  %2044 = vmatpush3.msra.mxu0 %v2863_v54 }
  0xa7   : > { %784 = vmatpush2.msra.mxu1 %v3076_v8  ;;  %1807 = vmatprep.mubr.msk.f32.mxu1 %vm579_vm1, %v546_v12  ;;  %v549_v12 = vld [vmem:[%s2922_s10 + $0x30] sm:$0xff]  ;;  %v1821_v8 = vld [vmem:[%s2922_s10 + $0x148] sm:$0xff] }
  0xa8   : > { %2045 = vmatprep.subr.mxu0 %v2875_v56  ;;  %786 = vmatmul.mubr.f32.vlgmr.msra.gmra.mxu1 %v545_v10  ;;  %v1817_v10 = vld [vmem:[%s2922_s10 + $0x128] sm:$0xff] }
  0xa9   : > { %1005 = vmatprep.subr.mxu1 %v2279_v19  ;;  %715 = vmatprep.mubr.f32.mxu0 %v576_v14  ;;  %v1816_v14 = vld [vmem:[%s2922_s10 + $0x120] sm:$0xff] }
  0xaa   : > { %2046 = vmatpush3.msra.mxu0 %v2882_v57  ;;  %1006 = vmatpush1.msra.mxu1 %v2641_v18 }
  0xab   : > { %716 = vmatmul.mubr.f32.gmra.mxu0 %v575_v0  ;;  %2047 = vmatprep.subr.mxu0 %v2894_v59  ;;  %v554_v0 = vld [vmem:[%s2922_s10 + $0x58] sm:$0xff] }
  0xac   : > { %1007 = vmatprep.subr.mxu1 %v2279_v19  ;;  %1808 = vmatprep.mubr.msk.f32.mxu1 %vm579_vm1, %v550_v4  ;;  %v553_v4 = vld [vmem:[%s2922_s10 + $0x50] sm:$0xff] }
  0xad   : > { %2048 = vmatpush3.msra.mxu0 %v2901_v60  ;;  %1008 = vmatpush1.msra.mxu1 %v2658_v22 }
  0xae   : > { %2049 = vmatprep.subr.mxu0 %v2913_v62  ;;  %791 = vmatmul.mubr.f32.gmra.mxu1 %v549_v12  ;;  %v1820_v12 = vld [vmem:[%s2922_s10 + $0x140] sm:$0xff] }
  0xaf   : > { %1009 = vmatprep.subr.mxu1 %v2279_v19  ;;  %2050 = vmatpush3.msra.mxu0 %v2920_v63 }
  0xb0   : > { %959 = vmatprep.mubr.f32.mxu0 %v1817_v10  ;;  %1010 = vmatpush1.msra.mxu1 %v2677_v25  ;;  %v558_v10 = vld [vmem:[%s2922_s10 + $0x78] sm:$0xff] }
  0xb1   : > { %960 = vmatmul.mubr.f32.vlgmr.msra.gmra.mxu0 %v1816_v14  ;;  %1011 = vmatprep.subr.mxu1 %v2279_v19  ;;  %v569_v14 = vld [vmem:[%s2922_s10 + $0xd0] sm:$0xff] }
  0xb2   : > { %2078 = vmatprep.subr.mxu0 %v2631_v16  ;;  %1809 = vmatprep.mubr.msk.f32.mxu1 %vm579_vm1, %v554_v0  ;;  %v557_v16 = vld [vmem:[%s2922_s10 + $0x70] sm:$0xff] }
  0xb3   : > { %1012 = vmatpush1.msra.mxu1 %v2696_v28  ;;  %2079 = vmatpush3.msra.mxu0 %v2636_v17  ;;  %v1825_v17 = vld [vmem:[%s2922_s10 + $0x168] sm:$0xff]  ;;  %v577_v0 = vld [vmem:[%s2922_s10 + $0x110] sm:$0xff] }
  0xb4   : > { %796 = vmatmul.mubr.f32.gmra.mxu1 %v553_v4  ;;  %1013 = vmatprep.subr.mxu1 %v2279_v19  ;;  %v1823_v4 = vld [vmem:[%s2922_s10 + $0x158] sm:$0xff] }
  0xb5   : > { %964 = vmatprep.mubr.f32.mxu0 %v1821_v8  ;;  %1014 = vmatpush1.msra.mxu1 %v2715_v31  ;;  %v562_v8 = vld [vmem:[%s2922_s10 + $0x98] sm:$0xff] }
  0xb6   : > { %2080 = vmatprep.subr.mxu0 %v2648_v20  ;;  %965 = vmatmul.mubr.f32.gmra.mxu0 %v1820_v12  ;;  %v1824_v20 = vld [vmem:[%s2922_s10 + $0x160] sm:$0xff]  ;;  %v1867_v12 = vld [vmem:[%s2922_s10 + $0x268] sm:$0xff] }
  0xb7   : > { %1015 = vmatprep.subr.mxu1 %v2279_v19  ;;  %2081 = vmatpush3.msra.mxu0 %v2653_v21  ;;  %v561_v21 = vld [vmem:[%s2922_s10 + $0x90] sm:$0xff] }
  0xb8   : > { %1810 = vmatprep.mubr.msk.f32.mxu1 %vm579_vm1, %v558_v10  ;;  %1016 = vmatpush1.msra.mxu1 %v2734_v34  ;;  %v1866_v10 = vld [vmem:[%s2922_s10 + $0x260] sm:$0xff] }
  0xb9   : > { %2082 = vmatprep.subr.mxu0 %v2665_v23  ;;  %801 = vmatmul.mubr.f32.gmra.mxu1 %v557_v16  ;;  %v1829_v23 = vld [vmem:[%s2922_s10 + $0x188] sm:$0xff]  ;;  %v1822_v16 = vld [vmem:[%s2922_s10 + $0x150] sm:$0xff] }
  0xba   : > { %1017 = vmatprep.subr.mxu1 %v2279_v19  ;;  %2083 = vmatpush3.msra.mxu0 %v2672_v24  ;;  %v1828_v24 = vld [vmem:[%s2922_s10 + $0x180] sm:$0xff] }
  0xbb   : > { %969 = vmatprep.mubr.f32.mxu0 %v1825_v17  ;;  %1018 = vmatpush1.msra.mxu1 %v2753_v37  ;;  %v1827_v17 = vld [vmem:[%s2922_s10 + $0x178] sm:$0xff] }
  0xbc   : > { %2084 = vmatprep.subr.mxu0 %v2684_v26  ;;  %970 = vmatmul.mubr.f32.gmra.mxu0 %v1824_v20  ;;  %v566_v26 = vld [vmem:[%s2922_s10 + $0xb8] sm:$0xff]  ;;  %v1871_v20 = vld [vmem:[%s2922_s10 + $0x288] sm:$0xff] }
  0xbd   : > { %1019 = vmatprep.subr.mxu1 %v2279_v19  ;;  %2085 = vmatpush3.msra.mxu0 %v2691_v27  ;;  %v565_v27 = vld [vmem:[%s2922_s10 + $0xb0] sm:$0xff] }
  0xbe   : > { %1811 = vmatprep.mubr.msk.f32.mxu1 %vm579_vm1, %v562_v8  ;;  %1020 = vmatpush1.msra.mxu1 %v2772_v40  ;;  %v1870_v8 = vld [vmem:[%s2922_s10 + $0x280] sm:$0xff] }
  0xbf   : > { %2086 = vmatprep.subr.mxu0 %v2703_v29  ;;  %806 = vmatmul.mubr.f32.gmra.mxu1 %v561_v21  ;;  %v1833_v29 = vld [vmem:[%s2922_s10 + $0x1a8] sm:$0xff]  ;;  %v1826_v21 = vld [vmem:[%s2922_s10 + $0x170] sm:$0xff] }
  0xc0   : > { %1021 = vmatprep.subr.mxu1 %v2279_v19  ;;  %2087 = vmatpush3.msra.mxu0 %v2710_v30  ;;  %v1832_v30 = vld [vmem:[%s2922_s10 + $0x1a0] sm:$0xff] }
  0xc1   : > { %974 = vmatprep.mubr.f32.mxu0 %v1829_v23  ;;  %1022 = vmatpush1.msra.mxu1 %v2791_v43  ;;  %v1831_v23 = vld [vmem:[%s2922_s10 + $0x198] sm:$0xff] }
  0xc2   : > { %975 = vmatmul.mubr.f32.gmra.mxu0 %v1828_v24  ;;  %1023 = vmatprep.subr.mxu1 %v2279_v19  ;;  %v1875_v24 = vld [vmem:[%s2922_s10 + $0x2a8] sm:$0xff] }
  0xc3   : > { %2088 = vmatprep.subr.mxu0 %v2722_v32  ;;  %1812 = vmatprep.mubr.msk.f32.mxu1 %vm579_vm1, %v566_v26  ;;  %v570_v32 = vld [vmem:[%s2922_s10 + $0xd8] sm:$0xff]  ;;  %v1874_v26 = vld [vmem:[%s2922_s10 + $0x2a0] sm:$0xff] }
  0xc4   : > { %1024 = vmatpush1.msra.mxu1 %v2810_v46  ;;  %2089 = vmatpush3.msra.mxu0 %v2729_v33  ;;  %v1837_v33 = vld [vmem:[%s2922_s10 + $0x1c8] sm:$0xff] }
  0xc5   : > { %811 = vmatmul.mubr.f32.gmra.mxu1 %v565_v27  ;;  %1025 = vmatprep.subr.mxu1 %v2279_v19  ;;  %v1830_v27 = vld [vmem:[%s2922_s10 + $0x190] sm:$0xff] }
  0xc6   : > { %2090 = vmatprep.subr.mxu0 %v2741_v35  ;;  %979 = vmatprep.mubr.f32.mxu0 %v1833_v29  ;;  %v1836_v35 = vld [vmem:[%s2922_s10 + $0x1c0] sm:$0xff]  ;;  %v1835_v29 = vld [vmem:[%s2922_s10 + $0x1b8] sm:$0xff] }
  0xc7   : > { %1026 = vmatpush1.msra.mxu1 %v2829_v49  ;;  %2091 = vmatpush3.msra.mxu0 %v2748_v36  ;;  %v574_v36 = vld [vmem:[%s2922_s10 + $0xf8] sm:$0xff] }
  0xc8   : > { %1027 = vmatprep.subr.mxu1 %v2279_v19  ;;  %980 = vmatmul.mubr.f32.gmra.mxu0 %v1832_v30  ;;  %v1879_v30 = vld [vmem:[%s2922_s10 + $0x2c8] sm:$0xff] }
  0xc9   : > { %2092 = vmatprep.subr.mxu0 %v2760_v38  ;;  %1813 = vmatprep.mubr.msk.f32.mxu1 %vm579_vm1, %v570_v32  ;;  %v573_v38 = vld [vmem:[%s2922_s10 + $0xf0] sm:$0xff] }
  0xca   : > { %1028 = vmatpush1.msra.mxu1 %v2849_v52  ;;  %2093 = vmatpush3.msra.mxu0 %v2767_v39  ;;  %v1841_v39 = vld [vmem:[%s2922_s10 + $0x1e8] sm:$0xff]  ;;  %v1834_v32 = vld [vmem:[%s2922_s10 + $0x1b0] sm:$0xff] }
  0xcb   : > { %816 = vmatmul.mubr.f32.gmra.mxu1 %v569_v14  ;;  %1029 = vmatprep.subr.mxu1 %v2279_v19  ;;  %v1839_v14 = vld [vmem:[%s2922_s10 + $0x1d8] sm:$0xff] }
  0xcc   : > { %2094 = vmatprep.subr.mxu0 %v2779_v41  ;;  %984 = vmatprep.mubr.f32.mxu0 %v1837_v33  ;;  %v1840_v41 = vld [vmem:[%s2922_s10 + $0x1e0] sm:$0xff] }
  0xcd   : > { %1030 = vmatpush1.msra.mxu1 %v2868_v55  ;;  %2095 = vmatpush3.msra.mxu0 %v2786_v42  ;;  %v578_v42 = vld [vmem:[%s2922_s10 + $0x118] sm:$0xff]  ;;  %v1878_v33 = vld [vmem:[%s2922_s10 + $0x2c0] sm:$0xff] }
  0xce   : > { %1031 = vmatprep.subr.mxu1 %v2279_v19  ;;  %985 = vmatmul.mubr.f32.gmra.mxu0 %v1836_v35  ;;  %v1838_v35 = vld [vmem:[%s2922_s10 + $0x1d0] sm:$0xff] }
  0xcf   : > { %1814 = vmatprep.mubr.msk.f32.mxu1 %vm579_vm1, %v574_v36  ;;  %1032 = vmatpush1.msra.mxu1 %v2887_v58  ;;  %v1843_v36 = vld [vmem:[%s2922_s10 + $0x1f8] sm:$0xff] }
  0xd0   : > { %2096 = vmatprep.subr.mxu0 %v2798_v44  ;;  %821 = vmatmul.mubr.f32.gmra.mxu1 %v573_v38  ;;  %v1845_v44 = vld [vmem:[%s2922_s10 + $0x208] sm:$0xff] }
  0xd1   : > { %1033 = vmatprep.subr.mxu1 %v2279_v19  ;;  %2097 = vmatpush3.msra.mxu0 %v2805_v45  ;;  %v1844_v45 = vld [vmem:[%s2922_s10 + $0x200] sm:$0xff]  ;;  %v1883_v38 = vld [vmem:[%s2922_s10 + $0x2e8] sm:$0xff] }
  0xd2   : > { %989 = vmatprep.mubr.f32.mxu0 %v1841_v39  ;;  %1034 = vmatpush1.msra.mxu1 %v2906_v61  ;;  %v1882_v39 = vld [vmem:[%s2922_s10 + $0x2e0] sm:$0xff] }
  0xd3   : > { %2098 = vmatprep.subr.mxu0 %v2817_v47  ;;  %990 = vmatmul.mubr.f32.gmra.mxu0 %v1840_v41  ;;  %v1849_v47 = vld [vmem:[%s2922_s10 + $0x228] sm:$0xff] }
  0xd4   : > { %1035 = vmatprep.subr.mxu1 %v2279_v19  ;;  %2099 = vmatpush3.msra.mxu0 %v2824_v48  ;;  %v1848_v48 = vld [vmem:[%s2922_s10 + $0x220] sm:$0xff]  ;;  %v1887_v41 = vld [vmem:[%s2922_s10 + $0x308] sm:$0xff] }
  0xd5   : > { %1815 = vmatprep.mubr.msk.f32.mxu1 %vm579_vm1, %v578_v42  ;;  %1036 = vmatpush1.msra.mxu1 %v2930_v1  ;;  %v1886_v42 = vld [vmem:[%s2922_s10 + $0x300] sm:$0xff] }
  0xd6   : > { %2100 = vmatprep.subr.mxu0 %v2837_v50  ;;  %826 = vmatmul.mubr.f32.gmra.mxu1 %v577_v0  ;;  %v1863_v50 = vld [vmem:[%s2922_s10 + $0x248] sm:$0xff] }
  0xd7   : > { %1039 = vmatprep.subr.mxu1 %v2279_v19  ;;  %2101 = vmatpush3.msra.mxu0 %v2844_v51  ;;  %v1862_v51 = vld [vmem:[%s2922_s10 + $0x240] sm:$0xff]  ;;  %v1891_v0 = vld [vmem:[%s2922_s10 + $0x328] sm:$0xff] }
  0xd8   : > { %994 = vmatprep.mubr.f32.mxu0 %v1845_v44  ;;  %1852 = vmatpush2.msk.msra.mxu1 %vm607_vm0, %v2939_v3  ;;  %v1890_v44 = vld [vmem:[%s2922_s10 + $0x320] sm:$0xff] }
  0xd9   : > { %2102 = vmatprep.subr.mxu0 %v2856_v53  ;;  %995 = vmatmul.mubr.f32.gmra.mxu0 %v1844_v45  ;;  %v3785_v53 = vld [vmem:[#allocation3_spill] sm:$0xff] }
  0xda   : > { %1041 = vmatprep.subr.mxu1 %v2279_v19  ;;  %2103 = vmatpush3.msra.mxu0 %v2863_v54  ;;  %v3786_v54 = vld [vmem:[#allocation4_spill] sm:$0xff]  ;;  %v1894_v45 = vld [vmem:[%s2922_s10 + $0x340] sm:$0xff] }
  0xdb   : > { %1042 = vmatpush2.msra.mxu1 %v2948_v5  ;;  %2104 = vmatprep.subr.mxu0 %v2875_v56  ;;  %v3787_v56 = vld [vmem:[#allocation5_spill] sm:$0xff] }
  0xdc   : > { %1043 = vmatprep.subr.mxu1 %v2279_v19  ;;  %2105 = vmatpush3.msra.mxu0 %v2882_v57  ;;  %v3788_v57 = vld [vmem:[#allocation6_spill] sm:$0xff] }
  0xdd   : > { %999 = vmatprep.mubr.f32.mxu0 %v1849_v47  ;;  %1044 = vmatpush2.msra.mxu1 %v2958_v7  ;;  %v1868_v47 = vld [vmem:[%s2922_s10 + $0x270] sm:$0xff] }
  0xde   : > { %2106 = vmatprep.subr.mxu0 %v2894_v59  ;;  %1000 = vmatmul.mubr.f32.gmra.mxu0 %v1848_v48  ;;  %v3789_v59 = vld [vmem:[#allocation7_spill] sm:$0xff]  ;;  %v2225_v48 = vld [vmem:[%s3764_s1 + $0xf0] sm:$0xff] }
  0xdf   : > { %1045 = vmatprep.subr.mxu1 %v2279_v19  ;;  %2107 = vmatpush3.msra.mxu0 %v2901_v60  ;;  %v1819_v60 = vld [vmem:[%s2922_s10 + $0x138] sm:$0xff] }
  0xe0   : > { %1046 = vmatpush2.msra.mxu1 %v2969_v9  ;;  %2108 = vmatprep.subr.mxu0 %v2913_v62  ;;  %v1818_v62 = vld [vmem:[%s2922_s10 + $0x130] sm:$0xff] }
  0xe1   : > { %1047 = vmatprep.subr.mxu1 %v2279_v19  ;;  %2109 = vmatpush3.msra.mxu0 %v2920_v63  ;;  %v3790_v63 = vld [vmem:[#allocation8_spill] sm:$0xff] }
  0xe2   : > { %1048 = vmatpush2.msra.mxu1 %v2978_v11  ;;  %1243 = vmatprep.mubr.f32.mxu0 %v1863_v50  ;;  %v1873_v50 = vld [vmem:[%s2922_s10 + $0x298] sm:$0xff] }
  0xe3   : > { %1289 = vmatprep.subr.mxu0 %v2279_v19  ;;  %1049 = vmatprep.subr.mxu1 %v2279_v19 }
  0xe4   : > { %1244 = vmatmul.mubr.f32.vlgmr.msra.gmra.mxu0 %v1862_v51  ;;  %1050 = vmatpush2.msra.mxu1 %v2989_v13  ;;  %v1872_v51 = vld [vmem:[%s2922_s10 + $0x290] sm:$0xff] }
  0xe5   : > { %1290 = vmatpush1.msra.mxu0 %v2641_v18  ;;  %1051 = vmatprep.subr.mxu1 %v2279_v19 }
  0xe6   : > { %1291 = vmatprep.subr.mxu0 %v2279_v19  ;;  %1052 = vmatpush2.msra.mxu1 %v2998_v15 }
  0xe7   : > { %1292 = vmatpush1.msra.mxu0 %v2658_v22  ;;  %1053 = vmatprep.subr.mxu1 %v2279_v19 }
  0xe8   : > { %1293 = vmatprep.subr.mxu0 %v2279_v19  ;;  %1054 = vmatpush2.msra.mxu1 %v3007_v2 }
  0xe9   : > { %1294 = vmatpush1.msra.mxu0 %v2677_v25  ;;  %1055 = vmatprep.subr.mxu1 %v2279_v19 }
  0xea   : > { %1295 = vmatprep.subr.mxu0 %v2279_v19  ;;  %1056 = vmatpush2.msra.mxu1 %v3018_v6 }
  0xeb   : > { %1296 = vmatpush1.msra.mxu0 %v2696_v28  ;;  %1057 = vmatprep.subr.mxu1 %v2279_v19 }
  0xec   : > { %1297 = vmatprep.subr.mxu0 %v2279_v19  ;;  %1058 = vmatpush2.msra.mxu1 %v3785_v53 }
  0xed   : > { %1298 = vmatpush1.msra.mxu0 %v2715_v31  ;;  %1059 = vmatprep.subr.mxu1 %v2279_v19 }
  0xee   : > { %1299 = vmatprep.subr.mxu0 %v2279_v19  ;;  %1060 = vmatpush2.msra.mxu1 %v3786_v54 }
  0xef   : > { %1300 = vmatpush1.msra.mxu0 %v2734_v34  ;;  %1061 = vmatprep.subr.mxu1 %v2279_v19 }
  0xf0   : > { %1301 = vmatprep.subr.mxu0 %v2279_v19  ;;  %1062 = vmatpush2.msra.mxu1 %v3787_v56 }
  0xf1   : > { %1302 = vmatpush1.msra.mxu0 %v2753_v37  ;;  %1063 = vmatprep.subr.mxu1 %v2279_v19 }
  0xf2   : > { %1303 = vmatprep.subr.mxu0 %v2279_v19  ;;  %1064 = vmatpush2.msra.mxu1 %v3788_v57 }
  0xf3   : > { %1304 = vmatpush1.msra.mxu0 %v2772_v40  ;;  %1065 = vmatprep.subr.mxu1 %v2279_v19 }
  0xf4   : > { %1305 = vmatprep.subr.mxu0 %v2279_v19  ;;  %1066 = vmatpush2.msra.mxu1 %v3789_v59 }
  0xf5   : > { %1306 = vmatpush1.msra.mxu0 %v2791_v43  ;;  %1067 = vmatprep.subr.mxu1 %v2279_v19 }
  0xf6   : > { %1307 = vmatprep.subr.mxu0 %v2279_v19  ;;  %1068 = vmatpush2.msra.mxu1 %v3790_v63 }
  0xf7   : > { %1308 = vmatpush1.msra.mxu0 %v2810_v46  ;;  %1853 = vmatprep.mubr.msk.f32.mxu1 %vm579_vm1, %v1819_v60  ;;  %v2228_v60 = vld [vmem:[%s3764_s1 + $0x68] sm:$0xff] }
  0xf8   : > { %1309 = vmatprep.subr.mxu0 %v2279_v19  ;;  %1070 = vmatmul.mubr.f32.vlgmr.msra.gmra.mxu1 %v1818_v62  ;;  %v2230_v62 = vld [vmem:[%s3764_s1 + $0x60] sm:$0xff] }
  0xf9   : > { %1310 = vmatpush1.msra.mxu0 %v2829_v49  ;;  %1854 = vmatprep.mubr.msk.f32.mxu1 %vm579_vm1, %v1823_v4  ;;  %v1877_v4 = vld [vmem:[%s2922_s10 + $0x2b8] sm:$0xff] }
  0xfa   : > { %1311 = vmatprep.subr.mxu0 %v2279_v19  ;;  %1248 = vmatprep.mubr.f32.mxu0 %v1867_v12  ;;  %v1876_v12 = vld [vmem:[%s2922_s10 + $0x2b0] sm:$0xff] }
  0xfb   : > { %1312 = vmatpush1.msra.mxu0 %v2849_v52  ;;  %1573 = vmatprep.subr.mxu1 %v2279_v19 }
  0xfc   : > { %1313 = vmatprep.subr.mxu0 %v2279_v19  ;;  %1249 = vmatmul.mubr.f32.gmra.mxu0 %v1866_v10  ;;  %v2232_v10 = vld [vmem:[%s3764_s1 + $0x58] sm:$0xff] }
  0xfd   : > { %1075 = vmatmul.mubr.f32.gmra.mxu1 %v1822_v16  ;;  %1314 = vmatpush1.msra.mxu0 %v2868_v55  ;;  %v1881_v16 = vld [vmem:[%s2922_s10 + $0x2d8] sm:$0xff] }
  0xfe   : > { %1315 = vmatprep.subr.mxu0 %v2279_v19  ;;  %1855 = vmatprep.mubr.msk.f32.mxu1 %vm579_vm1, %v1827_v17  ;;  %v2234_v17 = vld [vmem:[%s3764_s1 + $0x50] sm:$0xff] }
  0xff   : > { %1316 = vmatpush1.msra.mxu0 %v2887_v58  ;;  %1253 = vmatprep.mubr.f32.mxu0 %v1871_v20  ;;  %v1880_v20 = vld [vmem:[%s2922_s10 + $0x2d0] sm:$0xff] }
 0x100   : > { %1317 = vmatprep.subr.mxu0 %v2279_v19  ;;  %1254 = vmatmul.mubr.f32.gmra.mxu0 %v1870_v8  ;;  %v2237_v8 = vld [vmem:[%s3764_s1 + $0xc0] sm:$0xff] }
 0x101   : > { %1080 = vmatmul.mubr.f32.gmra.mxu1 %v1826_v21  ;;  %1318 = vmatpush1.msra.mxu0 %v2906_v61  ;;  %v1885_v21 = vld [vmem:[%s2922_s10 + $0x2f8] sm:$0xff] }
 0x102   : > { %1319 = vmatprep.subr.mxu0 %v2279_v19  ;;  %1856 = vmatprep.mubr.msk.f32.mxu1 %vm579_vm1, %v1831_v23  ;;  %v2239_v23 = vld [vmem:[%s3764_s1 + $0xb8] sm:$0xff] }
 0x103   : > { %1320 = vmatpush1.msra.mxu0 %v2930_v1  ;;  %1258 = vmatprep.mubr.f32.mxu0 %v1875_v24  ;;  %v1884_v24 = vld [vmem:[%s2922_s10 + $0x2f0] sm:$0xff] }
 0x104   : > { %1323 = vmatprep.subr.mxu0 %v2279_v19  ;;  %1259 = vmatmul.mubr.f32.gmra.mxu0 %v1874_v26  ;;  %v1889_v26 = vld [vmem:[%s2922_s10 + $0x318] sm:$0xff] }
 0x105   : > { %1085 = vmatmul.mubr.f32.gmra.mxu1 %v1830_v27  ;;  %1898 = vmatpush2.msk.msra.mxu0 %vm607_vm0, %v2939_v3  ;;  %v2241_v27 = vld [vmem:[%s3764_s1 + $0xb0] sm:$0xff] }
 0x106   : > { %1325 = vmatprep.subr.mxu0 %v2279_v19  ;;  %1857 = vmatprep.mubr.msk.f32.mxu1 %vm579_vm1, %v1835_v29  ;;  %v2242_v29 = vld [vmem:[%s3764_s1 + $0x30] sm:$0xff] }
 0x107   : > { %1326 = vmatpush2.msra.mxu0 %v2948_v5  ;;  %1263 = vmatprep.mubr.f32.mxu0 %v1879_v30 }
 0x108   : > { %1327 = vmatprep.subr.mxu0 %v2279_v19  ;;  %1574 = vmatpush1.msra.mxu1 %v2641_v18  ;;  %v1842_v18 = vld [vmem:[%s2922_s10 + $0x1f0] sm:$0xff] }
 0x109   : > { %1090 = vmatmul.mubr.f32.gmra.mxu1 %v1834_v32  ;;  %1328 = vmatpush2.msra.mxu0 %v2958_v7 }
 0x10a   : > { %1329 = vmatprep.subr.mxu0 %v2279_v19  ;;  %1858 = vmatprep.mubr.msk.f32.mxu1 %vm579_vm1, %v1839_v14  ;;  %v2244_v14 = vld [vmem:[%s3764_s1 + $0x28] sm:$0xff] }
 0x10b   : > { %1330 = vmatpush2.msra.mxu0 %v2969_v9  ;;  %1575 = vmatprep.subr.mxu1 %v2279_v19 }
 0x10c   : > { %1331 = vmatprep.subr.mxu0 %v2279_v19  ;;  %1264 = vmatmul.mubr.f32.gmra.mxu0 %v1878_v33 }
 0x10d   : > { %1095 = vmatmul.mubr.f32.gmra.mxu1 %v1838_v35  ;;  %1332 = vmatpush2.msra.mxu0 %v2978_v11  ;;  %v2245_v35 = vld [vmem:[%s3764_s1 + $0xa0] sm:$0xff] }
 0x10e   : > { %1333 = vmatprep.subr.mxu0 %v2279_v19  ;;  %1576 = vmatpush1.msra.mxu1 %v2658_v22  ;;  %v1847_v22 = vld [vmem:[%s2922_s10 + $0x218] sm:$0xff] }
 0x10f   : > { %1334 = vmatpush2.msra.mxu0 %v2989_v13  ;;  %1577 = vmatprep.subr.mxu1 %v2279_v19 }
 0x110   : > { %1859 = vmatprep.mubr.msk.f32.mxu1 %vm579_vm1, %v1843_v36  ;;  %1268 = vmatprep.mubr.f32.mxu0 %v1883_v38  ;;  %v1892_v36 = vld [vmem:[%s2922_s10 + $0x330] sm:$0xff]  ;;  %v2246_v38 = vld [vmem:[%s3764_s1 + $0x20] sm:$0xff] }
 0x111   : > { %1335 = vmatprep.subr.mxu0 %v2279_v19  ;;  %1578 = vmatpush1.msra.mxu1 %v2677_v25  ;;  %v1846_v25 = vld [vmem:[%s2922_s10 + $0x210] sm:$0xff] }
 0x112   : > { %1269 = vmatmul.mubr.f32.gmra.mxu0 %v1882_v39  ;;  %1100 = vmatmul.mubr.f32.gmra.mxu1 %v1842_v18  ;;  %v2247_v39 = vld [vmem:[%s3764_s1 + $0x98] sm:$0xff] }
 0x113   : > { %1336 = vmatpush2.msra.mxu0 %v2998_v15  ;;  %1579 = vmatprep.subr.mxu1 %v2279_v19  ;;  %v1897_v18 = vld [vmem:[%s2922_s10 + $0x358] sm:$0xff] }
 0x114   : > { %1337 = vmatprep.subr.mxu0 %v2279_v19  ;;  %1580 = vmatpush1.msra.mxu1 %v2696_v28  ;;  %v1851_v28 = vld [vmem:[%s2922_s10 + $0x238] sm:$0xff] }
 0x115   : > { %1338 = vmatpush2.msra.mxu0 %v3007_v2  ;;  %1581 = vmatprep.subr.mxu1 %v2279_v19 }
 0x116   : > { %1860 = vmatprep.mubr.msk.f32.mxu1 %vm579_vm1, %v1847_v22  ;;  %1273 = vmatprep.mubr.f32.mxu0 %v1887_v41  ;;  %v2248_v41 = vld [vmem:[%s3764_s1 + $0x18] sm:$0xff] }
 0x117   : > { %1339 = vmatprep.subr.mxu0 %v2279_v19  ;;  %1582 = vmatpush1.msra.mxu1 %v2715_v31  ;;  %v1850_v31 = vld [vmem:[%s2922_s10 + $0x230] sm:$0xff] }
 0x118   : > { %1274 = vmatmul.mubr.f32.gmra.mxu0 %v1886_v42  ;;  %1105 = vmatmul.mubr.f32.gmra.mxu1 %v1846_v25  ;;  %v2249_v42 = vld [vmem:[%s3764_s1 + $0x90] sm:$0xff] }
 0x119   : > { %1340 = vmatpush2.msra.mxu0 %v3018_v6  ;;  %1583 = vmatprep.subr.mxu1 %v2279_v19  ;;  %v1896_v25 = vld [vmem:[%s2922_s10 + $0x350] sm:$0xff] }
 0x11a   : > { %1341 = vmatprep.subr.mxu0 %v2279_v19  ;;  %1584 = vmatpush1.msra.mxu1 %v2734_v34  ;;  %v1895_v34 = vld [vmem:[%s2922_s10 + $0x348] sm:$0xff] }
 0x11b   : > { %1342 = vmatpush2.msra.mxu0 %v3785_v53  ;;  %1585 = vmatprep.subr.mxu1 %v2279_v19 }
 0x11c   : > { %1861 = vmatprep.mubr.msk.f32.mxu1 %vm579_vm1, %v1851_v28  ;;  %1278 = vmatprep.mubr.f32.mxu0 %v1891_v0  ;;  %v2251_v0 = vld [vmem:[%s3764_s1 + $0x88] sm:$0xff] }
 0x11d   : > { %1343 = vmatprep.subr.mxu0 %v2279_v19  ;;  %1586 = vmatpush1.msra.mxu1 %v2753_v37  ;;  %v1865_v37 = vld [vmem:[%s2922_s10 + $0x258] sm:$0xff] }
 0x11e   : > { %1279 = vmatmul.mubr.f32.gmra.mxu0 %v1890_v44  ;;  %1110 = vmatmul.mubr.f32.gmra.mxu1 %v1850_v31  ;;  %v1909_v31 = vld [vmem:[%s2922_s10 + $0x368] sm:$0xff] }
 0x11f   : > { %1344 = vmatpush2.msra.mxu0 %v3786_v54  ;;  %1587 = vmatprep.subr.mxu1 %v2279_v19 }
 0x120   : > { %1345 = vmatprep.subr.mxu0 %v2279_v19  ;;  %1588 = vmatpush1.msra.mxu1 %v2772_v40  ;;  %v1864_v40 = vld [vmem:[%s2922_s10 + $0x250] sm:$0xff] }
 0x121   : > { %1346 = vmatpush2.msra.mxu0 %v3787_v56  ;;  %1589 = vmatprep.subr.mxu1 %v2279_v19 }
 0x122   : > { %1283 = vmatprep.mubr.f32.mxu0 %v1895_v34  ;;  %1347 = vmatprep.subr.mxu0 %v2279_v19 }
 0x123   : > { %1590 = vmatpush1.msra.mxu1 %v2791_v43  ;;  %1284 = vmatmul.mubr.f32.gmra.mxu0 %v1894_v45  ;;  %v1869_v43 = vld [vmem:[%s2922_s10 + $0x278] sm:$0xff]  ;;  %v2253_v45 = vld [vmem:[%s3764_s1 + $0x80] sm:$0xff] }
 0x124   : > { %1591 = vmatprep.subr.mxu1 %v2279_v19  ;;  %1348 = vmatpush2.msra.mxu0 %v3788_v57 }
 0x125   : > { %1592 = vmatpush1.msra.mxu1 %v2810_v46  ;;  %1349 = vmatprep.subr.mxu0 %v2279_v19  ;;  %v2223_v46 = vld [vmem:[%s3764_s1 + $0xf8] sm:$0xff] }
 0x126   : > { %1593 = vmatprep.subr.mxu1 %v2279_v19  ;;  %1350 = vmatpush2.msra.mxu0 %v3789_v59 }
 0x127   : > { %1594 = vmatpush1.msra.mxu1 %v2829_v49  ;;  %1351 = vmatprep.subr.mxu0 %v2279_v19  ;;  %v2224_v49 = vld [vmem:[%s3764_s1 + $0x78] sm:$0xff] }
 0x128   : > { %1899 = vmatprep.mubr.msk.f32.mxu0 %vm579_vm1, %v1865_v37  ;;  %1352 = vmatpush2.msra.mxu0 %v3790_v63  ;;  %v1908_v37 = vld [vmem:[%s2922_s10 + $0x360] sm:$0xff] }
 0x129   : > { %1595 = vmatprep.subr.mxu1 %v2279_v19  ;;  %1354 = vmatmul.mubr.f32.vlgmr.msra.gmra.mxu0 %v1864_v40  ;;  %v2254_v40 = vld [vmem:[%s3764_s1] sm:$0xff] }
 0x12a   : > { %2137 = vmatprep.subr.mxu0 %v2223_v46  ;;  %1596 = vmatpush1.msra.mxu1 %v2849_v52  ;;  %v2226_v52 = vld [vmem:[%s3764_s1 + $0x70] sm:$0xff]  ;;  %v1913_v46 = vld [vmem:[%s2922_s10 + $0x388] sm:$0xff] }
 0x12b   : > { %2138 = vmatpush3.msra.mxu0 %v2224_v49  ;;  %1597 = vmatprep.subr.mxu1 %v2279_v19 }
 0x12c   : > { %1900 = vmatprep.mubr.msk.f32.mxu0 %vm579_vm1, %v1869_v43  ;;  %1598 = vmatpush1.msra.mxu1 %v2868_v55  ;;  %v2227_v55 = vld [vmem:[%s3764_s1 + $0xe8] sm:$0xff]  ;;  %v1911_v43 = vld [vmem:[%s2922_s10 + $0x378] sm:$0xff] }
 0x12d   : > { %2139 = vmatprep.subr.mxu0 %v2225_v48  ;;  %1599 = vmatprep.subr.mxu1 %v2279_v19  ;;  %v1912_v48 = vld [vmem:[%s2922_s10 + $0x380] sm:$0xff] }
 0x12e   : > { %1359 = vmatmul.mubr.f32.gmra.mxu0 %v1868_v47  ;;  %1600 = vmatpush1.msra.mxu1 %v2887_v58  ;;  %v2229_v58 = vld [vmem:[%s3764_s1 + $0xe0] sm:$0xff]  ;;  %v1910_v47 = vld [vmem:[%s2922_s10 + $0x370] sm:$0xff] }
 0x12f   : > { %2140 = vmatpush3.msra.mxu0 %v2226_v52  ;;  %1601 = vmatprep.subr.mxu1 %v2279_v19  ;;  %v1915_v52 = vld [vmem:[%s2922_s10 + $0x398] sm:$0xff] }
 0x130   : > { %2141 = vmatprep.subr.mxu0 %v2227_v55  ;;  %1602 = vmatpush1.msra.mxu1 %v2906_v61  ;;  %v2231_v61 = vld [vmem:[%s3764_s1 + $0xd8] sm:$0xff] }
 0x131   : > { %2142 = vmatpush3.msra.mxu0 %v2228_v60  ;;  %1901 = vmatprep.mubr.msk.f32.mxu0 %vm579_vm1, %v1873_v50  ;;  %v1917_v50 = vld [vmem:[%s2922_s10 + $0x3a8] sm:$0xff] }
 0x132   : > { %2143 = vmatprep.subr.mxu0 %v2229_v58  ;;  %1603 = vmatprep.subr.mxu1 %v2279_v19  ;;  %v1921_v58 = vld [vmem:[%s2922_s10 + $0x3c8] sm:$0xff] }
 0x133   : > { %1364 = vmatmul.mubr.f32.gmra.mxu0 %v1872_v51  ;;  %1604 = vmatpush1.msra.mxu1 %v2930_v1  ;;  %v2233_v1 = vld [vmem:[%s3764_s1 + $0xd0] sm:$0xff]  ;;  %v1919_v51 = vld [vmem:[%s2922_s10 + $0x3b8] sm:$0xff] }
 0x134   : > { %2144 = vmatpush3.msra.mxu0 %v2230_v62  ;;  %1607 = vmatprep.subr.mxu1 %v2279_v19 }
 0x135   : > { %2145 = vmatprep.subr.mxu0 %v2231_v61  ;;  %1944 = vmatpush2.msk.msra.mxu1 %vm607_vm0, %v2939_v3  ;;  %v2235_v3 = vld [vmem:[%s3764_s1 + $0xc8] sm:$0xff]  ;;  %v1920_v61 = vld [vmem:[%s2922_s10 + $0x3c0] sm:$0xff] }
 0x136   : > { %2146 = vmatpush3.msra.mxu0 %v2232_v10  ;;  %1902 = vmatprep.mubr.msk.f32.mxu0 %vm579_vm1, %v1877_v4  ;;  %v1925_v10 = vld [vmem:[%s2922_s10 + $0x3e8] sm:$0xff] }
 0x137   : > { %1609 = vmatprep.subr.mxu1 %v2279_v19  ;;  %1369 = vmatmul.mubr.f32.gmra.mxu0 %v1876_v12  ;;  %v1923_v12 = vld [vmem:[%s2922_s10 + $0x3d8] sm:$0xff] }
 0x138   : > { %2147 = vmatprep.subr.mxu0 %v2233_v1  ;;  %1610 = vmatpush2.msra.mxu1 %v2948_v5  ;;  %v2236_v5 = vld [vmem:[%s3764_s1 + $0x48] sm:$0xff] }
 0x139   : > { %2148 = vmatpush3.msra.mxu0 %v2234_v17  ;;  %1611 = vmatprep.subr.mxu1 %v2279_v19  ;;  %v1922_v17 = vld [vmem:[%s2922_s10 + $0x3d0] sm:$0xff] }
 0x13a   : > { %2149 = vmatprep.subr.mxu0 %v2235_v3  ;;  %1612 = vmatpush2.msra.mxu1 %v2958_v7  ;;  %v2238_v7 = vld [vmem:[%s3764_s1 + $0x40] sm:$0xff] }
 0x13b   : > { %1903 = vmatprep.mubr.msk.f32.mxu0 %vm579_vm1, %v1881_v16  ;;  %2150 = vmatpush3.msra.mxu0 %v2236_v5  ;;  %v1927_v5 = vld [vmem:[%s2922_s10 + $0x3f8] sm:$0xff] }
 0x13c   : > { %1613 = vmatprep.subr.mxu1 %v2279_v19  ;;  %1374 = vmatmul.mubr.f32.gmra.mxu0 %v1880_v20  ;;  %v1924_v20 = vld [vmem:[%s2922_s10 + $0x3e0] sm:$0xff] }
 0x13d   : > { %2151 = vmatprep.subr.mxu0 %v2237_v8  ;;  %1614 = vmatpush2.msra.mxu1 %v2969_v9  ;;  %v2240_v9 = vld [vmem:[%s3764_s1 + $0x38] sm:$0xff]  ;;  %v1929_v8 = vld [vmem:[%s2922_s10 + $0x408] sm:$0xff] }
 0x13e   : > { %2152 = vmatpush3.msra.mxu0 %v2238_v7  ;;  %1615 = vmatprep.subr.mxu1 %v2279_v19 }
 0x13f   : > { %2153 = vmatprep.subr.mxu0 %v2239_v23  ;;  %1616 = vmatpush2.msra.mxu1 %v2978_v11  ;;  %v1888_v11 = vld [vmem:[%s2922_s10 + $0x310] sm:$0xff] }
 0x140   : > { %1904 = vmatprep.mubr.msk.f32.mxu0 %vm579_vm1, %v1885_v21  ;;  %2154 = vmatpush3.msra.mxu0 %v2240_v9  ;;  %v1926_v23 = vld [vmem:[%s2922_s10 + $0x3f0] sm:$0xff]  ;;  %v1931_v9 = vld [vmem:[%s2922_s10 + $0x418] sm:$0xff] }
 0x141   : > { %1617 = vmatprep.subr.mxu1 %v2279_v19  ;;  %1379 = vmatmul.mubr.f32.gmra.mxu0 %v1884_v24  ;;  %v1928_v24 = vld [vmem:[%s2922_s10 + $0x400] sm:$0xff] }
 0x142   : > { %1618 = vmatpush2.msra.mxu1 %v2989_v13  ;;  %2155 = vmatprep.subr.mxu0 %v2241_v27  ;;  %v2243_v13 = vld [vmem:[%s3764_s1 + $0xa8] sm:$0xff] }
 0x143   : > { %1619 = vmatprep.subr.mxu1 %v2279_v19  ;;  %2156 = vmatpush3.msra.mxu0 %v2242_v29  ;;  %v1933_v27 = vld [vmem:[%s2922_s10 + $0x428] sm:$0xff]  ;;  %v1930_v29 = vld [vmem:[%s2922_s10 + $0x410] sm:$0xff] }
 0x144   : > { %1620 = vmatpush2.msra.mxu1 %v2998_v15  ;;  %v1992_v30 = vpop.f32.mrf.mxu0  ;;  %1905 = vmatprep.mubr.msk.f32.mxu0 %vm579_vm1, %v1889_v26  ;;  %v1893_v15 = vld [vmem:[%s2922_s10 + $0x338] sm:$0xff] }
 0x145   : > { %2157 = vmatprep.subr.mxu0 %v2243_v13  ;;  %1621 = vmatprep.subr.mxu1 %v2279_v19 }
 0x146   : > { %1384 = vmatmul.mubr.f32.gmra.mxu0 %v1888_v11  ;;  %v1993_v32 = vpop.f32.mrf.mxu0  ;;  %1622 = vmatpush2.msra.mxu1 %v3007_v2 }
 0x147   : > { %2158 = vmatpush3.msra.mxu0 %v2244_v14  ;;  %v3476_v33 = vadd.f32 %v1993_v32, %v1992_v30  ;;  %1623 = vmatprep.subr.mxu1 %v2279_v19  ;;  %v1932_v32 = vld [vmem:[%s2922_s10 + $0x420] sm:$0xff]  ;;  %v1935_v14 = vld [vmem:[%s2922_s10 + $0x438] sm:$0xff] }
 0x148   : > { %2159 = vmatprep.subr.mxu0 %v2245_v35  ;;  %1624 = vmatpush2.msra.mxu1 %v3018_v6  ;;  %v1995_v2 = vpop.f32.mrf.mxu0  ;;  %v1937_v35 = vld [vmem:[%s2922_s10 + $0x448] sm:$0xff] }
 0x149   : > { %2160 = vmatpush3.msra.mxu0 %v2246_v38  ;;  %1906 = vmatprep.mubr.msk.f32.mxu0 %vm579_vm1, %v1893_v15 }
 0x14a   : > { %2161 = vmatprep.subr.mxu0 %v2247_v39  ;;  %1625 = vmatprep.subr.mxu1 %v2279_v19  ;;  %v1996_v22 = vpop.f32.mrf.mxu0 }
 0x14b   : > { %1389 = vmatmul.mubr.f32.gmra.mxu0 %v1892_v36  ;;  %1626 = vmatpush2.msra.mxu1 %v3785_v53  ;;  %v3497_v6 = vadd.f32 %v1996_v22, %v1995_v2  ;;  %v2250_v53 = vld [vmem:[%s3764_s1 + $0x10] sm:$0xff]  ;;  %v1939_v22 = vld [vmem:[%s2922_s10 + $0x458] sm:$0xff] }
 0x14c   : > { %2162 = vmatpush3.msra.mxu0 %v2248_v41  ;;  %1627 = vmatprep.subr.mxu1 %v2279_v19  ;;  %v1934_v2 = vld [vmem:[%s2922_s10 + $0x430] sm:$0xff] }
 0x14d   : > { %2163 = vmatprep.subr.mxu0 %v2249_v42  ;;  %1628 = vmatpush2.msra.mxu1 %v3786_v54  ;;  %v1998_v28 = vpop.f32.mrf.mxu0  ;;  %v2252_v54 = vld [vmem:[%s3764_s1 + $0x8] sm:$0xff] }
 0x14e   : > { %1907 = vmatprep.mubr.msk.f32.mxu0 %vm579_vm1, %v1897_v18  ;;  %2164 = vmatpush3.msra.mxu0 %v2250_v53  ;;  %v1936_v18 = vld [vmem:[%s2922_s10 + $0x440] sm:$0xff]  ;;  %v1941_v42 = vld [vmem:[%s2922_s10 + $0x468] sm:$0xff] }
 0x14f   : > { %1629 = vmatprep.subr.mxu1 %v2279_v19  ;;  %1394 = vmatmul.mubr.f32.gmra.mxu0 %v1896_v25  ;;  %v1999_v44 = vpop.f32.mrf.mxu0 }
 0x150   : > { %2165 = vmatprep.subr.mxu0 %v2251_v0  ;;  %1630 = vmatpush2.msra.mxu1 %v3787_v56  ;;  %v3518_v34 = vadd.f32 %v1999_v44, %v1998_v28  ;;  %v1938_v28 = vld [vmem:[%s2922_s10 + $0x450] sm:$0xff]  ;;  %v1940_v44 = vld [vmem:[%s2922_s10 + $0x460] sm:$0xff] }
 0x151   : > { %2166 = vmatpush3.msra.mxu0 %v2252_v54  ;;  %1631 = vmatprep.subr.mxu1 %v2279_v19  ;;  %v1943_v54 = vld [vmem:[%s2922_s10 + $0x478] sm:$0xff] }
 0x152   : > { %2167 = vmatprep.subr.mxu0 %v2253_v45  ;;  %v2001_v56 = vpop.f32.mrf.mxu0  ;;  %1632 = vmatpush2.msra.mxu1 %v3788_v57 }
 0x153   : > { %2168 = vmatpush3.msra.mxu0 %v2254_v40  ;;  %1527 = vmatprep.mubr.f32.mxu0 %v1909_v31 }
 0x154   : > { %1633 = vmatprep.subr.mxu1 %v2279_v19  ;;  %v2002_v49 = vpop.f32.mrf.mxu0  ;;  %1528 = vmatmul.mubr.f32.vlgmr.msra.gmra.mxu0 %v1908_v37 }
 0x155   : > { %1634 = vmatpush2.msra.mxu1 %v3789_v59  ;;  %v3534_v57 = vadd.f32 %v2002_v49, %v2001_v56  ;;  %1945 = vmatprep.mubr.msk.f32.mxu1 %vm579_vm1, %v1911_v43  ;;  %v1914_v59 = vld [vmem:[%s2922_s10 + $0x390] sm:$0xff] }
 0x156   : > { %1635 = vmatprep.subr.mxu1 %v2279_v19  ;;  %1532 = vmatprep.mubr.f32.mxu0 %v1913_v46  ;;  %v1916_v19 = vld [vmem:[%s2922_s10 + $0x3a0] sm:$0xff]  ;;  %v1942_v56 = vld [vmem:[%s2922_s10 + $0x470] sm:$0xff] }
 0x157   : > { %1636 = vmatpush2.msra.mxu1 %v3790_v63  ;;  %v2004_v55 = vpop.f32.mrf.mxu0  ;;  %v1918_v63 = vld [vmem:[%s2922_s10 + $0x3b0] sm:$0xff]  ;;  %s474_s10 = smul.u32 9, %s1798_s15 }
 0x158   : > { %1638 = vmatmul.mubr.f32.vlgmr.msra.gmra.mxu1 %v1910_v47  ;;  %1533 = vmatmul.mubr.f32.gmra.mxu0 %v1912_v48 }
 0x159   : > { %1946 = vmatprep.mubr.msk.f32.mxu1 %vm579_vm1, %v1915_v52  ;;  %1537 = vmatprep.mubr.f32.mxu0 %v1917_v50  ;;  %v2005_v60 = vpop.f32.mrf.mxu0  ;;  %p475_p8 = scmp.lt.s32.totalorder %s474_s10, 17 }
 0x15a   : > { %v3547_v62 = vadd.f32 %v2005_v60, %v2004_v55 }
 0x15b   : > { %s3795_s10 = smov (!%p475_p8, %s474_s10), 17 }
 0x15c   : > { %1643 = vmatmul.mubr.f32.gmra.mxu1 %v1914_v59  ;;  %1538 = vmatmul.mubr.f32.gmra.mxu0 %v1916_v19  ;;  %v2007_v4 = vpop.f32.mrf.mxu0  ;;  %s1805_s29 = sshll.u32 %s3795_s10, 3 }
 0x15d   : > { %1947 = vmatprep.mubr.msk.f32.mxu1 %vm579_vm1, %v1919_v51  ;;  %1542 = vmatprep.mubr.f32.mxu0 %v1921_v58  ;;  %s3689_s5 = scalar_lea.vmem %s3766_s3, %s1805_s29 }
 0x15e   : > { %v2008_v1 = vpop.f32.mrf.mxu0 }
 0x15f   : > { %v3554_v16 = vadd.f32 %v2008_v1, %v2007_v4 }
 0x160   : > { %1648 = vmatmul.mubr.f32.gmra.mxu1 %v1918_v63  ;;  %1543 = vmatmul.mubr.f32.gmra.mxu0 %v1920_v61  ;;  %v2010_v3 = vpop.f32.mrf.mxu0 }
 0x161   : > { %1948 = vmatprep.mubr.msk.f32.mxu1 %vm579_vm1, %v1923_v12  ;;  %1547 = vmatprep.mubr.f32.mxu0 %v1925_v10 }
 0x162   : > { %v2011_v21 = vpop.f32.mrf.mxu0 }
 0x163   : > { %v3561_v7 = vadd.f32 %v2011_v21, %v2010_v3 }
 0x164   : > { %1653 = vmatmul.mubr.f32.gmra.mxu1 %v1922_v17  ;;  %1548 = vmatmul.mubr.f32.gmra.mxu0 %v1924_v20 }
 0x165   : > { %1949 = vmatprep.mubr.msk.f32.mxu1 %vm579_vm1, %v1927_v5  ;;  %1552 = vmatprep.mubr.f32.mxu0 %v1929_v8  ;;  %v2013_v26 = vpop.f32.mrf.mxu0 }
 0x167   : > { %v2014_v11 = vpop.f32.mrf.mxu0 }
 0x168   : > { %1658 = vmatmul.mubr.f32.gmra.mxu1 %v1926_v23  ;;  %1553 = vmatmul.mubr.f32.gmra.mxu0 %v1928_v24  ;;  %v3570_v30 = vadd.f32 %v2014_v11, %v2013_v26  ;;  %v787_v13 = vpop.f32.mrf.mxu1 }
 0x169   : > { %1950 = vmatprep.mubr.msk.f32.mxu1 %vm579_vm1, %v1931_v9  ;;  %1557 = vmatprep.mubr.f32.mxu0 %v1933_v27  ;;  %v3575_v15 = vadd.f32 %v3476_v33, %v787_v13 }
 0x16a   : > { %v789_v38 = vpop.f32.mrf.mxu1 }
 0x16b   : > { %v2016_v36 = vpop.f32.mrf.mxu0 }
 0x16c   : > { %1663 = vmatmul.mubr.f32.gmra.mxu1 %v1930_v29  ;;  %1558 = vmatmul.mubr.f32.gmra.mxu0 %v1932_v32 }
 0x16d   : > { %1951 = vmatprep.mubr.msk.f32.mxu1 %vm579_vm1, %v1935_v14  ;;  %v2017_v39 = vpop.f32.mrf.mxu0  ;;  %1562 = vmatprep.mubr.f32.mxu0 %v1937_v35 }
 0x16e   : > { %v2018_v41 = vadd.f32 %v2017_v39, %v2016_v36  ;;  %v792_v25 = vpop.f32.mrf.mxu1 }
 0x16f   : > { %v3584_v33 = vadd.f32 %v3497_v6, %v792_v25 }
 0x170   : > { %1668 = vmatmul.mubr.f32.gmra.mxu1 %v1934_v2  ;;  %1563 = vmatmul.mubr.f32.gmra.mxu0 %v1936_v18  ;;  %v794_v53 = vpop.f32.mrf.mxu1 }
 0x171   : > { %1952 = vmatprep.mubr.msk.f32.mxu1 %vm579_vm1, %v1939_v22  ;;  %v2051_v0 = vpop.f32.mrf.mxu0  ;;  %1567 = vmatprep.mubr.f32.mxu0 %v1941_v42 }
 0x173   : > { %v2052_v31 = vpop.f32.mrf.mxu0 }
 0x174   : > { %1673 = vmatmul.mubr.f32.gmra.mxu1 %v1938_v28  ;;  %v797_v45 = vpop.f32.mrf.mxu1  ;;  %v2053_v37 = vadd.f32 %v2052_v31, %v2051_v0  ;;  %1568 = vmatmul.mubr.f32.gmra.mxu0 %v1940_v44 }
 0x175   : > { %1953 = vmatprep.mubr.msk.f32.mxu1 %vm579_vm1, %v1943_v54  ;;  %v3593_v6 = vadd.f32 %v3518_v34, %v797_v45 }
 0x176   : > { %v799_v40 = vpop.f32.mrf.mxu1  ;;  %v2054_v43 = vpop.f32.mrf.mxu0 }
 0x178   : > { %1678 = vmatmul.mubr.f32.gmra.mxu1 %v1942_v56  ;;  %v2055_v46 = vpop.f32.mrf.mxu0 }
 0x179   : > { %v802_v49 = vpop.f32.mrf.mxu1  ;;  %v2056_v47 = vadd.f32 %v2055_v46, %v2054_v43 }
 0x17a   : > { %v3596_v48 = vadd.f32 %v3534_v57, %v802_v49 }
 0x17b   : > { %v804_v52 = vpop.f32.mrf.mxu1 }
 0x17c   : > { %v2057_v50 = vpop.f32.mrf.mxu0 }
 0x17e   : > { %v2058_v55 = vpop.f32.mrf.mxu0 }
 0x17f   : > { %v807_v59 = vpop.f32.mrf.mxu1  ;;  %v2059_v19 = vadd.f32 %v2058_v55, %v2057_v50 }
 0x180   : > { %v3599_v51 = vadd.f32 %v3547_v62, %v807_v59 }
 0x181   : > { %v809_v60 = vpop.f32.mrf.mxu1 }
 0x182   : > { %v2060_v34 = vpop.f32.mrf.mxu0 }
 0x184   : > { %v2061_v58 = vpop.f32.mrf.mxu0 }
 0x185   : > { %v812_v63 = vpop.f32.mrf.mxu1  ;;  %v2062_v4 = vadd.f32 %v2061_v58, %v2060_v34 }
 0x186   : > { %v3602_v61 = vadd.f32 %v3554_v16, %v812_v63 }
 0x187   : > { %v814_v12 = vpop.f32.mrf.mxu1 }
 0x188   : > { %v2063_v10 = vpop.f32.mrf.mxu0 }
 0x18a   : > { %v2064_v1 = vpop.f32.mrf.mxu0 }
 0x18b   : > { %v817_v57 = vpop.f32.mrf.mxu1  ;;  %v2065_v3 = vadd.f32 %v2064_v1, %v2063_v10 }
 0x18c   : > { %v3605_v17 = vadd.f32 %v3561_v7, %v817_v57 }
 0x18d   : > { %v819_v20 = vpop.f32.mrf.mxu1 }
 0x18e   : > { %v2066_v5 = vpop.f32.mrf.mxu0 }
 0x190   : > { %v822_v62 = vpop.f32.mrf.mxu1  ;;  %v2067_v8 = vpop.f32.mrf.mxu0 }
 0x191   : > { %v3608_v21 = vadd.f32 %v3570_v30, %v822_v62  ;;  %v2068_v23 = vadd.f32 %v2067_v8, %v2066_v5 }
 0x192   : > { %v824_v24 = vpop.f32.mrf.mxu1 }
 0x193   : > { %v2069_v9 = vpop.f32.mrf.mxu0 }
 0x195   : > { %v2070_v16 = vpop.f32.mrf.mxu0 }
 0x196   : > { %v827_v26 = vpop.f32.mrf.mxu1  ;;  %v2071_v27 = vadd.f32 %v2070_v16, %v2069_v9 }
 0x197   : > { %v3610_v11 = vadd.f32 %v2018_v41, %v827_v26 }
 0x198   : > { %v829_v29 = vpop.f32.mrf.mxu1 }
 0x199   : > { %v2072_v13 = vpop.f32.mrf.mxu0 }
 0x19b   : > { %v2073_v7 = vpop.f32.mrf.mxu0 }
 0x19c   : > { %v2074_v32 = vadd.f32 %v2073_v7, %v2072_v13 }
 0x19e   : > { %v2075_v14 = vpop.f32.mrf.mxu0 }
 0x1a0   : > { %v2076_v35 = vpop.f32.mrf.mxu0 }
 0x1a1   : > { %v2077_v36 = vadd.f32 %v2076_v35, %v2075_v14 }
 0x1a4   : > { %v2110_v38 = vpop.f32.mrf.mxu0 }
 0x1a6   : > { %v2111_v2 = vpop.f32.mrf.mxu0 }
 0x1a7   : > { %v3612_v39 = vadd.f32 %v2111_v2, %v2110_v38 }
 0x1b8   : > { %v1071_v30 = vpop.f32.mrf.mxu1 }
 0x1b9   : > { %v3614_v18 = vadd.f32 %v2053_v37, %v1071_v30 }
 0x1ba   : > { %v1073_v22 = vpop.f32.mrf.mxu1 }
 0x1bb   : > { %v1683_v42 = vmax.f32 %v3575_v15, %v3614_v18 }
 0x1bc   : > { %v2113_v41 = vpop.f32.mrf.mxu0 }
 0x1bd   : > { %v1076_v25 = vpop.f32.mrf.mxu1 }
 0x1be   : > { %v3618_v28 = vadd.f32 %v2056_v47, %v1076_v25  ;;  %v2114_v53 = vpop.f32.mrf.mxu0 }
 0x1bf   : > { %v1078_v0 = vpop.f32.mrf.mxu1  ;;  %v3620_v44 = vadd.f32 %v2114_v53, %v2113_v41 }
 0x1c0   : > { %v1684_v54 = vmax.f32 %v3584_v33, %v3618_v28  ;;  %v2116_v31 = vpop.f32.mrf.mxu0 }
 0x1c1   : > { %v1081_v45 = vpop.f32.mrf.mxu1 }
 0x1c2   : > { %v3624_v56 = vadd.f32 %v2059_v19, %v1081_v45  ;;  %v2117_v37 = vpop.f32.mrf.mxu0 }
 0x1c3   : > { %v1083_v40 = vpop.f32.mrf.mxu1  ;;  %v3626_v43 = vadd.f32 %v2117_v37, %v2116_v31 }
 0x1c4   : > { %v1685_v46 = vmax.f32 %v3593_v6, %v3624_v56  ;;  %v2119_v49 = vpop.f32.mrf.mxu0 }
 0x1c5   : > { %v1086_v47 = vpop.f32.mrf.mxu1 }
 0x1c6   : > { %v3630_v52 = vadd.f32 %v2062_v4, %v1086_v47  ;;  %v2120_v50 = vpop.f32.mrf.mxu0 }
 0x1c7   : > { %v1088_v55 = vpop.f32.mrf.mxu1  ;;  %v3632_v59 = vadd.f32 %v2120_v50, %v2119_v49 }
 0x1c8   : > { %v1686_v60 = vmax.f32 %v3596_v48, %v3630_v52 }
 0x1c9   : > { %v1091_v19 = vpop.f32.mrf.mxu1 }
 0x1ca   : > { %v3636_v34 = vadd.f32 %v2065_v3, %v1091_v19 }
 0x1cb   : > { %v1093_v58 = vpop.f32.mrf.mxu1 }
 0x1cc   : > { %v1687_v63 = vmax.f32 %v3599_v51, %v3636_v34  ;;  %v2122_v12 = vpop.f32.mrf.mxu0 }
 0x1cd   : > { %v1096_v10 = vpop.f32.mrf.mxu1 }
 0x1ce   : > { %v3640_v57 = vadd.f32 %v2068_v23, %v1096_v10  ;;  %v2123_v4 = vpop.f32.mrf.mxu0 }
 0x1cf   : > { %v1098_v1 = vpop.f32.mrf.mxu1  ;;  %v3642_v20 = vadd.f32 %v2123_v4, %v2122_v12 }
 0x1d0   : > { %v1688_v5 = vmax.f32 %v3602_v61, %v3640_v57 }
 0x1d2   : > { %v2125_v62 = vpop.f32.mrf.mxu0  ;;  %v1101_v8 = vpop.f32.mrf.mxu1 }
 0x1d3   : > { %v3646_v24 = vadd.f32 %v2071_v27, %v1101_v8 }
 0x1d4   : > { %v2126_v3 = vpop.f32.mrf.mxu0  ;;  %v1103_v9 = vpop.f32.mrf.mxu1 }
 0x1d5   : > { %v3648_v16 = vadd.f32 %v2126_v3, %v2125_v62  ;;  %v1689_v26 = vmax.f32 %v3605_v17, %v3646_v24 }
 0x1d8   : > { %v2128_v23 = vpop.f32.mrf.mxu0  ;;  %v1106_v29 = vpop.f32.mrf.mxu1 }
 0x1d9   : > { %v3652_v13 = vadd.f32 %v2074_v32, %v1106_v29 }
 0x1da   : > { %v2129_v7 = vpop.f32.mrf.mxu0  ;;  %v1108_v14 = vpop.f32.mrf.mxu1 }
 0x1db   : > { %v3654_v35 = vadd.f32 %v2129_v7, %v2128_v23  ;;  %v1690_v38 = vmax.f32 %v3608_v21, %v3652_v13 }
 0x1de   : > { %v2131_v27 = vpop.f32.mrf.mxu0  ;;  %v1111_v2 = vpop.f32.mrf.mxu1 }
 0x1df   : > { %v3658_v30 = vadd.f32 %v2077_v36, %v1111_v2 }
 0x1e0   : > { %v2132_v22 = vpop.f32.mrf.mxu0  ;;  %v1113_v25 = vpop.f32.mrf.mxu1 }
 0x1e1   : > { %v3660_v41 = vadd.f32 %v2132_v22, %v2131_v27  ;;  %v1691_v53 = vmax.f32 %v3610_v11, %v3658_v30 }
 0x1e3   : > { %v2134_v32 = vpop.f32.mrf.mxu0 }
 0x1e5   : > { %v2135_v0 = vpop.f32.mrf.mxu0 }
 0x1e6   : > { %v3664_v31 = vadd.f32 %v2135_v0, %v2134_v32 }
 0x1e9   : > { %v1355_v45 = vpop.f32.mrf.mxu0 }
 0x1ea   : > { %v1356_v2 = vadd.f32 %v3612_v39, %v1355_v45 }
 0x1eb   : > { %v1357_v37 = vpop.f32.mrf.mxu0 }
 0x1ee   : > { %v1360_v40 = vpop.f32.mrf.mxu0 }
 0x1f0   : > { %v1362_v49 = vpop.f32.mrf.mxu0 }
 0x1f3   : > { %v1365_v47 = vpop.f32.mrf.mxu0 }
 0x1f4   : > { %v1366_v15 = vadd.f32 %v3626_v43, %v1365_v47 }
 0x1f5   : > { %v1367_v50 = vpop.f32.mrf.mxu0 }
 0x1f6   : > { %v3680_v50 = vld [vmem:[%s3765_s2] ss:$0 sm:$0xff] }
 0x1f7   : > { %v1370_v36 = vpop.f32.mrf.mxu0 }
 0x1f9   : > { %v1372_v55 = vpop.f32.mrf.mxu0 }
 0x1fc   : > { %v1375_v19 = vpop.f32.mrf.mxu0 }
 0x1fe   : > { %v1377_v58 = vpop.f32.mrf.mxu0 }
 0x1ff   : > { %v1361_v58 = vadd.f32 %v3620_v44, %v1360_v40 }
 0x201   : > { %v3666_v12 = vpop.f32.mrf.mxu0 }
 0x203   : > { %v1382_v10 = vpop.f32.mrf.mxu0 }
 0x206   : > { %v3668_v4 = vpop.f32.mrf.mxu0 }
 0x208   : > { %v1387_v1 = vpop.f32.mrf.mxu0 }
 0x20b   : > { %v3670_v62 = vpop.f32.mrf.mxu0 }
 0x20d   : > { %v1392_v8 = vpop.f32.mrf.mxu0 }
 0x20f   : > { %v3672_v3 = vpop.f32.mrf.mxu0 }
 0x211   : > { %v1397_v9 = vpop.f32.mrf.mxu0 }
 0x214   : > { %v2169_v23 = vpop.f32.mrf.mxu0 }
 0x216   : > { %v2170_v29 = vpop.f32.mrf.mxu0 }
 0x217   : > { %v2171_v7 = vadd.f32 %v2170_v29, %v2169_v23 }
 0x218   : > { %v1639_v14 = vpop.f32.mrf.mxu1  ;;  %v2172_v27 = vpop.f32.mrf.mxu0 }
 0x219   : > { %v1640_v22 = vadd.f32 %v2171_v7, %v1639_v14 }
 0x21a   : > { %v1641_v25 = vpop.f32.mrf.mxu1  ;;  %v2173_v32 = vpop.f32.mrf.mxu0 }
 0x21b   : > { %v1692_v0 = vmax.f32 %v1356_v2, %v1640_v22  ;;  %v2174_v37 = vadd.f32 %v2173_v32, %v2172_v27  ;;  %v1371_v32 = vadd.f32 %v3632_v59, %v1370_v36 }
 0x21c   : > { %v1644_v49 = vpop.f32.mrf.mxu1  ;;  %v2175_v55 = vpop.f32.mrf.mxu0 }
 0x21d   : > { %v1701_v10 = vmax.f32 %v1683_v42, %v1692_v0  ;;  %v1645_v39 = vadd.f32 %v2174_v37, %v1644_v49 }
 0x21e   : > { %v1646_v45 = vpop.f32.mrf.mxu1  ;;  %v2176_v1 = vpop.f32.mrf.mxu0 }
 0x21f   : > { %v1717_v8 = vadd.f32 %v3680_v50, %v1701_v10  ;;  %v1693_v9 = vmax.f32 %v1361_v58, %v1645_v39  ;;  %v2177_v23 = vadd.f32 %v2176_v1, %v2175_v55  ;;  %v1376_v58 = vadd.f32 %v3642_v20, %v1375_v19 }
 0x220   : > { %v1649_v44 = vpop.f32.mrf.mxu1  ;;  %v2178_v40 = vpop.f32.mrf.mxu0 }
 0x221   : > { %1727 = vst.msk [vmem:[%s3689_s5] sm:$0xff] %vm1726_vm2, %v1717_v8  ;;  %v1702_v18 = vmax.f32 %v1684_v54, %v1693_v9  ;;  %v1650_v42 = vadd.f32 %v2177_v23, %v1649_v44  ;;  %v1381_v8 = vadd.f32 %v3648_v16, %v3666_v12 }
 0x222   : > { %v1651_v29 = vpop.f32.mrf.mxu1  ;;  %v2179_v7 = vpop.f32.mrf.mxu0 }
 0x223   : > { %v1718_v14 = vadd.f32 %v3680_v50, %v1702_v18  ;;  %v1694_v27 = vmax.f32 %v1366_v15, %v1650_v42  ;;  %v2180_v2 = vadd.f32 %v2179_v7, %v2178_v40  ;;  %v1386_v15 = vadd.f32 %v3654_v35, %v3668_v4 }
 0x224   : > { %v1654_v22 = vpop.f32.mrf.mxu1  ;;  %v2181_v25 = vpop.f32.mrf.mxu0 }
 0x225   : > { %1728 = vst.msk [vmem:[%s3689_s5 + $0x8] sm:$0xff] %vm1726_vm2, %v1718_v14  ;;  %v1703_v43 = vmax.f32 %v1685_v46, %v1694_v27  ;;  %v1655_v33 = vadd.f32 %v2180_v2, %v1654_v22  ;;  %v1391_v14 = vadd.f32 %v3660_v41, %v3670_v62 }
 0x226   : > { %v1656_v28 = vpop.f32.mrf.mxu1  ;;  %v2182_v54 = vpop.f32.mrf.mxu0 }
 0x227   : > { %v1719_v47 = vadd.f32 %v3680_v50, %v1703_v43  ;;  %v1695_v0 = vmax.f32 %v1371_v32, %v1655_v33  ;;  %v2183_v37 = vadd.f32 %v2182_v54, %v2181_v25  ;;  %v1396_v25 = vadd.f32 %v3664_v31, %v3672_v3 }
 0x228   : > { %v1659_v49 = vpop.f32.mrf.mxu1  ;;  %v2184_v55 = vpop.f32.mrf.mxu0 }
 0x229   : > { %1729 = vst.msk [vmem:[%s3689_s5 + $0x10] sm:$0xff] %vm1726_vm2, %v1719_v47  ;;  %v1704_v59 = vmax.f32 %v1686_v60, %v1695_v0  ;;  %v1660_v6 = vadd.f32 %v2183_v37, %v1659_v49 }
 0x22a   : > { %v1661_v56 = vpop.f32.mrf.mxu1  ;;  %v2185_v46 = vpop.f32.mrf.mxu0 }
 0x22b   : > { %v1720_v36 = vadd.f32 %v3680_v50, %v1704_v59  ;;  %v1696_v10 = vmax.f32 %v1376_v58, %v1660_v6  ;;  %v2186_v39 = vadd.f32 %v2185_v46, %v2184_v55 }
 0x22c   : > { %v1664_v45 = vpop.f32.mrf.mxu1  ;;  %v2187_v1 = vpop.f32.mrf.mxu0 }
 0x22d   : > { %1730 = vst.msk [vmem:[%s3689_s5 + $0x18] sm:$0xff] %vm1726_vm2, %v1720_v36  ;;  %v1705_v48 = vmax.f32 %v1687_v63, %v1696_v10  ;;  %v1665_v52 = vadd.f32 %v2186_v39, %v1664_v45 }
 0x22e   : > { %v1666_v60 = vpop.f32.mrf.mxu1  ;;  %v2188_v20 = vpop.f32.mrf.mxu0 }
 0x22f   : > { %v1721_v19 = vadd.f32 %v3680_v50, %v1705_v48  ;;  %v1697_v9 = vmax.f32 %v1381_v8, %v1665_v52  ;;  %v2189_v23 = vadd.f32 %v2188_v20, %v2187_v1 }
 0x230   : > { %v1669_v44 = vpop.f32.mrf.mxu1  ;;  %v2190_v40 = vpop.f32.mrf.mxu0 }
 0x231   : > { %1731 = vst.msk [vmem:[%s3689_s5 + $0x20] sm:$0xff] %vm1726_vm2, %v1721_v19  ;;  %v1706_v51 = vmax.f32 %v1688_v5, %v1697_v9  ;;  %v1670_v34 = vadd.f32 %v2189_v23, %v1669_v44 }
 0x232   : > { %v1671_v63 = vpop.f32.mrf.mxu1  ;;  %v2191_v16 = vpop.f32.mrf.mxu0 }
 0x233   : > { %v1722_v12 = vadd.f32 %v3680_v50, %v1706_v51  ;;  %v1698_v18 = vmax.f32 %v1386_v15, %v1670_v34  ;;  %v2192_v42 = vadd.f32 %v2191_v16, %v2190_v40 }
 0x234   : > { %v1674_v29 = vpop.f32.mrf.mxu1  ;;  %v2193_v7 = vpop.f32.mrf.mxu0 }
 0x235   : > { %1732 = vst.msk [vmem:[%s3689_s5 + $0x28] sm:$0xff] %vm1726_vm2, %v1722_v12  ;;  %v1707_v61 = vmax.f32 %v1689_v26, %v1698_v18  ;;  %v1675_v57 = vadd.f32 %v2192_v42, %v1674_v29 }
 0x236   : > { %v1676_v5 = vpop.f32.mrf.mxu1  ;;  %v2194_v35 = vpop.f32.mrf.mxu0 }
 0x237   : > { %v1723_v4 = vadd.f32 %v3680_v50, %v1707_v61  ;;  %v1699_v27 = vmax.f32 %v1391_v14, %v1675_v57  ;;  %v2195_v2 = vadd.f32 %v2194_v35, %v2193_v7 }
 0x238   : > { %v1679_v22 = vpop.f32.mrf.mxu1 }
 0x239   : > { %1733 = vst.msk [vmem:[%s3689_s5 + $0x30] sm:$0xff] %vm1726_vm2, %v1723_v4  ;;  %v1708_v17 = vmax.f32 %v1690_v38, %v1699_v27  ;;  %v1680_v24 = vadd.f32 %v2195_v2, %v1679_v22 }
 0x23a   : > { %v1681_v26 = vpop.f32.mrf.mxu1 }
 0x23b   : > { %v1724_v41 = vadd.f32 %v3680_v50, %v1708_v17  ;;  %v1700_v62 = vmax.f32 %v1396_v25, %v1680_v24 }
 0x23d   : > { %1734 = vst.msk [vmem:[%s3689_s5 + $0x38] sm:$0xff] %vm1726_vm2, %v1724_v41  ;;  %v1709_v32 = vmax.f32 %v1691_v53, %v1700_v62 }
 0x23f   : > { %v1725_v43 = vadd.f32 %v3680_v50, %v1709_v32 }
 0x241   : > { %1735 = vst.msk [vmem:[%s3689_s5 + $0x40] sm:$0xff] %vm1726_vm2, %v1725_v43 }
 0x242 PF: > { %p10_p9 = scmp.ge.s32.totalorder %s2317_s16, 4   ;;  %s3791_s12 = smov %s2273_s13 }
 0x243   : > { %s3792_s13 = smov %s2326_s19  ;;  %s3793_s14 = smov %s2317_s16 }
 0x244   :  { %12 = sbr.rel (!%p10_p9) target bundleno = 2 (0x2), region = 93 }

// kernel: forward.5
= control target key start
LH: loop header
LB: loop body
LE: loop exit
PB: predicated region body
PF: predicated region fallthrough
CT: control target
= control target key end

     0   :  { %v9498_v36 = vmov 1983009808   ;;  %v48_v38 = vlaneseq  ;;  %vm5650_vm0 = vcmask 130048   ;;  %s12770_s0 = inlined_call_operand.vmem [shape: f32[2,3600], index: 0, kind: input, shape index: {}]   ;;  %s12771_s1 = inlined_call_operand.vmem [shape: f32[2,2], index: 1, kind: input, shape index: {}]   ;;  %s12772_s2 = inlined_call_operand.vmem [shape: bf16[3600,512], index: 2, kind: input, shape index: {}]   ;;  %s12773_s3 = inlined_call_operand.vmem [shape: f32[1,512], index: 3, kind: input, shape index: {}]   ;;  %s12774_s4 = inlined_call_operand.vmem [shape: f32[512,2], index: 4, kind: input, shape index: {}]   ;;  %s12775_s5 = inlined_call_operand.vmem [shape: f32[2,2], index: 5, kind: input, shape index: {}]   ;;  %s12776_s6 = inlined_call_operand.vmem [shape: f32[1,2], index: 6, kind: input, shape index: {}]   ;;  %s12777_s7 = inlined_call_operand.hbm [shape: f32[2,2], index: 7, kind: output, shape index: {}]  }
   0x1   :  { %v8118_v0 = vld [vmem:[%s12772_s2 + $0xe4] ss:$16 sps:$4 sm:$0xff]   ;;  %v8122_v2 = vld [vmem:[%s12772_s2 + $0xe0] ss:$16 sps:$4 sm:$0xff]   ;;  %v46_v37 = vunpack.c.l.s4 %v9498_v36 }
   0x2   :  { %v8120_v1 = vld [vmem:[%s12772_s2 + $0x2e4] ss:$16 sps:$4 sm:$0xff]   ;;  %5654 = vmatprep.subr.bf16.mxu0 %v8118_v0  ;;  %v8123_v3 = vld [vmem:[%s12772_s2 + $0x2e0] ss:$16 sps:$4 sm:$0xff]   ;;  %v9659_v43 = vshrl.u32 %v48_v38, 7 }
   0x3   :  { %5695 = vmatprep.subr.bf16.mxu1 %v8120_v1  ;;  %v8124_v4 = vld [vmem:[%s12772_s2 + $0xc4] ss:$16 sps:$4 sm:$0xff]   ;;  %5655 = vmatpush1.bf16.msra.mxu0 %v8122_v2  ;;  %v8128_v6 = vld [vmem:[%s12772_s2 + $0xc0] ss:$16 sps:$4 sm:$0xff]   ;;  %v47_v42 = vunpack.c.0.s8 %v46_v37 }
   0x4   :  { %5696 = vmatpush1.bf16.msra.mxu1 %v8123_v3  ;;  %v8126_v5 = vld [vmem:[%s12772_s2 + $0x2c4] ss:$16 sps:$4 sm:$0xff]   ;;  %5656 = vmatprep.subr.bf16.mxu0 %v8124_v4  ;;  %v8129_v7 = vld [vmem:[%s12772_s2 + $0x2c0] ss:$16 sps:$4 sm:$0xff]  }
   0x5   :  { %5697 = vmatprep.subr.bf16.mxu1 %v8126_v5  ;;  %v8130_v8 = vld [vmem:[%s12772_s2 + $0xa4] ss:$16 sps:$4 sm:$0xff]   ;;  %v8134_v10 = vld [vmem:[%s12772_s2 + $0xa0] ss:$16 sps:$4 sm:$0xff]   ;;  %v9677_v49 = vsub.s32 %v47_v42, %v9659_v43  ;;  %v29_v42 = vld [vmem:[%s12770_s0 + $0x8] sm:$0xff] }
   0x6   :  { %v8132_v9 = vld [vmem:[%s12772_s2 + $0x2a4] ss:$16 sps:$4 sm:$0xff]   ;;  %v8135_v11 = vld [vmem:[%s12772_s2 + $0x2a0] ss:$16 sps:$4 sm:$0xff]  }
   0x7   :  { %5657 = vmatpush1.bf16.msra.mxu0 %v8128_v6  ;;  %v8136_v12 = vld [vmem:[%s12772_s2 + $0x84] ss:$16 sps:$4 sm:$0xff]   ;;  %v8140_v14 = vld [vmem:[%s12772_s2 + $0x80] ss:$16 sps:$4 sm:$0xff]  }
   0x8   :  { %5698 = vmatpush1.bf16.msra.mxu1 %v8129_v7  ;;  %5658 = vmatprep.subr.bf16.mxu0 %v8130_v8  ;;  %v8138_v13 = vld [vmem:[%s12772_s2 + $0x284] ss:$16 sps:$4 sm:$0xff]   ;;  %v8141_v15 = vld [vmem:[%s12772_s2 + $0x280] ss:$16 sps:$4 sm:$0xff]  }
   0x9   :  { %5699 = vmatprep.subr.bf16.mxu1 %v8132_v9  ;;  %v8142_v16 = vld [vmem:[%s12772_s2 + $0x64] ss:$16 sps:$4 sm:$0xff]   ;;  %v8146_v18 = vld [vmem:[%s12772_s2 + $0x60] ss:$16 sps:$4 sm:$0xff]  }
   0xa   :  { %v8144_v17 = vld [vmem:[%s12772_s2 + $0x264] ss:$16 sps:$4 sm:$0xff]   ;;  %v8147_v19 = vld [vmem:[%s12772_s2 + $0x260] ss:$16 sps:$4 sm:$0xff]  }
   0xb   :  { %5659 = vmatpush1.bf16.msra.mxu0 %v8134_v10  ;;  %v8148_v20 = vld [vmem:[%s12772_s2 + $0x44] ss:$16 sps:$4 sm:$0xff]   ;;  %v8152_v22 = vld [vmem:[%s12772_s2 + $0x40] ss:$16 sps:$4 sm:$0xff]  }
   0xc   :  { %5700 = vmatpush1.bf16.msra.mxu1 %v8135_v11  ;;  %5660 = vmatprep.subr.bf16.mxu0 %v8136_v12  ;;  %v8150_v21 = vld [vmem:[%s12772_s2 + $0x244] ss:$16 sps:$4 sm:$0xff]   ;;  %v8153_v23 = vld [vmem:[%s12772_s2 + $0x240] ss:$16 sps:$4 sm:$0xff]  }
   0xd   :  { %5701 = vmatprep.subr.bf16.mxu1 %v8138_v13  ;;  %v8154_v24 = vld [vmem:[%s12772_s2 + $0x24] ss:$16 sps:$4 sm:$0xff]   ;;  %v8158_v26 = vld [vmem:[%s12772_s2 + $0x20] ss:$16 sps:$4 sm:$0xff]  }
   0xe   :  { %v8156_v25 = vld [vmem:[%s12772_s2 + $0x224] ss:$16 sps:$4 sm:$0xff]   ;;  %v8159_v27 = vld [vmem:[%s12772_s2 + $0x220] ss:$16 sps:$4 sm:$0xff]  }
   0xf   :  { %5661 = vmatpush1.bf16.msra.mxu0 %v8140_v14  ;;  %v8160_v28 = vld [vmem:[%s12772_s2 + $0x4] ss:$16 sps:$4 sm:$0xff]   ;;  %v8164_v30 = vld [vmem:[%s12772_s2] ss:$16 sps:$4 sm:$0xff]  }
  0x10   :  { %5702 = vmatpush1.bf16.msra.mxu1 %v8141_v15  ;;  %5662 = vmatprep.subr.bf16.mxu0 %v8142_v16  ;;  %v8162_v29 = vld [vmem:[%s12772_s2 + $0x204] ss:$16 sps:$4 sm:$0xff]   ;;  %v8165_v31 = vld [vmem:[%s12772_s2 + $0x200] ss:$16 sps:$4 sm:$0xff]  }
  0x11   :  { %5703 = vmatprep.subr.bf16.mxu1 %v8144_v17  ;;  %v8166_v32 = vld [vmem:[%s12772_s2 + $0x1e4] ss:$16 sps:$4 sm:$0xff]   ;;  %v8170_v34 = vld [vmem:[%s12772_s2 + $0x1e0] ss:$16 sps:$4 sm:$0xff]  }
  0x12   :  { %v8168_v33 = vld [vmem:[%s12772_s2 + $0x3e4] ss:$16 sps:$4 sm:$0xff]   ;;  %v8171_v35 = vld [vmem:[%s12772_s2 + $0x3e0] ss:$16 sps:$4 sm:$0xff]  }
  0x13   :  { %5663 = vmatpush1.bf16.msra.mxu0 %v8146_v18  ;;  %v8172_v39 = vld [vmem:[%s12772_s2 + $0x1c4] ss:$16 sps:$4 sm:$0xff]   ;;  %v8176_v41 = vld [vmem:[%s12772_s2 + $0x1c0] ss:$16 sps:$4 sm:$0xff]  }
  0x14   :  { %5704 = vmatpush1.bf16.msra.mxu1 %v8147_v19  ;;  %5664 = vmatprep.subr.bf16.mxu0 %v8148_v20  ;;  %v8174_v40 = vld [vmem:[%s12772_s2 + $0x3c4] ss:$16 sps:$4 sm:$0xff]   ;;  %v8177_v44 = vld [vmem:[%s12772_s2 + $0x3c0] ss:$16 sps:$4 sm:$0xff]  }
  0x15   :  { %5705 = vmatprep.subr.bf16.mxu1 %v8150_v21  ;;  %v8178_v45 = vld [vmem:[%s12772_s2 + $0x1a4] ss:$16 sps:$4 sm:$0xff]   ;;  %v8182_v47 = vld [vmem:[%s12772_s2 + $0x1a0] ss:$16 sps:$4 sm:$0xff]  }
  0x16   :  { %v8180_v46 = vld [vmem:[%s12772_s2 + $0x3a4] ss:$16 sps:$4 sm:$0xff]   ;;  %v8183_v48 = vld [vmem:[%s12772_s2 + $0x3a0] ss:$16 sps:$4 sm:$0xff]  }
  0x17   :  { %5665 = vmatpush1.bf16.msra.mxu0 %v8152_v22  ;;  %v8184_v50 = vld [vmem:[%s12772_s2 + $0x184] ss:$16 sps:$4 sm:$0xff]   ;;  %v8188_v53 = vld [vmem:[%s12772_s2 + $0x180] ss:$16 sps:$4 sm:$0xff]  }
  0x18   :  { %5706 = vmatpush1.bf16.msra.mxu1 %v8153_v23  ;;  %5666 = vmatprep.subr.bf16.mxu0 %v8154_v24  ;;  %v8186_v51 = vld [vmem:[%s12772_s2 + $0x384] ss:$16 sps:$4 sm:$0xff]   ;;  %v8189_v56 = vld [vmem:[%s12772_s2 + $0x380] ss:$16 sps:$4 sm:$0xff]  }
  0x19   :  { %5707 = vmatprep.subr.bf16.mxu1 %v8156_v25  ;;  %v28_v52 = vld [vmem:[%s12770_s0] sm:$0xff] }
  0x1a   :  { %v51_v54 = vrot.slane %v28_v52, %v9677_v49  ;;  %v44_v55 = vcombine.high %v28_v52, %v28_v52  ;;  %v8190_v57 = vld [vmem:[%s12772_s2 + $0x164] ss:$16 sps:$4 sm:$0xff]   ;;  %v8194_v61 = vld [vmem:[%s12772_s2 + $0x160] ss:$16 sps:$4 sm:$0xff]  }
  0x1b   :  { %5667 = vmatpush1.bf16.msra.mxu0 %v8158_v26  ;;  %v8192_v58 = vld [vmem:[%s12772_s2 + $0x364] ss:$16 sps:$4 sm:$0xff]   ;;  %v8195_v0 = vld [vmem:[%s12772_s2 + $0x360] ss:$16 sps:$4 sm:$0xff]  }
  0x1c   :  { %5708 = vmatpush1.bf16.msra.mxu1 %v8159_v27  ;;  %5668 = vmatprep.subr.bf16.mxu0 %v8160_v28  ;;  %v59_v59 = vcombine.high %v51_v54, %v51_v54  ;;  %v58_v60 = vrot.slane %v44_v55, %v9677_v49  ;;  %v8196_v1 = vld [vmem:[%s12772_s2 + $0x144] ss:$16 sps:$4 sm:$0xff]   ;;  %v8200_v4 = vld [vmem:[%s12772_s2 + $0x140] ss:$16 sps:$4 sm:$0xff]   ;;  %v9756_v16 = vpack.c.bf16 %v51_v54, %v51_v54 }
  0x1d   :  { %5709 = vmatprep.subr.bf16.mxu1 %v8162_v29  ;;  %v8198_v2 = vld [vmem:[%s12772_s2 + $0x344] ss:$16 sps:$4 sm:$0xff]   ;;  %v8201_v5 = vld [vmem:[%s12772_s2 + $0x340] ss:$16 sps:$4 sm:$0xff]  }
  0x1e   :  { %v9705_v62 = vpack.c.bf16 %v59_v59, %v59_v59  ;;  %v60_v63 = vcombine.high %v58_v60, %v58_v60  ;;  %v8202_v6 = vld [vmem:[%s12772_s2 + $0x124] ss:$16 sps:$4 sm:$0xff]   ;;  %v8206_v8 = vld [vmem:[%s12772_s2 + $0x120] ss:$16 sps:$4 sm:$0xff]   ;;  %v9758_v17 = vpack.c.bf16 %v58_v60, %v58_v60 }
  0x1f   :  { %5669 = vmatpush1.bf16.msra.mxu0 %v8164_v30  ;;  %v8204_v7 = vld [vmem:[%s12772_s2 + $0x324] ss:$16 sps:$4 sm:$0xff]   ;;  %v8207_v9 = vld [vmem:[%s12772_s2 + $0x320] ss:$16 sps:$4 sm:$0xff]  }
  0x20   :  { %5710 = vmatpush1.bf16.msra.mxu1 %v8165_v31  ;;  %5670 = vmatprep.subr.bf16.mxu0 %v8166_v32  ;;  %v9716_v3 = vpack.c.bf16 %v60_v63, %v60_v63  ;;  %v8208_v10 = vld [vmem:[%s12772_s2 + $0x104] ss:$16 sps:$4 sm:$0xff]   ;;  %v8212_v12 = vld [vmem:[%s12772_s2 + $0x100] ss:$16 sps:$4 sm:$0xff]  }
  0x21   :  { %5711 = vmatprep.subr.bf16.mxu1 %v8168_v33  ;;  %5686 = vmatprep.mubr.bf16.mxu0 %v9705_v62  ;;  %v8210_v11 = vld [vmem:[%s12772_s2 + $0x304] ss:$16 sps:$4 sm:$0xff]   ;;  %v8213_v13 = vld [vmem:[%s12772_s2 + $0x300] ss:$16 sps:$4 sm:$0xff]  }
  0x22   :  { %5727 = vmatprep.mubr.bf16.mxu1 %v9716_v3  ;;  %v8217_v14 = vld [vmem:[%s12772_s2 + $0x4e4] ss:$16 sps:$4 sm:$0xff]   ;;  %v8215_v18 = vld [vmem:[%s12772_s2 + $0x4e0] ss:$16 sps:$4 sm:$0xff]  }
  0x23   :  { %5671 = vmatpush2.bf16.msra.mxu0 %v8170_v34  ;;  %v8220_v15 = vld [vmem:[%s12772_s2 + $0x6e4] ss:$16 sps:$4 sm:$0xff]   ;;  %v8218_v19 = vld [vmem:[%s12772_s2 + $0x6e0] ss:$16 sps:$4 sm:$0xff]  }
  0x24   :  { %5712 = vmatpush2.bf16.msra.mxu1 %v8171_v35  ;;  %5672 = vmatprep.subr.bf16.mxu0 %v8172_v39  ;;  %v8223_v20 = vld [vmem:[%s12772_s2 + $0x4c4] ss:$16 sps:$4 sm:$0xff]   ;;  %v8221_v22 = vld [vmem:[%s12772_s2 + $0x4c0] ss:$16 sps:$4 sm:$0xff]  }
  0x25   :  { %5713 = vmatprep.subr.bf16.mxu1 %v8174_v40  ;;  %v8226_v21 = vld [vmem:[%s12772_s2 + $0x6c4] ss:$16 sps:$4 sm:$0xff]   ;;  %v8224_v23 = vld [vmem:[%s12772_s2 + $0x6c0] ss:$16 sps:$4 sm:$0xff]  }
  0x26   :  { %v8229_v24 = vld [vmem:[%s12772_s2 + $0x4a4] ss:$16 sps:$4 sm:$0xff]   ;;  %v8227_v26 = vld [vmem:[%s12772_s2 + $0x4a0] ss:$16 sps:$4 sm:$0xff]  }
  0x27   :  { %5673 = vmatpush2.bf16.msra.mxu0 %v8176_v41  ;;  %v8232_v25 = vld [vmem:[%s12772_s2 + $0x6a4] ss:$16 sps:$4 sm:$0xff]   ;;  %v8230_v27 = vld [vmem:[%s12772_s2 + $0x6a0] ss:$16 sps:$4 sm:$0xff]  }
  0x28   :  { %5714 = vmatpush2.bf16.msra.mxu1 %v8177_v44  ;;  %5674 = vmatprep.subr.bf16.mxu0 %v8178_v45  ;;  %v8235_v28 = vld [vmem:[%s12772_s2 + $0x484] ss:$16 sps:$4 sm:$0xff]   ;;  %v8233_v30 = vld [vmem:[%s12772_s2 + $0x480] ss:$16 sps:$4 sm:$0xff]   ;;  %v9838_v44 = vrot.slane %v29_v42, %v9677_v49  ;;  %v61_v45 = vcombine.high %v29_v42, %v29_v42 }
  0x29   :  { %5715 = vmatprep.subr.bf16.mxu1 %v8180_v46  ;;  %v8238_v29 = vld [vmem:[%s12772_s2 + $0x684] ss:$16 sps:$4 sm:$0xff]   ;;  %v8236_v31 = vld [vmem:[%s12772_s2 + $0x680] ss:$16 sps:$4 sm:$0xff]  }
  0x2a   :  { %v8241_v32 = vld [vmem:[%s12772_s2 + $0x464] ss:$16 sps:$4 sm:$0xff]   ;;  %v8239_v34 = vld [vmem:[%s12772_s2 + $0x460] ss:$16 sps:$4 sm:$0xff]  }
  0x2b   :  { %5675 = vmatpush2.bf16.msra.mxu0 %v8182_v47  ;;  %v8244_v33 = vld [vmem:[%s12772_s2 + $0x664] ss:$16 sps:$4 sm:$0xff]   ;;  %v8242_v35 = vld [vmem:[%s12772_s2 + $0x660] ss:$16 sps:$4 sm:$0xff]  }
  0x2c   :  { %5716 = vmatpush2.bf16.msra.mxu1 %v8183_v48  ;;  %5676 = vmatprep.subr.bf16.mxu0 %v8184_v50  ;;  %v8247_v36 = vld [vmem:[%s12772_s2 + $0x444] ss:$16 sps:$4 sm:$0xff]   ;;  %v8245_v38 = vld [vmem:[%s12772_s2 + $0x440] ss:$16 sps:$4 sm:$0xff]   ;;  %v76_v48 = vcombine.high %v9838_v44, %v9838_v44  ;;  %v9849_v50 = vrot.slane %v61_v45, %v9677_v49 }
  0x2d   :  { %5717 = vmatprep.subr.bf16.mxu1 %v8186_v51  ;;  %v8250_v37 = vld [vmem:[%s12772_s2 + $0x644] ss:$16 sps:$4 sm:$0xff]   ;;  %v8248_v39 = vld [vmem:[%s12772_s2 + $0x640] ss:$16 sps:$4 sm:$0xff]  }
  0x2e   :  { %v8253_v40 = vld [vmem:[%s12772_s2 + $0x424] ss:$16 sps:$4 sm:$0xff]   ;;  %v8251_v46 = vld [vmem:[%s12772_s2 + $0x420] ss:$16 sps:$4 sm:$0xff]   ;;  %v77_v54 = vcombine.high %v9849_v50, %v9849_v50 }
  0x2f   :  { %5677 = vmatpush2.bf16.msra.mxu0 %v8188_v53  ;;  %v8256_v41 = vld [vmem:[%s12772_s2 + $0x624] ss:$16 sps:$4 sm:$0xff]   ;;  %v8254_v47 = vld [vmem:[%s12772_s2 + $0x620] ss:$16 sps:$4 sm:$0xff]   ;;  %v9857_v53 = vpack.c.bf16 %v76_v48, %v76_v48 }
  0x30   :  { %5718 = vmatpush2.bf16.msra.mxu1 %v8189_v56  ;;  %5678 = vmatprep.subr.bf16.mxu0 %v8190_v57  ;;  %v8259_v51 = vld [vmem:[%s12772_s2 + $0x404] ss:$16 sps:$4 sm:$0xff]   ;;  %v8257_v55 = vld [vmem:[%s12772_s2 + $0x400] ss:$16 sps:$4 sm:$0xff]   ;;  %v9867_v57 = vpack.c.bf16 %v77_v54, %v77_v54 }
  0x31   :  { %5719 = vmatprep.subr.bf16.mxu1 %v8192_v58  ;;  %v8262_v52 = vld [vmem:[%s12772_s2 + $0x604] ss:$16 sps:$4 sm:$0xff]   ;;  %v8260_v56 = vld [vmem:[%s12772_s2 + $0x600] ss:$16 sps:$4 sm:$0xff]  }
  0x32   :  { %v8265_v58 = vld [vmem:[%s12772_s2 + $0x5e4] ss:$16 sps:$4 sm:$0xff]   ;;  %v8263_v60 = vld [vmem:[%s12772_s2 + $0x5e0] ss:$16 sps:$4 sm:$0xff]  }
  0x33   :  { %5679 = vmatpush2.bf16.msra.mxu0 %v8194_v61  ;;  %v8268_v59 = vld [vmem:[%s12772_s2 + $0x7e4] ss:$16 sps:$4 sm:$0xff]   ;;  %v8266_v61 = vld [vmem:[%s12772_s2 + $0x7e0] ss:$16 sps:$4 sm:$0xff]  }
  0x34   :  { %5720 = vmatpush2.bf16.msra.mxu1 %v8195_v0  ;;  %5680 = vmatprep.subr.bf16.mxu0 %v8196_v1  ;;  %v8271_v63 = vld [vmem:[%s12772_s2 + $0x5c4] ss:$16 sps:$4 sm:$0xff]   ;;  %v8269_v1 = vld [vmem:[%s12772_s2 + $0x5c0] ss:$16 sps:$4 sm:$0xff]  }
  0x35   :  { %5721 = vmatprep.subr.bf16.mxu1 %v8198_v2  ;;  %v8274_v0 = vld [vmem:[%s12772_s2 + $0x7c4] ss:$16 sps:$4 sm:$0xff]   ;;  %v8272_v2 = vld [vmem:[%s12772_s2 + $0x7c0] ss:$16 sps:$4 sm:$0xff]  }
  0x36   :  { %v8321_v45 = vld [vmem:[%s12772_s2 + $0xac0] ss:$16 sps:$4 sm:$0xff]  }
  0x37   :  { %5681 = vmatpush2.bf16.msra.mxu0 %v8200_v4  ;;  %v8277_v4 = vld [vmem:[%s12772_s2 + $0x5a4] ss:$16 sps:$4 sm:$0xff]   ;;  %v8327_v54 = vld [vmem:[%s12772_s2 + $0xaa0] ss:$16 sps:$4 sm:$0xff]  }
  0x38   :  { %5722 = vmatpush2.bf16.msra.mxu1 %v8201_v5  ;;  %5682 = vmatprep.subr.bf16.mxu0 %v8202_v6  ;;  %v8280_v5 = vld [vmem:[%s12772_s2 + $0x7a4] ss:$16 sps:$4 sm:$0xff]   ;;  %v8275_v6 = vld [vmem:[%s12772_s2 + $0x5a0] ss:$16 sps:$4 sm:$0xff]  }
  0x39   :  { %5723 = vmatprep.subr.bf16.mxu1 %v8204_v7  ;;  %v8278_v7 = vld [vmem:[%s12772_s2 + $0x7a0] ss:$16 sps:$4 sm:$0xff]  }
  0x3b   :  { %5683 = vmatpush2.bf16.msra.mxu0 %v8206_v8  ;;  %v8283_v8 = vld [vmem:[%s12772_s2 + $0x584] ss:$16 sps:$4 sm:$0xff]  }
  0x3c   :  { %5724 = vmatpush2.bf16.msra.mxu1 %v8207_v9  ;;  %5684 = vmatprep.subr.bf16.mxu0 %v8208_v10  ;;  %v8286_v9 = vld [vmem:[%s12772_s2 + $0x784] ss:$16 sps:$4 sm:$0xff]   ;;  %v8281_v10 = vld [vmem:[%s12772_s2 + $0x580] ss:$16 sps:$4 sm:$0xff]  }
  0x3d   :  { %5725 = vmatprep.subr.bf16.mxu1 %v8210_v11  ;;  %v8284_v11 = vld [vmem:[%s12772_s2 + $0x780] ss:$16 sps:$4 sm:$0xff]  }
  0x3f   :  { %5685 = vmatpush2.bf16.msra.mxu0 %v8212_v12  ;;  %v8289_v12 = vld [vmem:[%s12772_s2 + $0x564] ss:$16 sps:$4 sm:$0xff]  }
  0x40   :  { %5726 = vmatpush2.bf16.msra.mxu1 %v8213_v13  ;;  %5736 = vmatprep.subr.bf16.mxu0 %v8217_v14  ;;  %v8292_v13 = vld [vmem:[%s12772_s2 + $0x764] ss:$16 sps:$4 sm:$0xff]   ;;  %v8287_v14 = vld [vmem:[%s12772_s2 + $0x560] ss:$16 sps:$4 sm:$0xff]  }
  0x41   :  { %5777 = vmatprep.subr.bf16.mxu1 %v8220_v15  ;;  %v8290_v15 = vld [vmem:[%s12772_s2 + $0x760] ss:$16 sps:$4 sm:$0xff]  }
  0x42   :  { %5687 = vmatmul.mubr.bf16.vlgmr.msra.gmra.mxu0 %v9756_v16 }
  0x43   :  { %5728 = vmatmul.mubr.bf16.vlgmr.msra.gmra.mxu1 %v9758_v17  ;;  %5737 = vmatpush1.bf16.msra.mxu0 %v8215_v18  ;;  %v8295_v18 = vld [vmem:[%s12772_s2 + $0x544] ss:$16 sps:$4 sm:$0xff]  }
  0x44   :  { %5778 = vmatpush1.bf16.msra.mxu1 %v8218_v19  ;;  %5738 = vmatprep.subr.bf16.mxu0 %v8223_v20  ;;  %v8298_v19 = vld [vmem:[%s12772_s2 + $0x744] ss:$16 sps:$4 sm:$0xff]   ;;  %v8293_v20 = vld [vmem:[%s12772_s2 + $0x540] ss:$16 sps:$4 sm:$0xff]  }
  0x45   :  { %5779 = vmatprep.subr.bf16.mxu1 %v8226_v21  ;;  %5768 = vmatprep.mubr.bf16.mxu0 %v9857_v53  ;;  %v8296_v21 = vld [vmem:[%s12772_s2 + $0x740] ss:$16 sps:$4 sm:$0xff]  }
  0x46   :  { %5809 = vmatprep.mubr.bf16.mxu1 %v9867_v57 }
  0x47   :  { %5739 = vmatpush1.bf16.msra.mxu0 %v8221_v22  ;;  %v8301_v22 = vld [vmem:[%s12772_s2 + $0x524] ss:$16 sps:$4 sm:$0xff]  }
  0x48   :  { %5780 = vmatpush1.bf16.msra.mxu1 %v8224_v23  ;;  %5740 = vmatprep.subr.bf16.mxu0 %v8229_v24  ;;  %v8304_v23 = vld [vmem:[%s12772_s2 + $0x724] ss:$16 sps:$4 sm:$0xff]   ;;  %v8299_v24 = vld [vmem:[%s12772_s2 + $0x520] ss:$16 sps:$4 sm:$0xff]  }
  0x49   :  { %5781 = vmatprep.subr.bf16.mxu1 %v8232_v25  ;;  %v8302_v25 = vld [vmem:[%s12772_s2 + $0x720] ss:$16 sps:$4 sm:$0xff]  }
  0x4b   :  { %5741 = vmatpush1.bf16.msra.mxu0 %v8227_v26  ;;  %v8307_v26 = vld [vmem:[%s12772_s2 + $0x504] ss:$16 sps:$4 sm:$0xff]  }
  0x4c   :  { %5782 = vmatpush1.bf16.msra.mxu1 %v8230_v27  ;;  %5742 = vmatprep.subr.bf16.mxu0 %v8235_v28  ;;  %v8310_v27 = vld [vmem:[%s12772_s2 + $0x704] ss:$16 sps:$4 sm:$0xff]   ;;  %v8305_v28 = vld [vmem:[%s12772_s2 + $0x500] ss:$16 sps:$4 sm:$0xff]  }
  0x4d   :  { %5783 = vmatprep.subr.bf16.mxu1 %v8238_v29  ;;  %v8308_v29 = vld [vmem:[%s12772_s2 + $0x700] ss:$16 sps:$4 sm:$0xff]  }
  0x4f   :  { %5743 = vmatpush1.bf16.msra.mxu0 %v8233_v30  ;;  %v8314_v30 = vld [vmem:[%s12772_s2 + $0x8e4] ss:$16 sps:$4 sm:$0xff]  }
  0x50   :  { %5784 = vmatpush1.bf16.msra.mxu1 %v8236_v31  ;;  %5744 = vmatprep.subr.bf16.mxu0 %v8241_v32  ;;  %v8317_v31 = vld [vmem:[%s12772_s2 + $0xae4] ss:$16 sps:$4 sm:$0xff]   ;;  %v9975_v32 = vpack.c.bf16 %v9838_v44, %v9838_v44 }
  0x51   :  { %5785 = vmatprep.subr.bf16.mxu1 %v8244_v33  ;;  %v9979_v33 = vpack.c.bf16 %v9849_v50, %v9849_v50 }
  0x53   :  { %5745 = vmatpush1.bf16.msra.mxu0 %v8239_v34  ;;  %v8312_v34 = vld [vmem:[%s12772_s2 + $0x8e0] ss:$16 sps:$4 sm:$0xff]  }
  0x54   :  { %5786 = vmatpush1.bf16.msra.mxu1 %v8242_v35  ;;  %5746 = vmatprep.subr.bf16.mxu0 %v8247_v36  ;;  %v8315_v35 = vld [vmem:[%s12772_s2 + $0xae0] ss:$16 sps:$4 sm:$0xff]   ;;  %v8320_v36 = vld [vmem:[%s12772_s2 + $0x8c4] ss:$16 sps:$4 sm:$0xff]  }
  0x55   :  { %5787 = vmatprep.subr.bf16.mxu1 %v8250_v37  ;;  %v30_v37 = vld [vmem:[%s12770_s0 + $0x10] sm:$0xff] }
  0x57   :  { %5747 = vmatpush1.bf16.msra.mxu0 %v8245_v38  ;;  %v8323_v38 = vld [vmem:[%s12772_s2 + $0xac4] ss:$16 sps:$4 sm:$0xff]  }
  0x58   :  { %5788 = vmatpush1.bf16.msra.mxu1 %v8248_v39  ;;  %5748 = vmatprep.subr.bf16.mxu0 %v8253_v40  ;;  %v9997_v39 = vrot.slane %v30_v37, %v9677_v49  ;;  %v78_v40 = vcombine.high %v30_v37, %v30_v37  ;;  %v8387_v37 = vld [vmem:[%s12772_s2 + $0xb60] ss:$16 sps:$4 sm:$0xff]  }
  0x59   :  { %5789 = vmatprep.subr.bf16.mxu1 %v8256_v41  ;;  %v8318_v41 = vld [vmem:[%s12772_s2 + $0x8c0] ss:$16 sps:$4 sm:$0xff]  }
  0x5a   :  { %v93_v42 = vcombine.high %v9997_v39, %v9997_v39  ;;  %v10007_v44 = vrot.slane %v78_v40, %v9677_v49  ;;  %v8395_v40 = vld [vmem:[%s12772_s2 + $0xb44] ss:$16 sps:$4 sm:$0xff]  }
  0x5b   :  { %5749 = vmatpush1.bf16.msra.mxu0 %v8251_v46  ;;  %v8326_v46 = vld [vmem:[%s12772_s2 + $0x8a4] ss:$16 sps:$4 sm:$0xff]  }
  0x5c   :  { %5790 = vmatpush1.bf16.msra.mxu1 %v8254_v47  ;;  %5750 = vmatprep.subr.bf16.mxu0 %v8259_v51  ;;  %v8329_v47 = vld [vmem:[%s12772_s2 + $0xaa4] ss:$16 sps:$4 sm:$0xff]   ;;  %v10018_v48 = vpack.c.bf16 %v93_v42, %v93_v42  ;;  %v94_v50 = vcombine.high %v10007_v44, %v10007_v44  ;;  %v8324_v51 = vld [vmem:[%s12772_s2 + $0x8a0] ss:$16 sps:$4 sm:$0xff]   ;;  %v31_v42 = vld [vmem:[%s12770_s0 + $0x18] sm:$0xff] }
  0x5d   :  { %5791 = vmatprep.subr.bf16.mxu1 %v8262_v52 }
  0x5e   :  { %v10026_v52 = vpack.c.bf16 %v94_v50, %v94_v50  ;;  %v95_v50 = vcombine.high %v31_v42, %v31_v42 }
  0x5f   :  { %5751 = vmatpush1.bf16.msra.mxu0 %v8257_v55  ;;  %v8332_v55 = vld [vmem:[%s12772_s2 + $0x884] ss:$16 sps:$4 sm:$0xff]  }
  0x60   :  { %5792 = vmatpush1.bf16.msra.mxu1 %v8260_v56  ;;  %5752 = vmatprep.subr.bf16.mxu0 %v8265_v58  ;;  %v8335_v56 = vld [vmem:[%s12772_s2 + $0xa84] ss:$16 sps:$4 sm:$0xff]   ;;  %v8330_v58 = vld [vmem:[%s12772_s2 + $0x880] ss:$16 sps:$4 sm:$0xff]  }
  0x61   :  { %5793 = vmatprep.subr.bf16.mxu1 %v8268_v59  ;;  %v8333_v59 = vld [vmem:[%s12772_s2 + $0xa80] ss:$16 sps:$4 sm:$0xff]  }
  0x63   :  { %5753 = vmatpush2.bf16.msra.mxu0 %v8263_v60  ;;  %v8338_v60 = vld [vmem:[%s12772_s2 + $0x864] ss:$16 sps:$4 sm:$0xff]  }
  0x64   :  { %5794 = vmatpush2.bf16.msra.mxu1 %v8266_v61  ;;  %5754 = vmatprep.subr.bf16.mxu0 %v8271_v63  ;;  %v8341_v61 = vld [vmem:[%s12772_s2 + $0xa64] ss:$16 sps:$4 sm:$0xff]   ;;  %v8336_v63 = vld [vmem:[%s12772_s2 + $0x860] ss:$16 sps:$4 sm:$0xff]  }
  0x65   :  { %5795 = vmatprep.subr.bf16.mxu1 %v8274_v0  ;;  %v8339_v0 = vld [vmem:[%s12772_s2 + $0xa60] ss:$16 sps:$4 sm:$0xff]  }
  0x67   :  { %5755 = vmatpush2.bf16.msra.mxu0 %v8269_v1  ;;  %v8344_v1 = vld [vmem:[%s12772_s2 + $0x844] ss:$16 sps:$4 sm:$0xff]  }
  0x68   :  { %5796 = vmatpush2.bf16.msra.mxu1 %v8272_v2  ;;  %5756 = vmatprep.subr.bf16.mxu0 %v8277_v4  ;;  %v8347_v2 = vld [vmem:[%s12772_s2 + $0xa44] ss:$16 sps:$4 sm:$0xff]   ;;  %v8342_v4 = vld [vmem:[%s12772_s2 + $0x840] ss:$16 sps:$4 sm:$0xff]  }
  0x69   :  { %5797 = vmatprep.subr.bf16.mxu1 %v8280_v5  ;;  %v8345_v5 = vld [vmem:[%s12772_s2 + $0xa40] ss:$16 sps:$4 sm:$0xff]  }
  0x6b   :  { %5757 = vmatpush2.bf16.msra.mxu0 %v8275_v6  ;;  %v8350_v6 = vld [vmem:[%s12772_s2 + $0x824] ss:$16 sps:$4 sm:$0xff]  }
  0x6c   :  { %5798 = vmatpush2.bf16.msra.mxu1 %v8278_v7  ;;  %5758 = vmatprep.subr.bf16.mxu0 %v8283_v8  ;;  %v8353_v7 = vld [vmem:[%s12772_s2 + $0xa24] ss:$16 sps:$4 sm:$0xff]   ;;  %v8348_v8 = vld [vmem:[%s12772_s2 + $0x820] ss:$16 sps:$4 sm:$0xff]  }
  0x6d   :  { %5799 = vmatprep.subr.bf16.mxu1 %v8286_v9  ;;  %v8351_v9 = vld [vmem:[%s12772_s2 + $0xa20] ss:$16 sps:$4 sm:$0xff]  }
  0x6f   :  { %5759 = vmatpush2.bf16.msra.mxu0 %v8281_v10  ;;  %v8356_v10 = vld [vmem:[%s12772_s2 + $0x804] ss:$16 sps:$4 sm:$0xff]  }
  0x70   :  { %5800 = vmatpush2.bf16.msra.mxu1 %v8284_v11  ;;  %5760 = vmatprep.subr.bf16.mxu0 %v8289_v12  ;;  %v8359_v11 = vld [vmem:[%s12772_s2 + $0xa04] ss:$16 sps:$4 sm:$0xff]   ;;  %v8354_v12 = vld [vmem:[%s12772_s2 + $0x800] ss:$16 sps:$4 sm:$0xff]  }
  0x71   :  { %5801 = vmatprep.subr.bf16.mxu1 %v8292_v13  ;;  %v8357_v13 = vld [vmem:[%s12772_s2 + $0xa00] ss:$16 sps:$4 sm:$0xff]  }
  0x73   :  { %5761 = vmatpush2.bf16.msra.mxu0 %v8287_v14  ;;  %v8362_v14 = vld [vmem:[%s12772_s2 + $0x9e4] ss:$16 sps:$4 sm:$0xff]  }
  0x74   :  { %5802 = vmatpush2.bf16.msra.mxu1 %v8290_v15  ;;  %5762 = vmatprep.subr.bf16.mxu0 %v8295_v18  ;;  %v8365_v15 = vld [vmem:[%s12772_s2 + $0xbe4] ss:$16 sps:$4 sm:$0xff]   ;;  %v8360_v18 = vld [vmem:[%s12772_s2 + $0x9e0] ss:$16 sps:$4 sm:$0xff]  }
  0x75   :  { %5803 = vmatprep.subr.bf16.mxu1 %v8298_v19  ;;  %v8363_v19 = vld [vmem:[%s12772_s2 + $0xbe0] ss:$16 sps:$4 sm:$0xff]  }
  0x77   :  { %5763 = vmatpush2.bf16.msra.mxu0 %v8293_v20  ;;  %v8368_v20 = vld [vmem:[%s12772_s2 + $0x9c4] ss:$16 sps:$4 sm:$0xff]  }
  0x78   :  { %5804 = vmatpush2.bf16.msra.mxu1 %v8296_v21  ;;  %5764 = vmatprep.subr.bf16.mxu0 %v8301_v22  ;;  %v8371_v21 = vld [vmem:[%s12772_s2 + $0xbc4] ss:$16 sps:$4 sm:$0xff]   ;;  %v8366_v22 = vld [vmem:[%s12772_s2 + $0x9c0] ss:$16 sps:$4 sm:$0xff]  }
  0x79   :  { %5805 = vmatprep.subr.bf16.mxu1 %v8304_v23  ;;  %v8369_v23 = vld [vmem:[%s12772_s2 + $0xbc0] ss:$16 sps:$4 sm:$0xff]  }
  0x7b   :  { %5765 = vmatpush2.bf16.msra.mxu0 %v8299_v24  ;;  %v8374_v24 = vld [vmem:[%s12772_s2 + $0x9a4] ss:$16 sps:$4 sm:$0xff]  }
  0x7c   :  { %5806 = vmatpush2.bf16.msra.mxu1 %v8302_v25  ;;  %5766 = vmatprep.subr.bf16.mxu0 %v8307_v26  ;;  %v8377_v25 = vld [vmem:[%s12772_s2 + $0xba4] ss:$16 sps:$4 sm:$0xff]   ;;  %v8372_v26 = vld [vmem:[%s12772_s2 + $0x9a0] ss:$16 sps:$4 sm:$0xff]  }
  0x7d   :  { %5807 = vmatprep.subr.bf16.mxu1 %v8310_v27  ;;  %v8375_v27 = vld [vmem:[%s12772_s2 + $0xba0] ss:$16 sps:$4 sm:$0xff]  }
  0x7f   :  { %5767 = vmatpush2.bf16.msra.mxu0 %v8305_v28  ;;  %v8380_v28 = vld [vmem:[%s12772_s2 + $0x984] ss:$16 sps:$4 sm:$0xff]  }
  0x80   :  { %5808 = vmatpush2.bf16.msra.mxu1 %v8308_v29  ;;  %5818 = vmatprep.subr.bf16.mxu0 %v8314_v30  ;;  %v8383_v29 = vld [vmem:[%s12772_s2 + $0xb84] ss:$16 sps:$4 sm:$0xff]   ;;  %v8378_v30 = vld [vmem:[%s12772_s2 + $0x980] ss:$16 sps:$4 sm:$0xff]  }
  0x81   :  { %5859 = vmatprep.subr.bf16.mxu1 %v8317_v31  ;;  %v8381_v31 = vld [vmem:[%s12772_s2 + $0xb80] ss:$16 sps:$4 sm:$0xff]  }
  0x82   :  { %5769 = vmatmul.mubr.bf16.vlgmr.msra.gmra.mxu0 %v9975_v32 }
  0x83   :  { %5810 = vmatmul.mubr.bf16.vlgmr.msra.gmra.mxu1 %v9979_v33  ;;  %5819 = vmatpush1.bf16.msra.mxu0 %v8312_v34  ;;  %v8386_v34 = vld [vmem:[%s12772_s2 + $0x964] ss:$16 sps:$4 sm:$0xff]  }
  0x84   :  { %5860 = vmatpush1.bf16.msra.mxu1 %v8315_v35  ;;  %5820 = vmatprep.subr.bf16.mxu0 %v8320_v36  ;;  %v8389_v35 = vld [vmem:[%s12772_s2 + $0xb64] ss:$16 sps:$4 sm:$0xff]   ;;  %v8384_v36 = vld [vmem:[%s12772_s2 + $0x960] ss:$16 sps:$4 sm:$0xff]  }
  0x85   :  { %5861 = vmatprep.subr.bf16.mxu1 %v8323_v38  ;;  %5850 = vmatprep.mubr.bf16.mxu0 %v10018_v48  ;;  %v8392_v38 = vld [vmem:[%s12772_s2 + $0x944] ss:$16 sps:$4 sm:$0xff]  }
  0x86   :  { %5891 = vmatprep.mubr.bf16.mxu1 %v10026_v52 }
  0x87   :  { %5821 = vmatpush1.bf16.msra.mxu0 %v8318_v41  ;;  %v8390_v41 = vld [vmem:[%s12772_s2 + $0x940] ss:$16 sps:$4 sm:$0xff]  }
  0x88   :  { %5862 = vmatpush1.bf16.msra.mxu1 %v8321_v45  ;;  %5822 = vmatprep.subr.bf16.mxu0 %v8326_v46  ;;  %v8393_v45 = vld [vmem:[%s12772_s2 + $0xb40] ss:$16 sps:$4 sm:$0xff]   ;;  %v8398_v46 = vld [vmem:[%s12772_s2 + $0x924] ss:$16 sps:$4 sm:$0xff]  }
  0x89   :  { %5863 = vmatprep.subr.bf16.mxu1 %v8329_v47  ;;  %v8401_v47 = vld [vmem:[%s12772_s2 + $0xb24] ss:$16 sps:$4 sm:$0xff]  }
  0x8b   :  { %5823 = vmatpush1.bf16.msra.mxu0 %v8324_v51  ;;  %v8396_v51 = vld [vmem:[%s12772_s2 + $0x920] ss:$16 sps:$4 sm:$0xff]  }
  0x8c   :  { %5864 = vmatpush1.bf16.msra.mxu1 %v8327_v54  ;;  %5824 = vmatprep.subr.bf16.mxu0 %v8332_v55  ;;  %v8399_v54 = vld [vmem:[%s12772_s2 + $0xb20] ss:$16 sps:$4 sm:$0xff]   ;;  %v8404_v55 = vld [vmem:[%s12772_s2 + $0x904] ss:$16 sps:$4 sm:$0xff]  }
  0x8d   :  { %5865 = vmatprep.subr.bf16.mxu1 %v8335_v56  ;;  %v8407_v56 = vld [vmem:[%s12772_s2 + $0xb04] ss:$16 sps:$4 sm:$0xff]  }
  0x8f   :  { %5825 = vmatpush1.bf16.msra.mxu0 %v8330_v58  ;;  %v10186_v58 = vrot.slane %v31_v42, %v9677_v49  ;;  %v8462_v42 = vld [vmem:[%s12772_s2 + $0xfe4] ss:$16 sps:$4 sm:$0xff]  }
  0x90   :  { %5866 = vmatpush1.bf16.msra.mxu1 %v8333_v59  ;;  %5826 = vmatprep.subr.bf16.mxu0 %v8338_v60  ;;  %v10189_v59 = vrot.slane %v95_v50, %v9677_v49  ;;  %v8402_v60 = vld [vmem:[%s12772_s2 + $0x900] ss:$16 sps:$4 sm:$0xff]   ;;  %v8468_v50 = vld [vmem:[%s12772_s2 + $0xfc4] ss:$16 sps:$4 sm:$0xff]  }
  0x91   :  { %5867 = vmatprep.subr.bf16.mxu1 %v8341_v61  ;;  %v8405_v61 = vld [vmem:[%s12772_s2 + $0xb00] ss:$16 sps:$4 sm:$0xff]  }
  0x93   :  { %5827 = vmatpush1.bf16.msra.mxu0 %v8336_v63  ;;  %v8411_v63 = vld [vmem:[%s12772_s2 + $0xce4] ss:$16 sps:$4 sm:$0xff]  }
  0x94   :  { %5868 = vmatpush1.bf16.msra.mxu1 %v8339_v0  ;;  %5828 = vmatprep.subr.bf16.mxu0 %v8344_v1  ;;  %v8414_v0 = vld [vmem:[%s12772_s2 + $0xee4] ss:$16 sps:$4 sm:$0xff]   ;;  %v110_v1 = vcombine.high %v10186_v58, %v10186_v58 }
  0x95   :  { %5869 = vmatprep.subr.bf16.mxu1 %v8347_v2  ;;  %v111_v2 = vcombine.high %v10189_v59, %v10189_v59 }
  0x97   :  { %5829 = vmatpush1.bf16.msra.mxu0 %v8342_v4  ;;  %v10209_v4 = vpack.c.bf16 %v9997_v39, %v9997_v39  ;;  %v8417_v39 = vld [vmem:[%s12772_s2 + $0xcc4] ss:$16 sps:$4 sm:$0xff]  }
  0x98   :  { %5870 = vmatpush1.bf16.msra.mxu1 %v8345_v5  ;;  %5830 = vmatprep.subr.bf16.mxu0 %v8350_v6  ;;  %v10213_v5 = vpack.c.bf16 %v10007_v44, %v10007_v44  ;;  %v8409_v6 = vld [vmem:[%s12772_s2 + $0xce0] ss:$16 sps:$4 sm:$0xff]   ;;  %v8420_v44 = vld [vmem:[%s12772_s2 + $0xec4] ss:$16 sps:$4 sm:$0xff]  }
  0x99   :  { %5871 = vmatprep.subr.bf16.mxu1 %v8353_v7  ;;  %v8412_v7 = vld [vmem:[%s12772_s2 + $0xee0] ss:$16 sps:$4 sm:$0xff]  }
  0x9b   :  { %5831 = vmatpush1.bf16.msra.mxu0 %v8348_v8  ;;  %v10227_v8 = vpack.c.bf16 %v110_v1, %v110_v1  ;;  %v8475_v1 = vld [vmem:[%s12772_s2 + $0xd80] ss:$16 sps:$4 sm:$0xff]  }
  0x9c   :  { %5872 = vmatpush1.bf16.msra.mxu1 %v8351_v9  ;;  %5832 = vmatprep.subr.bf16.mxu0 %v8356_v10  ;;  %v10229_v9 = vpack.c.bf16 %v111_v2, %v111_v2  ;;  %v8415_v10 = vld [vmem:[%s12772_s2 + $0xcc0] ss:$16 sps:$4 sm:$0xff]  }
  0x9d   :  { %5873 = vmatprep.subr.bf16.mxu1 %v8359_v11  ;;  %v8418_v11 = vld [vmem:[%s12772_s2 + $0xec0] ss:$16 sps:$4 sm:$0xff]  }
  0x9e   :  { %v8478_v2 = vld [vmem:[%s12772_s2 + $0xf80] ss:$16 sps:$4 sm:$0xff]  }
  0x9f   :  { %5833 = vmatpush1.bf16.msra.mxu0 %v8354_v12  ;;  %v8423_v12 = vld [vmem:[%s12772_s2 + $0xca4] ss:$16 sps:$4 sm:$0xff]  }
  0xa0   :  { %5874 = vmatpush1.bf16.msra.mxu1 %v8357_v13  ;;  %5834 = vmatprep.subr.bf16.mxu0 %v8362_v14  ;;  %v8426_v13 = vld [vmem:[%s12772_s2 + $0xea4] ss:$16 sps:$4 sm:$0xff]   ;;  %v8421_v14 = vld [vmem:[%s12772_s2 + $0xca0] ss:$16 sps:$4 sm:$0xff]  }
  0xa1   :  { %5875 = vmatprep.subr.bf16.mxu1 %v8365_v15  ;;  %v8424_v15 = vld [vmem:[%s12772_s2 + $0xea0] ss:$16 sps:$4 sm:$0xff]  }
  0xa3   :  { %5835 = vmatpush2.bf16.msra.mxu0 %v8360_v18  ;;  %v8429_v18 = vld [vmem:[%s12772_s2 + $0xc84] ss:$16 sps:$4 sm:$0xff]  }
  0xa4   :  { %5876 = vmatpush2.bf16.msra.mxu1 %v8363_v19  ;;  %5836 = vmatprep.subr.bf16.mxu0 %v8368_v20  ;;  %v8432_v19 = vld [vmem:[%s12772_s2 + $0xe84] ss:$16 sps:$4 sm:$0xff]   ;;  %v8427_v20 = vld [vmem:[%s12772_s2 + $0xc80] ss:$16 sps:$4 sm:$0xff]  }
  0xa5   :  { %5877 = vmatprep.subr.bf16.mxu1 %v8371_v21  ;;  %v8430_v21 = vld [vmem:[%s12772_s2 + $0xe80] ss:$16 sps:$4 sm:$0xff]  }
  0xa7   :  { %5837 = vmatpush2.bf16.msra.mxu0 %v8366_v22  ;;  %v8435_v22 = vld [vmem:[%s12772_s2 + $0xc64] ss:$16 sps:$4 sm:$0xff]  }
  0xa8   :  { %5878 = vmatpush2.bf16.msra.mxu1 %v8369_v23  ;;  %5838 = vmatprep.subr.bf16.mxu0 %v8374_v24  ;;  %v8438_v23 = vld [vmem:[%s12772_s2 + $0xe64] ss:$16 sps:$4 sm:$0xff]   ;;  %v8433_v24 = vld [vmem:[%s12772_s2 + $0xc60] ss:$16 sps:$4 sm:$0xff]  }
  0xa9   :  { %5879 = vmatprep.subr.bf16.mxu1 %v8377_v25  ;;  %v8436_v25 = vld [vmem:[%s12772_s2 + $0xe60] ss:$16 sps:$4 sm:$0xff]  }
  0xab   :  { %5839 = vmatpush2.bf16.msra.mxu0 %v8372_v26  ;;  %v8441_v26 = vld [vmem:[%s12772_s2 + $0xc44] ss:$16 sps:$4 sm:$0xff]  }
  0xac   :  { %5880 = vmatpush2.bf16.msra.mxu1 %v8375_v27  ;;  %5840 = vmatprep.subr.bf16.mxu0 %v8380_v28  ;;  %v8444_v27 = vld [vmem:[%s12772_s2 + $0xe44] ss:$16 sps:$4 sm:$0xff]   ;;  %v8439_v28 = vld [vmem:[%s12772_s2 + $0xc40] ss:$16 sps:$4 sm:$0xff]  }
  0xad   :  { %5881 = vmatprep.subr.bf16.mxu1 %v8383_v29  ;;  %v8442_v29 = vld [vmem:[%s12772_s2 + $0xe40] ss:$16 sps:$4 sm:$0xff]  }
  0xaf   :  { %5841 = vmatpush2.bf16.msra.mxu0 %v8378_v30  ;;  %v8447_v30 = vld [vmem:[%s12772_s2 + $0xc24] ss:$16 sps:$4 sm:$0xff]  }
  0xb0   :  { %5882 = vmatpush2.bf16.msra.mxu1 %v8381_v31  ;;  %5842 = vmatprep.subr.bf16.mxu0 %v8386_v34  ;;  %v8450_v31 = vld [vmem:[%s12772_s2 + $0xe24] ss:$16 sps:$4 sm:$0xff]   ;;  %v8445_v34 = vld [vmem:[%s12772_s2 + $0xc20] ss:$16 sps:$4 sm:$0xff]  }
  0xb1   :  { %5883 = vmatprep.subr.bf16.mxu1 %v8389_v35  ;;  %v8448_v35 = vld [vmem:[%s12772_s2 + $0xe20] ss:$16 sps:$4 sm:$0xff]  }
  0xb3   :  { %5843 = vmatpush2.bf16.msra.mxu0 %v8384_v36  ;;  %v8453_v36 = vld [vmem:[%s12772_s2 + $0xc04] ss:$16 sps:$4 sm:$0xff]  }
  0xb4   :  { %5884 = vmatpush2.bf16.msra.mxu1 %v8387_v37  ;;  %5844 = vmatprep.subr.bf16.mxu0 %v8392_v38  ;;  %v8456_v37 = vld [vmem:[%s12772_s2 + $0xe04] ss:$16 sps:$4 sm:$0xff]   ;;  %v8451_v38 = vld [vmem:[%s12772_s2 + $0xc00] ss:$16 sps:$4 sm:$0xff]  }
  0xb5   :  { %5885 = vmatprep.subr.bf16.mxu1 %v8395_v40  ;;  %v8454_v40 = vld [vmem:[%s12772_s2 + $0xe00] ss:$16 sps:$4 sm:$0xff]  }
  0xb7   :  { %5845 = vmatpush2.bf16.msra.mxu0 %v8390_v41  ;;  %v8459_v41 = vld [vmem:[%s12772_s2 + $0xde4] ss:$16 sps:$4 sm:$0xff]  }
  0xb8   :  { %5886 = vmatpush2.bf16.msra.mxu1 %v8393_v45  ;;  %5846 = vmatprep.subr.bf16.mxu0 %v8398_v46  ;;  %v8457_v45 = vld [vmem:[%s12772_s2 + $0xde0] ss:$16 sps:$4 sm:$0xff]  }
  0xb9   :  { %5887 = vmatprep.subr.bf16.mxu1 %v8401_v47  ;;  %v8460_v46 = vld [vmem:[%s12772_s2 + $0xfe0] ss:$16 sps:$4 sm:$0xff]   ;;  %v8465_v47 = vld [vmem:[%s12772_s2 + $0xdc4] ss:$16 sps:$4 sm:$0xff]  }
  0xbb   :  { %5847 = vmatpush2.bf16.msra.mxu0 %v8396_v51  ;;  %v8463_v51 = vld [vmem:[%s12772_s2 + $0xdc0] ss:$16 sps:$4 sm:$0xff]  }
  0xbc   :  { %5888 = vmatpush2.bf16.msra.mxu1 %v8399_v54  ;;  %5848 = vmatprep.subr.bf16.mxu0 %v8404_v55  ;;  %v8466_v54 = vld [vmem:[%s12772_s2 + $0xfc0] ss:$16 sps:$4 sm:$0xff]   ;;  %v8471_v55 = vld [vmem:[%s12772_s2 + $0xda4] ss:$16 sps:$4 sm:$0xff]  }
  0xbd   :  { %5889 = vmatprep.subr.bf16.mxu1 %v8407_v56  ;;  %v8474_v56 = vld [vmem:[%s12772_s2 + $0xfa4] ss:$16 sps:$4 sm:$0xff]  }
  0xbf   :  { %5849 = vmatpush2.bf16.msra.mxu0 %v8402_v60  ;;  %v8469_v60 = vld [vmem:[%s12772_s2 + $0xda0] ss:$16 sps:$4 sm:$0xff]  }
  0xc0   :  { %5890 = vmatpush2.bf16.msra.mxu1 %v8405_v61  ;;  %5900 = vmatprep.subr.bf16.mxu0 %v8411_v63  ;;  %v8472_v61 = vld [vmem:[%s12772_s2 + $0xfa0] ss:$16 sps:$4 sm:$0xff]   ;;  %v8477_v63 = vld [vmem:[%s12772_s2 + $0xd84] ss:$16 sps:$4 sm:$0xff]  }
  0xc1   :  { %5941 = vmatprep.subr.bf16.mxu1 %v8414_v0  ;;  %v8480_v0 = vld [vmem:[%s12772_s2 + $0xf84] ss:$16 sps:$4 sm:$0xff]  }
  0xc2   :  { %5851 = vmatmul.mubr.bf16.vlgmr.msra.gmra.mxu0 %v10209_v4 }
  0xc3   :  { %5892 = vmatmul.mubr.bf16.vlgmr.msra.gmra.mxu1 %v10213_v5  ;;  %5901 = vmatpush1.bf16.msra.mxu0 %v8409_v6  ;;  %v8483_v6 = vld [vmem:[%s12772_s2 + $0xd64] ss:$16 sps:$4 sm:$0xff]  }
  0xc4   :  { %5942 = vmatpush1.bf16.msra.mxu1 %v8412_v7  ;;  %5902 = vmatprep.subr.bf16.mxu0 %v8417_v39  ;;  %v8486_v7 = vld [vmem:[%s12772_s2 + $0xf64] ss:$16 sps:$4 sm:$0xff]   ;;  %v8481_v39 = vld [vmem:[%s12772_s2 + $0xd60] ss:$16 sps:$4 sm:$0xff]  }
  0xc5   :  { %5943 = vmatprep.subr.bf16.mxu1 %v8420_v44  ;;  %5932 = vmatprep.mubr.bf16.mxu0 %v10227_v8  ;;  %v8484_v44 = vld [vmem:[%s12772_s2 + $0xf60] ss:$16 sps:$4 sm:$0xff]  }
  0xc6   :  { %5973 = vmatprep.mubr.bf16.mxu1 %v10229_v9 }
  0xc7   :  { %5903 = vmatpush1.bf16.msra.mxu0 %v8415_v10  ;;  %v8489_v10 = vld [vmem:[%s12772_s2 + $0xd44] ss:$16 sps:$4 sm:$0xff]  }
  0xc8   :  { %5944 = vmatpush1.bf16.msra.mxu1 %v8418_v11  ;;  %5904 = vmatprep.subr.bf16.mxu0 %v8423_v12  ;;  %v8492_v11 = vld [vmem:[%s12772_s2 + $0xf44] ss:$16 sps:$4 sm:$0xff]  }
  0xc9   :  { %5945 = vmatprep.subr.bf16.mxu1 %v8426_v13  ;;  %v32_v12 = vld [vmem:[%s12770_s0 + $0x20] sm:$0xff] }
  0xca   :  { %v8487_v13 = vld [vmem:[%s12772_s2 + $0xd40] ss:$16 sps:$4 sm:$0xff]  }
  0xcb   :  { %5905 = vmatpush1.bf16.msra.mxu0 %v8421_v14  ;;  %v8490_v14 = vld [vmem:[%s12772_s2 + $0xf40] ss:$16 sps:$4 sm:$0xff]  }
  0xcc   :  { %5946 = vmatpush1.bf16.msra.mxu1 %v8424_v15  ;;  %5906 = vmatprep.subr.bf16.mxu0 %v8429_v18  ;;  %v8495_v15 = vld [vmem:[%s12772_s2 + $0xd24] ss:$16 sps:$4 sm:$0xff]  }
  0xcd   :  { %5947 = vmatprep.subr.bf16.mxu1 %v8432_v19  ;;  %v8498_v18 = vld [vmem:[%s12772_s2 + $0xf24] ss:$16 sps:$4 sm:$0xff]   ;;  %v112_v19 = vcombine.high %v32_v12, %v32_v12 }
  0xcf   :  { %5907 = vmatpush1.bf16.msra.mxu0 %v8427_v20  ;;  %v8493_v20 = vld [vmem:[%s12772_s2 + $0xd20] ss:$16 sps:$4 sm:$0xff]  }
  0xd0   :  { %5948 = vmatpush1.bf16.msra.mxu1 %v8430_v21  ;;  %5908 = vmatprep.subr.bf16.mxu0 %v8435_v22  ;;  %v8496_v21 = vld [vmem:[%s12772_s2 + $0xf20] ss:$16 sps:$4 sm:$0xff]   ;;  %v8501_v22 = vld [vmem:[%s12772_s2 + $0xd04] ss:$16 sps:$4 sm:$0xff]  }
  0xd1   :  { %5949 = vmatprep.subr.bf16.mxu1 %v8438_v23  ;;  %v8504_v23 = vld [vmem:[%s12772_s2 + $0xf04] ss:$16 sps:$4 sm:$0xff]  }
  0xd3   :  { %5909 = vmatpush1.bf16.msra.mxu0 %v8433_v24  ;;  %v10407_v24 = vrot.slane %v32_v12, %v9677_v49 }
  0xd4   :  { %5950 = vmatpush1.bf16.msra.mxu1 %v8436_v25  ;;  %5910 = vmatprep.subr.bf16.mxu0 %v8441_v26  ;;  %v10410_v25 = vrot.slane %v112_v19, %v9677_v49  ;;  %v8499_v26 = vld [vmem:[%s12772_s2 + $0xd00] ss:$16 sps:$4 sm:$0xff]   ;;  %v8532_v19 = vld [vmem:[%s12772_s2 + $0x1064] ss:$16 sps:$4 sm:$0xff]  }
  0xd5   :  { %5951 = vmatprep.subr.bf16.mxu1 %v8444_v27  ;;  %v8502_v27 = vld [vmem:[%s12772_s2 + $0xf00] ss:$16 sps:$4 sm:$0xff]  }
  0xd7   :  { %5911 = vmatpush1.bf16.msra.mxu0 %v8439_v28  ;;  %v1128_v28 = vld [vmem:[%s12773_s3] sm:$0xf] }
  0xd8   :  { %5952 = vmatpush1.bf16.msra.mxu1 %v8442_v29  ;;  %5912 = vmatprep.subr.bf16.mxu0 %v8447_v30  ;;  %v1132_v29 = vsub.s32 0, %v9659_v43  ;;  %v8508_v30 = vld [vmem:[%s12772_s2 + $0x10e4] ss:$16 sps:$4 sm:$0xff]  }
  0xd9   :  { %5953 = vmatprep.subr.bf16.mxu1 %v8450_v31  ;;  %v8511_v31 = vld [vmem:[%s12772_s2 + $0x12e4] ss:$16 sps:$4 sm:$0xff]  }
  0xdb   :  { %5913 = vmatpush1.bf16.msra.mxu0 %v8445_v34  ;;  %v1136_v34 = vsub.s32 1, %v9659_v43 }
  0xdc   :  { %5954 = vmatpush1.bf16.msra.mxu1 %v8448_v35  ;;  %5914 = vmatprep.subr.bf16.mxu0 %v8453_v36  ;;  %v127_v35 = vcombine.high %v10407_v24, %v10407_v24  ;;  %v128_v36 = vcombine.high %v10410_v25, %v10410_v25 }
  0xdd   :  { %5955 = vmatprep.subr.bf16.mxu1 %v8456_v37  ;;  %v10435_v37 = vpack.c.bf16 %v10186_v58, %v10186_v58  ;;  %v8514_v58 = vld [vmem:[%s12772_s2 + $0x10c4] ss:$16 sps:$4 sm:$0xff]  }
  0xdf   :  { %5915 = vmatpush1.bf16.msra.mxu0 %v8451_v38  ;;  %v10439_v38 = vpack.c.bf16 %v10189_v59, %v10189_v59  ;;  %v8517_v59 = vld [vmem:[%s12772_s2 + $0x12c4] ss:$16 sps:$4 sm:$0xff]  }
  0xe0   :  { %5956 = vmatpush1.bf16.msra.mxu1 %v8454_v40  ;;  %5916 = vmatprep.subr.bf16.mxu0 %v8459_v41  ;;  %v1133_v40 = vrot.slane %v1128_v28, %v1132_v29  ;;  %v8506_v41 = vld [vmem:[%s12772_s2 + $0x10e0] ss:$16 sps:$4 sm:$0xff]  }
  0xe1   :  { %5957 = vmatprep.subr.bf16.mxu1 %v8462_v42  ;;  %v8509_v42 = vld [vmem:[%s12772_s2 + $0x12e0] ss:$16 sps:$4 sm:$0xff]  }
  0xe3   :  { %5917 = vmatpush2.bf16.msra.mxu0 %v8457_v45  ;;  %v1137_v45 = vrot.slane %v1128_v28, %v1136_v34  ;;  %v8539_v28 = vld [vmem:[%s12772_s2 + $0x1240] ss:$16 sps:$4 sm:$0xff]  }
  0xe4   :  { %5958 = vmatpush2.bf16.msra.mxu1 %v8460_v46  ;;  %5918 = vmatprep.subr.bf16.mxu0 %v8465_v47  ;;  %v10457_v46 = vpack.c.bf16 %v127_v35, %v127_v35  ;;  %v10459_v47 = vpack.c.bf16 %v128_v36, %v128_v36  ;;  %v8542_v35 = vld [vmem:[%s12772_s2 + $0x1020] ss:$16 sps:$4 sm:$0xff]  }
  0xe5   :  { %5959 = vmatprep.subr.bf16.mxu1 %v8468_v50  ;;  %v8545_v36 = vld [vmem:[%s12772_s2 + $0x1220] ss:$16 sps:$4 sm:$0xff]  }
  0xe7   :  { %5919 = vmatpush2.bf16.msra.mxu0 %v8463_v51 }
  0xe8   :  { %5960 = vmatpush2.bf16.msra.mxu1 %v8466_v54  ;;  %5920 = vmatprep.subr.bf16.mxu0 %v8471_v55  ;;  %v8512_v54 = vld [vmem:[%s12772_s2 + $0x10c0] ss:$16 sps:$4 sm:$0xff]  }
  0xe9   :  { %5961 = vmatprep.subr.bf16.mxu1 %v8474_v56  ;;  %v8515_v56 = vld [vmem:[%s12772_s2 + $0x12c0] ss:$16 sps:$4 sm:$0xff]  }
  0xeb   :  { %5921 = vmatpush2.bf16.msra.mxu0 %v8469_v60  ;;  %v8520_v60 = vld [vmem:[%s12772_s2 + $0x10a4] ss:$16 sps:$4 sm:$0xff]  }
  0xec   :  { %5962 = vmatpush2.bf16.msra.mxu1 %v8472_v61  ;;  %5922 = vmatprep.subr.bf16.mxu0 %v8477_v63 }
  0xed   :  { %5963 = vmatprep.subr.bf16.mxu1 %v8480_v0  ;;  %v8523_v0 = vld [vmem:[%s12772_s2 + $0x12a4] ss:$16 sps:$4 sm:$0xff]  }
  0xef   :  { %5923 = vmatpush2.bf16.msra.mxu0 %v8475_v1 }
  0xf0   :  { %5964 = vmatpush2.bf16.msra.mxu1 %v8478_v2  ;;  %5924 = vmatprep.subr.bf16.mxu0 %v8483_v6 }
  0xf1   :  { %5965 = vmatprep.subr.bf16.mxu1 %v8486_v7 }
  0xf3   :  { %5925 = vmatpush2.bf16.msra.mxu0 %v8481_v39  ;;  %v8518_v39 = vld [vmem:[%s12772_s2 + $0x10a0] ss:$16 sps:$4 sm:$0xff]  }
  0xf4   :  { %5966 = vmatpush2.bf16.msra.mxu1 %v8484_v44  ;;  %5926 = vmatprep.subr.bf16.mxu0 %v8489_v10  ;;  %v8521_v44 = vld [vmem:[%s12772_s2 + $0x12a0] ss:$16 sps:$4 sm:$0xff]  }
  0xf5   :  { %5967 = vmatprep.subr.bf16.mxu1 %v8492_v11 }
  0xf7   :  { %5927 = vmatpush2.bf16.msra.mxu0 %v8487_v13  ;;  %v8526_v13 = vld [vmem:[%s12772_s2 + $0x1084] ss:$16 sps:$4 sm:$0xff]  }
  0xf8   :  { %5968 = vmatpush2.bf16.msra.mxu1 %v8490_v14  ;;  %5928 = vmatprep.subr.bf16.mxu0 %v8495_v15  ;;  %v8529_v14 = vld [vmem:[%s12772_s2 + $0x1284] ss:$16 sps:$4 sm:$0xff]   ;;  %v8524_v15 = vld [vmem:[%s12772_s2 + $0x1080] ss:$16 sps:$4 sm:$0xff]  }
  0xf9   :  { %5969 = vmatprep.subr.bf16.mxu1 %v8498_v18  ;;  %v8527_v18 = vld [vmem:[%s12772_s2 + $0x1280] ss:$16 sps:$4 sm:$0xff]  }
  0xfb   :  { %5929 = vmatpush2.bf16.msra.mxu0 %v8493_v20  ;;  %v8535_v20 = vld [vmem:[%s12772_s2 + $0x1264] ss:$16 sps:$4 sm:$0xff]  }
  0xfc   :  { %5970 = vmatpush2.bf16.msra.mxu1 %v8496_v21  ;;  %5930 = vmatprep.subr.bf16.mxu0 %v8501_v22  ;;  %v8530_v21 = vld [vmem:[%s12772_s2 + $0x1060] ss:$16 sps:$4 sm:$0xff]  }
  0xfd   :  { %5971 = vmatprep.subr.bf16.mxu1 %v8504_v23  ;;  %v8533_v22 = vld [vmem:[%s12772_s2 + $0x1260] ss:$16 sps:$4 sm:$0xff]   ;;  %v8538_v23 = vld [vmem:[%s12772_s2 + $0x1044] ss:$16 sps:$4 sm:$0xff]  }
  0xff   :  { %5931 = vmatpush2.bf16.msra.mxu0 %v8499_v26  ;;  %v8541_v26 = vld [vmem:[%s12772_s2 + $0x1244] ss:$16 sps:$4 sm:$0xff]  }
 0x100   :  { %5972 = vmatpush2.bf16.msra.mxu1 %v8502_v27  ;;  %5982 = vmatprep.subr.bf16.mxu0 %v8508_v30  ;;  %v8536_v27 = vld [vmem:[%s12772_s2 + $0x1040] ss:$16 sps:$4 sm:$0xff]   ;;  %v8544_v30 = vld [vmem:[%s12772_s2 + $0x1024] ss:$16 sps:$4 sm:$0xff]  }
 0x101   :  { %6023 = vmatprep.subr.bf16.mxu1 %v8511_v31  ;;  %v8547_v31 = vld [vmem:[%s12772_s2 + $0x1224] ss:$16 sps:$4 sm:$0xff]  }
 0x102   :  { %v5688_v50 = vpop.f32.mrf.mxu0  ;;  %5933 = vmatmul.mubr.bf16.vlgmr.msra.gmra.mxu0 %v10435_v37 }
 0x103   :  { %v5729_v51 = vpop.f32.mrf.mxu1  ;;  %5974 = vmatmul.mubr.bf16.vlgmr.msra.gmra.mxu1 %v10439_v38  ;;  %v5689_v55 = vadd.f32 %v5688_v50, %v1133_v40  ;;  %5983 = vmatpush1.bf16.msra.mxu0 %v8506_v41  ;;  %v8550_v40 = vld [vmem:[%s12772_s2 + $0x1004] ss:$16 sps:$4 sm:$0xff]   ;;  %v8554_v50 = vld [vmem:[%s12772_s2 + $0x11e0] ss:$16 sps:$4 sm:$0xff]  }
 0x104   :  { %6024 = vmatpush1.bf16.msra.mxu1 %v8509_v42  ;;  %v5690_v61 = vpop.f32.mrf.mxu0  ;;  %5984 = vmatprep.subr.bf16.mxu0 %v8514_v58  ;;  %v8553_v41 = vld [vmem:[%s12772_s2 + $0x1204] ss:$16 sps:$4 sm:$0xff]   ;;  %v8548_v42 = vld [vmem:[%s12772_s2 + $0x1000] ss:$16 sps:$4 sm:$0xff]  }
 0x105   :  { %v5731_v63 = vpop.f32.mrf.mxu1  ;;  %6025 = vmatprep.subr.bf16.mxu1 %v8517_v59  ;;  %v10475_v1 = vadd.f32 %v5729_v51, %v5689_v55  ;;  %v5691_v2 = vadd.f32 %v5690_v61, %v1137_v45  ;;  %6014 = vmatprep.mubr.bf16.mxu0 %v10457_v46  ;;  %v8551_v58 = vld [vmem:[%s12772_s2 + $0x1200] ss:$16 sps:$4 sm:$0xff]   ;;  %v8556_v59 = vld [vmem:[%s12772_s2 + $0x11e4] ss:$16 sps:$4 sm:$0xff]  }
 0x106   :  { %6055 = vmatprep.mubr.bf16.mxu1 %v10459_v47  ;;  %v5692_v6 = vpop.f32.mrf.mxu0  ;;  %v8559_v45 = vld [vmem:[%s12772_s2 + $0x13e4] ss:$16 sps:$4 sm:$0xff]   ;;  %v8557_v51 = vld [vmem:[%s12772_s2 + $0x13e0] ss:$16 sps:$4 sm:$0xff]  }
 0x107   :  { %v5733_v7 = vpop.f32.mrf.mxu1  ;;  %v10485_v10 = vadd.f32 %v5731_v63, %v5691_v2  ;;  %5985 = vmatpush1.bf16.msra.mxu0 %v8512_v54  ;;  %v8562_v54 = vld [vmem:[%s12772_s2 + $0x11c4] ss:$16 sps:$4 sm:$0xff]   ;;  %v8569_v2 = vld [vmem:[%s12772_s2 + $0x13a0] ss:$16 sps:$4 sm:$0xff]  }
 0x108   :  { %6026 = vmatpush1.bf16.msra.mxu1 %v8515_v56  ;;  %v5693_v11 = vpop.f32.mrf.mxu0  ;;  %5986 = vmatprep.subr.bf16.mxu0 %v8520_v60  ;;  %v8565_v55 = vld [vmem:[%s12772_s2 + $0x13c4] ss:$16 sps:$4 sm:$0xff]   ;;  %v8560_v56 = vld [vmem:[%s12772_s2 + $0x11c0] ss:$16 sps:$4 sm:$0xff]  }
 0x109   :  { %v5734_v12 = vpop.f32.mrf.mxu1  ;;  %6027 = vmatprep.subr.bf16.mxu1 %v8523_v0  ;;  %v8563_v60 = vld [vmem:[%s12772_s2 + $0x13c0] ss:$16 sps:$4 sm:$0xff]   ;;  %v8568_v61 = vld [vmem:[%s12772_s2 + $0x11a4] ss:$16 sps:$4 sm:$0xff]  }
 0x10a   :  { %v8571_v63 = vld [vmem:[%s12772_s2 + $0x13a4] ss:$16 sps:$4 sm:$0xff]   ;;  %v8566_v0 = vld [vmem:[%s12772_s2 + $0x11a0] ss:$16 sps:$4 sm:$0xff]  }
 0x10b   :  { %5987 = vmatpush1.bf16.msra.mxu0 %v8518_v39  ;;  %v8574_v6 = vld [vmem:[%s12772_s2 + $0x1184] ss:$16 sps:$4 sm:$0xff]   ;;  %v8572_v39 = vld [vmem:[%s12772_s2 + $0x1180] ss:$16 sps:$4 sm:$0xff]  }
 0x10c   :  { %6028 = vmatpush1.bf16.msra.mxu1 %v8521_v44  ;;  %5988 = vmatprep.subr.bf16.mxu0 %v8526_v13  ;;  %v8577_v7 = vld [vmem:[%s12772_s2 + $0x1384] ss:$16 sps:$4 sm:$0xff]   ;;  %v8575_v44 = vld [vmem:[%s12772_s2 + $0x1380] ss:$16 sps:$4 sm:$0xff]  }
 0x10d   :  { %6029 = vmatprep.subr.bf16.mxu1 %v8529_v14  ;;  %v8580_v11 = vld [vmem:[%s12772_s2 + $0x1164] ss:$16 sps:$4 sm:$0xff]   ;;  %v8578_v13 = vld [vmem:[%s12772_s2 + $0x1160] ss:$16 sps:$4 sm:$0xff]  }
 0x10e   :  { %v8583_v12 = vld [vmem:[%s12772_s2 + $0x1364] ss:$16 sps:$4 sm:$0xff]   ;;  %v8581_v14 = vld [vmem:[%s12772_s2 + $0x1360] ss:$16 sps:$4 sm:$0xff]  }
 0x10f   :  { %5989 = vmatpush1.bf16.msra.mxu0 %v8524_v15  ;;  %v8586_v15 = vld [vmem:[%s12772_s2 + $0x1144] ss:$16 sps:$4 sm:$0xff]  }
 0x110   :  { %6030 = vmatpush1.bf16.msra.mxu1 %v8527_v18  ;;  %5990 = vmatprep.subr.bf16.mxu0 %v8532_v19  ;;  %v8589_v18 = vld [vmem:[%s12772_s2 + $0x1344] ss:$16 sps:$4 sm:$0xff]   ;;  %v33_v19 = vld [vmem:[%s12770_s0 + $0x28] sm:$0xff] }
 0x111   :  { %6031 = vmatprep.subr.bf16.mxu1 %v8535_v20  ;;  %v8584_v20 = vld [vmem:[%s12772_s2 + $0x1140] ss:$16 sps:$4 sm:$0xff]  }
 0x113   :  { %5991 = vmatpush1.bf16.msra.mxu0 %v8530_v21  ;;  %v8587_v21 = vld [vmem:[%s12772_s2 + $0x1340] ss:$16 sps:$4 sm:$0xff]  }
 0x114   :  { %6032 = vmatpush1.bf16.msra.mxu1 %v8533_v22  ;;  %5992 = vmatprep.subr.bf16.mxu0 %v8538_v23  ;;  %v8592_v22 = vld [vmem:[%s12772_s2 + $0x1124] ss:$16 sps:$4 sm:$0xff]  }
 0x115   :  { %6033 = vmatprep.subr.bf16.mxu1 %v8541_v26  ;;  %v8595_v23 = vld [vmem:[%s12772_s2 + $0x1324] ss:$16 sps:$4 sm:$0xff]   ;;  %v129_v26 = vcombine.high %v33_v19, %v33_v19 }
 0x117   :  { %5993 = vmatpush1.bf16.msra.mxu0 %v8536_v27  ;;  %v8590_v27 = vld [vmem:[%s12772_s2 + $0x1120] ss:$16 sps:$4 sm:$0xff]  }
 0x118   :  { %6034 = vmatpush1.bf16.msra.mxu1 %v8539_v28  ;;  %5994 = vmatprep.subr.bf16.mxu0 %v8544_v30  ;;  %v8593_v28 = vld [vmem:[%s12772_s2 + $0x1320] ss:$16 sps:$4 sm:$0xff]   ;;  %v8598_v30 = vld [vmem:[%s12772_s2 + $0x1104] ss:$16 sps:$4 sm:$0xff]  }
 0x119   :  { %6035 = vmatprep.subr.bf16.mxu1 %v8547_v31  ;;  %v8601_v31 = vld [vmem:[%s12772_s2 + $0x1304] ss:$16 sps:$4 sm:$0xff]  }
 0x11b   :  { %5995 = vmatpush1.bf16.msra.mxu0 %v8542_v35  ;;  %v10641_v35 = vrot.slane %v33_v19, %v9677_v49  ;;  %v8618_v19 = vld [vmem:[%s12772_s2 + $0x16a0] ss:$16 sps:$4 sm:$0xff]  }
 0x11c   :  { %6036 = vmatpush1.bf16.msra.mxu1 %v8545_v36  ;;  %5996 = vmatprep.subr.bf16.mxu0 %v8550_v40  ;;  %v10644_v36 = vrot.slane %v129_v26, %v9677_v49  ;;  %v8596_v40 = vld [vmem:[%s12772_s2 + $0x1100] ss:$16 sps:$4 sm:$0xff]  }
 0x11d   :  { %6037 = vmatprep.subr.bf16.mxu1 %v8553_v41  ;;  %v8599_v41 = vld [vmem:[%s12772_s2 + $0x1300] ss:$16 sps:$4 sm:$0xff]  }
 0x11e   :  { %v8621_v26 = vld [vmem:[%s12772_s2 + $0x1480] ss:$16 sps:$4 sm:$0xff]  }
 0x11f   :  { %5997 = vmatpush1.bf16.msra.mxu0 %v8548_v42  ;;  %v8605_v42 = vld [vmem:[%s12772_s2 + $0x14e4] ss:$16 sps:$4 sm:$0xff]  }
 0x120   :  { %6038 = vmatpush1.bf16.msra.mxu1 %v8551_v58  ;;  %5998 = vmatprep.subr.bf16.mxu0 %v8556_v59  ;;  %v8608_v58 = vld [vmem:[%s12772_s2 + $0x16e4] ss:$16 sps:$4 sm:$0xff]   ;;  %v8603_v59 = vld [vmem:[%s12772_s2 + $0x14e0] ss:$16 sps:$4 sm:$0xff]  }
 0x121   :  { %6039 = vmatprep.subr.bf16.mxu1 %v8559_v45  ;;  %v8606_v45 = vld [vmem:[%s12772_s2 + $0x16e0] ss:$16 sps:$4 sm:$0xff]  }
 0x123   :  { %5999 = vmatpush2.bf16.msra.mxu0 %v8554_v50  ;;  %v144_v50 = vcombine.high %v10641_v35, %v10641_v35 }
 0x124   :  { %6040 = vmatpush2.bf16.msra.mxu1 %v8557_v51  ;;  %6000 = vmatprep.subr.bf16.mxu0 %v8562_v54  ;;  %v145_v51 = vcombine.high %v10644_v36, %v10644_v36  ;;  %v10670_v54 = vpack.c.bf16 %v10407_v24, %v10407_v24  ;;  %v8609_v24 = vld [vmem:[%s12772_s2 + $0x14c0] ss:$16 sps:$4 sm:$0xff]  }
 0x125   :  { %6041 = vmatprep.subr.bf16.mxu1 %v8565_v55  ;;  %v10674_v55 = vpack.c.bf16 %v10410_v25, %v10410_v25 }
 0x126   :  { %v10687_v25 = vpack.c.bf16 %v145_v51, %v145_v51  ;;  %v8639_v51 = vld [vmem:[%s12772_s2 + $0x1420] ss:$16 sps:$4 sm:$0xff]  }
 0x127   :  { %6001 = vmatpush2.bf16.msra.mxu0 %v8560_v56  ;;  %v8611_v56 = vld [vmem:[%s12772_s2 + $0x14c4] ss:$16 sps:$4 sm:$0xff]  }
 0x128   :  { %6042 = vmatpush2.bf16.msra.mxu1 %v8563_v60  ;;  %6002 = vmatprep.subr.bf16.mxu0 %v8568_v61  ;;  %v8614_v60 = vld [vmem:[%s12772_s2 + $0x16c4] ss:$16 sps:$4 sm:$0xff]   ;;  %v10685_v61 = vpack.c.bf16 %v144_v50, %v144_v50 }
 0x129   :  { %6043 = vmatprep.subr.bf16.mxu1 %v8571_v63  ;;  %v8644_v50 = vld [vmem:[%s12772_s2 + $0x1624] ss:$16 sps:$4 sm:$0xff]  }
 0x12b   :  { %6003 = vmatpush2.bf16.msra.mxu0 %v8566_v0 }
 0x12c   :  { %6044 = vmatpush2.bf16.msra.mxu1 %v8569_v2  ;;  %6004 = vmatprep.subr.bf16.mxu0 %v8574_v6  ;;  %v8612_v6 = vld [vmem:[%s12772_s2 + $0x16c0] ss:$16 sps:$4 sm:$0xff]  }
 0x12d   :  { %6045 = vmatprep.subr.bf16.mxu1 %v8577_v7 }
 0x12f   :  { %6005 = vmatpush2.bf16.msra.mxu0 %v8572_v39 }
 0x130   :  { %6046 = vmatpush2.bf16.msra.mxu1 %v8575_v44  ;;  %6006 = vmatprep.subr.bf16.mxu0 %v8580_v11  ;;  %v8617_v44 = vld [vmem:[%s12772_s2 + $0x14a4] ss:$16 sps:$4 sm:$0xff]  }
 0x131   :  { %6047 = vmatprep.subr.bf16.mxu1 %v8583_v12  ;;  %v8620_v11 = vld [vmem:[%s12772_s2 + $0x16a4] ss:$16 sps:$4 sm:$0xff]  }
 0x133   :  { %6007 = vmatpush2.bf16.msra.mxu0 %v8578_v13 }
 0x134   :  { %6048 = vmatpush2.bf16.msra.mxu1 %v8581_v14  ;;  %6008 = vmatprep.subr.bf16.mxu0 %v8586_v15 }
 0x135   :  { %6049 = vmatprep.subr.bf16.mxu1 %v8589_v18  ;;  %v8615_v18 = vld [vmem:[%s12772_s2 + $0x14a0] ss:$16 sps:$4 sm:$0xff]  }
 0x137   :  { %6009 = vmatpush2.bf16.msra.mxu0 %v8584_v20 }
 0x138   :  { %6050 = vmatpush2.bf16.msra.mxu1 %v8587_v21  ;;  %6010 = vmatprep.subr.bf16.mxu0 %v8592_v22  ;;  %v8623_v21 = vld [vmem:[%s12772_s2 + $0x1484] ss:$16 sps:$4 sm:$0xff]  }
 0x139   :  { %6051 = vmatprep.subr.bf16.mxu1 %v8595_v23  ;;  %v8626_v22 = vld [vmem:[%s12772_s2 + $0x1684] ss:$16 sps:$4 sm:$0xff]   ;;  %v9499_v23 = vmov 0  }
 0x13a   :  { %8116 = vset.pattern.permute.xlu0 %v9499_v23 }
 0x13b   :  { %6011 = vmatpush2.bf16.msra.mxu0 %v8590_v27  ;;  %v8624_v27 = vld [vmem:[%s12772_s2 + $0x1680] ss:$16 sps:$4 sm:$0xff]  }
 0x13c   :  { %6052 = vmatpush2.bf16.msra.mxu1 %v8593_v28  ;;  %6012 = vmatprep.subr.bf16.mxu0 %v8598_v30  ;;  %v8629_v28 = vld [vmem:[%s12772_s2 + $0x1464] ss:$16 sps:$4 sm:$0xff]  }
 0x13d   :  { %6053 = vmatprep.subr.bf16.mxu1 %v8601_v31  ;;  %v8632_v30 = vld [vmem:[%s12772_s2 + $0x1664] ss:$16 sps:$4 sm:$0xff]   ;;  %v8627_v31 = vld [vmem:[%s12772_s2 + $0x1460] ss:$16 sps:$4 sm:$0xff]  }
 0x13f   :  { %6013 = vmatpush2.bf16.msra.mxu0 %v8596_v40  ;;  %v8630_v40 = vld [vmem:[%s12772_s2 + $0x1660] ss:$16 sps:$4 sm:$0xff]  }
 0x140   :  { %6054 = vmatpush2.bf16.msra.mxu1 %v8599_v41  ;;  %6064 = vmatprep.subr.bf16.mxu0 %v8605_v42  ;;  %v8635_v41 = vld [vmem:[%s12772_s2 + $0x1444] ss:$16 sps:$4 sm:$0xff]  }
 0x141   :  { %6105 = vmatprep.subr.bf16.mxu1 %v8608_v58  ;;  %v8638_v42 = vld [vmem:[%s12772_s2 + $0x1644] ss:$16 sps:$4 sm:$0xff]   ;;  %v8633_v58 = vld [vmem:[%s12772_s2 + $0x1440] ss:$16 sps:$4 sm:$0xff]  }
 0x142   :  { %v5770_v63 = vpop.f32.mrf.mxu0  ;;  %6015 = vmatmul.mubr.bf16.vlgmr.msra.gmra.mxu0 %v10670_v54 }
 0x143   :  { %v5811_v0 = vpop.f32.mrf.mxu1  ;;  %6056 = vmatmul.mubr.bf16.vlgmr.msra.gmra.mxu1 %v10674_v55  ;;  %v5771_v2 = vadd.f32 %v5770_v63, %v10475_v1  ;;  %6065 = vmatpush1.bf16.msra.mxu0 %v8603_v59  ;;  %v8636_v59 = vld [vmem:[%s12772_s2 + $0x1640] ss:$16 sps:$4 sm:$0xff]  }
 0x144   :  { %6106 = vmatpush1.bf16.msra.mxu1 %v8606_v45  ;;  %v5772_v7 = vpop.f32.mrf.mxu0  ;;  %6066 = vmatprep.subr.bf16.mxu0 %v8611_v56  ;;  %v8641_v45 = vld [vmem:[%s12772_s2 + $0x1424] ss:$16 sps:$4 sm:$0xff]   ;;  %v8642_v56 = vld [vmem:[%s12772_s2 + $0x1620] ss:$16 sps:$4 sm:$0xff]  }
 0x145   :  { %v5813_v39 = vpop.f32.mrf.mxu1  ;;  %6107 = vmatprep.subr.bf16.mxu1 %v8614_v60  ;;  %v10701_v12 = vadd.f32 %v5811_v0, %v5771_v2  ;;  %v5773_v1 = vadd.f32 %v5772_v7, %v10485_v10  ;;  %6096 = vmatprep.mubr.bf16.mxu0 %v10685_v61  ;;  %v8647_v60 = vld [vmem:[%s12772_s2 + $0x1404] ss:$16 sps:$4 sm:$0xff]   ;;  %v8645_v63 = vld [vmem:[%s12772_s2 + $0x1400] ss:$16 sps:$4 sm:$0xff]  }
 0x146   :  { %6137 = vmatprep.mubr.bf16.mxu1 %v10687_v25  ;;  %v5774_v13 = vpop.f32.mrf.mxu0  ;;  %v8648_v0 = vld [vmem:[%s12772_s2 + $0x1600] ss:$16 sps:$4 sm:$0xff]   ;;  %v8653_v2 = vld [vmem:[%s12772_s2 + $0x15e4] ss:$16 sps:$4 sm:$0xff]  }
 0x147   :  { %v5815_v14 = vpop.f32.mrf.mxu1  ;;  %v10706_v15 = vadd.f32 %v5813_v39, %v5773_v1  ;;  %6067 = vmatpush1.bf16.msra.mxu0 %v8609_v24  ;;  %v8650_v24 = vld [vmem:[%s12772_s2 + $0x1604] ss:$16 sps:$4 sm:$0xff]   ;;  %v8651_v7 = vld [vmem:[%s12772_s2 + $0x15e0] ss:$16 sps:$4 sm:$0xff]  }
 0x148   :  { %6108 = vmatpush1.bf16.msra.mxu1 %v8612_v6  ;;  %v5775_v20 = vpop.f32.mrf.mxu0  ;;  %6068 = vmatprep.subr.bf16.mxu0 %v8617_v44  ;;  %v8656_v6 = vld [vmem:[%s12772_s2 + $0x17e4] ss:$16 sps:$4 sm:$0xff]   ;;  %v8654_v39 = vld [vmem:[%s12772_s2 + $0x17e0] ss:$16 sps:$4 sm:$0xff]  }
 0x149   :  { %v5816_v10 = vpop.f32.mrf.mxu1  ;;  %6109 = vmatprep.subr.bf16.mxu1 %v8620_v11  ;;  %v8659_v44 = vld [vmem:[%s12772_s2 + $0x15c4] ss:$16 sps:$4 sm:$0xff]   ;;  %v8657_v1 = vld [vmem:[%s12772_s2 + $0x15c0] ss:$16 sps:$4 sm:$0xff]  }
 0x14a   :  { %v8662_v11 = vld [vmem:[%s12772_s2 + $0x17c4] ss:$16 sps:$4 sm:$0xff]   ;;  %v8660_v13 = vld [vmem:[%s12772_s2 + $0x17c0] ss:$16 sps:$4 sm:$0xff]  }
 0x14b   :  { %6069 = vmatpush1.bf16.msra.mxu0 %v8615_v18  ;;  %v8665_v14 = vld [vmem:[%s12772_s2 + $0x15a4] ss:$16 sps:$4 sm:$0xff]   ;;  %v8666_v20 = vld [vmem:[%s12772_s2 + $0x17a0] ss:$16 sps:$4 sm:$0xff]  }
 0x14c   :  { %6110 = vmatpush1.bf16.msra.mxu1 %v8618_v19  ;;  %6070 = vmatprep.subr.bf16.mxu0 %v8623_v21  ;;  %v8668_v18 = vld [vmem:[%s12772_s2 + $0x17a4] ss:$16 sps:$4 sm:$0xff]   ;;  %v8663_v19 = vld [vmem:[%s12772_s2 + $0x15a0] ss:$16 sps:$4 sm:$0xff]  }
 0x14d   :  { %6111 = vmatprep.subr.bf16.mxu1 %v8626_v22  ;;  %v8671_v10 = vld [vmem:[%s12772_s2 + $0x1584] ss:$16 sps:$4 sm:$0xff]   ;;  %v8669_v22 = vld [vmem:[%s12772_s2 + $0x1580] ss:$16 sps:$4 sm:$0xff]  }
 0x14e   :  { %v8674_v21 = vld [vmem:[%s12772_s2 + $0x1784] ss:$16 sps:$4 sm:$0xff]  }
 0x14f   :  { %6071 = vmatpush1.bf16.msra.mxu0 %v8621_v26  ;;  %v8672_v26 = vld [vmem:[%s12772_s2 + $0x1780] ss:$16 sps:$4 sm:$0xff]  }
 0x150   :  { %6112 = vmatpush1.bf16.msra.mxu1 %v8624_v27  ;;  %6072 = vmatprep.subr.bf16.mxu0 %v8629_v28  ;;  %v8677_v27 = vld [vmem:[%s12772_s2 + $0x1564] ss:$16 sps:$4 sm:$0xff]  }
 0x151   :  { %6113 = vmatprep.subr.bf16.mxu1 %v8632_v30  ;;  %v8680_v28 = vld [vmem:[%s12772_s2 + $0x1764] ss:$16 sps:$4 sm:$0xff]   ;;  %v8675_v30 = vld [vmem:[%s12772_s2 + $0x1560] ss:$16 sps:$4 sm:$0xff]  }
 0x153   :  { %6073 = vmatpush1.bf16.msra.mxu0 %v8627_v31  ;;  %v8678_v31 = vld [vmem:[%s12772_s2 + $0x1760] ss:$16 sps:$4 sm:$0xff]  }
 0x154   :  { %6114 = vmatpush1.bf16.msra.mxu1 %v8630_v40  ;;  %6074 = vmatprep.subr.bf16.mxu0 %v8635_v41  ;;  %v8683_v40 = vld [vmem:[%s12772_s2 + $0x1544] ss:$16 sps:$4 sm:$0xff]  }
 0x155   :  { %6115 = vmatprep.subr.bf16.mxu1 %v8638_v42  ;;  %v8686_v41 = vld [vmem:[%s12772_s2 + $0x1744] ss:$16 sps:$4 sm:$0xff]  }
 0x156   :  { %v34_v42 = vld [vmem:[%s12770_s0 + $0x30] sm:$0xff] }
 0x157   :  { %6075 = vmatpush1.bf16.msra.mxu0 %v8633_v58  ;;  %v8681_v58 = vld [vmem:[%s12772_s2 + $0x1540] ss:$16 sps:$4 sm:$0xff]  }
 0x158   :  { %6116 = vmatpush1.bf16.msra.mxu1 %v8636_v59  ;;  %6076 = vmatprep.subr.bf16.mxu0 %v8641_v45  ;;  %v8684_v59 = vld [vmem:[%s12772_s2 + $0x1740] ss:$16 sps:$4 sm:$0xff]   ;;  %v8689_v45 = vld [vmem:[%s12772_s2 + $0x1524] ss:$16 sps:$4 sm:$0xff]  }
 0x159   :  { %6117 = vmatprep.subr.bf16.mxu1 %v8644_v50  ;;  %v8692_v50 = vld [vmem:[%s12772_s2 + $0x1724] ss:$16 sps:$4 sm:$0xff]  }
 0x15b   :  { %6077 = vmatpush1.bf16.msra.mxu0 %v8639_v51  ;;  %v146_v51 = vcombine.high %v34_v42, %v34_v42 }
 0x15c   :  { %6118 = vmatpush1.bf16.msra.mxu1 %v8642_v56  ;;  %6078 = vmatprep.subr.bf16.mxu0 %v8647_v60  ;;  %v8687_v56 = vld [vmem:[%s12772_s2 + $0x1520] ss:$16 sps:$4 sm:$0xff]  }
 0x15d   :  { %6119 = vmatprep.subr.bf16.mxu1 %v8650_v24  ;;  %v8690_v60 = vld [vmem:[%s12772_s2 + $0x1720] ss:$16 sps:$4 sm:$0xff]   ;;  %v8695_v24 = vld [vmem:[%s12772_s2 + $0x1504] ss:$16 sps:$4 sm:$0xff]  }
 0x15f   :  { %6079 = vmatpush1.bf16.msra.mxu0 %v8645_v63  ;;  %v8698_v63 = vld [vmem:[%s12772_s2 + $0x1704] ss:$16 sps:$4 sm:$0xff]  }
 0x160   :  { %6120 = vmatpush1.bf16.msra.mxu1 %v8648_v0  ;;  %6080 = vmatprep.subr.bf16.mxu0 %v8653_v2  ;;  %v10869_v0 = vrot.slane %v34_v42, %v9677_v49  ;;  %v10872_v2 = vrot.slane %v146_v51, %v9677_v49  ;;  %v8705_v49 = vld [vmem:[%s12772_s2 + $0x1ae4] ss:$16 sps:$4 sm:$0xff]  }
 0x161   :  { %6121 = vmatprep.subr.bf16.mxu1 %v8656_v6  ;;  %v8693_v6 = vld [vmem:[%s12772_s2 + $0x1500] ss:$16 sps:$4 sm:$0xff]  }
 0x163   :  { %6081 = vmatpush2.bf16.msra.mxu0 %v8651_v7  ;;  %v8696_v7 = vld [vmem:[%s12772_s2 + $0x1700] ss:$16 sps:$4 sm:$0xff]  }
 0x164   :  { %6122 = vmatpush2.bf16.msra.mxu1 %v8654_v39  ;;  %6082 = vmatprep.subr.bf16.mxu0 %v8659_v44  ;;  %v8702_v39 = vld [vmem:[%s12772_s2 + $0x18e4] ss:$16 sps:$4 sm:$0xff]   ;;  %v8700_v44 = vld [vmem:[%s12772_s2 + $0x18e0] ss:$16 sps:$4 sm:$0xff]  }
 0x165   :  { %6123 = vmatprep.subr.bf16.mxu1 %v8662_v11  ;;  %v8703_v11 = vld [vmem:[%s12772_s2 + $0x1ae0] ss:$16 sps:$4 sm:$0xff]  }
 0x167   :  { %6083 = vmatpush2.bf16.msra.mxu0 %v8657_v1  ;;  %v161_v1 = vcombine.high %v10869_v0, %v10869_v0 }
 0x168   :  { %6124 = vmatpush2.bf16.msra.mxu1 %v8660_v13  ;;  %6084 = vmatprep.subr.bf16.mxu0 %v8665_v14  ;;  %v162_v13 = vcombine.high %v10872_v2, %v10872_v2  ;;  %v10898_v14 = vpack.c.bf16 %v10641_v35, %v10641_v35  ;;  %v8706_v35 = vld [vmem:[%s12772_s2 + $0x18c0] ss:$16 sps:$4 sm:$0xff]  }
 0x169   :  { %6125 = vmatprep.subr.bf16.mxu1 %v8668_v18  ;;  %v10902_v18 = vpack.c.bf16 %v10644_v36, %v10644_v36  ;;  %v8709_v36 = vld [vmem:[%s12772_s2 + $0x1ac0] ss:$16 sps:$4 sm:$0xff]  }
 0x16b   :  { %6085 = vmatpush2.bf16.msra.mxu0 %v8663_v19  ;;  %v8708_v19 = vld [vmem:[%s12772_s2 + $0x18c4] ss:$16 sps:$4 sm:$0xff]  }
 0x16c   :  { %6126 = vmatpush2.bf16.msra.mxu1 %v8666_v20  ;;  %6086 = vmatprep.subr.bf16.mxu0 %v8671_v10  ;;  %v8711_v20 = vld [vmem:[%s12772_s2 + $0x1ac4] ss:$16 sps:$4 sm:$0xff]   ;;  %v10916_v10 = vpack.c.bf16 %v161_v1, %v161_v1  ;;  %v8730_v1 = vld [vmem:[%s12772_s2 + $0x1840] ss:$16 sps:$4 sm:$0xff]  }
 0x16d   :  { %6127 = vmatprep.subr.bf16.mxu1 %v8674_v21  ;;  %v10918_v21 = vpack.c.bf16 %v162_v13, %v162_v13  ;;  %v8733_v13 = vld [vmem:[%s12772_s2 + $0x1a40] ss:$16 sps:$4 sm:$0xff]  }
 0x16f   :  { %6087 = vmatpush2.bf16.msra.mxu0 %v8669_v22 }
 0x170   :  { %6128 = vmatpush2.bf16.msra.mxu1 %v8672_v26  ;;  %6088 = vmatprep.subr.bf16.mxu0 %v8677_v27  ;;  %v8714_v27 = vld [vmem:[%s12772_s2 + $0x18a4] ss:$16 sps:$4 sm:$0xff]  }
 0x171   :  { %6129 = vmatprep.subr.bf16.mxu1 %v8680_v28 }
 0x173   :  { %6089 = vmatpush2.bf16.msra.mxu0 %v8675_v30 }
 0x174   :  { %6130 = vmatpush2.bf16.msra.mxu1 %v8678_v31  ;;  %6090 = vmatprep.subr.bf16.mxu0 %v8683_v40  ;;  %v8717_v40 = vld [vmem:[%s12772_s2 + $0x1aa4] ss:$16 sps:$4 sm:$0xff]  }
 0x175   :  { %6131 = vmatprep.subr.bf16.mxu1 %v8686_v41 }
 0x177   :  { %6091 = vmatpush2.bf16.msra.mxu0 %v8681_v58  ;;  %v8712_v58 = vld [vmem:[%s12772_s2 + $0x18a0] ss:$16 sps:$4 sm:$0xff]  }
 0x178   :  { %6132 = vmatpush2.bf16.msra.mxu1 %v8684_v59  ;;  %6092 = vmatprep.subr.bf16.mxu0 %v8689_v45 }
 0x179   :  { %6133 = vmatprep.subr.bf16.mxu1 %v8692_v50  ;;  %v8720_v50 = vld [vmem:[%s12772_s2 + $0x1884] ss:$16 sps:$4 sm:$0xff]  }
 0x17b   :  { %6093 = vmatpush2.bf16.msra.mxu0 %v8687_v56 }
 0x17c   :  { %6134 = vmatpush2.bf16.msra.mxu1 %v8690_v60  ;;  %6094 = vmatprep.subr.bf16.mxu0 %v8695_v24  ;;  %v8723_v60 = vld [vmem:[%s12772_s2 + $0x1a84] ss:$16 sps:$4 sm:$0xff]   ;;  %v8718_v24 = vld [vmem:[%s12772_s2 + $0x1880] ss:$16 sps:$4 sm:$0xff]  }
 0x17d   :  { %6135 = vmatprep.subr.bf16.mxu1 %v8698_v63  ;;  %v8721_v63 = vld [vmem:[%s12772_s2 + $0x1a80] ss:$16 sps:$4 sm:$0xff]  }
 0x17f   :  { %6095 = vmatpush2.bf16.msra.mxu0 %v8693_v6  ;;  %v8726_v6 = vld [vmem:[%s12772_s2 + $0x1864] ss:$16 sps:$4 sm:$0xff]  }
 0x180   :  { %6136 = vmatpush2.bf16.msra.mxu1 %v8696_v7  ;;  %6146 = vmatprep.subr.bf16.mxu0 %v8702_v39  ;;  %v8729_v7 = vld [vmem:[%s12772_s2 + $0x1a64] ss:$16 sps:$4 sm:$0xff]   ;;  %v8724_v39 = vld [vmem:[%s12772_s2 + $0x1860] ss:$16 sps:$4 sm:$0xff]  }
 0x181   :  { %6187 = vmatprep.subr.bf16.mxu1 %v8705_v49  ;;  %v8727_v49 = vld [vmem:[%s12772_s2 + $0x1a60] ss:$16 sps:$4 sm:$0xff]  }
 0x182   :  { %v5852_v22 = vpop.f32.mrf.mxu0  ;;  %6097 = vmatmul.mubr.bf16.vlgmr.msra.gmra.mxu0 %v10898_v14 }
 0x183   :  { %v5893_v26 = vpop.f32.mrf.mxu1  ;;  %6138 = vmatmul.mubr.bf16.vlgmr.msra.gmra.mxu1 %v10902_v18  ;;  %v5853_v28 = vadd.f32 %v5852_v22, %v10701_v12  ;;  %6147 = vmatpush1.bf16.msra.mxu0 %v8700_v44  ;;  %v8715_v12 = vld [vmem:[%s12772_s2 + $0x1aa0] ss:$16 sps:$4 sm:$0xff]   ;;  %v8732_v44 = vld [vmem:[%s12772_s2 + $0x1844] ss:$16 sps:$4 sm:$0xff]  }
 0x184   :  { %6188 = vmatpush1.bf16.msra.mxu1 %v8703_v11  ;;  %v5854_v30 = vpop.f32.mrf.mxu0  ;;  %6148 = vmatprep.subr.bf16.mxu0 %v8708_v19  ;;  %v8735_v11 = vld [vmem:[%s12772_s2 + $0x1a44] ss:$16 sps:$4 sm:$0xff]  }
 0x185   :  { %v5895_v31 = vpop.f32.mrf.mxu1  ;;  %6189 = vmatprep.subr.bf16.mxu1 %v8711_v20  ;;  %v10929_v41 = vadd.f32 %v5893_v26, %v5853_v28  ;;  %v5855_v42 = vadd.f32 %v5854_v30, %v10706_v15  ;;  %6178 = vmatprep.mubr.bf16.mxu0 %v10916_v10  ;;  %v8738_v19 = vld [vmem:[%s12772_s2 + $0x1824] ss:$16 sps:$4 sm:$0xff]   ;;  %v8745_v28 = vld [vmem:[%s12772_s2 + $0x1a00] ss:$16 sps:$4 sm:$0xff]  }
 0x186   :  { %6219 = vmatprep.mubr.bf16.mxu1 %v10918_v21  ;;  %v5856_v59 = vpop.f32.mrf.mxu0  ;;  %v8741_v20 = vld [vmem:[%s12772_s2 + $0x1a24] ss:$16 sps:$4 sm:$0xff]  }
 0x187   :  { %v5897_v45 = vpop.f32.mrf.mxu1  ;;  %v10943_v51 = vadd.f32 %v5895_v31, %v5855_v42  ;;  %6149 = vmatpush1.bf16.msra.mxu0 %v8706_v35  ;;  %v8736_v35 = vld [vmem:[%s12772_s2 + $0x1820] ss:$16 sps:$4 sm:$0xff]   ;;  %v8744_v22 = vld [vmem:[%s12772_s2 + $0x1804] ss:$16 sps:$4 sm:$0xff]  }
 0x188   :  { %6190 = vmatpush1.bf16.msra.mxu1 %v8709_v36  ;;  %v5857_v15 = vpop.f32.mrf.mxu0  ;;  %6150 = vmatprep.subr.bf16.mxu0 %v8714_v27  ;;  %v8739_v36 = vld [vmem:[%s12772_s2 + $0x1a20] ss:$16 sps:$4 sm:$0xff]   ;;  %v8747_v26 = vld [vmem:[%s12772_s2 + $0x1a04] ss:$16 sps:$4 sm:$0xff]  }
 0x189   :  { %v5898_v56 = vpop.f32.mrf.mxu1  ;;  %6191 = vmatprep.subr.bf16.mxu1 %v8717_v40  ;;  %v8742_v27 = vld [vmem:[%s12772_s2 + $0x1800] ss:$16 sps:$4 sm:$0xff]   ;;  %v8750_v30 = vld [vmem:[%s12772_s2 + $0x19e4] ss:$16 sps:$4 sm:$0xff]  }
 0x18a   :  { %v8753_v31 = vld [vmem:[%s12772_s2 + $0x1be4] ss:$16 sps:$4 sm:$0xff]   ;;  %v8748_v40 = vld [vmem:[%s12772_s2 + $0x19e0] ss:$16 sps:$4 sm:$0xff]  }
 0x18b   :  { %6151 = vmatpush1.bf16.msra.mxu0 %v8712_v58  ;;  %v8751_v42 = vld [vmem:[%s12772_s2 + $0x1be0] ss:$16 sps:$4 sm:$0xff]   ;;  %v8756_v58 = vld [vmem:[%s12772_s2 + $0x19c4] ss:$16 sps:$4 sm:$0xff]  }
 0x18c   :  { %6192 = vmatpush1.bf16.msra.mxu1 %v8715_v12  ;;  %6152 = vmatprep.subr.bf16.mxu0 %v8720_v50  ;;  %v8759_v12 = vld [vmem:[%s12772_s2 + $0x1bc4] ss:$16 sps:$4 sm:$0xff]   ;;  %v8754_v59 = vld [vmem:[%s12772_s2 + $0x19c0] ss:$16 sps:$4 sm:$0xff]  }
 0x18d   :  { %6193 = vmatprep.subr.bf16.mxu1 %v8723_v60  ;;  %v8757_v45 = vld [vmem:[%s12772_s2 + $0x1bc0] ss:$16 sps:$4 sm:$0xff]   ;;  %v8762_v50 = vld [vmem:[%s12772_s2 + $0x19a4] ss:$16 sps:$4 sm:$0xff]  }
 0x18e   :  { %v8765_v15 = vld [vmem:[%s12772_s2 + $0x1ba4] ss:$16 sps:$4 sm:$0xff]   ;;  %v8760_v56 = vld [vmem:[%s12772_s2 + $0x19a0] ss:$16 sps:$4 sm:$0xff]  }
 0x18f   :  { %6153 = vmatpush1.bf16.msra.mxu0 %v8718_v24  ;;  %v8763_v60 = vld [vmem:[%s12772_s2 + $0x1ba0] ss:$16 sps:$4 sm:$0xff]   ;;  %v8768_v24 = vld [vmem:[%s12772_s2 + $0x1984] ss:$16 sps:$4 sm:$0xff]  }
 0x190   :  { %6194 = vmatpush1.bf16.msra.mxu1 %v8721_v63  ;;  %6154 = vmatprep.subr.bf16.mxu0 %v8726_v6  ;;  %v8771_v63 = vld [vmem:[%s12772_s2 + $0x1b84] ss:$16 sps:$4 sm:$0xff]   ;;  %v8766_v6 = vld [vmem:[%s12772_s2 + $0x1980] ss:$16 sps:$4 sm:$0xff]  }
 0x191   :  { %6195 = vmatprep.subr.bf16.mxu1 %v8729_v7  ;;  %v8769_v7 = vld [vmem:[%s12772_s2 + $0x1b80] ss:$16 sps:$4 sm:$0xff]  }
 0x193   :  { %6155 = vmatpush1.bf16.msra.mxu0 %v8724_v39  ;;  %v8774_v39 = vld [vmem:[%s12772_s2 + $0x1964] ss:$16 sps:$4 sm:$0xff]  }
 0x194   :  { %6196 = vmatpush1.bf16.msra.mxu1 %v8727_v49  ;;  %6156 = vmatprep.subr.bf16.mxu0 %v8732_v44  ;;  %v8777_v49 = vld [vmem:[%s12772_s2 + $0x1b64] ss:$16 sps:$4 sm:$0xff]   ;;  %v8772_v44 = vld [vmem:[%s12772_s2 + $0x1960] ss:$16 sps:$4 sm:$0xff]  }
 0x195   :  { %6197 = vmatprep.subr.bf16.mxu1 %v8735_v11  ;;  %v8775_v11 = vld [vmem:[%s12772_s2 + $0x1b60] ss:$16 sps:$4 sm:$0xff]  }
 0x197   :  { %6157 = vmatpush1.bf16.msra.mxu0 %v8730_v1  ;;  %v8780_v1 = vld [vmem:[%s12772_s2 + $0x1944] ss:$16 sps:$4 sm:$0xff]  }
 0x198   :  { %6198 = vmatpush1.bf16.msra.mxu1 %v8733_v13  ;;  %6158 = vmatprep.subr.bf16.mxu0 %v8738_v19  ;;  %v8783_v13 = vld [vmem:[%s12772_s2 + $0x1b44] ss:$16 sps:$4 sm:$0xff]   ;;  %v8778_v19 = vld [vmem:[%s12772_s2 + $0x1940] ss:$16 sps:$4 sm:$0xff]  }
 0x199   :  { %6199 = vmatprep.subr.bf16.mxu1 %v8741_v20  ;;  %v8781_v20 = vld [vmem:[%s12772_s2 + $0x1b40] ss:$16 sps:$4 sm:$0xff]  }
 0x19b   :  { %6159 = vmatpush1.bf16.msra.mxu0 %v8736_v35  ;;  %v8786_v35 = vld [vmem:[%s12772_s2 + $0x1924] ss:$16 sps:$4 sm:$0xff]  }
 0x19c   :  { %6200 = vmatpush1.bf16.msra.mxu1 %v8739_v36  ;;  %6160 = vmatprep.subr.bf16.mxu0 %v8744_v22  ;;  %v8789_v36 = vld [vmem:[%s12772_s2 + $0x1b24] ss:$16 sps:$4 sm:$0xff]   ;;  %v8784_v22 = vld [vmem:[%s12772_s2 + $0x1920] ss:$16 sps:$4 sm:$0xff]  }
 0x19d   :  { %6201 = vmatprep.subr.bf16.mxu1 %v8747_v26  ;;  %v8787_v26 = vld [vmem:[%s12772_s2 + $0x1b20] ss:$16 sps:$4 sm:$0xff]  }
 0x19f   :  { %6161 = vmatpush1.bf16.msra.mxu0 %v8742_v27  ;;  %v8792_v27 = vld [vmem:[%s12772_s2 + $0x1904] ss:$16 sps:$4 sm:$0xff]  }
 0x1a0   :  { %6202 = vmatpush1.bf16.msra.mxu1 %v8745_v28  ;;  %6162 = vmatprep.subr.bf16.mxu0 %v8750_v30  ;;  %v8795_v28 = vld [vmem:[%s12772_s2 + $0x1b04] ss:$16 sps:$4 sm:$0xff]   ;;  %v8790_v30 = vld [vmem:[%s12772_s2 + $0x1900] ss:$16 sps:$4 sm:$0xff]  }
 0x1a1   :  { %6203 = vmatprep.subr.bf16.mxu1 %v8753_v31  ;;  %v8793_v31 = vld [vmem:[%s12772_s2 + $0x1b00] ss:$16 sps:$4 sm:$0xff]  }
 0x1a3   :  { %6163 = vmatpush2.bf16.msra.mxu0 %v8748_v40  ;;  %v8799_v40 = vld [vmem:[%s12772_s2 + $0x1c04] ss:$16 sps:$4 sm:$0xff]  }
 0x1a4   :  { %6204 = vmatpush2.bf16.msra.mxu1 %v8751_v42  ;;  %6164 = vmatprep.subr.bf16.mxu0 %v8756_v58  ;;  %v8802_v42 = vld [vmem:[%s12772_s2 + $0xec] ss:$16 sps:$4 sm:$0xff]   ;;  %v8800_v58 = vld [vmem:[%s12772_s2 + $0xe8] ss:$16 sps:$4 sm:$0xff]  }
 0x1a5   :  { %6205 = vmatprep.subr.bf16.mxu1 %v8759_v12  ;;  %v11109_v12 = vpack.c.bf16 %v10869_v0, %v10869_v0  ;;  %v8803_v0 = vld [vmem:[%s12772_s2 + $0xc8] ss:$16 sps:$4 sm:$0xff]  }
 0x1a7   :  { %6165 = vmatpush2.bf16.msra.mxu0 %v8754_v59  ;;  %v11113_v59 = vpack.c.bf16 %v10872_v2, %v10872_v2  ;;  %v8808_v2 = vld [vmem:[%s12772_s2 + $0x2ec] ss:$16 sps:$4 sm:$0xff]  }
 0x1a8   :  { %6206 = vmatpush2.bf16.msra.mxu1 %v8757_v45  ;;  %6166 = vmatprep.subr.bf16.mxu0 %v8762_v50  ;;  %v8797_v45 = vld [vmem:[%s12772_s2 + $0x1c00] ss:$16 sps:$4 sm:$0xff]   ;;  %v8805_v50 = vld [vmem:[%s12772_s2 + $0xcc] ss:$16 sps:$4 sm:$0xff]  }
 0x1a9   :  { %6207 = vmatprep.subr.bf16.mxu1 %v8765_v15 }
 0x1ab   :  { %6167 = vmatpush2.bf16.msra.mxu0 %v8760_v56 }
 0x1ac   :  { %6208 = vmatpush2.bf16.msra.mxu1 %v8763_v60  ;;  %6168 = vmatprep.subr.bf16.mxu0 %v8768_v24  ;;  %v7138_v60 = vld.sshfl [vmem:[%s12770_s0 + $0x38] sm:$0x3 pattern:$0x76325410] }
 0x1ad   :  { %6209 = vmatprep.subr.bf16.mxu1 %v8771_v63 }
 0x1af   :  { %6169 = vmatpush2.bf16.msra.mxu0 %v8766_v6 }
 0x1b0   :  { %6210 = vmatpush2.bf16.msra.mxu1 %v8769_v7  ;;  %6170 = vmatprep.subr.bf16.mxu0 %v8774_v39  ;;  %v8811_v7 = vld [vmem:[%s12772_s2 + $0xac] ss:$16 sps:$4 sm:$0xff]  }
 0x1b1   :  { %6211 = vmatprep.subr.bf16.mxu1 %v8777_v49 }
 0x1b3   :  { %6171 = vmatpush2.bf16.msra.mxu0 %v8772_v44  ;;  %v8806_v44 = vld [vmem:[%s12772_s2 + $0x2e8] ss:$16 sps:$4 sm:$0xff]  }
 0x1b4   :  { %6212 = vmatpush2.bf16.msra.mxu1 %v8775_v11  ;;  %6172 = vmatprep.subr.bf16.mxu0 %v8780_v1 }
 0x1b5   :  { %6213 = vmatprep.subr.bf16.mxu1 %v8783_v13  ;;  %v11147_v13 = vpack.c.bf16 %v7138_v60, %v7138_v60  ;;  %v8839_v60 = vld [vmem:[%s12772_s2 + $0x8] ss:$16 sps:$4 sm:$0xff]  }
 0x1b7   :  { %6173 = vmatpush2.bf16.msra.mxu0 %v8778_v19  ;;  %v8814_v19 = vld [vmem:[%s12772_s2 + $0x2cc] ss:$16 sps:$4 sm:$0xff]  }
 0x1b8   :  { %6214 = vmatpush2.bf16.msra.mxu1 %v8781_v20  ;;  %6174 = vmatprep.subr.bf16.mxu0 %v8786_v35 }
 0x1b9   :  { %6215 = vmatprep.subr.bf16.mxu1 %v8789_v36  ;;  %v8817_v36 = vld [vmem:[%s12772_s2 + $0x8c] ss:$16 sps:$4 sm:$0xff]  }
 0x1bb   :  { %6175 = vmatpush2.bf16.msra.mxu0 %v8784_v22  ;;  %v8815_v22 = vld [vmem:[%s12772_s2 + $0x88] ss:$16 sps:$4 sm:$0xff]  }
 0x1bc   :  { %6216 = vmatpush2.bf16.msra.mxu1 %v8787_v26  ;;  %6176 = vmatprep.subr.bf16.mxu0 %v8792_v27  ;;  %v8820_v26 = vld [vmem:[%s12772_s2 + $0x2ac] ss:$16 sps:$4 sm:$0xff]  }
 0x1bd   :  { %6217 = vmatprep.subr.bf16.mxu1 %v8795_v28  ;;  %v8823_v27 = vld [vmem:[%s12772_s2 + $0x6c] ss:$16 sps:$4 sm:$0xff]   ;;  %v8818_v28 = vld [vmem:[%s12772_s2 + $0x2a8] ss:$16 sps:$4 sm:$0xff]  }
 0x1bf   :  { %6177 = vmatpush2.bf16.msra.mxu0 %v8790_v30  ;;  %v8821_v30 = vld [vmem:[%s12772_s2 + $0x68] ss:$16 sps:$4 sm:$0xff]  }
 0x1c0   :  { %6218 = vmatpush2.bf16.msra.mxu1 %v8793_v31  ;;  %6242 = vmatprep.subr.bf16.mxu0 %v8799_v40  ;;  %v8826_v31 = vld [vmem:[%s12772_s2 + $0x28c] ss:$16 sps:$4 sm:$0xff]   ;;  %v8824_v40 = vld [vmem:[%s12772_s2 + $0x288] ss:$16 sps:$4 sm:$0xff]  }
 0x1c1   :  { %6269 = vmatprep.subr.bf16.mxu1 %v8802_v42  ;;  %v8827_v42 = vld [vmem:[%s12772_s2 + $0x48] ss:$16 sps:$4 sm:$0xff]  }
 0x1c2   :  { %v5934_v15 = vpop.f32.mrf.mxu0  ;;  %6179 = vmatmul.mubr.bf16.vlgmr.msra.gmra.mxu0 %v11109_v12 }
 0x1c3   :  { %v5975_v56 = vpop.f32.mrf.mxu1  ;;  %6220 = vmatmul.mubr.bf16.vlgmr.msra.gmra.mxu1 %v11113_v59  ;;  %v5935_v24 = vadd.f32 %v5934_v15, %v10929_v41  ;;  %6243 = vmatpush1.bf16.msra.mxu0 %v8797_v45  ;;  %v8809_v41 = vld [vmem:[%s12772_s2 + $0xa8] ss:$16 sps:$4 sm:$0xff]   ;;  %v8835_v45 = vld [vmem:[%s12772_s2 + $0x2c] ss:$16 sps:$4 sm:$0xff]  }
 0x1c4   :  { %6270 = vmatpush1.bf16.msra.mxu1 %v8800_v58  ;;  %v5936_v63 = vpop.f32.mrf.mxu0  ;;  %6260 = vmatprep.mubr.bf16.mxu0 %v9499_v23  ;;  %v8832_v58 = vld [vmem:[%s12772_s2 + $0x26c] ss:$16 sps:$4 sm:$0xff]  }
 0x1c5   :  { %v5977_v6 = vpop.f32.mrf.mxu1  ;;  %6271 = vmatprep.subr.bf16.mxu1 %v8805_v50  ;;  %v11137_v39 = vadd.f32 %v5975_v56, %v5935_v24  ;;  %v5937_v49 = vadd.f32 %v5936_v63, %v10943_v51  ;;  %6310 = vmatprep.subr.bf16.mxu0 %v8808_v2  ;;  %v8830_v50 = vld [vmem:[%s12772_s2 + $0x268] ss:$16 sps:$4 sm:$0xff]   ;;  %v8838_v2 = vld [vmem:[%s12772_s2 + $0x24c] ss:$16 sps:$4 sm:$0xff]  }
 0x1c6   :  { %6301 = vmatprep.mubr.bf16.mxu1 %v9705_v62  ;;  %v5938_v11 = vpop.f32.mrf.mxu0  ;;  %v8812_v62 = vld [vmem:[%s12772_s2 + $0x2c8] ss:$16 sps:$4 sm:$0xff]   ;;  %v8841_v15 = vld [vmem:[%s12772_s2 + $0xc] ss:$16 sps:$4 sm:$0xff]  }
 0x1c7   :  { %v5979_v1 = vpop.f32.mrf.mxu1  ;;  %v11152_v51 = vadd.f32 %v5977_v6, %v5937_v49  ;;  %v8836_v56 = vld [vmem:[%s12772_s2 + $0x248] ss:$16 sps:$4 sm:$0xff]   ;;  %v8844_v24 = vld [vmem:[%s12772_s2 + $0x22c] ss:$16 sps:$4 sm:$0xff]  }
 0x1c8   :  { %6272 = vmatpush1.bf16.msra.mxu1 %v8803_v0  ;;  %v5939_v20 = vpop.f32.mrf.mxu0  ;;  %v8833_v0 = vld [vmem:[%s12772_s2 + $0x28] ss:$16 sps:$4 sm:$0xff]   ;;  %v8847_v63 = vld [vmem:[%s12772_s2 + $0x1ec] ss:$16 sps:$4 sm:$0xff]  }
 0x1c9   :  { %v5980_v35 = vpop.f32.mrf.mxu1  ;;  %6273 = vmatprep.subr.bf16.mxu1 %v8811_v7  ;;  %v8842_v6 = vld [vmem:[%s12772_s2 + $0x228] ss:$16 sps:$4 sm:$0xff]   ;;  %v8850_v49 = vld [vmem:[%s12772_s2 + $0x20c] ss:$16 sps:$4 sm:$0xff]  }
 0x1ca   :  { %8039 = vmatmul.mubr.msk.bf16.vlgmr.msra.gmra.mxu0 %vm5650_vm0, %v11147_v13  ;;  %v8845_v7 = vld [vmem:[%s12772_s2 + $0x1e8] ss:$16 sps:$4 sm:$0xff]   ;;  %v8856_v1 = vld [vmem:[%s12772_s2 + $0x3ec] ss:$16 sps:$4 sm:$0xff]  }
 0x1cb   :  { %6311 = vmatpush1.bf16.msra.mxu0 %v8806_v44  ;;  %6342 = vmatprep.mubr.bf16.mxu0 %v9716_v3  ;;  %v8829_v3 = vld [vmem:[%s12772_s2 + $0x4c] ss:$16 sps:$4 sm:$0xff]   ;;  %v8851_v11 = vld [vmem:[%s12772_s2 + $0x1c8] ss:$16 sps:$4 sm:$0xff]  }
 0x1cc   :  { %6274 = vmatpush1.bf16.msra.mxu1 %v8809_v41  ;;  %6312 = vmatprep.subr.bf16.mxu0 %v8814_v19  ;;  %v8853_v44 = vld [vmem:[%s12772_s2 + $0x1cc] ss:$16 sps:$4 sm:$0xff]   ;;  %v8848_v41 = vld [vmem:[%s12772_s2 + $0x208] ss:$16 sps:$4 sm:$0xff]  }
 0x1cd   :  { %6275 = vmatprep.subr.bf16.mxu1 %v8817_v36  ;;  %v8859_v19 = vld [vmem:[%s12772_s2 + $0x1ac] ss:$16 sps:$4 sm:$0xff]   ;;  %v8854_v20 = vld [vmem:[%s12772_s2 + $0x3e8] ss:$16 sps:$4 sm:$0xff]  }
 0x1ce   :  { %v8857_v35 = vld [vmem:[%s12772_s2 + $0x1a8] ss:$16 sps:$4 sm:$0xff]   ;;  %v8862_v36 = vld [vmem:[%s12772_s2 + $0x3cc] ss:$16 sps:$4 sm:$0xff]  }
 0x1cf   :  { %6313 = vmatpush1.bf16.msra.mxu0 %v8812_v62  ;;  %v8865_v62 = vld [vmem:[%s12772_s2 + $0x18c] ss:$16 sps:$4 sm:$0xff]  }
 0x1d0   :  { %6276 = vmatpush1.bf16.msra.mxu1 %v8815_v22  ;;  %6314 = vmatprep.subr.bf16.mxu0 %v8820_v26  ;;  %v8860_v22 = vld [vmem:[%s12772_s2 + $0x3c8] ss:$16 sps:$4 sm:$0xff]  }
 0x1d1   :  { %6277 = vmatprep.subr.bf16.mxu1 %v8823_v27  ;;  %v8863_v26 = vld [vmem:[%s12772_s2 + $0x188] ss:$16 sps:$4 sm:$0xff]   ;;  %v8868_v27 = vld [vmem:[%s12772_s2 + $0x3ac] ss:$16 sps:$4 sm:$0xff]  }
 0x1d3   :  { %6315 = vmatpush1.bf16.msra.mxu0 %v8818_v28  ;;  %v8871_v28 = vld [vmem:[%s12772_s2 + $0x16c] ss:$16 sps:$4 sm:$0xff]  }
 0x1d4   :  { %6278 = vmatpush1.bf16.msra.mxu1 %v8821_v30  ;;  %6316 = vmatprep.subr.bf16.mxu0 %v8826_v31  ;;  %v8866_v30 = vld [vmem:[%s12772_s2 + $0x3a8] ss:$16 sps:$4 sm:$0xff]  }
 0x1d5   :  { %6279 = vmatprep.subr.bf16.mxu1 %v8829_v3  ;;  %v8869_v31 = vld [vmem:[%s12772_s2 + $0x168] ss:$16 sps:$4 sm:$0xff]   ;;  %v8874_v3 = vld [vmem:[%s12772_s2 + $0x38c] ss:$16 sps:$4 sm:$0xff]  }
 0x1d7   :  { %6317 = vmatpush1.bf16.msra.mxu0 %v8824_v40  ;;  %v8877_v40 = vld [vmem:[%s12772_s2 + $0x14c] ss:$16 sps:$4 sm:$0xff]  }
 0x1d8   :  { %6280 = vmatpush1.bf16.msra.mxu1 %v8827_v42  ;;  %6318 = vmatprep.subr.bf16.mxu0 %v8832_v58  ;;  %v8872_v42 = vld [vmem:[%s12772_s2 + $0x388] ss:$16 sps:$4 sm:$0xff]  }
 0x1d9   :  { %6281 = vmatprep.subr.bf16.mxu1 %v8835_v45  ;;  %v8875_v58 = vld [vmem:[%s12772_s2 + $0x148] ss:$16 sps:$4 sm:$0xff]   ;;  %v8880_v45 = vld [vmem:[%s12772_s2 + $0x36c] ss:$16 sps:$4 sm:$0xff]  }
 0x1db   :  { %6319 = vmatpush1.bf16.msra.mxu0 %v8830_v50  ;;  %v8883_v50 = vld [vmem:[%s12772_s2 + $0x12c] ss:$16 sps:$4 sm:$0xff]  }
 0x1dc   :  { %6282 = vmatpush1.bf16.msra.mxu1 %v8833_v0  ;;  %6320 = vmatprep.subr.bf16.mxu0 %v8838_v2  ;;  %v8878_v0 = vld [vmem:[%s12772_s2 + $0x368] ss:$16 sps:$4 sm:$0xff]  }
 0x1dd   :  { %6283 = vmatprep.subr.bf16.mxu1 %v8841_v15  ;;  %v8881_v2 = vld [vmem:[%s12772_s2 + $0x128] ss:$16 sps:$4 sm:$0xff]   ;;  %v8886_v15 = vld [vmem:[%s12772_s2 + $0x34c] ss:$16 sps:$4 sm:$0xff]  }
 0x1df   :  { %6321 = vmatpush1.bf16.msra.mxu0 %v8836_v56  ;;  %v8889_v56 = vld [vmem:[%s12772_s2 + $0x10c] ss:$16 sps:$4 sm:$0xff]  }
 0x1e0   :  { %6284 = vmatpush1.bf16.msra.mxu1 %v8839_v60  ;;  %6322 = vmatprep.subr.bf16.mxu0 %v8844_v24  ;;  %v8884_v60 = vld [vmem:[%s12772_s2 + $0x348] ss:$16 sps:$4 sm:$0xff]  }
 0x1e1   :  { %6285 = vmatprep.subr.bf16.mxu1 %v8847_v63  ;;  %v8887_v24 = vld [vmem:[%s12772_s2 + $0x108] ss:$16 sps:$4 sm:$0xff]   ;;  %v8892_v63 = vld [vmem:[%s12772_s2 + $0x32c] ss:$16 sps:$4 sm:$0xff]  }
 0x1e3   :  { %6323 = vmatpush1.bf16.msra.mxu0 %v8842_v6  ;;  %v8895_v6 = vld [vmem:[%s12772_s2 + $0x4ec] ss:$16 sps:$4 sm:$0xff]  }
 0x1e4   :  { %6286 = vmatpush2.bf16.msra.mxu1 %v8845_v7  ;;  %6324 = vmatprep.subr.bf16.mxu0 %v8850_v49  ;;  %v8890_v7 = vld [vmem:[%s12772_s2 + $0x328] ss:$16 sps:$4 sm:$0xff]  }
 0x1e5   :  { %6287 = vmatprep.subr.bf16.mxu1 %v8853_v44  ;;  %v8893_v49 = vld [vmem:[%s12772_s2 + $0x4e8] ss:$16 sps:$4 sm:$0xff]   ;;  %v8898_v44 = vld [vmem:[%s12772_s2 + $0x30c] ss:$16 sps:$4 sm:$0xff]  }
 0x1e7   :  { %6325 = vmatpush1.bf16.msra.mxu0 %v8848_v41  ;;  %v8901_v41 = vld [vmem:[%s12772_s2 + $0x4cc] ss:$16 sps:$4 sm:$0xff]  }
 0x1e8   :  { %6288 = vmatpush2.bf16.msra.mxu1 %v8851_v11  ;;  %6326 = vmatprep.subr.bf16.mxu0 %v8856_v1  ;;  %v8896_v11 = vld [vmem:[%s12772_s2 + $0x308] ss:$16 sps:$4 sm:$0xff]  }
 0x1e9   :  { %6289 = vmatprep.subr.bf16.mxu1 %v8859_v19  ;;  %v8899_v1 = vld [vmem:[%s12772_s2 + $0x4c8] ss:$16 sps:$4 sm:$0xff]  }
 0x1eb   :  { %6327 = vmatpush2.bf16.msra.mxu0 %v8854_v20 }
 0x1ec   :  { %6290 = vmatpush2.bf16.msra.mxu1 %v8857_v35  ;;  %6328 = vmatprep.subr.bf16.mxu0 %v8862_v36  ;;  %v8904_v35 = vld [vmem:[%s12772_s2 + $0x6ec] ss:$16 sps:$4 sm:$0xff]  }
 0x1ed   :  { %6291 = vmatprep.subr.bf16.mxu1 %v8865_v62 }
 0x1ef   :  { %6329 = vmatpush2.bf16.msra.mxu0 %v8860_v22 }
 0x1f0   :  { %6292 = vmatpush2.bf16.msra.mxu1 %v8863_v26  ;;  %6330 = vmatprep.subr.bf16.mxu0 %v8868_v27  ;;  %v8907_v26 = vld [vmem:[%s12772_s2 + $0x4ac] ss:$16 sps:$4 sm:$0xff]  }
 0x1f1   :  { %6293 = vmatprep.subr.bf16.mxu1 %v8871_v28 }
 0x1f3   :  { %6331 = vmatpush2.bf16.msra.mxu0 %v8866_v30 }
 0x1f4   :  { %6294 = vmatpush2.bf16.msra.mxu1 %v8869_v31  ;;  %6332 = vmatprep.subr.bf16.mxu0 %v8874_v3 }
 0x1f5   :  { %6295 = vmatprep.subr.bf16.mxu1 %v8877_v40 }
 0x1f7   :  { %6333 = vmatpush2.bf16.msra.mxu0 %v8872_v42 }
 0x1f8   :  { %6296 = vmatpush2.bf16.msra.mxu1 %v8875_v58  ;;  %6334 = vmatprep.subr.bf16.mxu0 %v8880_v45 }
 0x1f9   :  { %6297 = vmatprep.subr.bf16.mxu1 %v8883_v50 }
 0x1fb   :  { %6335 = vmatpush2.bf16.msra.mxu0 %v8878_v0 }
 0x1fc   :  { %6298 = vmatpush2.bf16.msra.mxu1 %v8881_v2  ;;  %6336 = vmatprep.subr.bf16.mxu0 %v8886_v15 }
 0x1fd   :  { %6299 = vmatprep.subr.bf16.mxu1 %v8889_v56 }
 0x1ff   :  { %6337 = vmatpush2.bf16.msra.mxu0 %v8884_v60 }
 0x200   :  { %6300 = vmatpush2.bf16.msra.mxu1 %v8887_v24  ;;  %6338 = vmatprep.subr.bf16.mxu0 %v8892_v63 }
 0x201   :  { %6351 = vmatprep.subr.bf16.mxu1 %v8895_v6 }
 0x202   :  { %v6016_v19 = vpop.f32.mrf.mxu0 }
 0x203   :  { %v6057_v20 = vpop.f32.mrf.mxu1  ;;  %6302 = vmatmul.mubr.bf16.vlgmr.msra.gmra.mxu1 %v9756_v16  ;;  %v6017_v36 = vadd.f32 %v6016_v19, %v11137_v39  ;;  %6339 = vmatpush2.bf16.msra.mxu0 %v8890_v7 }
 0x204   :  { %6352 = vmatpush1.bf16.msra.mxu1 %v8893_v49  ;;  %v6018_v62 = vpop.f32.mrf.mxu0  ;;  %6340 = vmatprep.subr.bf16.mxu0 %v8898_v44 }
 0x205   :  { %v6059_v22 = vpop.f32.mrf.mxu1  ;;  %6353 = vmatprep.subr.bf16.mxu1 %v8901_v41  ;;  %v11342_v27 = vadd.f32 %v6057_v20, %v6017_v36  ;;  %v6019_v16 = vadd.f32 %v6018_v62, %v11152_v51  ;;  %6383 = vmatprep.mubr.bf16.mxu1 %v9857_v53 }
 0x206   :  { %12 = vsyncpa [#allocation3], 0  ;;  %v6020_v28 = vpop.f32.mrf.mxu0  ;;  %v8902_v31 = vld [vmem:[%s12772_s2 + $0x6e8] ss:$16 sps:$4 sm:$0xff]   ;;  %v8910_v53 = vld [vmem:[%s12772_s2 + $0x6cc] ss:$16 sps:$4 sm:$0xff]  }
 0x207   :  { %v6061_v30 = vpop.f32.mrf.mxu1  ;;  %v11346_v39 = vadd.f32 %v6059_v22, %v6019_v16  ;;  %6341 = vmatpush2.bf16.msra.mxu0 %v8896_v11  ;;  %v8905_v3 = vld [vmem:[%s12772_s2 + $0x4a8] ss:$16 sps:$4 sm:$0xff]   ;;  %v8913_v51 = vld [vmem:[%s12772_s2 + $0x48c] ss:$16 sps:$4 sm:$0xff]   ;;  %vm7122_vm1 = vcmask 9216  }
 0x208   :  { %6354 = vmatpush1.bf16.msra.mxu1 %v8899_v1  ;;  %v6021_v40 = vpop.f32.mrf.mxu0  ;;  %6392 = vmatprep.subr.bf16.mxu0 %v8904_v35  ;;  %v8908_v58 = vld [vmem:[%s12772_s2 + $0x6c8] ss:$16 sps:$4 sm:$0xff]   ;;  %v8916_v50 = vld [vmem:[%s12772_s2 + $0x6ac] ss:$16 sps:$4 sm:$0xff]  }
 0x209   :  { %v6062_v42 = vpop.f32.mrf.mxu1  ;;  %6355 = vmatprep.subr.bf16.mxu1 %v8907_v26  ;;  %v8911_v45 = vld [vmem:[%s12772_s2 + $0x488] ss:$16 sps:$4 sm:$0xff]   ;;  %v8922_v15 = vld [vmem:[%s12772_s2 + $0x68c] ss:$16 sps:$4 sm:$0xff]  }
 0x20a   :  { %6343 = vmatmul.mubr.bf16.vlgmr.msra.gmra.mxu0 %v9758_v17  ;;  %v8919_v17 = vld [vmem:[%s12772_s2 + $0x46c] ss:$16 sps:$4 sm:$0xff]   ;;  %v8914_v0 = vld [vmem:[%s12772_s2 + $0x6a8] ss:$16 sps:$4 sm:$0xff]  }
 0x20b   :  { %6393 = vmatpush1.bf16.msra.mxu0 %v8902_v31  ;;  %6424 = vmatprep.mubr.bf16.mxu0 %v9867_v57  ;;  %v8917_v2 = vld [vmem:[%s12772_s2 + $0x468] ss:$16 sps:$4 sm:$0xff]   ;;  %v8925_v57 = vld [vmem:[%s12772_s2 + $0x44c] ss:$16 sps:$4 sm:$0xff]  }
 0x20c   :  { %6356 = vmatpush1.bf16.msra.mxu1 %v8905_v3  ;;  %6394 = vmatprep.subr.bf16.mxu0 %v8910_v53  ;;  %v8920_v56 = vld [vmem:[%s12772_s2 + $0x688] ss:$16 sps:$4 sm:$0xff]   ;;  %v8928_v24 = vld [vmem:[%s12772_s2 + $0x66c] ss:$16 sps:$4 sm:$0xff]  }
 0x20d   :  { %6357 = vmatprep.subr.bf16.mxu1 %v8913_v51  ;;  %v8923_v60 = vld [vmem:[%s12772_s2 + $0x448] ss:$16 sps:$4 sm:$0xff]   ;;  %v8931_v63 = vld [vmem:[%s12772_s2 + $0x42c] ss:$16 sps:$4 sm:$0xff]  }
 0x20e   :  { %v8926_v6 = vld [vmem:[%s12772_s2 + $0x668] ss:$16 sps:$4 sm:$0xff]   ;;  %v8934_v49 = vld [vmem:[%s12772_s2 + $0x64c] ss:$16 sps:$4 sm:$0xff]  }
 0x20f   :  { %6395 = vmatpush1.bf16.msra.mxu0 %v8908_v58  ;;  %v8929_v7 = vld [vmem:[%s12772_s2 + $0x428] ss:$16 sps:$4 sm:$0xff]   ;;  %v8937_v44 = vld [vmem:[%s12772_s2 + $0x40c] ss:$16 sps:$4 sm:$0xff]  }
 0x210   :  { %6358 = vmatpush1.bf16.msra.mxu1 %v8911_v45  ;;  %6396 = vmatprep.subr.bf16.mxu0 %v8916_v50  ;;  %v8932_v41 = vld [vmem:[%s12772_s2 + $0x648] ss:$16 sps:$4 sm:$0xff]   ;;  %v8940_v1 = vld [vmem:[%s12772_s2 + $0x62c] ss:$16 sps:$4 sm:$0xff]  }
 0x211   :  { %6359 = vmatprep.subr.bf16.mxu1 %v8919_v17  ;;  %v8935_v11 = vld [vmem:[%s12772_s2 + $0x408] ss:$16 sps:$4 sm:$0xff]   ;;  %v8943_v19 = vld [vmem:[%s12772_s2 + $0x5ec] ss:$16 sps:$4 sm:$0xff]  }
 0x212   :  { %v8938_v20 = vld [vmem:[%s12772_s2 + $0x628] ss:$16 sps:$4 sm:$0xff]   ;;  %v8946_v36 = vld [vmem:[%s12772_s2 + $0x60c] ss:$16 sps:$4 sm:$0xff]  }
 0x213   :  { %6397 = vmatpush1.bf16.msra.mxu0 %v8914_v0  ;;  %v8941_v35 = vld [vmem:[%s12772_s2 + $0x5e8] ss:$16 sps:$4 sm:$0xff]   ;;  %v8949_v62 = vld [vmem:[%s12772_s2 + $0x5cc] ss:$16 sps:$4 sm:$0xff]  }
 0x214   :  { %6360 = vmatpush1.bf16.msra.mxu1 %v8917_v2  ;;  %6398 = vmatprep.subr.bf16.mxu0 %v8922_v15  ;;  %v8944_v22 = vld [vmem:[%s12772_s2 + $0x608] ss:$16 sps:$4 sm:$0xff]   ;;  %v8952_v16 = vld [vmem:[%s12772_s2 + $0x7ec] ss:$16 sps:$4 sm:$0xff]  }
 0x215   :  { %6361 = vmatprep.subr.bf16.mxu1 %v8925_v57  ;;  %v8947_v26 = vld [vmem:[%s12772_s2 + $0x5c8] ss:$16 sps:$4 sm:$0xff]   ;;  %v8955_v28 = vld [vmem:[%s12772_s2 + $0x5ac] ss:$16 sps:$4 sm:$0xff]  }
 0x216   :  { %v8950_v30 = vld [vmem:[%s12772_s2 + $0x7e8] ss:$16 sps:$4 sm:$0xff]   ;;  %v8958_v3 = vld [vmem:[%s12772_s2 + $0x7cc] ss:$16 sps:$4 sm:$0xff]  }
 0x217   :  { %6399 = vmatpush1.bf16.msra.mxu0 %v8920_v56  ;;  %v8953_v31 = vld [vmem:[%s12772_s2 + $0x5a8] ss:$16 sps:$4 sm:$0xff]   ;;  %v8961_v40 = vld [vmem:[%s12772_s2 + $0x58c] ss:$16 sps:$4 sm:$0xff]  }
 0x218   :  { %6362 = vmatpush1.bf16.msra.mxu1 %v8923_v60  ;;  %6400 = vmatprep.subr.bf16.mxu0 %v8928_v24  ;;  %v8956_v42 = vld [vmem:[%s12772_s2 + $0x7c8] ss:$16 sps:$4 sm:$0xff]   ;;  %v8964_v51 = vld [vmem:[%s12772_s2 + $0x7ac] ss:$16 sps:$4 sm:$0xff]  }
 0x219   :  { %6363 = vmatprep.subr.bf16.mxu1 %v8931_v63  ;;  %v8959_v53 = vld [vmem:[%s12772_s2 + $0x588] ss:$16 sps:$4 sm:$0xff]   ;;  %v8967_v58 = vld [vmem:[%s12772_s2 + $0x56c] ss:$16 sps:$4 sm:$0xff]  }
 0x21a   :  { %v8962_v45 = vld [vmem:[%s12772_s2 + $0x7a8] ss:$16 sps:$4 sm:$0xff]   ;;  %v8970_v17 = vld [vmem:[%s12772_s2 + $0x78c] ss:$16 sps:$4 sm:$0xff]  }
 0x21b   :  { %6401 = vmatpush1.bf16.msra.mxu0 %v8926_v6  ;;  %v8965_v50 = vld [vmem:[%s12772_s2 + $0x568] ss:$16 sps:$4 sm:$0xff]   ;;  %v8973_v0 = vld [vmem:[%s12772_s2 + $0x54c] ss:$16 sps:$4 sm:$0xff]  }
 0x21c   :  { %6364 = vmatpush1.bf16.msra.mxu1 %v8929_v7  ;;  %6402 = vmatprep.subr.bf16.mxu0 %v8934_v49  ;;  %v8968_v2 = vld [vmem:[%s12772_s2 + $0x788] ss:$16 sps:$4 sm:$0xff]   ;;  %v8976_v57 = vld [vmem:[%s12772_s2 + $0x76c] ss:$16 sps:$4 sm:$0xff]  }
 0x21d   :  { %6365 = vmatprep.subr.bf16.mxu1 %v8937_v44  ;;  %v8971_v15 = vld [vmem:[%s12772_s2 + $0x548] ss:$16 sps:$4 sm:$0xff]   ;;  %v8979_v56 = vld [vmem:[%s12772_s2 + $0x52c] ss:$16 sps:$4 sm:$0xff]  }
 0x21e   :  { %v8974_v60 = vld [vmem:[%s12772_s2 + $0x768] ss:$16 sps:$4 sm:$0xff]   ;;  %v8982_v63 = vld [vmem:[%s12772_s2 + $0x74c] ss:$16 sps:$4 sm:$0xff]  }
 0x21f   :  { %6403 = vmatpush1.bf16.msra.mxu0 %v8932_v41  ;;  %v8977_v24 = vld [vmem:[%s12772_s2 + $0x528] ss:$16 sps:$4 sm:$0xff]   ;;  %v8985_v6 = vld [vmem:[%s12772_s2 + $0x50c] ss:$16 sps:$4 sm:$0xff]  }
 0x220   :  { %6366 = vmatpush1.bf16.msra.mxu1 %v8935_v11  ;;  %6404 = vmatprep.subr.bf16.mxu0 %v8940_v1  ;;  %v8980_v7 = vld [vmem:[%s12772_s2 + $0x748] ss:$16 sps:$4 sm:$0xff]   ;;  %v8988_v44 = vld [vmem:[%s12772_s2 + $0x72c] ss:$16 sps:$4 sm:$0xff]  }
 0x221   :  { %6367 = vmatprep.subr.bf16.mxu1 %v8943_v19  ;;  %v8983_v49 = vld [vmem:[%s12772_s2 + $0x508] ss:$16 sps:$4 sm:$0xff]   ;;  %v8991_v41 = vld [vmem:[%s12772_s2 + $0x8ec] ss:$16 sps:$4 sm:$0xff]  }
 0x222   :  { %v8986_v11 = vld [vmem:[%s12772_s2 + $0x728] ss:$16 sps:$4 sm:$0xff]   ;;  %v8994_v19 = vld [vmem:[%s12772_s2 + $0x70c] ss:$16 sps:$4 sm:$0xff]  }
 0x223   :  { %6405 = vmatpush1.bf16.msra.mxu0 %v8938_v20  ;;  %v8989_v1 = vld [vmem:[%s12772_s2 + $0x8e8] ss:$16 sps:$4 sm:$0xff]   ;;  %v8997_v20 = vld [vmem:[%s12772_s2 + $0x8cc] ss:$16 sps:$4 sm:$0xff]  }
 0x224   :  { %6368 = vmatpush2.bf16.msra.mxu1 %v8941_v35  ;;  %6406 = vmatprep.subr.bf16.mxu0 %v8946_v36 }
 0x225   :  { %6369 = vmatprep.subr.bf16.mxu1 %v8949_v62 }
 0x227   :  { %6407 = vmatpush1.bf16.msra.mxu0 %v8944_v22  ;;  %v8992_v22 = vld [vmem:[%s12772_s2 + $0x708] ss:$16 sps:$4 sm:$0xff]  }
 0x228   :  { %6370 = vmatpush2.bf16.msra.mxu1 %v8947_v26  ;;  %6408 = vmatprep.subr.bf16.mxu0 %v8952_v16  ;;  %v8995_v26 = vld [vmem:[%s12772_s2 + $0x8c8] ss:$16 sps:$4 sm:$0xff]  }
 0x229   :  { %6371 = vmatprep.subr.bf16.mxu1 %v8955_v28 }
 0x22b   :  { %6409 = vmatpush2.bf16.msra.mxu0 %v8950_v30 }
 0x22c   :  { %6372 = vmatpush2.bf16.msra.mxu1 %v8953_v31  ;;  %6410 = vmatprep.subr.bf16.mxu0 %v8958_v3 }
 0x22d   :  { %6373 = vmatprep.subr.bf16.mxu1 %v8961_v40 }
 0x22f   :  { %6411 = vmatpush2.bf16.msra.mxu0 %v8956_v42 }
 0x230   :  { %6374 = vmatpush2.bf16.msra.mxu1 %v8959_v53  ;;  %6412 = vmatprep.subr.bf16.mxu0 %v8964_v51  ;;  %v8998_v53 = vld [vmem:[%s12772_s2 + $0xae8] ss:$16 sps:$4 sm:$0xff]  }
 0x231   :  { %6375 = vmatprep.subr.bf16.mxu1 %v8967_v58  ;;  %v9001_v51 = vld [vmem:[%s12772_s2 + $0x8a8] ss:$16 sps:$4 sm:$0xff]  }
 0x233   :  { %6413 = vmatpush2.bf16.msra.mxu0 %v8962_v45 }
 0x234   :  { %6376 = vmatpush2.bf16.msra.mxu1 %v8965_v50  ;;  %6414 = vmatprep.subr.bf16.mxu0 %v8970_v17  ;;  %v9004_v50 = vld [vmem:[%s12772_s2 + $0xac8] ss:$16 sps:$4 sm:$0xff]  }
 0x235   :  { %6377 = vmatprep.subr.bf16.mxu1 %v8973_v0  ;;  %v9007_v17 = vld [vmem:[%s12772_s2 + $0x888] ss:$16 sps:$4 sm:$0xff]   ;;  %v9012_v0 = vld [vmem:[%s12772_s2 + $0xaac] ss:$16 sps:$4 sm:$0xff]  }
 0x237   :  { %6415 = vmatpush2.bf16.msra.mxu0 %v8968_v2  ;;  %v9010_v2 = vld [vmem:[%s12772_s2 + $0xaa8] ss:$16 sps:$4 sm:$0xff]  }
 0x238   :  { %6378 = vmatpush2.bf16.msra.mxu1 %v8971_v15  ;;  %6416 = vmatprep.subr.bf16.mxu0 %v8976_v57  ;;  %v9013_v15 = vld [vmem:[%s12772_s2 + $0x868] ss:$16 sps:$4 sm:$0xff]   ;;  %v9018_v57 = vld [vmem:[%s12772_s2 + $0xa8c] ss:$16 sps:$4 sm:$0xff]  }
 0x239   :  { %6379 = vmatprep.subr.bf16.mxu1 %v8979_v56  ;;  %v9016_v56 = vld [vmem:[%s12772_s2 + $0xa88] ss:$16 sps:$4 sm:$0xff]  }
 0x23b   :  { %6417 = vmatpush2.bf16.msra.mxu0 %v8974_v60  ;;  %v9019_v60 = vld [vmem:[%s12772_s2 + $0x848] ss:$16 sps:$4 sm:$0xff]  }
 0x23c   :  { %6380 = vmatpush2.bf16.msra.mxu1 %v8977_v24  ;;  %6418 = vmatprep.subr.bf16.mxu0 %v8982_v63  ;;  %v9024_v24 = vld [vmem:[%s12772_s2 + $0xa6c] ss:$16 sps:$4 sm:$0xff]  }
 0x23d   :  { %6381 = vmatprep.subr.bf16.mxu1 %v8985_v6  ;;  %v9027_v63 = vld [vmem:[%s12772_s2 + $0x82c] ss:$16 sps:$4 sm:$0xff]   ;;  %v9022_v6 = vld [vmem:[%s12772_s2 + $0xa68] ss:$16 sps:$4 sm:$0xff]  }
 0x23f   :  { %6419 = vmatpush2.bf16.msra.mxu0 %v8980_v7  ;;  %v9025_v7 = vld [vmem:[%s12772_s2 + $0x828] ss:$16 sps:$4 sm:$0xff]  }
 0x240   :  { %6382 = vmatpush2.bf16.msra.mxu1 %v8983_v49  ;;  %6420 = vmatprep.subr.bf16.mxu0 %v8988_v44  ;;  %v9030_v49 = vld [vmem:[%s12772_s2 + $0xa4c] ss:$16 sps:$4 sm:$0xff]  }
 0x241   :  { %6433 = vmatprep.subr.bf16.mxu1 %v8991_v41  ;;  %v9033_v44 = vld [vmem:[%s12772_s2 + $0x80c] ss:$16 sps:$4 sm:$0xff]   ;;  %v9028_v41 = vld [vmem:[%s12772_s2 + $0xa48] ss:$16 sps:$4 sm:$0xff]  }
 0x242   :  { %v6098_v35 = vpop.f32.mrf.mxu0 }
 0x243   :  { %v6139_v36 = vpop.f32.mrf.mxu1  ;;  %6384 = vmatmul.mubr.bf16.vlgmr.msra.gmra.mxu1 %v9975_v32  ;;  %v6099_v62 = vadd.f32 %v6098_v35, %v11342_v27  ;;  %6421 = vmatpush2.bf16.msra.mxu0 %v8986_v11  ;;  %v9000_v32 = vld [vmem:[%s12772_s2 + $0xaec] ss:$16 sps:$4 sm:$0xff]   ;;  %v9031_v11 = vld [vmem:[%s12772_s2 + $0x808] ss:$16 sps:$4 sm:$0xff]  }
 0x244   :  { %6434 = vmatpush1.bf16.msra.mxu1 %v8989_v1  ;;  %v6100_v16 = vpop.f32.mrf.mxu0  ;;  %6422 = vmatprep.subr.bf16.mxu0 %v8994_v19  ;;  %v9003_v27 = vld [vmem:[%s12772_s2 + $0x8ac] ss:$16 sps:$4 sm:$0xff]   ;;  %v9037_v35 = vld [vmem:[%s12772_s2 + $0x9e8] ss:$16 sps:$4 sm:$0xff]  }
 0x245   :  { %v6141_v28 = vpop.f32.mrf.mxu1  ;;  %6435 = vmatprep.subr.bf16.mxu1 %v8997_v20  ;;  %v11544_v30 = vadd.f32 %v6139_v36, %v6099_v62  ;;  %v6101_v31 = vadd.f32 %v6100_v16, %v11346_v39  ;;  %6465 = vmatprep.mubr.bf16.mxu1 %v10018_v48  ;;  %v9006_v48 = vld [vmem:[%s12772_s2 + $0xacc] ss:$16 sps:$4 sm:$0xff]   ;;  %v9034_v20 = vld [vmem:[%s12772_s2 + $0xa28] ss:$16 sps:$4 sm:$0xff]  }
 0x246   :  { %v6102_v3 = vpop.f32.mrf.mxu0  ;;  %v9009_v39 = vld [vmem:[%s12772_s2 + $0x88c] ss:$16 sps:$4 sm:$0xff]  }
 0x247   :  { %v6143_v40 = vpop.f32.mrf.mxu1  ;;  %v11548_v42 = vadd.f32 %v6141_v28, %v6101_v31  ;;  %6423 = vmatpush2.bf16.msra.mxu0 %v8992_v22  ;;  %v9036_v1 = vld [vmem:[%s12772_s2 + $0xa2c] ss:$16 sps:$4 sm:$0xff]   ;;  %v9040_v22 = vld [vmem:[%s12772_s2 + $0xa08] ss:$16 sps:$4 sm:$0xff]  }
 0x248   :  { %6436 = vmatpush1.bf16.msra.mxu1 %v8995_v26  ;;  %v6103_v58 = vpop.f32.mrf.mxu0  ;;  %6474 = vmatprep.subr.bf16.mxu0 %v9000_v32  ;;  %v9039_v19 = vld [vmem:[%s12772_s2 + $0x9ec] ss:$16 sps:$4 sm:$0xff]   ;;  %v9043_v26 = vld [vmem:[%s12772_s2 + $0x9c8] ss:$16 sps:$4 sm:$0xff]  }
 0x249   :  { %v6144_v45 = vpop.f32.mrf.mxu1  ;;  %6437 = vmatprep.subr.bf16.mxu1 %v9003_v27  ;;  %v9042_v36 = vld [vmem:[%s12772_s2 + $0xa0c] ss:$16 sps:$4 sm:$0xff]   ;;  %v9046_v32 = vld [vmem:[%s12772_s2 + $0xbe8] ss:$16 sps:$4 sm:$0xff]  }
 0x24a   :  { %6425 = vmatmul.mubr.bf16.vlgmr.msra.gmra.mxu0 %v9979_v33  ;;  %v9015_v33 = vld [vmem:[%s12772_s2 + $0x86c] ss:$16 sps:$4 sm:$0xff]   ;;  %v9049_v27 = vld [vmem:[%s12772_s2 + $0x9a8] ss:$16 sps:$4 sm:$0xff]  }
 0x24b   :  { %6475 = vmatpush1.bf16.msra.mxu0 %v8998_v53  ;;  %6506 = vmatprep.mubr.bf16.mxu0 %v10026_v52  ;;  %v9021_v52 = vld [vmem:[%s12772_s2 + $0x84c] ss:$16 sps:$4 sm:$0xff]   ;;  %v9052_v40 = vld [vmem:[%s12772_s2 + $0xbc8] ss:$16 sps:$4 sm:$0xff]  }
 0x24c   :  { %6438 = vmatpush1.bf16.msra.mxu1 %v9001_v51  ;;  %6476 = vmatprep.subr.bf16.mxu0 %v9006_v48  ;;  %v9045_v62 = vld [vmem:[%s12772_s2 + $0x9cc] ss:$16 sps:$4 sm:$0xff]   ;;  %v9055_v53 = vld [vmem:[%s12772_s2 + $0x988] ss:$16 sps:$4 sm:$0xff]  }
 0x24d   :  { %6439 = vmatprep.subr.bf16.mxu1 %v9009_v39  ;;  %v9048_v16 = vld [vmem:[%s12772_s2 + $0xbec] ss:$16 sps:$4 sm:$0xff]   ;;  %v9058_v45 = vld [vmem:[%s12772_s2 + $0xba8] ss:$16 sps:$4 sm:$0xff]  }
 0x24e   :  { %v9051_v28 = vld [vmem:[%s12772_s2 + $0x9ac] ss:$16 sps:$4 sm:$0xff]   ;;  %v9061_v48 = vld [vmem:[%s12772_s2 + $0x968] ss:$16 sps:$4 sm:$0xff]  }
 0x24f   :  { %6477 = vmatpush1.bf16.msra.mxu0 %v9004_v50  ;;  %v9054_v31 = vld [vmem:[%s12772_s2 + $0xbcc] ss:$16 sps:$4 sm:$0xff]  }
 0x250   :  { %6440 = vmatpush1.bf16.msra.mxu1 %v9007_v17  ;;  %6478 = vmatprep.subr.bf16.mxu0 %v9012_v0  ;;  %v9057_v3 = vld [vmem:[%s12772_s2 + $0x98c] ss:$16 sps:$4 sm:$0xff]   ;;  %v9064_v17 = vld [vmem:[%s12772_s2 + $0xb88] ss:$16 sps:$4 sm:$0xff]  }
 0x251   :  { %6441 = vmatprep.subr.bf16.mxu1 %v9015_v33  ;;  %v9060_v51 = vld [vmem:[%s12772_s2 + $0xbac] ss:$16 sps:$4 sm:$0xff]   ;;  %v9067_v0 = vld [vmem:[%s12772_s2 + $0x948] ss:$16 sps:$4 sm:$0xff]  }
 0x252   :  { %v9063_v58 = vld [vmem:[%s12772_s2 + $0x96c] ss:$16 sps:$4 sm:$0xff]  }
 0x253   :  { %6479 = vmatpush1.bf16.msra.mxu0 %v9010_v2  ;;  %v9066_v39 = vld [vmem:[%s12772_s2 + $0xb8c] ss:$16 sps:$4 sm:$0xff]  }
 0x254   :  { %6442 = vmatpush1.bf16.msra.mxu1 %v9013_v15  ;;  %6480 = vmatprep.subr.bf16.mxu0 %v9018_v57  ;;  %v9069_v50 = vld [vmem:[%s12772_s2 + $0x94c] ss:$16 sps:$4 sm:$0xff]   ;;  %v9070_v15 = vld [vmem:[%s12772_s2 + $0xb68] ss:$16 sps:$4 sm:$0xff]  }
 0x255   :  { %6443 = vmatprep.subr.bf16.mxu1 %v9021_v52  ;;  %v9072_v33 = vld [vmem:[%s12772_s2 + $0xb6c] ss:$16 sps:$4 sm:$0xff]   ;;  %v9073_v57 = vld [vmem:[%s12772_s2 + $0x928] ss:$16 sps:$4 sm:$0xff]  }
 0x256   :  { %v9075_v2 = vld [vmem:[%s12772_s2 + $0x92c] ss:$16 sps:$4 sm:$0xff]  }
 0x257   :  { %6481 = vmatpush1.bf16.msra.mxu0 %v9016_v56  ;;  %v9078_v52 = vld [vmem:[%s12772_s2 + $0xb4c] ss:$16 sps:$4 sm:$0xff]  }
 0x258   :  { %6444 = vmatpush1.bf16.msra.mxu1 %v9019_v60  ;;  %6482 = vmatprep.subr.bf16.mxu0 %v9024_v24  ;;  %v9081_v56 = vld [vmem:[%s12772_s2 + $0x90c] ss:$16 sps:$4 sm:$0xff]   ;;  %v9076_v60 = vld [vmem:[%s12772_s2 + $0xb48] ss:$16 sps:$4 sm:$0xff]  }
 0x259   :  { %6445 = vmatprep.subr.bf16.mxu1 %v9027_v63  ;;  %v9079_v24 = vld [vmem:[%s12772_s2 + $0x908] ss:$16 sps:$4 sm:$0xff]   ;;  %v9084_v63 = vld [vmem:[%s12772_s2 + $0xb2c] ss:$16 sps:$4 sm:$0xff]  }
 0x25b   :  { %6483 = vmatpush1.bf16.msra.mxu0 %v9022_v6  ;;  %v9087_v6 = vld [vmem:[%s12772_s2 + $0xcec] ss:$16 sps:$4 sm:$0xff]  }
 0x25c   :  { %6446 = vmatpush1.bf16.msra.mxu1 %v9025_v7  ;;  %6484 = vmatprep.subr.bf16.mxu0 %v9030_v49  ;;  %v9082_v7 = vld [vmem:[%s12772_s2 + $0xb28] ss:$16 sps:$4 sm:$0xff]  }
 0x25d   :  { %6447 = vmatprep.subr.bf16.mxu1 %v9033_v44  ;;  %v9085_v49 = vld [vmem:[%s12772_s2 + $0xce8] ss:$16 sps:$4 sm:$0xff]   ;;  %v9090_v44 = vld [vmem:[%s12772_s2 + $0xb0c] ss:$16 sps:$4 sm:$0xff]  }
 0x25f   :  { %6485 = vmatpush1.bf16.msra.mxu0 %v9028_v41  ;;  %v9093_v41 = vld [vmem:[%s12772_s2 + $0xccc] ss:$16 sps:$4 sm:$0xff]  }
 0x260   :  { %6448 = vmatpush1.bf16.msra.mxu1 %v9031_v11  ;;  %6486 = vmatprep.subr.bf16.mxu0 %v9036_v1 }
 0x261   :  { %6449 = vmatprep.subr.bf16.mxu1 %v9039_v19 }
 0x263   :  { %6487 = vmatpush1.bf16.msra.mxu0 %v9034_v20  ;;  %v9088_v20 = vld [vmem:[%s12772_s2 + $0xb08] ss:$16 sps:$4 sm:$0xff]  }
 0x264   :  { %6450 = vmatpush2.bf16.msra.mxu1 %v9037_v35  ;;  %6488 = vmatprep.subr.bf16.mxu0 %v9042_v36  ;;  %v9091_v35 = vld [vmem:[%s12772_s2 + $0xcc8] ss:$16 sps:$4 sm:$0xff]  }
 0x265   :  { %6451 = vmatprep.subr.bf16.mxu1 %v9045_v62 }
 0x267   :  { %6489 = vmatpush1.bf16.msra.mxu0 %v9040_v22 }
 0x268   :  { %6452 = vmatpush2.bf16.msra.mxu1 %v9043_v26  ;;  %6490 = vmatprep.subr.bf16.mxu0 %v9048_v16 }
 0x269   :  { %6453 = vmatprep.subr.bf16.mxu1 %v9051_v28 }
 0x26b   :  { %6491 = vmatpush2.bf16.msra.mxu0 %v9046_v32 }
 0x26c   :  { %6454 = vmatpush2.bf16.msra.mxu1 %v9049_v27  ;;  %6492 = vmatprep.subr.bf16.mxu0 %v9054_v31  ;;  %v9094_v27 = vld [vmem:[%s12772_s2 + $0xee8] ss:$16 sps:$4 sm:$0xff]  }
 0x26d   :  { %6455 = vmatprep.subr.bf16.mxu1 %v9057_v3  ;;  %v9097_v31 = vld [vmem:[%s12772_s2 + $0xca8] ss:$16 sps:$4 sm:$0xff]  }
 0x26f   :  { %6493 = vmatpush2.bf16.msra.mxu0 %v9052_v40 }
 0x270   :  { %6456 = vmatpush2.bf16.msra.mxu1 %v9055_v53  ;;  %6494 = vmatprep.subr.bf16.mxu0 %v9060_v51 }
 0x271   :  { %6457 = vmatprep.subr.bf16.mxu1 %v9063_v58  ;;  %v9100_v58 = vld [vmem:[%s12772_s2 + $0xec8] ss:$16 sps:$4 sm:$0xff]  }
 0x273   :  { %6495 = vmatpush2.bf16.msra.mxu0 %v9058_v45  ;;  %v9103_v45 = vld [vmem:[%s12772_s2 + $0xc88] ss:$16 sps:$4 sm:$0xff]  }
 0x274   :  { %6458 = vmatpush2.bf16.msra.mxu1 %v9061_v48  ;;  %6496 = vmatprep.subr.bf16.mxu0 %v9066_v39  ;;  %v9111_v39 = vld [vmem:[%s12772_s2 + $0xc6c] ss:$16 sps:$4 sm:$0xff]  }
 0x275   :  { %6459 = vmatprep.subr.bf16.mxu1 %v9069_v50 }
 0x277   :  { %6497 = vmatpush2.bf16.msra.mxu0 %v9064_v17 }
 0x278   :  { %6460 = vmatpush2.bf16.msra.mxu1 %v9067_v0  ;;  %6498 = vmatprep.subr.bf16.mxu0 %v9072_v33  ;;  %v9106_v0 = vld [vmem:[%s12772_s2 + $0xea8] ss:$16 sps:$4 sm:$0xff]  }
 0x279   :  { %6461 = vmatprep.subr.bf16.mxu1 %v9075_v2  ;;  %v9109_v33 = vld [vmem:[%s12772_s2 + $0xc68] ss:$16 sps:$4 sm:$0xff]  }
 0x27b   :  { %6499 = vmatpush2.bf16.msra.mxu0 %v9070_v15  ;;  %v9114_v15 = vld [vmem:[%s12772_s2 + $0xe8c] ss:$16 sps:$4 sm:$0xff]  }
 0x27c   :  { %6462 = vmatpush2.bf16.msra.mxu1 %v9073_v57  ;;  %6500 = vmatprep.subr.bf16.mxu0 %v9078_v52  ;;  %v9112_v57 = vld [vmem:[%s12772_s2 + $0xe88] ss:$16 sps:$4 sm:$0xff]  }
 0x27d   :  { %6463 = vmatprep.subr.bf16.mxu1 %v9081_v56  ;;  %v9115_v52 = vld [vmem:[%s12772_s2 + $0xc48] ss:$16 sps:$4 sm:$0xff]   ;;  %v9120_v56 = vld [vmem:[%s12772_s2 + $0xe6c] ss:$16 sps:$4 sm:$0xff]  }
 0x27f   :  { %6501 = vmatpush2.bf16.msra.mxu0 %v9076_v60  ;;  %v9123_v60 = vld [vmem:[%s12772_s2 + $0xc2c] ss:$16 sps:$4 sm:$0xff]  }
 0x280   :  { %6464 = vmatpush2.bf16.msra.mxu1 %v9079_v24  ;;  %6502 = vmatprep.subr.bf16.mxu0 %v9084_v63  ;;  %v9118_v24 = vld [vmem:[%s12772_s2 + $0xe68] ss:$16 sps:$4 sm:$0xff]  }
 0x281   :  { %6515 = vmatprep.subr.bf16.mxu1 %v9087_v6  ;;  %v9121_v63 = vld [vmem:[%s12772_s2 + $0xc28] ss:$16 sps:$4 sm:$0xff]   ;;  %v9126_v6 = vld [vmem:[%s12772_s2 + $0xe4c] ss:$16 sps:$4 sm:$0xff]  }
 0x282   :  { %v6180_v11 = vpop.f32.mrf.mxu0 }
 0x283   :  { %v6221_v1 = vpop.f32.mrf.mxu1  ;;  %6466 = vmatmul.mubr.bf16.vlgmr.msra.gmra.mxu1 %v10209_v4  ;;  %v6181_v19 = vadd.f32 %v6180_v11, %v11544_v30  ;;  %6503 = vmatpush2.bf16.msra.mxu0 %v9082_v7  ;;  %v9096_v4 = vld [vmem:[%s12772_s2 + $0xeec] ss:$16 sps:$4 sm:$0xff]  }
 0x284   :  { %6516 = vmatpush1.bf16.msra.mxu1 %v9085_v49  ;;  %v6182_v36 = vpop.f32.mrf.mxu0  ;;  %6504 = vmatprep.subr.bf16.mxu0 %v9090_v44  ;;  %v9099_v30 = vld [vmem:[%s12772_s2 + $0xcac] ss:$16 sps:$4 sm:$0xff]   ;;  %v9124_v49 = vld [vmem:[%s12772_s2 + $0xe48] ss:$16 sps:$4 sm:$0xff]  }
 0x285   :  { %v6223_v62 = vpop.f32.mrf.mxu1  ;;  %6517 = vmatprep.subr.bf16.mxu1 %v9093_v41  ;;  %v6222_v22 = vadd.f32 %v6221_v1, %v6181_v19  ;;  %v6183_v26 = vadd.f32 %v6182_v36, %v11548_v42  ;;  %6547 = vmatprep.mubr.bf16.mxu1 %v10227_v8  ;;  %v9102_v8 = vld [vmem:[%s12772_s2 + $0xecc] ss:$16 sps:$4 sm:$0xff]   ;;  %v9127_v44 = vld [vmem:[%s12772_s2 + $0xc08] ss:$16 sps:$4 sm:$0xff]  }
 0x286   :  { %v6184_v16 = vpop.f32.mrf.mxu0  ;;  %v9105_v42 = vld [vmem:[%s12772_s2 + $0xc8c] ss:$16 sps:$4 sm:$0xff]   ;;  %v9130_v1 = vld [vmem:[%s12772_s2 + $0xe28] ss:$16 sps:$4 sm:$0xff]  }
 0x287   :  { %v6225_v28 = vpop.f32.mrf.mxu1  ;;  %v6224_v32 = vadd.f32 %v6223_v62, %v6183_v26  ;;  %6505 = vmatpush2.bf16.msra.mxu0 %v9088_v20  ;;  %v9129_v7 = vld [vmem:[%s12772_s2 + $0xc0c] ss:$16 sps:$4 sm:$0xff]   ;;  %v9133_v19 = vld [vmem:[%s12772_s2 + $0xde8] ss:$16 sps:$4 sm:$0xff]  }
 0x288   :  { %6518 = vmatpush1.bf16.msra.mxu1 %v9091_v35  ;;  %v6185_v3 = vpop.f32.mrf.mxu0  ;;  %6556 = vmatprep.subr.bf16.mxu0 %v9096_v4  ;;  %v9132_v41 = vld [vmem:[%s12772_s2 + $0xe2c] ss:$16 sps:$4 sm:$0xff]   ;;  %v9136_v36 = vld [vmem:[%s12772_s2 + $0xe08] ss:$16 sps:$4 sm:$0xff]  }
 0x289   :  { %v6226_v40 = vpop.f32.mrf.mxu1  ;;  %6519 = vmatprep.subr.bf16.mxu1 %v9099_v30  ;;  %v9135_v11 = vld [vmem:[%s12772_s2 + $0xdec] ss:$16 sps:$4 sm:$0xff]   ;;  %v9139_v62 = vld [vmem:[%s12772_s2 + $0xdc8] ss:$16 sps:$4 sm:$0xff]  }
 0x28a   :  { %6507 = vmatmul.mubr.bf16.vlgmr.msra.gmra.mxu0 %v10213_v5  ;;  %v6262_v53 = vpop.f32.mrf.mxu0  ;;  %v9108_v5 = vld [vmem:[%s12772_s2 + $0xeac] ss:$16 sps:$4 sm:$0xff]   ;;  %v9145_v26 = vld [vmem:[%s12772_s2 + $0xda8] ss:$16 sps:$4 sm:$0xff]  }
 0x28b   :  { %v11761_v51 = vadd.f32 %v6262_v53, %v6222_v22  ;;  %6557 = vmatpush1.bf16.msra.mxu0 %v9094_v27  ;;  %6588 = vmatprep.mubr.bf16.mxu0 %v10229_v9  ;;  %v9117_v9 = vld [vmem:[%s12772_s2 + $0xc4c] ss:$16 sps:$4 sm:$0xff]   ;;  %v9142_v22 = vld [vmem:[%s12772_s2 + $0xfe8] ss:$16 sps:$4 sm:$0xff]  }
 0x28c   :  { %6520 = vmatpush1.bf16.msra.mxu1 %v9097_v31  ;;  %v6264_v48 = vpop.f32.mrf.mxu0  ;;  %6558 = vmatprep.subr.bf16.mxu0 %v9102_v8  ;;  %v9138_v20 = vld [vmem:[%s12772_s2 + $0xe0c] ss:$16 sps:$4 sm:$0xff]   ;;  %v9151_v27 = vld [vmem:[%s12772_s2 + $0xd88] ss:$16 sps:$4 sm:$0xff]  }
 0x28d   :  { %6521 = vmatprep.subr.bf16.mxu1 %v9105_v42  ;;  %v11775_v50 = vadd.f32 %v6264_v48, %v6224_v32  ;;  %v9141_v35 = vld [vmem:[%s12772_s2 + $0xdcc] ss:$16 sps:$4 sm:$0xff]   ;;  %v9148_v32 = vld [vmem:[%s12772_s2 + $0xfc8] ss:$16 sps:$4 sm:$0xff]  }
 0x28e   :  { %v6266_v17 = vpop.f32.mrf.mxu0  ;;  %v9144_v4 = vld [vmem:[%s12772_s2 + $0xfec] ss:$16 sps:$4 sm:$0xff]   ;;  %v9154_v40 = vld [vmem:[%s12772_s2 + $0xfa8] ss:$16 sps:$4 sm:$0xff]  }
 0x28f   :  { %6559 = vmatpush1.bf16.msra.mxu0 %v9100_v58  ;;  %v9147_v30 = vld [vmem:[%s12772_s2 + $0xdac] ss:$16 sps:$4 sm:$0xff]   ;;  %v9157_v8 = vld [vmem:[%s12772_s2 + $0xd68] ss:$16 sps:$4 sm:$0xff]  }
 0x290   :  { %6522 = vmatpush1.bf16.msra.mxu1 %v9103_v45  ;;  %v6267_v2 = vpop.f32.mrf.mxu0  ;;  %6560 = vmatprep.subr.bf16.mxu0 %v9108_v5  ;;  %v9150_v16 = vld [vmem:[%s12772_s2 + $0xfcc] ss:$16 sps:$4 sm:$0xff]   ;;  %v9160_v58 = vld [vmem:[%s12772_s2 + $0xf88] ss:$16 sps:$4 sm:$0xff]  }
 0x291   :  { %6523 = vmatprep.subr.bf16.mxu1 %v9111_v39  ;;  %v9153_v28 = vld [vmem:[%s12772_s2 + $0xd8c] ss:$16 sps:$4 sm:$0xff]   ;;  %v9163_v45 = vld [vmem:[%s12772_s2 + $0xd48] ss:$16 sps:$4 sm:$0xff]  }
 0x292   :  { %v9156_v31 = vld [vmem:[%s12772_s2 + $0xfac] ss:$16 sps:$4 sm:$0xff]   ;;  %v9166_v39 = vld [vmem:[%s12772_s2 + $0xf68] ss:$16 sps:$4 sm:$0xff]  }
 0x293   :  { %6561 = vmatpush1.bf16.msra.mxu0 %v9106_v0  ;;  %v9159_v3 = vld [vmem:[%s12772_s2 + $0xd6c] ss:$16 sps:$4 sm:$0xff]   ;;  %v9169_v17 = vld [vmem:[%s12772_s2 + $0xd28] ss:$16 sps:$4 sm:$0xff]  }
 0x294   :  { %6524 = vmatpush1.bf16.msra.mxu1 %v9109_v33  ;;  %6562 = vmatprep.subr.bf16.mxu0 %v9114_v15  ;;  %v9162_v42 = vld [vmem:[%s12772_s2 + $0xf8c] ss:$16 sps:$4 sm:$0xff]   ;;  %v9172_v2 = vld [vmem:[%s12772_s2 + $0xf48] ss:$16 sps:$4 sm:$0xff]  }
 0x295   :  { %6525 = vmatprep.subr.bf16.mxu1 %v9117_v9  ;;  %v9165_v53 = vld [vmem:[%s12772_s2 + $0xd4c] ss:$16 sps:$4 sm:$0xff]   ;;  %v9175_v15 = vld [vmem:[%s12772_s2 + $0xd08] ss:$16 sps:$4 sm:$0xff]  }
 0x296   :  { %v9168_v48 = vld [vmem:[%s12772_s2 + $0xf6c] ss:$16 sps:$4 sm:$0xff]  }
 0x297   :  { %6563 = vmatpush1.bf16.msra.mxu0 %v9112_v57  ;;  %v9171_v5 = vld [vmem:[%s12772_s2 + $0xd2c] ss:$16 sps:$4 sm:$0xff]  }
 0x298   :  { %6526 = vmatpush1.bf16.msra.mxu1 %v9115_v52  ;;  %6564 = vmatprep.subr.bf16.mxu0 %v9120_v56  ;;  %v9174_v0 = vld [vmem:[%s12772_s2 + $0xf4c] ss:$16 sps:$4 sm:$0xff]   ;;  %v9178_v52 = vld [vmem:[%s12772_s2 + $0xf28] ss:$16 sps:$4 sm:$0xff]  }
 0x299   :  { %6527 = vmatprep.subr.bf16.mxu1 %v9123_v60  ;;  %v9177_v33 = vld [vmem:[%s12772_s2 + $0xd0c] ss:$16 sps:$4 sm:$0xff]   ;;  %v9181_v56 = vld [vmem:[%s12772_s2 + $0x10e8] ss:$16 sps:$4 sm:$0xff]  }
 0x29a   :  { %v9180_v9 = vld [vmem:[%s12772_s2 + $0xf2c] ss:$16 sps:$4 sm:$0xff]  }
 0x29b   :  { %6565 = vmatpush1.bf16.msra.mxu0 %v9118_v24  ;;  %v9183_v57 = vld [vmem:[%s12772_s2 + $0x10ec] ss:$16 sps:$4 sm:$0xff]  }
 0x29c   :  { %6528 = vmatpush1.bf16.msra.mxu1 %v9121_v63  ;;  %6566 = vmatprep.subr.bf16.mxu0 %v9126_v6  ;;  %v9186_v60 = vld [vmem:[%s12772_s2 + $0xf0c] ss:$16 sps:$4 sm:$0xff]   ;;  %v1140_v63 = vsub.s32 2, %v9659_v43 }
 0x29d   :  { %6529 = vmatprep.subr.bf16.mxu1 %v9129_v7  ;;  %v9189_v24 = vld [vmem:[%s12772_s2 + $0x10cc] ss:$16 sps:$4 sm:$0xff]   ;;  %v1144_v7 = vsub.s32 3, %v9659_v43 }
 0x29f   :  { %6567 = vmatpush1.bf16.msra.mxu0 %v9124_v49  ;;  %v9184_v49 = vld [vmem:[%s12772_s2 + $0xf08] ss:$16 sps:$4 sm:$0xff]  }
 0x2a0   :  { %6530 = vmatpush1.bf16.msra.mxu1 %v9127_v44  ;;  %6568 = vmatprep.subr.bf16.mxu0 %v9132_v41  ;;  %v9187_v44 = vld [vmem:[%s12772_s2 + $0x10c8] ss:$16 sps:$4 sm:$0xff]  }
 0x2a1   :  { %6531 = vmatprep.subr.bf16.mxu1 %v9135_v11  ;;  %v9192_v11 = vld [vmem:[%s12772_s2 + $0x12ec] ss:$16 sps:$4 sm:$0xff]  }
 0x2a3   :  { %6569 = vmatpush1.bf16.msra.mxu0 %v9130_v1  ;;  %v9475_v1 = vld [vmem:[%s12773_s3] sm:$0xf] }
 0x2a4   :  { %6532 = vmatpush2.bf16.msra.mxu1 %v9133_v19  ;;  %6570 = vmatprep.subr.bf16.mxu0 %v9138_v20  ;;  %v1141_v19 = vrot.slane %v9475_v1, %v1140_v63  ;;  %v9234_v63 = vld [vmem:[%s12772_s2 + $0x120c] ss:$16 sps:$4 sm:$0xff]  }
 0x2a5   :  { %6533 = vmatprep.subr.bf16.mxu1 %v9141_v35  ;;  %v1145_v35 = vrot.slane %v9475_v1, %v1144_v7  ;;  %v9232_v7 = vld [vmem:[%s12772_s2 + $0x1208] ss:$16 sps:$4 sm:$0xff]   ;;  %v9246_v1 = vld [vmem:[%s12772_s2 + $0x13cc] ss:$16 sps:$4 sm:$0xff]  }
 0x2a7   :  { %6571 = vmatpush1.bf16.msra.mxu0 %v9136_v36  ;;  %v9190_v36 = vld [vmem:[%s12772_s2 + $0x12e8] ss:$16 sps:$4 sm:$0xff]  }
 0x2a8   :  { %6534 = vmatpush2.bf16.msra.mxu1 %v9139_v62  ;;  %6572 = vmatprep.subr.bf16.mxu0 %v9144_v4  ;;  %v9193_v62 = vld [vmem:[%s12772_s2 + $0x10a8] ss:$16 sps:$4 sm:$0xff]  }
 0x2a9   :  { %6535 = vmatprep.subr.bf16.mxu1 %v9147_v30  ;;  %v9198_v30 = vld [vmem:[%s12772_s2 + $0x12cc] ss:$16 sps:$4 sm:$0xff]  }
 0x2ab   :  { %6573 = vmatpush2.bf16.msra.mxu0 %v9142_v22 }
 0x2ac   :  { %6536 = vmatpush2.bf16.msra.mxu1 %v9145_v26  ;;  %6574 = vmatprep.subr.bf16.mxu0 %v9150_v16 }
 0x2ad   :  { %6537 = vmatprep.subr.bf16.mxu1 %v9153_v28 }
 0x2af   :  { %6575 = vmatpush2.bf16.msra.mxu0 %v9148_v32  ;;  %v9196_v32 = vld [vmem:[%s12772_s2 + $0x12c8] ss:$16 sps:$4 sm:$0xff]  }
 0x2b0   :  { %6538 = vmatpush2.bf16.msra.mxu1 %v9151_v27  ;;  %6576 = vmatprep.subr.bf16.mxu0 %v9156_v31  ;;  %v9199_v27 = vld [vmem:[%s12772_s2 + $0x1088] ss:$16 sps:$4 sm:$0xff]  }
 0x2b1   :  { %6539 = vmatprep.subr.bf16.mxu1 %v9159_v3  ;;  %v9207_v3 = vld [vmem:[%s12772_s2 + $0x106c] ss:$16 sps:$4 sm:$0xff]  }
 0x2b3   :  { %6577 = vmatpush2.bf16.msra.mxu0 %v9154_v40 }
 0x2b4   :  { %6540 = vmatpush2.bf16.msra.mxu1 %v9157_v8  ;;  %6578 = vmatprep.subr.bf16.mxu0 %v9162_v42  ;;  %v9202_v42 = vld [vmem:[%s12772_s2 + $0x12a8] ss:$16 sps:$4 sm:$0xff]  }
 0x2b5   :  { %6541 = vmatprep.subr.bf16.mxu1 %v9165_v53  ;;  %v9205_v53 = vld [vmem:[%s12772_s2 + $0x1068] ss:$16 sps:$4 sm:$0xff]  }
 0x2b7   :  { %6579 = vmatpush2.bf16.msra.mxu0 %v9160_v58 }
 0x2b8   :  { %6542 = vmatpush2.bf16.msra.mxu1 %v9163_v45  ;;  %6580 = vmatprep.subr.bf16.mxu0 %v9168_v48  ;;  %v9210_v45 = vld [vmem:[%s12772_s2 + $0x128c] ss:$16 sps:$4 sm:$0xff]   ;;  %v9208_v48 = vld [vmem:[%s12772_s2 + $0x1288] ss:$16 sps:$4 sm:$0xff]  }
 0x2b9   :  { %6543 = vmatprep.subr.bf16.mxu1 %v9171_v5  ;;  %v9211_v5 = vld [vmem:[%s12772_s2 + $0x1048] ss:$16 sps:$4 sm:$0xff]  }
 0x2bb   :  { %6581 = vmatpush2.bf16.msra.mxu0 %v9166_v39  ;;  %v9216_v39 = vld [vmem:[%s12772_s2 + $0x126c] ss:$16 sps:$4 sm:$0xff]  }
 0x2bc   :  { %6544 = vmatpush2.bf16.msra.mxu1 %v9169_v17  ;;  %6582 = vmatprep.subr.bf16.mxu0 %v9174_v0  ;;  %v9219_v17 = vld [vmem:[%s12772_s2 + $0x102c] ss:$16 sps:$4 sm:$0xff]   ;;  %v9214_v0 = vld [vmem:[%s12772_s2 + $0x1268] ss:$16 sps:$4 sm:$0xff]  }
 0x2bd   :  { %6545 = vmatprep.subr.bf16.mxu1 %v9177_v33  ;;  %v9217_v33 = vld [vmem:[%s12772_s2 + $0x1028] ss:$16 sps:$4 sm:$0xff]  }
 0x2bf   :  { %6583 = vmatpush2.bf16.msra.mxu0 %v9172_v2  ;;  %v9222_v2 = vld [vmem:[%s12772_s2 + $0x124c] ss:$16 sps:$4 sm:$0xff]  }
 0x2c0   :  { %6546 = vmatpush2.bf16.msra.mxu1 %v9175_v15  ;;  %6584 = vmatprep.subr.bf16.mxu0 %v9180_v9  ;;  %v9225_v15 = vld [vmem:[%s12772_s2 + $0x100c] ss:$16 sps:$4 sm:$0xff]   ;;  %v9220_v9 = vld [vmem:[%s12772_s2 + $0x1248] ss:$16 sps:$4 sm:$0xff]  }
 0x2c1   :  { %6597 = vmatprep.subr.bf16.mxu1 %v9183_v57  ;;  %v9223_v57 = vld [vmem:[%s12772_s2 + $0x1008] ss:$16 sps:$4 sm:$0xff]  }
 0x2c3   :  { %v6303_v6 = vpop.f32.mrf.mxu1  ;;  %6548 = vmatmul.mubr.bf16.vlgmr.msra.gmra.mxu1 %v10435_v37  ;;  %6585 = vmatpush2.bf16.msra.mxu0 %v9178_v52  ;;  %v9195_v37 = vld [vmem:[%s12772_s2 + $0x10ac] ss:$16 sps:$4 sm:$0xff]  }
 0x2c4   :  { %6598 = vmatpush1.bf16.msra.mxu1 %v9181_v56  ;;  %6586 = vmatprep.subr.bf16.mxu0 %v9186_v60  ;;  %v6304_v22 = vadd.f32 %v6303_v6, %v1141_v19  ;;  %v9228_v52 = vld [vmem:[%s12772_s2 + $0x122c] ss:$16 sps:$4 sm:$0xff]   ;;  %v9226_v60 = vld [vmem:[%s12772_s2 + $0x1228] ss:$16 sps:$4 sm:$0xff]  }
 0x2c5   :  { %v6305_v41 = vpop.f32.mrf.mxu1  ;;  %6599 = vmatprep.subr.bf16.mxu1 %v9189_v24  ;;  %6629 = vmatprep.mubr.bf16.mxu1 %v10457_v46  ;;  %v9201_v46 = vld [vmem:[%s12772_s2 + $0x108c] ss:$16 sps:$4 sm:$0xff]   ;;  %v9229_v24 = vld [vmem:[%s12772_s2 + $0x11e8] ss:$16 sps:$4 sm:$0xff]  }
 0x2c6   :  { %v6306_v16 = vadd.f32 %v6305_v41, %v1145_v35  ;;  %v9231_v56 = vld [vmem:[%s12772_s2 + $0x11ec] ss:$16 sps:$4 sm:$0xff]   ;;  %v9247_v35 = vld [vmem:[%s12772_s2 + $0x1188] ss:$16 sps:$4 sm:$0xff]  }
 0x2c7   :  { %v6307_v20 = vpop.f32.mrf.mxu1  ;;  %6587 = vmatpush2.bf16.msra.mxu0 %v9184_v49  ;;  %v9237_v6 = vld [vmem:[%s12772_s2 + $0x11cc] ss:$16 sps:$4 sm:$0xff]   ;;  %v9235_v49 = vld [vmem:[%s12772_s2 + $0x11c8] ss:$16 sps:$4 sm:$0xff]  }
 0x2c8   :  { %6600 = vmatpush1.bf16.msra.mxu1 %v9187_v44  ;;  %6638 = vmatprep.subr.bf16.mxu0 %v9192_v11  ;;  %v9240_v44 = vld [vmem:[%s12772_s2 + $0x13ec] ss:$16 sps:$4 sm:$0xff]   ;;  %v9238_v11 = vld [vmem:[%s12772_s2 + $0x13e8] ss:$16 sps:$4 sm:$0xff]  }
 0x2c9   :  { %v6308_v4 = vpop.f32.mrf.mxu1  ;;  %6601 = vmatprep.subr.bf16.mxu1 %v9195_v37  ;;  %v9243_v41 = vld [vmem:[%s12772_s2 + $0x11ac] ss:$16 sps:$4 sm:$0xff]   ;;  %v9241_v37 = vld [vmem:[%s12772_s2 + $0x11a8] ss:$16 sps:$4 sm:$0xff]  }
 0x2ca   :  { %v6344_v26 = vpop.f32.mrf.mxu0  ;;  %6589 = vmatmul.mubr.bf16.vlgmr.msra.gmra.mxu0 %v10439_v38  ;;  %v9204_v38 = vld [vmem:[%s12772_s2 + $0x12ac] ss:$16 sps:$4 sm:$0xff]   ;;  %v9244_v20 = vld [vmem:[%s12772_s2 + $0x13c8] ss:$16 sps:$4 sm:$0xff]  }
 0x2cb   :  { %v11966_v28 = vadd.f32 %v6344_v26, %v6304_v22  ;;  %6639 = vmatpush1.bf16.msra.mxu0 %v9190_v36  ;;  %6670 = vmatprep.mubr.bf16.mxu0 %v10459_v47  ;;  %v9213_v47 = vld [vmem:[%s12772_s2 + $0x104c] ss:$16 sps:$4 sm:$0xff]   ;;  %v9250_v4 = vld [vmem:[%s12772_s2 + $0x13a8] ss:$16 sps:$4 sm:$0xff]  }
 0x2cc   :  { %6602 = vmatpush1.bf16.msra.mxu1 %v9193_v62  ;;  %v6346_v31 = vpop.f32.mrf.mxu0  ;;  %6640 = vmatprep.subr.bf16.mxu0 %v9198_v30  ;;  %v9249_v19 = vld [vmem:[%s12772_s2 + $0x118c] ss:$16 sps:$4 sm:$0xff]   ;;  %v9253_v30 = vld [vmem:[%s12772_s2 + $0x1168] ss:$16 sps:$4 sm:$0xff]  }
 0x2cd   :  { %6603 = vmatprep.subr.bf16.mxu1 %v9201_v46  ;;  %v11980_v40 = vadd.f32 %v6346_v31, %v6306_v16  ;;  %v9252_v36 = vld [vmem:[%s12772_s2 + $0x13ac] ss:$16 sps:$4 sm:$0xff]   ;;  %v9256_v26 = vld [vmem:[%s12772_s2 + $0x1388] ss:$16 sps:$4 sm:$0xff]  }
 0x2ce   :  { %v6348_v8 = vpop.f32.mrf.mxu0  ;;  %v9255_v62 = vld [vmem:[%s12772_s2 + $0x116c] ss:$16 sps:$4 sm:$0xff]   ;;  %v9259_v16 = vld [vmem:[%s12772_s2 + $0x1148] ss:$16 sps:$4 sm:$0xff]  }
 0x2cf   :  { %6641 = vmatpush1.bf16.msra.mxu0 %v9196_v32  ;;  %v9258_v46 = vld [vmem:[%s12772_s2 + $0x138c] ss:$16 sps:$4 sm:$0xff]   ;;  %v9262_v31 = vld [vmem:[%s12772_s2 + $0x1368] ss:$16 sps:$4 sm:$0xff]  }
 0x2d0   :  { %6604 = vmatpush1.bf16.msra.mxu1 %v9199_v27  ;;  %v6349_v58 = vpop.f32.mrf.mxu0  ;;  %6642 = vmatprep.subr.bf16.mxu0 %v9204_v38  ;;  %v9261_v22 = vld [vmem:[%s12772_s2 + $0x114c] ss:$16 sps:$4 sm:$0xff]   ;;  %v9265_v38 = vld [vmem:[%s12772_s2 + $0x1128] ss:$16 sps:$4 sm:$0xff]  }
 0x2d1   :  { %6605 = vmatprep.subr.bf16.mxu1 %v9207_v3  ;;  %v9264_v32 = vld [vmem:[%s12772_s2 + $0x136c] ss:$16 sps:$4 sm:$0xff]  }
 0x2d2   :  { %v9267_v27 = vld [vmem:[%s12772_s2 + $0x112c] ss:$16 sps:$4 sm:$0xff]  }
 0x2d3   :  { %6643 = vmatpush1.bf16.msra.mxu0 %v9202_v42  ;;  %v9270_v3 = vld [vmem:[%s12772_s2 + $0x134c] ss:$16 sps:$4 sm:$0xff]   ;;  %v9268_v42 = vld [vmem:[%s12772_s2 + $0x1348] ss:$16 sps:$4 sm:$0xff]  }
 0x2d4   :  { %6606 = vmatpush1.bf16.msra.mxu1 %v9205_v53  ;;  %6644 = vmatprep.subr.bf16.mxu0 %v9210_v45  ;;  %v9273_v8 = vld [vmem:[%s12772_s2 + $0x110c] ss:$16 sps:$4 sm:$0xff]   ;;  %v9271_v53 = vld [vmem:[%s12772_s2 + $0x1108] ss:$16 sps:$4 sm:$0xff]  }
 0x2d5   :  { %6607 = vmatprep.subr.bf16.mxu1 %v9213_v47  ;;  %v9276_v58 = vld [vmem:[%s12772_s2 + $0x132c] ss:$16 sps:$4 sm:$0xff]   ;;  %v9274_v47 = vld [vmem:[%s12772_s2 + $0x1328] ss:$16 sps:$4 sm:$0xff]  }
 0x2d6   :  { %v9279_v45 = vld [vmem:[%s12772_s2 + $0x14ec] ss:$16 sps:$4 sm:$0xff]  }
 0x2d7   :  { %6645 = vmatpush1.bf16.msra.mxu0 %v9208_v48  ;;  %v9277_v48 = vld [vmem:[%s12772_s2 + $0x14e8] ss:$16 sps:$4 sm:$0xff]  }
 0x2d8   :  { %6608 = vmatpush1.bf16.msra.mxu1 %v9211_v5  ;;  %6646 = vmatprep.subr.bf16.mxu0 %v9216_v39  ;;  %v9282_v5 = vld [vmem:[%s12772_s2 + $0x130c] ss:$16 sps:$4 sm:$0xff]  }
 0x2d9   :  { %6609 = vmatprep.subr.bf16.mxu1 %v9219_v17  ;;  %v9285_v39 = vld [vmem:[%s12772_s2 + $0x14cc] ss:$16 sps:$4 sm:$0xff]  }
 0x2db   :  { %6647 = vmatpush1.bf16.msra.mxu0 %v9214_v0 }
 0x2dc   :  { %6610 = vmatpush1.bf16.msra.mxu1 %v9217_v33  ;;  %6648 = vmatprep.subr.bf16.mxu0 %v9222_v2  ;;  %v9280_v33 = vld [vmem:[%s12772_s2 + $0x1308] ss:$16 sps:$4 sm:$0xff]  }
 0x2dd   :  { %6611 = vmatprep.subr.bf16.mxu1 %v9225_v15  ;;  %v9283_v2 = vld [vmem:[%s12772_s2 + $0x14c8] ss:$16 sps:$4 sm:$0xff]  }
 0x2df   :  { %6649 = vmatpush1.bf16.msra.mxu0 %v9220_v9  ;;  %v9288_v9 = vld [vmem:[%s12772_s2 + $0x16ec] ss:$16 sps:$4 sm:$0xff]  }
 0x2e0   :  { %6612 = vmatpush1.bf16.msra.mxu1 %v9223_v57  ;;  %6650 = vmatprep.subr.bf16.mxu0 %v9228_v52  ;;  %v9286_v52 = vld [vmem:[%s12772_s2 + $0x16e8] ss:$16 sps:$4 sm:$0xff]  }
 0x2e1   :  { %6613 = vmatprep.subr.bf16.mxu1 %v9231_v56  ;;  %v9289_v56 = vld [vmem:[%s12772_s2 + $0x14a8] ss:$16 sps:$4 sm:$0xff]  }
 0x2e3   :  { %6651 = vmatpush1.bf16.msra.mxu0 %v9226_v60 }
 0x2e4   :  { %6614 = vmatpush2.bf16.msra.mxu1 %v9229_v24  ;;  %6652 = vmatprep.subr.bf16.mxu0 %v9234_v63 }
 0x2e5   :  { %6615 = vmatprep.subr.bf16.mxu1 %v9237_v6  ;;  %v9292_v6 = vld [vmem:[%s12772_s2 + $0x16c8] ss:$16 sps:$4 sm:$0xff]  }
 0x2e7   :  { %6653 = vmatpush1.bf16.msra.mxu0 %v9232_v7  ;;  %v9295_v7 = vld [vmem:[%s12772_s2 + $0x1488] ss:$16 sps:$4 sm:$0xff]  }
 0x2e8   :  { %6616 = vmatpush2.bf16.msra.mxu1 %v9235_v49  ;;  %6654 = vmatprep.subr.bf16.mxu0 %v9240_v44  ;;  %v9300_v44 = vld [vmem:[%s12772_s2 + $0x16ac] ss:$16 sps:$4 sm:$0xff]  }
 0x2e9   :  { %6617 = vmatprep.subr.bf16.mxu1 %v9243_v41 }
 0x2eb   :  { %6655 = vmatpush2.bf16.msra.mxu0 %v9238_v11 }
 0x2ec   :  { %6618 = vmatpush2.bf16.msra.mxu1 %v9241_v37  ;;  %6656 = vmatprep.subr.bf16.mxu0 %v9246_v1  ;;  %v9298_v37 = vld [vmem:[%s12772_s2 + $0x16a8] ss:$16 sps:$4 sm:$0xff]  }
 0x2ed   :  { %6619 = vmatprep.subr.bf16.mxu1 %v9249_v19  ;;  %v9301_v1 = vld [vmem:[%s12772_s2 + $0x1468] ss:$16 sps:$4 sm:$0xff]  }
 0x2ef   :  { %6657 = vmatpush2.bf16.msra.mxu0 %v9244_v20  ;;  %v9306_v20 = vld [vmem:[%s12772_s2 + $0x168c] ss:$16 sps:$4 sm:$0xff]  }
 0x2f0   :  { %6620 = vmatpush2.bf16.msra.mxu1 %v9247_v35  ;;  %6658 = vmatprep.subr.bf16.mxu0 %v9252_v36  ;;  %v9304_v35 = vld [vmem:[%s12772_s2 + $0x1688] ss:$16 sps:$4 sm:$0xff]  }
 0x2f1   :  { %6621 = vmatprep.subr.bf16.mxu1 %v9255_v62  ;;  %v9307_v36 = vld [vmem:[%s12772_s2 + $0x1448] ss:$16 sps:$4 sm:$0xff]   ;;  %v9312_v62 = vld [vmem:[%s12772_s2 + $0x166c] ss:$16 sps:$4 sm:$0xff]  }
 0x2f3   :  { %6659 = vmatpush2.bf16.msra.mxu0 %v9250_v4  ;;  %v9315_v4 = vld [vmem:[%s12772_s2 + $0x142c] ss:$16 sps:$4 sm:$0xff]  }
 0x2f4   :  { %6622 = vmatpush2.bf16.msra.mxu1 %v9253_v30  ;;  %6660 = vmatprep.subr.bf16.mxu0 %v9258_v46  ;;  %v9310_v30 = vld [vmem:[%s12772_s2 + $0x1668] ss:$16 sps:$4 sm:$0xff]  }
 0x2f5   :  { %6623 = vmatprep.subr.bf16.mxu1 %v9261_v22  ;;  %v9313_v46 = vld [vmem:[%s12772_s2 + $0x1428] ss:$16 sps:$4 sm:$0xff]   ;;  %v9318_v22 = vld [vmem:[%s12772_s2 + $0x164c] ss:$16 sps:$4 sm:$0xff]  }
 0x2f7   :  { %6661 = vmatpush2.bf16.msra.mxu0 %v9256_v26  ;;  %v9321_v26 = vld [vmem:[%s12772_s2 + $0x140c] ss:$16 sps:$4 sm:$0xff]  }
 0x2f8   :  { %6624 = vmatpush2.bf16.msra.mxu1 %v9259_v16  ;;  %6662 = vmatprep.subr.bf16.mxu0 %v9264_v32  ;;  %v9316_v16 = vld [vmem:[%s12772_s2 + $0x1648] ss:$16 sps:$4 sm:$0xff]  }
 0x2f9   :  { %6625 = vmatprep.subr.bf16.mxu1 %v9267_v27  ;;  %v9319_v32 = vld [vmem:[%s12772_s2 + $0x1408] ss:$16 sps:$4 sm:$0xff]   ;;  %v9324_v27 = vld [vmem:[%s12772_s2 + $0x162c] ss:$16 sps:$4 sm:$0xff]  }
 0x2fb   :  { %6663 = vmatpush2.bf16.msra.mxu0 %v9262_v31  ;;  %v9327_v31 = vld [vmem:[%s12772_s2 + $0x15ec] ss:$16 sps:$4 sm:$0xff]  }
 0x2fc   :  { %6626 = vmatpush2.bf16.msra.mxu1 %v9265_v38  ;;  %6664 = vmatprep.subr.bf16.mxu0 %v9270_v3  ;;  %v9322_v38 = vld [vmem:[%s12772_s2 + $0x1628] ss:$16 sps:$4 sm:$0xff]  }
 0x2fd   :  { %6627 = vmatprep.subr.bf16.mxu1 %v9273_v8  ;;  %v9325_v3 = vld [vmem:[%s12772_s2 + $0x15e8] ss:$16 sps:$4 sm:$0xff]   ;;  %v9330_v8 = vld [vmem:[%s12772_s2 + $0x160c] ss:$16 sps:$4 sm:$0xff]  }
 0x2ff   :  { %6665 = vmatpush2.bf16.msra.mxu0 %v9268_v42  ;;  %v9333_v42 = vld [vmem:[%s12772_s2 + $0x15cc] ss:$16 sps:$4 sm:$0xff]  }
 0x300   :  { %6628 = vmatpush2.bf16.msra.mxu1 %v9271_v53  ;;  %6666 = vmatprep.subr.bf16.mxu0 %v9276_v58  ;;  %v9328_v53 = vld [vmem:[%s12772_s2 + $0x1608] ss:$16 sps:$4 sm:$0xff]  }
 0x301   :  { %6679 = vmatprep.subr.bf16.mxu1 %v9279_v45  ;;  %v9331_v58 = vld [vmem:[%s12772_s2 + $0x15c8] ss:$16 sps:$4 sm:$0xff]   ;;  %v9336_v45 = vld [vmem:[%s12772_s2 + $0x17ec] ss:$16 sps:$4 sm:$0xff]  }
 0x303   :  { %v6385_v17 = vpop.f32.mrf.mxu1  ;;  %6630 = vmatmul.mubr.bf16.vlgmr.msra.gmra.mxu1 %v10670_v54  ;;  %6667 = vmatpush2.bf16.msra.mxu0 %v9274_v47  ;;  %v9291_v54 = vld [vmem:[%s12772_s2 + $0x14ac] ss:$16 sps:$4 sm:$0xff]  }
 0x304   :  { %v6386_v0 = vadd.f32 %v6385_v17, %v11966_v28  ;;  %6680 = vmatpush1.bf16.msra.mxu1 %v9277_v48  ;;  %6668 = vmatprep.subr.bf16.mxu0 %v9282_v5  ;;  %v9339_v47 = vld [vmem:[%s12772_s2 + $0x15ac] ss:$16 sps:$4 sm:$0xff]   ;;  %v9334_v48 = vld [vmem:[%s12772_s2 + $0x17e8] ss:$16 sps:$4 sm:$0xff]  }
 0x305   :  { %v6387_v15 = vpop.f32.mrf.mxu1  ;;  %6681 = vmatprep.subr.bf16.mxu1 %v9285_v39  ;;  %6711 = vmatprep.mubr.bf16.mxu1 %v10685_v61  ;;  %v9297_v61 = vld [vmem:[%s12772_s2 + $0x148c] ss:$16 sps:$4 sm:$0xff]   ;;  %v9337_v5 = vld [vmem:[%s12772_s2 + $0x15a8] ss:$16 sps:$4 sm:$0xff]  }
 0x306   :  { %v6388_v28 = vadd.f32 %v6387_v15, %v11980_v40  ;;  %v9294_v40 = vld [vmem:[%s12772_s2 + $0x16cc] ss:$16 sps:$4 sm:$0xff]  }
 0x307   :  { %v6389_v57 = vpop.f32.mrf.mxu1  ;;  %6669 = vmatpush2.bf16.msra.mxu0 %v9280_v33  ;;  %v9342_v39 = vld [vmem:[%s12772_s2 + $0x17cc] ss:$16 sps:$4 sm:$0xff]   ;;  %v9343_v33 = vld [vmem:[%s12772_s2 + $0x1588] ss:$16 sps:$4 sm:$0xff]  }
 0x308   :  { %6682 = vmatpush1.bf16.msra.mxu1 %v9283_v2  ;;  %6720 = vmatprep.subr.bf16.mxu0 %v9288_v9  ;;  %v9345_v17 = vld [vmem:[%s12772_s2 + $0x158c] ss:$16 sps:$4 sm:$0xff]   ;;  %v9346_v9 = vld [vmem:[%s12772_s2 + $0x17a8] ss:$16 sps:$4 sm:$0xff]  }
 0x309   :  { %v6390_v60 = vpop.f32.mrf.mxu1  ;;  %6683 = vmatprep.subr.bf16.mxu1 %v9291_v54  ;;  %v9348_v2 = vld [vmem:[%s12772_s2 + $0x17ac] ss:$16 sps:$4 sm:$0xff]   ;;  %v9349_v54 = vld [vmem:[%s12772_s2 + $0x1568] ss:$16 sps:$4 sm:$0xff]  }
 0x30a   :  { %v6426_v24 = vpop.f32.mrf.mxu0  ;;  %6671 = vmatmul.mubr.bf16.vlgmr.msra.gmra.mxu0 %v10674_v55  ;;  %v9303_v55 = vld [vmem:[%s12772_s2 + $0x146c] ss:$16 sps:$4 sm:$0xff]  }
 0x30b   :  { %v12168_v63 = vadd.f32 %v6426_v24, %v6386_v0  ;;  %6721 = vmatpush1.bf16.msra.mxu0 %v9286_v52  ;;  %6752 = vmatprep.mubr.bf16.mxu0 %v10687_v25  ;;  %v9309_v25 = vld [vmem:[%s12772_s2 + $0x144c] ss:$16 sps:$4 sm:$0xff]   ;;  %v9340_v0 = vld [vmem:[%s12772_s2 + $0x17c8] ss:$16 sps:$4 sm:$0xff]  }
 0x30c   :  { %6684 = vmatpush1.bf16.msra.mxu1 %v9289_v56  ;;  %v6428_v49 = vpop.f32.mrf.mxu0  ;;  %6722 = vmatprep.subr.bf16.mxu0 %v9294_v40  ;;  %v9351_v15 = vld [vmem:[%s12772_s2 + $0x156c] ss:$16 sps:$4 sm:$0xff]   ;;  %v9352_v52 = vld [vmem:[%s12772_s2 + $0x1788] ss:$16 sps:$4 sm:$0xff]  }
 0x30d   :  { %6685 = vmatprep.subr.bf16.mxu1 %v9297_v61  ;;  %v12182_v41 = vadd.f32 %v6428_v49, %v6388_v28  ;;  %v9354_v28 = vld [vmem:[%s12772_s2 + $0x178c] ss:$16 sps:$4 sm:$0xff]   ;;  %v9355_v56 = vld [vmem:[%s12772_s2 + $0x1548] ss:$16 sps:$4 sm:$0xff]  }
 0x30e   :  { %v6430_v11 = vpop.f32.mrf.mxu0  ;;  %v9357_v57 = vld [vmem:[%s12772_s2 + $0x154c] ss:$16 sps:$4 sm:$0xff]   ;;  %v9358_v61 = vld [vmem:[%s12772_s2 + $0x1768] ss:$16 sps:$4 sm:$0xff]  }
 0x30f   :  { %6723 = vmatpush1.bf16.msra.mxu0 %v9292_v6  ;;  %v9360_v60 = vld [vmem:[%s12772_s2 + $0x176c] ss:$16 sps:$4 sm:$0xff]   ;;  %v9361_v24 = vld [vmem:[%s12772_s2 + $0x1528] ss:$16 sps:$4 sm:$0xff]  }
 0x310   :  { %6686 = vmatpush1.bf16.msra.mxu1 %v9295_v7  ;;  %v6431_v19 = vpop.f32.mrf.mxu0  ;;  %6724 = vmatprep.subr.bf16.mxu0 %v9300_v44  ;;  %v9363_v40 = vld [vmem:[%s12772_s2 + $0x152c] ss:$16 sps:$4 sm:$0xff]   ;;  %v9364_v49 = vld [vmem:[%s12772_s2 + $0x1748] ss:$16 sps:$4 sm:$0xff]  }
 0x311   :  { %6687 = vmatprep.subr.bf16.mxu1 %v9303_v55  ;;  %v9366_v6 = vld [vmem:[%s12772_s2 + $0x174c] ss:$16 sps:$4 sm:$0xff]   ;;  %v9367_v44 = vld [vmem:[%s12772_s2 + $0x1508] ss:$16 sps:$4 sm:$0xff]  }
 0x312   :  { %v9369_v7 = vld [vmem:[%s12772_s2 + $0x150c] ss:$16 sps:$4 sm:$0xff]  }
 0x313   :  { %6725 = vmatpush1.bf16.msra.mxu0 %v9298_v37  ;;  %v9372_v55 = vld [vmem:[%s12772_s2 + $0x172c] ss:$16 sps:$4 sm:$0xff]   ;;  %v9370_v37 = vld [vmem:[%s12772_s2 + $0x1728] ss:$16 sps:$4 sm:$0xff]  }
 0x314   :  { %6688 = vmatpush1.bf16.msra.mxu1 %v9301_v1  ;;  %6726 = vmatprep.subr.bf16.mxu0 %v9306_v20  ;;  %v9375_v11 = vld [vmem:[%s12772_s2 + $0x18ec] ss:$16 sps:$4 sm:$0xff]   ;;  %v9373_v1 = vld [vmem:[%s12772_s2 + $0x18e8] ss:$16 sps:$4 sm:$0xff]  }
 0x315   :  { %6689 = vmatprep.subr.bf16.mxu1 %v9309_v25  ;;  %v9378_v19 = vld [vmem:[%s12772_s2 + $0x170c] ss:$16 sps:$4 sm:$0xff]  }
 0x316   :  { %v9381_v20 = vld [vmem:[%s12772_s2 + $0x18cc] ss:$16 sps:$4 sm:$0xff]  }
 0x317   :  { %6727 = vmatpush1.bf16.msra.mxu0 %v9304_v35 }
 0x318   :  { %6690 = vmatpush1.bf16.msra.mxu1 %v9307_v36  ;;  %6728 = vmatprep.subr.bf16.mxu0 %v9312_v62  ;;  %v9376_v36 = vld [vmem:[%s12772_s2 + $0x1708] ss:$16 sps:$4 sm:$0xff]  }
 0x319   :  { %6691 = vmatprep.subr.bf16.mxu1 %v9315_v4  ;;  %v9379_v62 = vld [vmem:[%s12772_s2 + $0x18c8] ss:$16 sps:$4 sm:$0xff]  }
 0x31b   :  { %6729 = vmatpush1.bf16.msra.mxu0 %v9310_v30  ;;  %v9384_v30 = vld [vmem:[%s12772_s2 + $0x1aec] ss:$16 sps:$4 sm:$0xff]  }
 0x31c   :  { %6692 = vmatpush1.bf16.msra.mxu1 %v9313_v46  ;;  %6730 = vmatprep.subr.bf16.mxu0 %v9318_v22  ;;  %v9382_v22 = vld [vmem:[%s12772_s2 + $0x1ae8] ss:$16 sps:$4 sm:$0xff]  }
 0x31d   :  { %6693 = vmatprep.subr.bf16.mxu1 %v9321_v26  ;;  %v9385_v26 = vld [vmem:[%s12772_s2 + $0x18a8] ss:$16 sps:$4 sm:$0xff]  }
 0x31f   :  { %6731 = vmatpush1.bf16.msra.mxu0 %v9316_v16 }
 0x320   :  { %6694 = vmatpush1.bf16.msra.mxu1 %v9319_v32  ;;  %6732 = vmatprep.subr.bf16.mxu0 %v9324_v27 }
 0x321   :  { %6695 = vmatprep.subr.bf16.mxu1 %v9327_v31  ;;  %v9388_v31 = vld [vmem:[%s12772_s2 + $0x1ac8] ss:$16 sps:$4 sm:$0xff]  }
 0x323   :  { %6733 = vmatpush1.bf16.msra.mxu0 %v9322_v38  ;;  %v9391_v38 = vld [vmem:[%s12772_s2 + $0x1888] ss:$16 sps:$4 sm:$0xff]  }
 0x324   :  { %6696 = vmatpush2.bf16.msra.mxu1 %v9325_v3  ;;  %6734 = vmatprep.subr.bf16.mxu0 %v9330_v8  ;;  %v9396_v8 = vld [vmem:[%s12772_s2 + $0x1aac] ss:$16 sps:$4 sm:$0xff]  }
 0x325   :  { %6697 = vmatprep.subr.bf16.mxu1 %v9333_v42 }
 0x327   :  { %6735 = vmatpush1.bf16.msra.mxu0 %v9328_v53 }
 0x328   :  { %6698 = vmatpush2.bf16.msra.mxu1 %v9331_v58  ;;  %6736 = vmatprep.subr.bf16.mxu0 %v9336_v45  ;;  %v9394_v58 = vld [vmem:[%s12772_s2 + $0x1aa8] ss:$16 sps:$4 sm:$0xff]  }
 0x329   :  { %6699 = vmatprep.subr.bf16.mxu1 %v9339_v47  ;;  %v9397_v45 = vld [vmem:[%s12772_s2 + $0x1868] ss:$16 sps:$4 sm:$0xff]  }
 0x32b   :  { %6737 = vmatpush2.bf16.msra.mxu0 %v9334_v48  ;;  %v9402_v48 = vld [vmem:[%s12772_s2 + $0x1a8c] ss:$16 sps:$4 sm:$0xff]  }
 0x32c   :  { %6700 = vmatpush2.bf16.msra.mxu1 %v9337_v5  ;;  %6738 = vmatprep.subr.bf16.mxu0 %v9342_v39  ;;  %v12402_v5 = vld [vmem:[%s12771_s1] sm:$0x3]  ;;  %v9400_v39 = vld [vmem:[%s12772_s2 + $0x1a88] ss:$16 sps:$4 sm:$0xff]  }
 0x32d   :  { %6701 = vmatprep.subr.bf16.mxu1 %v9345_v17  ;;  %6956 = vperm.xlu0 %8116, %v12402_v5   ;;  %v9403_v17 = vld [vmem:[%s12772_s2 + $0x1848] ss:$16 sps:$4 sm:$0xff]  }
 0x32f   :  { %6739 = vmatpush2.bf16.msra.mxu0 %v9340_v0  ;;  %v9408_v0 = vld [vmem:[%s12772_s2 + $0x1a6c] ss:$16 sps:$4 sm:$0xff]  }
 0x330   :  { %6702 = vmatpush2.bf16.msra.mxu1 %v9343_v33  ;;  %6740 = vmatprep.subr.bf16.mxu0 %v9348_v2  ;;  %v9411_v33 = vld [vmem:[%s12772_s2 + $0x182c] ss:$16 sps:$4 sm:$0xff]   ;;  %v9406_v2 = vld [vmem:[%s12772_s2 + $0x1a68] ss:$16 sps:$4 sm:$0xff]  }
 0x331   :  { %6703 = vmatprep.subr.bf16.mxu1 %v9351_v15  ;;  %v9409_v15 = vld [vmem:[%s12772_s2 + $0x1828] ss:$16 sps:$4 sm:$0xff]  }
 0x333   :  { %6741 = vmatpush2.bf16.msra.mxu0 %v9346_v9  ;;  %v9414_v9 = vld [vmem:[%s12772_s2 + $0x1a4c] ss:$16 sps:$4 sm:$0xff]  }
 0x334   :  { %6704 = vmatpush2.bf16.msra.mxu1 %v9349_v54  ;;  %6742 = vmatprep.subr.bf16.mxu0 %v9354_v28  ;;  %v9417_v54 = vld [vmem:[%s12772_s2 + $0x180c] ss:$16 sps:$4 sm:$0xff]   ;;  %v9412_v28 = vld [vmem:[%s12772_s2 + $0x1a48] ss:$16 sps:$4 sm:$0xff]  }
 0x335   :  { %6705 = vmatprep.subr.bf16.mxu1 %v9357_v57  ;;  %v9415_v57 = vld [vmem:[%s12772_s2 + $0x1808] ss:$16 sps:$4 sm:$0xff]  }
 0x337   :  { %6743 = vmatpush2.bf16.msra.mxu0 %v9352_v52  ;;  %v9420_v52 = vld [vmem:[%s12772_s2 + $0x1a2c] ss:$16 sps:$4 sm:$0xff]  }
 0x338   :  { %6706 = vmatpush2.bf16.msra.mxu1 %v9355_v56  ;;  %6744 = vmatprep.subr.bf16.mxu0 %v9360_v60  ;;  %v9423_v56 = vld [vmem:[%s12772_s2 + $0x19ec] ss:$16 sps:$4 sm:$0xff]   ;;  %v9418_v60 = vld [vmem:[%s12772_s2 + $0x1a28] ss:$16 sps:$4 sm:$0xff]  }
 0x339   :  { %6707 = vmatprep.subr.bf16.mxu1 %v9363_v40  ;;  %v9421_v40 = vld [vmem:[%s12772_s2 + $0x19e8] ss:$16 sps:$4 sm:$0xff]  }
 0x33b   :  { %6745 = vmatpush2.bf16.msra.mxu0 %v9358_v61  ;;  %v9426_v61 = vld [vmem:[%s12772_s2 + $0x1a0c] ss:$16 sps:$4 sm:$0xff]  }
 0x33c   :  { %6708 = vmatpush2.bf16.msra.mxu1 %v9361_v24  ;;  %6746 = vmatprep.subr.bf16.mxu0 %v9366_v6  ;;  %v9429_v24 = vld [vmem:[%s12772_s2 + $0x19cc] ss:$16 sps:$4 sm:$0xff]   ;;  %v9424_v6 = vld [vmem:[%s12772_s2 + $0x1a08] ss:$16 sps:$4 sm:$0xff]  }
 0x33d   :  { %6709 = vmatprep.subr.bf16.mxu1 %v9369_v7  ;;  %v9427_v7 = vld [vmem:[%s12772_s2 + $0x19c8] ss:$16 sps:$4 sm:$0xff]  }
 0x33f   :  { %6747 = vmatpush2.bf16.msra.mxu0 %v9364_v49  ;;  %v9432_v49 = vld [vmem:[%s12772_s2 + $0x1bec] ss:$16 sps:$4 sm:$0xff]  }
 0x340   :  { %6710 = vmatpush2.bf16.msra.mxu1 %v9367_v44  ;;  %6748 = vmatprep.subr.bf16.mxu0 %v9372_v55  ;;  %v9435_v44 = vld [vmem:[%s12772_s2 + $0x19ac] ss:$16 sps:$4 sm:$0xff]   ;;  %v9430_v55 = vld [vmem:[%s12772_s2 + $0x1be8] ss:$16 sps:$4 sm:$0xff]  }
 0x341   :  { %6761 = vmatprep.subr.bf16.mxu1 %v9375_v11  ;;  %v9433_v11 = vld [vmem:[%s12772_s2 + $0x19a8] ss:$16 sps:$4 sm:$0xff]  }
 0x343   :  { %v6467_v25 = vpop.f32.mrf.mxu1  ;;  %6712 = vmatmul.mubr.bf16.vlgmr.msra.gmra.mxu1 %v10898_v14  ;;  %6749 = vmatpush2.bf16.msra.mxu0 %v9370_v37  ;;  %v9387_v14 = vld [vmem:[%s12772_s2 + $0x18ac] ss:$16 sps:$4 sm:$0xff]  }
 0x344   :  { %v6468_v35 = vadd.f32 %v6467_v25, %v12168_v63  ;;  %6762 = vmatpush1.bf16.msra.mxu1 %v9373_v1  ;;  %6750 = vmatprep.subr.bf16.mxu0 %v9378_v19  ;;  %v9438_v37 = vld [vmem:[%s12772_s2 + $0x1bcc] ss:$16 sps:$4 sm:$0xff]   ;;  %v9436_v19 = vld [vmem:[%s12772_s2 + $0x1bc8] ss:$16 sps:$4 sm:$0xff]  }
 0x345   :  { %v6469_v4 = vpop.f32.mrf.mxu1  ;;  %6763 = vmatprep.subr.bf16.mxu1 %v9381_v20  ;;  %6793 = vmatprep.mubr.bf16.mxu1 %v10916_v10  ;;  %v9393_v10 = vld [vmem:[%s12772_s2 + $0x188c] ss:$16 sps:$4 sm:$0xff]   ;;  %v9439_v20 = vld [vmem:[%s12772_s2 + $0x1988] ss:$16 sps:$4 sm:$0xff]  }
 0x346   :  { %v6470_v63 = vadd.f32 %v6469_v4, %v12182_v41  ;;  %v9390_v41 = vld [vmem:[%s12772_s2 + $0x1acc] ss:$16 sps:$4 sm:$0xff]  }
 0x347   :  { %v6471_v46 = vpop.f32.mrf.mxu1  ;;  %6751 = vmatpush2.bf16.msra.mxu0 %v9376_v36  ;;  %v9441_v1 = vld [vmem:[%s12772_s2 + $0x198c] ss:$16 sps:$4 sm:$0xff]   ;;  %v9442_v36 = vld [vmem:[%s12772_s2 + $0x1ba8] ss:$16 sps:$4 sm:$0xff]  }
 0x348   :  { %6764 = vmatpush1.bf16.msra.mxu1 %v9379_v62  ;;  %6802 = vmatprep.subr.bf16.mxu0 %v9384_v30  ;;  %v9444_v25 = vld [vmem:[%s12772_s2 + $0x1bac] ss:$16 sps:$4 sm:$0xff]   ;;  %v9445_v62 = vld [vmem:[%s12772_s2 + $0x1968] ss:$16 sps:$4 sm:$0xff]  }
 0x349   :  { %v6472_v16 = vpop.f32.mrf.mxu1  ;;  %6765 = vmatprep.subr.bf16.mxu1 %v9387_v14  ;;  %v9450_v4 = vld [vmem:[%s12772_s2 + $0x1b8c] ss:$16 sps:$4 sm:$0xff]   ;;  %v9448_v14 = vld [vmem:[%s12772_s2 + $0x1b88] ss:$16 sps:$4 sm:$0xff]  }
 0x34a   :  { %v6508_v32 = vpop.f32.mrf.mxu0  ;;  %6753 = vmatmul.mubr.bf16.vlgmr.msra.gmra.mxu0 %v10902_v18  ;;  %v9399_v18 = vld [vmem:[%s12772_s2 + $0x186c] ss:$16 sps:$4 sm:$0xff]   ;;  %v9457_v16 = vld [vmem:[%s12772_s2 + $0x1928] ss:$16 sps:$4 sm:$0xff]  }
 0x34b   :  { %v12370_v27 = vadd.f32 %v6508_v32, %v6468_v35  ;;  %6803 = vmatpush1.bf16.msra.mxu0 %v9382_v22  ;;  %6834 = vmatprep.mubr.bf16.mxu0 %v10918_v21  ;;  %v9405_v21 = vld [vmem:[%s12772_s2 + $0x184c] ss:$16 sps:$4 sm:$0xff]   ;;  %v9460_v32 = vld [vmem:[%s12772_s2 + $0x1b48] ss:$16 sps:$4 sm:$0xff]  }
 0x34c   :  { %6766 = vmatpush1.bf16.msra.mxu1 %v9385_v26  ;;  %v6510_v3 = vpop.f32.mrf.mxu0  ;;  %6804 = vmatprep.subr.bf16.mxu0 %v9390_v41  ;;  %v9447_v35 = vld [vmem:[%s12772_s2 + $0x196c] ss:$16 sps:$4 sm:$0xff]   ;;  %v9454_v26 = vld [vmem:[%s12772_s2 + $0x1b68] ss:$16 sps:$4 sm:$0xff]  }
 0x34d   :  { %6767 = vmatprep.subr.bf16.mxu1 %v9393_v10  ;;  %v12384_v42 = vadd.f32 %v6510_v3, %v6470_v63  ;;  %v9453_v30 = vld [vmem:[%s12772_s2 + $0x194c] ss:$16 sps:$4 sm:$0xff]   ;;  %v9451_v63 = vld [vmem:[%s12772_s2 + $0x1948] ss:$16 sps:$4 sm:$0xff]  }
 0x34e   :  { %v6512_v53 = vpop.f32.mrf.mxu0  ;;  %v9456_v46 = vld [vmem:[%s12772_s2 + $0x1b6c] ss:$16 sps:$4 sm:$0xff]  }
 0x34f   :  { %6805 = vmatpush1.bf16.msra.mxu0 %v9388_v31  ;;  %v9459_v22 = vld [vmem:[%s12772_s2 + $0x192c] ss:$16 sps:$4 sm:$0xff]   ;;  %v9463_v31 = vld [vmem:[%s12772_s2 + $0x1908] ss:$16 sps:$4 sm:$0xff]  }
 0x350   :  { %6768 = vmatpush1.bf16.msra.mxu1 %v9391_v38  ;;  %v6513_v47 = vpop.f32.mrf.mxu0  ;;  %6806 = vmatprep.subr.bf16.mxu0 %v9396_v8  ;;  %v9462_v41 = vld [vmem:[%s12772_s2 + $0x1b4c] ss:$16 sps:$4 sm:$0xff]   ;;  %v9466_v8 = vld [vmem:[%s12772_s2 + $0x1b28] ss:$16 sps:$4 sm:$0xff]  }
 0x351   :  { %6769 = vmatprep.subr.bf16.mxu1 %v9399_v18  ;;  %v9465_v10 = vld [vmem:[%s12772_s2 + $0x190c] ss:$16 sps:$4 sm:$0xff]   ;;  %v9469_v18 = vld [vmem:[%s12772_s2 + $0x1c08] ss:$16 sps:$4 sm:$0xff]  }
 0x352   :  { %v9468_v38 = vld [vmem:[%s12772_s2 + $0x1b2c] ss:$16 sps:$4 sm:$0xff]   ;;  %v9472_v47 = vld [vmem:[%s12772_s2 + $0x1b08] ss:$16 sps:$4 sm:$0xff]  }
 0x353   :  { %6807 = vmatpush1.bf16.msra.mxu0 %v9394_v58  ;;  %v9471_v3 = vld [vmem:[%s12772_s2 + $0x1c0c] ss:$16 sps:$4 sm:$0xff]  }
 0x354   :  { %6770 = vmatpush1.bf16.msra.mxu1 %v9397_v45  ;;  %6808 = vmatprep.subr.bf16.mxu0 %v9402_v48  ;;  %v9474_v53 = vld [vmem:[%s12772_s2 + $0x1b0c] ss:$16 sps:$4 sm:$0xff]  }
 0x355   :  { %6771 = vmatprep.subr.bf16.mxu1 %v9405_v21 }
 0x357   :  { %6809 = vmatpush1.bf16.msra.mxu0 %v9400_v39  ;;  %v6919_v39 = vld [vmem:[%s12774_s4 + $0xf8] sm:$0xff] }
 0x358   :  { %6772 = vmatpush1.bf16.msra.mxu1 %v9403_v17  ;;  %6810 = vmatprep.subr.bf16.mxu0 %v9408_v0  ;;  %v6885_v0 = vmax.f32 %v11775_v50, 0.0  ;;  %v6917_v50 = vld [vmem:[%s12774_s4 + $0xe8] sm:$0xff] }
 0x359   :  { %6773 = vmatprep.subr.bf16.mxu1 %v9411_v33 }
 0x35b   :  { %6811 = vmatpush1.bf16.msra.mxu0 %v9406_v2 }
 0x35c   :  { %6774 = vmatpush1.bf16.msra.mxu1 %v9409_v15  ;;  %6812 = vmatprep.subr.bf16.mxu0 %v9414_v9 }
 0x35d   :  { %6775 = vmatprep.subr.bf16.mxu1 %v9417_v54 }
 0x35f   :  { %6813 = vmatpush1.bf16.msra.mxu0 %v9412_v28  ;;  %v6900_v28 = vld [vmem:[%s12774_s4 + $0x60] sm:$0xff] }
 0x360   :  { %6776 = vmatpush1.bf16.msra.mxu1 %v9415_v57  ;;  %6814 = vmatprep.subr.bf16.mxu0 %v9420_v52  ;;  %v6915_v57 = vld [vmem:[%s12774_s4 + $0xd8] sm:$0xff] }
 0x361   :  { %6777 = vmatprep.subr.bf16.mxu1 %v9423_v56  ;;  %v6899_v52 = vld [vmem:[%s12774_s4 + $0x58] sm:$0xff] }
 0x363   :  { %6815 = vmatpush1.bf16.msra.mxu0 %v9418_v60  ;;  %v6951_v60 = vld [vmem:[%s12774_s4 + $0x1f8] sm:$0xff] }
 0x364   :  { %6778 = vmatpush2.bf16.msra.mxu1 %v9421_v40  ;;  %6816 = vmatprep.subr.bf16.mxu0 %v9426_v61  ;;  %v6935_v40 = vld [vmem:[%s12774_s4 + $0x178] sm:$0xff]  ;;  %v6950_v61 = vld [vmem:[%s12774_s4 + $0x1f0] sm:$0xff] }
 0x365   :  { %6779 = vmatprep.subr.bf16.mxu1 %v9429_v24  ;;  %v6914_v24 = vld [vmem:[%s12774_s4 + $0xd0] sm:$0xff] }
 0x367   :  { %6817 = vmatpush1.bf16.msra.mxu0 %v9424_v6  ;;  %v6934_v6 = vld [vmem:[%s12774_s4 + $0x170] sm:$0xff] }
 0x368   :  { %6780 = vmatpush2.bf16.msra.mxu1 %v9427_v7  ;;  %6818 = vmatprep.subr.bf16.mxu0 %v9432_v49  ;;  %v6898_v7 = vld [vmem:[%s12774_s4 + $0x50] sm:$0xff]  ;;  %v6949_v49 = vld [vmem:[%s12774_s4 + $0x1e8] sm:$0xff] }
 0x369   :  { %6781 = vmatprep.subr.bf16.mxu1 %v9435_v44  ;;  %v6913_v44 = vld [vmem:[%s12774_s4 + $0xc8] sm:$0xff] }
 0x36b   :  { %6819 = vmatpush2.bf16.msra.mxu0 %v9430_v55  ;;  %v6933_v55 = vld [vmem:[%s12774_s4 + $0x168] sm:$0xff] }
 0x36c   :  { %6782 = vmatpush2.bf16.msra.mxu1 %v9433_v11  ;;  %6820 = vmatprep.subr.bf16.mxu0 %v9438_v37  ;;  %v6897_v11 = vld [vmem:[%s12774_s4 + $0x48] sm:$0xff]  ;;  %v6948_v37 = vld [vmem:[%s12774_s4 + $0x1e0] sm:$0xff] }
 0x36d   :  { %6783 = vmatprep.subr.bf16.mxu1 %v9441_v1  ;;  %v6912_v1 = vld [vmem:[%s12774_s4 + $0xc0] sm:$0xff] }
 0x36f   :  { %6821 = vmatpush2.bf16.msra.mxu0 %v9436_v19  ;;  %v6932_v19 = vld [vmem:[%s12774_s4 + $0x160] sm:$0xff] }
 0x370   :  { %6784 = vmatpush2.bf16.msra.mxu1 %v9439_v20  ;;  %6822 = vmatprep.subr.bf16.mxu0 %v9444_v25  ;;  %v6896_v20 = vld [vmem:[%s12774_s4 + $0x40] sm:$0xff]  ;;  %v6947_v25 = vld [vmem:[%s12774_s4 + $0x1d8] sm:$0xff] }
 0x371   :  { %6785 = vmatprep.subr.bf16.mxu1 %v9447_v35  ;;  %v6911_v35 = vld [vmem:[%s12774_s4 + $0xb8] sm:$0xff] }
 0x373   :  { %6823 = vmatpush2.bf16.msra.mxu0 %v9442_v36  ;;  %v6931_v36 = vld [vmem:[%s12774_s4 + $0x158] sm:$0xff] }
 0x374   :  { %6786 = vmatpush2.bf16.msra.mxu1 %v9445_v62  ;;  %6824 = vmatprep.subr.bf16.mxu0 %v9450_v4  ;;  %v6895_v62 = vld [vmem:[%s12774_s4 + $0x38] sm:$0xff]  ;;  %v6946_v4 = vld [vmem:[%s12774_s4 + $0x1d0] sm:$0xff] }
 0x375   :  { %6787 = vmatprep.subr.bf16.mxu1 %v9453_v30  ;;  %v6910_v30 = vld [vmem:[%s12774_s4 + $0xb0] sm:$0xff] }
 0x377   :  { %6825 = vmatpush2.bf16.msra.mxu0 %v9448_v14  ;;  %v6930_v14 = vld [vmem:[%s12774_s4 + $0x150] sm:$0xff] }
 0x378   :  { %6788 = vmatpush2.bf16.msra.mxu1 %v9451_v63  ;;  %6826 = vmatprep.subr.bf16.mxu0 %v9456_v46  ;;  %v6894_v63 = vld [vmem:[%s12774_s4 + $0x30] sm:$0xff]  ;;  %v6945_v46 = vld [vmem:[%s12774_s4 + $0x1c8] sm:$0xff] }
 0x379   :  { %6789 = vmatprep.subr.bf16.mxu1 %v9459_v22  ;;  %v6909_v22 = vld [vmem:[%s12774_s4 + $0xa8] sm:$0xff] }
 0x37b   :  { %6827 = vmatpush2.bf16.msra.mxu0 %v9454_v26  ;;  %v6929_v26 = vld [vmem:[%s12774_s4 + $0x148] sm:$0xff] }
 0x37c   :  { %6790 = vmatpush2.bf16.msra.mxu1 %v9457_v16  ;;  %6828 = vmatprep.subr.bf16.mxu0 %v9462_v41  ;;  %v6893_v16 = vld [vmem:[%s12774_s4 + $0x28] sm:$0xff]  ;;  %v6944_v41 = vld [vmem:[%s12774_s4 + $0x1c0] sm:$0xff] }
 0x37d   :  { %6791 = vmatprep.subr.bf16.mxu1 %v9465_v10  ;;  %v6908_v10 = vld [vmem:[%s12774_s4 + $0xa0] sm:$0xff] }
 0x37f   :  { %6829 = vmatpush2.bf16.msra.mxu0 %v9460_v32  ;;  %v6892_v32 = vld [vmem:[%s12774_s4 + $0x20] sm:$0xff] }
 0x380   :  { %6792 = vmatpush2.bf16.msra.mxu1 %v9463_v31  ;;  %6830 = vmatprep.subr.bf16.mxu0 %v9468_v38  ;;  %v6907_v31 = vld [vmem:[%s12774_s4 + $0x98] sm:$0xff] }
 0x381   :  { %6857 = vmatprep.subr.bf16.mxu1 %v9471_v3  ;;  %v6891_v38 = vld [vmem:[%s12774_s4 + $0x18] sm:$0xff]  ;;  %v6906_v3 = vld [vmem:[%s12774_s4 + $0x90] sm:$0xff] }
 0x383   :  { %v6549_v58 = vpop.f32.mrf.mxu1  ;;  %6794 = vmatmul.mubr.bf16.vlgmr.msra.gmra.mxu1 %v11109_v12  ;;  %6831 = vmatpush2.bf16.msra.mxu0 %v9466_v8  ;;  %v6890_v8 = vld [vmem:[%s12774_s4 + $0x10] sm:$0xff] }
 0x384   :  { %v6550_v45 = vadd.f32 %v6549_v58, %v12370_v27  ;;  %6858 = vmatpush1.bf16.msra.mxu1 %v9469_v18  ;;  %6832 = vmatprep.subr.bf16.mxu0 %v9474_v53  ;;  %v6903_v27 = vld [vmem:[%s12774_s4 + $0x78] sm:$0xff]  ;;  %v6905_v18 = vld [vmem:[%s12774_s4 + $0x88] sm:$0xff]  ;;  %v6904_v58 = vld [vmem:[%s12774_s4 + $0x80] sm:$0xff] }
 0x385   :  { %v6551_v48 = vpop.f32.mrf.mxu1  ;;  %6875 = vmatprep.mubr.bf16.mxu1 %v9499_v23  ;;  %v6918_v23 = vld [vmem:[%s12774_s4 + $0xf0] sm:$0xff]  ;;  %8077 = vmatprep.subr.mxu1 %v6951_v60  ;;  %v6889_v53 = vld [vmem:[%s12774_s4 + $0x8] sm:$0xff] }
 0x386   :  { %v6552_v21 = vadd.f32 %v6551_v48, %v12384_v42  ;;  %v6902_v42 = vld [vmem:[%s12774_s4 + $0x70] sm:$0xff] }
 0x387   :  { %v6553_v17 = vpop.f32.mrf.mxu1  ;;  %6833 = vmatpush2.bf16.msra.mxu0 %v9472_v47  ;;  %v6884_v47 = vmax.f32 %v11761_v51, 0.0  ;;  %v6927_v51 = vld [vmem:[%s12774_s4 + $0x138] sm:$0xff] }
 0x388   :  { %8042 = vmatprep.subr.mxu0 %v6919_v39  ;;  %v6943_v17 = vld [vmem:[%s12774_s4 + $0x1b8] sm:$0xff] }
 0x389   :  { %v6554_v12 = vpop.f32.mrf.mxu1 }
 0x38a   :  { %v6590_v33 = vpop.f32.mrf.mxu0  ;;  %6835 = vmatmul.mubr.bf16.vlgmr.msra.gmra.mxu0 %v11113_v59  ;;  %v6901_v59 = vld [vmem:[%s12774_s4 + $0x68] sm:$0xff] }
 0x38b   :  { %8040 = vmatmul.mubr.msk.bf16.vlgmr.msra.gmra.mxu1 %vm5650_vm0, %v11147_v13  ;;  %v12569_v2 = vadd.f32 %v6590_v33, %v6550_v45  ;;  %8043 = vmatpush3.msra.mxu0 %v6903_v27  ;;  %v6916_v13 = vld [vmem:[%s12774_s4 + $0xe0] sm:$0xff]  ;;  %v6926_v33 = vld [vmem:[%s12774_s4 + $0x130] sm:$0xff] }
 0x38c   :  { %7028 = vmatprep.mubr.f32.mxu0 %v6885_v0  ;;  %v6592_v15 = vpop.f32.mrf.mxu0  ;;  %8044 = vmatprep.subr.mxu0 %v6918_v23  ;;  %v6888_v45 = vld [vmem:[%s12774_s4] sm:$0xff]  ;;  %v6942_v0 = vld [vmem:[%s12774_s4 + $0x1b0] sm:$0xff] }
 0x38d   :  { %v12577_v9 = vadd.f32 %v6592_v15, %v6552_v21  ;;  %8045 = vmatpush3.msra.mxu0 %v6902_v42  ;;  %8078 = vmatpush3.msra.mxu1 %v6935_v40  ;;  %v6928_v21 = vld [vmem:[%s12774_s4 + $0x140] sm:$0xff]  ;;  %v6941_v42 = vld [vmem:[%s12774_s4 + $0x1a8] sm:$0xff]  ;;  %v6922_v40 = vld [vmem:[%s12774_s4 + $0x110] sm:$0xff] }
 0x38e   :  { %v6594_v54 = vpop.f32.mrf.mxu0  ;;  %8046 = vmatprep.subr.mxu0 %v6917_v50  ;;  %8079 = vmatprep.subr.mxu1 %v6950_v61  ;;  %v6925_v50 = vld [vmem:[%s12774_s4 + $0x128] sm:$0xff]  ;;  %v6940_v15 = vld [vmem:[%s12774_s4 + $0x1a0] sm:$0xff] }
 0x38f   :  { %8047 = vmatpush3.msra.mxu0 %v6901_v59  ;;  %8080 = vmatpush3.msra.mxu1 %v6934_v6  ;;  %v6939_v54 = vld [vmem:[%s12774_s4 + $0x198] sm:$0xff]  ;;  %v6937_v61 = vld [vmem:[%s12774_s4 + $0x188] sm:$0xff] }
 0x390   :  { %v6595_v56 = vpop.f32.mrf.mxu0  ;;  %8048 = vmatprep.subr.mxu0 %v6916_v13  ;;  %8081 = vmatprep.subr.mxu1 %v6949_v49  ;;  %v6921_v6 = vld [vmem:[%s12774_s4 + $0x108] sm:$0xff]  ;;  %v6920_v49 = vld [vmem:[%s12774_s4 + $0x100] sm:$0xff] }
 0x391   :  { %8049 = vmatpush3.msra.mxu0 %v6900_v28  ;;  %8082 = vmatpush3.msra.mxu1 %v6933_v55  ;;  %v6938_v56 = vld [vmem:[%s12774_s4 + $0x190] sm:$0xff] }
 0x392   :  { %8050 = vmatprep.subr.mxu0 %v6915_v57  ;;  %8083 = vmatprep.subr.mxu1 %v6948_v37  ;;  %v6923_v57 = vld [vmem:[%s12774_s4 + $0x118] sm:$0xff] }
 0x393   :  { %8051 = vmatpush3.msra.mxu0 %v6899_v52  ;;  %8084 = vmatpush3.msra.mxu1 %v6932_v19 }
 0x394   :  { %8052 = vmatprep.subr.mxu0 %v6914_v24  ;;  %8085 = vmatprep.subr.mxu1 %v6947_v25 }
 0x395   :  { %8053 = vmatpush3.msra.mxu0 %v6898_v7  ;;  %8086 = vmatpush3.msra.mxu1 %v6931_v36  ;;  %v6936_v7 = vld [vmem:[%s12774_s4 + $0x180] sm:$0xff] }
 0x396   :  { %8054 = vmatprep.subr.mxu0 %v6913_v44  ;;  %8087 = vmatprep.subr.mxu1 %v6946_v4  ;;  %v9500_v44 = vmov 1  }
 0x397   :  { %8055 = vmatpush3.msra.mxu0 %v6897_v11  ;;  %8088 = vmatpush3.msra.mxu1 %v6930_v14 }
 0x398   :  { %8056 = vmatprep.subr.mxu0 %v6912_v1  ;;  %8089 = vmatprep.subr.mxu1 %v6945_v46 }
 0x399   :  { %8057 = vmatpush3.msra.mxu0 %v6896_v20  ;;  %8090 = vmatpush3.msra.mxu1 %v6929_v26 }
 0x39a   :  { %8058 = vmatprep.subr.mxu0 %v6911_v35  ;;  %8091 = vmatprep.subr.mxu1 %v6944_v41 }
 0x39b   :  { %8059 = vmatpush3.msra.mxu0 %v6895_v62  ;;  %8092 = vmatpush3.msra.mxu1 %v6928_v21 }
 0x39c   :  { %8060 = vmatprep.subr.mxu0 %v6910_v30  ;;  %8093 = vmatprep.subr.mxu1 %v6943_v17 }
 0x39d   :  { %8061 = vmatpush3.msra.mxu0 %v6894_v63  ;;  %8094 = vmatpush3.msra.mxu1 %v6927_v51 }
 0x39e   :  { %8062 = vmatprep.subr.mxu0 %v6909_v22  ;;  %8095 = vmatprep.subr.mxu1 %v6942_v0 }
 0x39f   :  { %8063 = vmatpush3.msra.mxu0 %v6893_v16  ;;  %8096 = vmatpush3.msra.mxu1 %v6926_v33 }
 0x3a0   :  { %8064 = vmatprep.subr.mxu0 %v6908_v10  ;;  %8097 = vmatprep.subr.mxu1 %v6941_v42 }
 0x3a1   :  { %8065 = vmatpush3.msra.mxu0 %v6892_v32  ;;  %8098 = vmatpush3.msra.mxu1 %v6925_v50 }
 0x3a2   :  { %8066 = vmatprep.subr.mxu0 %v6907_v31  ;;  %8099 = vmatprep.subr.mxu1 %v6940_v15 }
 0x3a3   :  { %8067 = vmatpush3.msra.mxu0 %v6891_v38  ;;  %8117 = vset.pattern.permute.xlu0 %v9500_v44 }
 0x3a4   :  { %8068 = vmatprep.subr.mxu0 %v6906_v3  ;;  %7105 = vperm.xlu0 %8117, %v12402_v5  }
 0x3a5   :  { %8069 = vmatpush3.msra.mxu0 %v6890_v8 }
 0x3a6   :  { %8070 = vmatprep.subr.mxu0 %v6905_v18 }
 0x3a7   :  { %8071 = vmatpush3.msra.mxu0 %v6889_v53 }
 0x3a8   :  { %8072 = vmatprep.subr.mxu0 %v6904_v58 }
 0x3a9   :  { %8073 = vmatpush3.msra.mxu0 %v6888_v45 }
 0x3aa   :  { %7029 = vmatmul.mubr.f32.vlgmr.msra.gmra.mxu0 %v6884_v47 }
 0x3c3   :  { %v6631_v48 = vpop.f32.mrf.mxu1 }
 0x3c4   :  { %v6632_v39 = vadd.f32 %v6631_v48, %v12569_v2 }
 0x3c5   :  { %v6633_v12 = vpop.f32.mrf.mxu1 }
 0x3c6   :  { %v6634_v27 = vadd.f32 %v6633_v12, %v12577_v9  ;;  %v6924_v9 = vld [vmem:[%s12774_s4 + $0x120] sm:$0xff]  ;;  %v6957_v12 = vpop.permute.xlu0 %6956 }
 0x3c7   :  { %v6635_v23 = vpop.f32.mrf.mxu1  ;;  %8100 = vmatpush3.msra.mxu1 %v6924_v9 }
 0x3c8   :  { %8101 = vmatprep.subr.mxu1 %v6939_v54 }
 0x3c9   :  { %v6636_v2 = vpop.f32.mrf.mxu1  ;;  %8102 = vmatpush3.msra.mxu1 %v6923_v57 }
 0x3ca   :  { %v6672_v59 = vpop.f32.mrf.mxu0  ;;  %8103 = vmatprep.subr.mxu1 %v6938_v56 }
 0x3cb   :  { %v6673_v13 = vadd.f32 %v6672_v59, %v6632_v39  ;;  %8104 = vmatpush3.msra.mxu1 %v6922_v40  ;;  %v6953_v39 = vld [vmem:[%s12775_s5] sm:$0x3]  ;;  %s9501_s5 = smov [#allocation2]  }
 0x3cc   :  { %v6674_v28 = vpop.f32.mrf.mxu0  ;;  %8105 = vmatprep.subr.mxu1 %v6937_v61  ;;  %v6962_v17 = vrot.slane %v6953_v39, %v1132_v29  ;;  %v7111_v23 = vrot.slane %v6953_v39, %v1136_v34  ;;  %s7130_s15 = sshll.u32 %s9501_s5, 4  ;;  %s7131_s15 = int_to_ptr.vmem [resolvable:$true] %s7130_s15 }
 0x3cd   :  { %v6675_v52 = vadd.f32 %v6674_v28, %v6634_v27  ;;  %8106 = vmatpush3.msra.mxu1 %v6921_v6  ;;  %s9476_s16 = scalar_lea.vmem %s7131_s15, 32  ;;  %p9481_p1 = scmp.lt.s32.totalorder %s7131_s15, %s7131_s15 }
 0x3ce   :  { %v6676_v60 = vpop.f32.mrf.mxu0  ;;  %8107 = vmatprep.subr.mxu1 %v6936_v7  ;;  %v6963_v27 = vmul.f32 %v6962_v17, %v6957_v12  ;;  %p9477_p0 = scmp.ne.s32.totalorder %s7131_s15, %s9476_s16  ;;  %p9482_p2 = scmp.lt.s32.totalorder %s9476_s16, %s9476_s16 }
 0x3cf   :  { %8108 = vmatpush3.msra.mxu1 %v6920_v49 }
 0x3d0   :  { %v6677_v24 = vpop.f32.mrf.mxu0  ;;  %p9483_p3 = por %p9482_p2, %p9481_p1 }
 0x3d2   :  { %p9484_p4 = pnand %p9483_p3, %p9477_p0 }
 0x403   :  { %v6713_v55 = vpop.f32.mrf.mxu1 }
 0x404   :  { %v6714_v11 = vadd.f32 %v6713_v55, %v6673_v13  ;;  %v8041_v13 = vld [vmem:[%s12776_s6] ss:$0 sm:$0xff] }
 0x405   :  { %v6715_v37 = vpop.f32.mrf.mxu1 }
 0x406   :  { %v6716_v1 = vadd.f32 %v6715_v37, %v6675_v52 }
 0x407   :  { %v6717_v19 = vpop.f32.mrf.mxu1 }
 0x409   :  { %v6718_v20 = vpop.f32.mrf.mxu1 }
 0x40a   :  { %v6754_v25 = vpop.f32.mrf.mxu0 }
 0x40b   :  { %v6755_v63 = vadd.f32 %v6754_v25, %v6714_v11 }
 0x40c   :  { %v6756_v35 = vpop.f32.mrf.mxu0 }
 0x40d   :  { %v6757_v22 = vadd.f32 %v6756_v35, %v6716_v1 }
 0x40e   :  { %v6758_v36 = vpop.f32.mrf.mxu0 }
 0x410   :  { %v6759_v62 = vpop.f32.mrf.mxu0 }
 0x41f   :  { %v7106_v42 = vpop.permute.xlu0 %7105 }
 0x420   :  { %v7112_v59 = vmul.f32 %v7111_v23, %v7106_v42 }
 0x443   :  { %v6795_v4 = vpop.f32.mrf.mxu1 }
 0x444   :  { %v6796_v26 = vadd.f32 %v6795_v4, %v6755_v63 }
 0x445   :  { %v6797_v30 = vpop.f32.mrf.mxu1 }
 0x446   :  { %v6798_v5 = vadd.f32 %v6797_v30, %v6757_v22 }
 0x447   :  { %v6799_v14 = vpop.f32.mrf.mxu1 }
 0x449   :  { %v6800_v46 = vpop.f32.mrf.mxu1 }
 0x44a   :  { %v6836_v16 = vpop.f32.mrf.mxu0 }
 0x44b   :  { %v6877_v41 = vpop.f32.mrf.mxu1  ;;  %v6837_v10 = vadd.f32 %v6836_v16, %v6796_v26 }
 0x44c   :  { %v6838_v32 = vpop.f32.mrf.mxu0 }
 0x44d   :  { %v6879_v31 = vpop.f32.mrf.mxu1  ;;  %v6839_v38 = vadd.f32 %v6838_v32, %v6798_v5  ;;  %v6878_v3 = vadd.f32 %v6877_v41, %v6837_v10 }
 0x44e   :  { %v6840_v8 = vpop.f32.mrf.mxu0 }
 0x44f   :  { %v6881_v18 = vpop.f32.mrf.mxu1  ;;  %v6880_v53 = vadd.f32 %v6879_v31, %v6839_v38  ;;  %v6886_v48 = vmax.f32 %v6878_v3, 0.0 }
 0x450   :  { %v6841_v58 = vpop.f32.mrf.mxu0 }
 0x451   :  { %v6882_v45 = vpop.f32.mrf.mxu1  ;;  %v6887_v47 = vmax.f32 %v6880_v53, 0.0 }
 0x453   :  { %7098 = vmatprep.mubr.f32.mxu1 %v6887_v47 }
 0x454   :  { %7099 = vmatmul.mubr.f32.vlgmr.msra.gmra.mxu1 %v6886_v48 }
 0x46a   :  { %v8074_v21 = vpop.f32.mrf.mxu0 }
 0x46c   :  { %v8075_v51 = vpop.f32.mrf.mxu0 }
 0x46d   :  { %v8076_v0 = vadd.f32 %v8075_v51, %v8074_v21 }
 0x46f   :  { %v7031_v50 = vadd.f32 %v8076_v0, %v6963_v27 }
 0x514   :  { %v8109_v33 = vpop.f32.mrf.mxu1 }
 0x516   :  { %v8110_v2 = vpop.f32.mrf.mxu1 }
 0x517   :  { %v8111_v15 = vadd.f32 %v8110_v2, %v8109_v33 }
 0x519   :  { %v7101_v9 = vadd.f32 %v8111_v15, %v7031_v50 }
 0x51b   :  { %v7113_v29 = vadd.f32 %v7112_v59, %v7101_v9 }
 0x51d   :  { %v7121_v54 = vadd.f32 %v8041_v13, %v7113_v29 }
 0x51f   :  { %7123 = vst.msk [vmem:[#allocation2] sm:$0x3] %vm7122_vm1, %v7121_v54 }
 0x520   :  { %9487 = shalt.err (!%p9484_p4)
}
 0x521   :  { %7133 = dma.vmem_to_hbm [thread:$0]  %s7131_s15, 32, %s12777_s7, [#allocation3]  }
 0x522   :  { %9496 = dma.done.wait [#allocation3], 32  }
 0x523   :  { %9497 = vsyncadd [#allocation3], 4294967264 }
 0x524   :  { %7137 = vsyncpa [#allocation3], 1 }

</bundles_post_ra>
